<compile_context>
chip_gen: v5e
topology: v5e:2x2
jax: 0.10.0
libtpu: 0.0.40
codegen_flags: <defaults>
</compile_context>

<pallas_src>
import functools

import jax
import jax.numpy as jnp
from jax.experimental import pallas as pl
from jax.experimental.pallas import tpu as pltpu


_LAYERS = (("e1", 1, 32), ("e2", 32, 64), ("e3", 64, 128),
           ("d1", 128, 64), ("d2", 64, 32), ("d3", 32, 1))


# ----------------------------------------------------------------------------
# In-kernel building blocks (pure jnp on VMEM-resident values)
# ----------------------------------------------------------------------------
def _matmul_bias_act(patches, w_ref, b_ref, act):
    """(M, K) @ (K, Cout) + bias + activation; returns (M, Cout) f32."""
    y = jnp.dot(patches, w_ref[...], preferred_element_type=jnp.float32)
    y = y + b_ref[...]                                    # (1, Cout) broadcast
    if act == "relu":
        return jnp.maximum(y, 0.0)
    return 1.0 / (1.0 + jnp.exp(-y))                      # sigmoid (EUP)


def _conv3x3_flat(x, w_ref, b_ref, H, W, Cin, Cout, act):
    """3x3 'same' conv + bias + activation via ONE im2col MXU matmul.

    x : (H, W, Cin) VMEM-resident value, channels on lanes.
    Returns the flat (H*W, Cout) result (channels on lanes).
    """
    zr = jnp.zeros((1, W, Cin), x.dtype)
    xp = jnp.concatenate([zr, x, zr], axis=0)             # (H+2, W, Cin)
    zc = jnp.zeros((H + 2, 1, Cin), x.dtype)
    xp = jnp.concatenate([zc, xp, zc], axis=1)            # (H+2, W+2, Cin)
    cols = [xp[ky:ky + H, kx:kx + W, :] for ky in range(3) for kx in range(3)]
    patches = jnp.concatenate(cols, axis=-1).reshape(H * W, 9 * Cin)
    return _matmul_bias_act(patches, w_ref, b_ref, act)   # (H*W, Cout)


def _conv3x3(x, w_ref, b_ref, H, W, Cin, Cout, act):
    return _conv3x3_flat(x, w_ref, b_ref, H, W, Cin, Cout, act).reshape(H, W, Cout)


def _maxpool2(x, H, W, C):
    """2x2 max pool, stride 2, on a (H, W, C) value."""
    a = x.reshape(H // 2, 2, W, C)
    xh = jnp.maximum(a[:, 0], a[:, 1])                    # (H/2, W, C)
    b = xh.reshape(H // 2, W // 2, 2, C)
    return jnp.maximum(b[:, :, 0, :], b[:, :, 1, :])      # (H/2, W/2, C)


def _upsample2(x, H, W, C):
    """Nearest-neighbor 2x upsample on a (H, W, C) value."""
    x = jnp.broadcast_to(x[:, None, :, :], (H, 2, W, C)).reshape(2 * H, W, C)
    x = jnp.broadcast_to(x[:, :, None, :], (2 * H, W, 2, C)).reshape(2 * H, 2 * W, C)
    return x


# ----------------------------------------------------------------------------
# Fused forward kernel: one batch element per grid step
# ----------------------------------------------------------------------------
def fused_autoencoder_kernel(p1_ref,
                             w1, b1, w2, b2, w3, b3,
                             w4, b4, w5, b5, w6, b6,
                             o_ref, *, H, W):
    # ---- encoder ----
    p1 = p1_ref[0]                                                    # (H*W, 9)
    a1 = _matmul_bias_act(p1, w1, b1, "relu").reshape(H, W, 32)       # (H, W, 32)
    s1 = _maxpool2(a1, H, W, 32)                                      # (H/2, W/2, 32)
    a2 = _conv3x3(s1, w2, b2, H // 2, W // 2, 32, 64, "relu")         # (H/2, W/2, 64)
    s2 = _maxpool2(a2, H // 2, W // 2, 64)                            # (H/4, W/4, 64)
    a3 = _conv3x3(s2, w3, b3, H // 4, W // 4, 64, 128, "relu")        # (H/4, W/4, 128)
    # ---- decoder ----
    d1 = _conv3x3(a3, w4, b4, H // 4, W // 4, 128, 64, "relu")        # (H/4, W/4, 64)
    u1 = _upsample2(d1, H // 4, W // 4, 64)                           # (H/2, W/2, 64)
    d2 = _conv3x3(u1, w5, b5, H // 2, W // 2, 64, 32, "relu")         # (H/2, W/2, 32)
    u2 = _upsample2(d2, H // 2, W // 2, 32)                           # (H, W, 32)
    d3 = _conv3x3_flat(u2, w6, b6, H, W, 32, 1, "sigmoid")            # (H*W, 1)
    o_ref[0] = d3.astype(o_ref.dtype)


# ----------------------------------------------------------------------------
# Wrapper: NCHW in / NCHW out, single pallas_call, grid over batch only
# ----------------------------------------------------------------------------
def dyn_autoencoder_forward(x_nchw, params):
    N, C, H, W = x_nchw.shape
    assert C == 1 and H % 4 == 0 and W % 4 == 0

    # First-layer im2col is a tiny one-time XLA op in the wrapper: it removes
    # the lane-width-1 padded-input layout from HBM and leaves conv-1 as a
    # single dense (H*W, 9) @ (9, 32) matmul in the kernel.
    xpad = jnp.pad(x_nchw[:, 0], ((0, 0), (1, 1), (1, 1)))            # (N, H+2, W+2)
    cols = [xpad[:, ky:ky + H, kx:kx + W]
            for ky in range(3) for kx in range(3)]
    patches1 = jnp.stack(cols, axis=-1).reshape(N, H * W, 9)          # (N, H*W, 9)

    flat_args = [patches1]
    in_specs = [pl.BlockSpec((1, H * W, 9), lambda n: (n, 0, 0))]
    for name, cin, cout in _LAYERS:
        wmat = params[f"{name}_w"].reshape(9 * cin, cout)             # (9*Cin, Cout)
        bias = params[f"{name}_b"].reshape(1, cout)
        flat_args += [wmat, bias]
        # Constant index maps -> weights DMA'd once, VMEM-resident across grid.
        in_specs += [pl.BlockSpec((9 * cin, cout), lambda n: (0, 0)),
                     pl.BlockSpec((1, cout), lambda n: (0, 0))]

    kernel = functools.partial(fused_autoencoder_kernel, H=H, W=W)
    out = pl.pallas_call(
        kernel,
        out_shape=jax.ShapeDtypeStruct((N, H * W, 1), jnp.float32),
        grid=(N,),
        in_specs=in_specs,
        out_specs=pl.BlockSpec((1, H * W, 1), lambda n: (n, 0, 0)),
        compiler_params=pltpu.CompilerParams(
            dimension_semantics=("parallel",)),
    )(*flat_args)
    return out.reshape(N, 1, H, W)                                    # NCHW


# ----------------------------------------------------------------------------
# Deterministic parameter init (shapes from the module's __init__, HWIO layout)
# ----------------------------------------------------------------------------
def init_params(key):
    params = {}
    for name, cin, cout in _LAYERS:
        key, kw, kb = jax.random.split(key, 3)
        scale = 1.0 / (cin * 9) ** 0.5
        params[f"{name}_w"] = (
            jax.random.normal(kw, (3, 3, cin, cout), jnp.float32) * scale)
        params[f"{name}_b"] = (
            jax.random.normal(kb, (cout,), jnp.float32) * 0.01)
    return params


# ----------------------------------------------------------------------------
# Pure-JAX reference (sanity check against the Pallas pipeline)
# ----------------------------------------------------------------------------
def _ref_conv(x, w, b):
    y = jax.lax.conv_general_dilated(
        x, w, window_strides=(1, 1), padding="SAME",
        dimension_numbers=("NHWC", "HWIO", "NHWC"))
    return y + b[None, None, None, :]


def _ref_pool(x):
    return jax.lax.reduce_window(x, -jnp.inf, jax.lax.max,
                                 (1, 2, 2, 1), (1, 2, 2, 1), "VALID")


def _ref_up(x):
    return jnp.repeat(jnp.repeat(x, 2, axis=1), 2, axis=2)


def ref_forward(x_nchw, p):
    x = jnp.transpose(x_nchw, (0, 2, 3, 1))
    x = jax.nn.relu(_ref_conv(x, p["e1_w"], p["e1_b"]))
    x = _ref_pool(x)
    x = jax.nn.relu(_ref_conv(x, p["e2_w"], p["e2_b"]))
    x = _ref_pool(x)
    x = jax.nn.relu(_ref_conv(x, p["e3_w"], p["e3_b"]))
    x = jax.nn.relu(_ref_conv(x, p["d1_w"], p["d1_b"]))
    x = _ref_up(x)
    x = jax.nn.relu(_ref_conv(x, p["d2_w"], p["d2_b"]))
    x = _ref_up(x)
    x = jax.nn.sigmoid(_ref_conv(x, p["d3_w"], p["d3_b"]))
    return jnp.transpose(x, (0, 3, 1, 2))


if __name__ == "__main__":
    key = jax.random.PRNGKey(0)
    kx, kp = jax.random.split(key)
    # nn.Conv2d(1, 32, ...) in the encoder implies a single input channel.
    x = jax.random.normal(kx, (2, 1, 16, 16), jnp.float32)
    params = init_params(kp)

    fwd = jax.jit(dyn_autoencoder_forward)
    out = jax.block_until_ready(fwd(x, params))
    assert out.shape == (2, 1, 16, 16), out.shape

    ref = jax.block_until_ready(ref_forward(x, params))
    max_err = float(jnp.max(jnp.abs(out - ref)))
    assert max_err < 2e-3, f"max abs error vs reference: {max_err}"

    print("KERNEL_OK")
</pallas_src>

<mosaic_0001>
module attributes {stable_mosaic.version = 11 : i64} {
  func.func @fused_autoencoder_kernel(%arg0: i32, %arg1: memref<1x256x9xf32, #tpu.memory_space<vmem>>, %arg2: memref<9x32xf32, #tpu.memory_space<vmem>>, %arg3: memref<1x32xf32, #tpu.memory_space<vmem>>, %arg4: memref<288x64xf32, #tpu.memory_space<vmem>>, %arg5: memref<1x64xf32, #tpu.memory_space<vmem>>, %arg6: memref<576x128xf32, #tpu.memory_space<vmem>>, %arg7: memref<1x128xf32, #tpu.memory_space<vmem>>, %arg8: memref<1152x64xf32, #tpu.memory_space<vmem>>, %arg9: memref<1x64xf32, #tpu.memory_space<vmem>>, %arg10: memref<576x32xf32, #tpu.memory_space<vmem>>, %arg11: memref<1x32xf32, #tpu.memory_space<vmem>>, %arg12: memref<288x1xf32, #tpu.memory_space<vmem>>, %arg13: memref<1x1xf32, #tpu.memory_space<vmem>>, %arg14: memref<1x256x1xf32, #tpu.memory_space<vmem>>) attributes {dimension_semantics = [#tpu.dimension_semantics<parallel>], iteration_bounds = array<i64: 2>, scalar_prefetch = 0 : i64, scratch_operands = 0 : i64, tpu.core_type = #tpu.core_type<tc>, window_params = [{transform_indices = @transform_0, window_bounds = array<i64: 1, 256, 9>}, {pipeline_mode = #tpu.pipeline_mode<synchronous>, transform_indices = @transform_1, window_bounds = array<i64: 9, 32>}, {pipeline_mode = #tpu.pipeline_mode<synchronous>, transform_indices = @transform_2, window_bounds = array<i64: 1, 32>}, {pipeline_mode = #tpu.pipeline_mode<synchronous>, transform_indices = @transform_3, window_bounds = array<i64: 288, 64>}, {pipeline_mode = #tpu.pipeline_mode<synchronous>, transform_indices = @transform_4, window_bounds = array<i64: 1, 64>}, {pipeline_mode = #tpu.pipeline_mode<synchronous>, transform_indices = @transform_5, window_bounds = array<i64: 576, 128>}, {pipeline_mode = #tpu.pipeline_mode<synchronous>, transform_indices = @transform_6, window_bounds = array<i64: 1, 128>}, {pipeline_mode = #tpu.pipeline_mode<synchronous>, transform_indices = @transform_7, window_bounds = array<i64: 1152, 64>}, {pipeline_mode = #tpu.pipeline_mode<synchronous>, transform_indices = @transform_8, window_bounds = array<i64: 1, 64>}, {pipeline_mode = #tpu.pipeline_mode<synchronous>, transform_indices = @transform_9, window_bounds = array<i64: 576, 32>}, {pipeline_mode = #tpu.pipeline_mode<synchronous>, transform_indices = @transform_10, window_bounds = array<i64: 1, 32>}, {pipeline_mode = #tpu.pipeline_mode<synchronous>, transform_indices = @transform_11, window_bounds = array<i64: 288, 1>}, {pipeline_mode = #tpu.pipeline_mode<synchronous>, transform_indices = @transform_12, window_bounds = array<i64: 1, 1>}, {transform_indices = @transform_13, window_bounds = array<i64: 1, 256, 1>}]} {
    %c0 = arith.constant 0 : index
    %c0_0 = arith.constant 0 : index
    %c0_1 = arith.constant 0 : index
    %0 = vector.load %arg1[%c0, %c0_0, %c0_1] : memref<1x256x9xf32, #tpu.memory_space<vmem>>, vector<1x256x9xf32>
    %1 = vector.shape_cast %0 : vector<1x256x9xf32> to vector<256x9xf32>
    %c0_2 = arith.constant 0 : index
    %c0_3 = arith.constant 0 : index
    %2 = vector.load %arg2[%c0_2, %c0_3] : memref<9x32xf32, #tpu.memory_space<vmem>>, vector<9x32xf32>
    %cst = arith.constant dense<0.000000e+00> : vector<256x32xf32>
    %3 = tpu.matmul %1, %2, %cst {dimension_numbers = #tpu.dot_dimension_numbers<[1], [0], [0], [1], [0, 0, 1, 1], [], []>} : vector<256x9xf32>, vector<9x32xf32>, vector<256x32xf32> -> vector<256x32xf32>
    %c0_4 = arith.constant 0 : index
    %c0_5 = arith.constant 0 : index
    %4 = vector.load %arg3[%c0_4, %c0_5] : memref<1x32xf32, #tpu.memory_space<vmem>>, vector<1x32xf32>
    %5 = vector.broadcast %4 : vector<1x32xf32> to vector<256x32xf32>
    %6 = arith.addf %3, %5 : vector<256x32xf32>
    %cst_6 = arith.constant 0.000000e+00 : f32
    %7 = vector.broadcast %cst_6 : f32 to vector<256x32xf32>
    %8 = arith.maximumf %6, %7 : vector<256x32xf32>
    %9 = vector.shape_cast %8 : vector<256x32xf32> to vector<16x16x32xf32>
    %10 = vector.shape_cast %9 : vector<16x16x32xf32> to vector<8x2x16x32xf32>
    %11 = vector.extract_strided_slice %10 {offsets = [0, 0, 0, 0], sizes = [8, 1, 16, 32], strides = [1, 1, 1, 1]} : vector<8x2x16x32xf32> to vector<8x1x16x32xf32>
    %12 = vector.shape_cast %11 : vector<8x1x16x32xf32> to vector<8x16x32xf32>
    %13 = vector.extract_strided_slice %10 {offsets = [0, 1, 0, 0], sizes = [8, 1, 16, 32], strides = [1, 1, 1, 1]} : vector<8x2x16x32xf32> to vector<8x1x16x32xf32>
    %14 = vector.shape_cast %13 : vector<8x1x16x32xf32> to vector<8x16x32xf32>
    %15 = arith.maximumf %12, %14 : vector<8x16x32xf32>
    %16 = vector.shape_cast %15 : vector<8x16x32xf32> to vector<8x8x2x32xf32>
    %17 = vector.extract_strided_slice %16 {offsets = [0, 0, 0, 0], sizes = [8, 8, 1, 32], strides = [1, 1, 1, 1]} : vector<8x8x2x32xf32> to vector<8x8x1x32xf32>
    %18 = vector.shape_cast %17 : vector<8x8x1x32xf32> to vector<8x8x32xf32>
    %19 = vector.extract_strided_slice %16 {offsets = [0, 0, 1, 0], sizes = [8, 8, 1, 32], strides = [1, 1, 1, 1]} : vector<8x8x2x32xf32> to vector<8x8x1x32xf32>
    %20 = vector.shape_cast %19 : vector<8x8x1x32xf32> to vector<8x8x32xf32>
    %21 = arith.maximumf %18, %20 : vector<8x8x32xf32>
    %cst_7 = arith.constant 0.000000e+00 : f32
    %22 = vector.broadcast %cst_7 : f32 to vector<1x8x32xf32>
    %23 = tpu.concatenate %22, %21, %22 in 0 : vector<1x8x32xf32>, vector<8x8x32xf32>, vector<1x8x32xf32> -> vector<10x8x32xf32>
    %cst_8 = arith.constant 0.000000e+00 : f32
    %24 = vector.broadcast %cst_8 : f32 to vector<10x1x32xf32>
    %25 = tpu.concatenate %24, %23, %24 in 1 : vector<10x1x32xf32>, vector<10x8x32xf32>, vector<10x1x32xf32> -> vector<10x10x32xf32>
    %26 = vector.extract_strided_slice %25 {offsets = [0, 0, 0], sizes = [8, 8, 32], strides = [1, 1, 1]} : vector<10x10x32xf32> to vector<8x8x32xf32>
    %27 = vector.extract_strided_slice %25 {offsets = [0, 1, 0], sizes = [8, 8, 32], strides = [1, 1, 1]} : vector<10x10x32xf32> to vector<8x8x32xf32>
    %28 = vector.extract_strided_slice %25 {offsets = [0, 2, 0], sizes = [8, 8, 32], strides = [1, 1, 1]} : vector<10x10x32xf32> to vector<8x8x32xf32>
    %29 = vector.extract_strided_slice %25 {offsets = [1, 0, 0], sizes = [8, 8, 32], strides = [1, 1, 1]} : vector<10x10x32xf32> to vector<8x8x32xf32>
    %30 = vector.extract_strided_slice %25 {offsets = [1, 1, 0], sizes = [8, 8, 32], strides = [1, 1, 1]} : vector<10x10x32xf32> to vector<8x8x32xf32>
    %31 = vector.extract_strided_slice %25 {offsets = [1, 2, 0], sizes = [8, 8, 32], strides = [1, 1, 1]} : vector<10x10x32xf32> to vector<8x8x32xf32>
    %32 = vector.extract_strided_slice %25 {offsets = [2, 0, 0], sizes = [8, 8, 32], strides = [1, 1, 1]} : vector<10x10x32xf32> to vector<8x8x32xf32>
    %33 = vector.extract_strided_slice %25 {offsets = [2, 1, 0], sizes = [8, 8, 32], strides = [1, 1, 1]} : vector<10x10x32xf32> to vector<8x8x32xf32>
    %34 = vector.extract_strided_slice %25 {offsets = [2, 2, 0], sizes = [8, 8, 32], strides = [1, 1, 1]} : vector<10x10x32xf32> to vector<8x8x32xf32>
    %35 = tpu.concatenate %26, %27, %28, %29, %30, %31, %32, %33, %34 in 2 : vector<8x8x32xf32>, vector<8x8x32xf32>, vector<8x8x32xf32>, vector<8x8x32xf32>, vector<8x8x32xf32>, vector<8x8x32xf32>, vector<8x8x32xf32>, vector<8x8x32xf32>, vector<8x8x32xf32> -> vector<8x8x288xf32>
    %36 = vector.shape_cast %35 : vector<8x8x288xf32> to vector<64x288xf32>
    %c0_9 = arith.constant 0 : index
    %c0_10 = arith.constant 0 : index
    %37 = vector.load %arg4[%c0_9, %c0_10] : memref<288x64xf32, #tpu.memory_space<vmem>>, vector<288x64xf32>
    %cst_11 = arith.constant dense<0.000000e+00> : vector<64x64xf32>
    %38 = tpu.matmul %36, %37, %cst_11 {dimension_numbers = #tpu.dot_dimension_numbers<[1], [0], [0], [1], [0, 0, 1, 1], [], []>} : vector<64x288xf32>, vector<288x64xf32>, vector<64x64xf32> -> vector<64x64xf32>
    %c0_12 = arith.constant 0 : index
    %c0_13 = arith.constant 0 : index
    %39 = vector.load %arg5[%c0_12, %c0_13] : memref<1x64xf32, #tpu.memory_space<vmem>>, vector<1x64xf32>
    %40 = vector.broadcast %39 : vector<1x64xf32> to vector<64x64xf32>
    %41 = arith.addf %38, %40 : vector<64x64xf32>
    %cst_14 = arith.constant 0.000000e+00 : f32
    %42 = vector.broadcast %cst_14 : f32 to vector<64x64xf32>
    %43 = arith.maximumf %41, %42 : vector<64x64xf32>
    %44 = vector.shape_cast %43 : vector<64x64xf32> to vector<8x8x64xf32>
    %45 = vector.shape_cast %44 : vector<8x8x64xf32> to vector<4x2x8x64xf32>
    %46 = vector.extract_strided_slice %45 {offsets = [0, 0, 0, 0], sizes = [4, 1, 8, 64], strides = [1, 1, 1, 1]} : vector<4x2x8x64xf32> to vector<4x1x8x64xf32>
    %47 = vector.shape_cast %46 : vector<4x1x8x64xf32> to vector<4x8x64xf32>
    %48 = vector.extract_strided_slice %45 {offsets = [0, 1, 0, 0], sizes = [4, 1, 8, 64], strides = [1, 1, 1, 1]} : vector<4x2x8x64xf32> to vector<4x1x8x64xf32>
    %49 = vector.shape_cast %48 : vector<4x1x8x64xf32> to vector<4x8x64xf32>
    %50 = arith.maximumf %47, %49 : vector<4x8x64xf32>
    %51 = vector.shape_cast %50 : vector<4x8x64xf32> to vector<4x4x2x64xf32>
    %52 = vector.extract_strided_slice %51 {offsets = [0, 0, 0, 0], sizes = [4, 4, 1, 64], strides = [1, 1, 1, 1]} : vector<4x4x2x64xf32> to vector<4x4x1x64xf32>
    %53 = vector.shape_cast %52 : vector<4x4x1x64xf32> to vector<4x4x64xf32>
    %54 = vector.extract_strided_slice %51 {offsets = [0, 0, 1, 0], sizes = [4, 4, 1, 64], strides = [1, 1, 1, 1]} : vector<4x4x2x64xf32> to vector<4x4x1x64xf32>
    %55 = vector.shape_cast %54 : vector<4x4x1x64xf32> to vector<4x4x64xf32>
    %56 = arith.maximumf %53, %55 : vector<4x4x64xf32>
    %cst_15 = arith.constant 0.000000e+00 : f32
    %57 = vector.broadcast %cst_15 : f32 to vector<1x4x64xf32>
    %58 = tpu.concatenate %57, %56, %57 in 0 : vector<1x4x64xf32>, vector<4x4x64xf32>, vector<1x4x64xf32> -> vector<6x4x64xf32>
    %cst_16 = arith.constant 0.000000e+00 : f32
    %59 = vector.broadcast %cst_16 : f32 to vector<6x1x64xf32>
    %60 = tpu.concatenate %59, %58, %59 in 1 : vector<6x1x64xf32>, vector<6x4x64xf32>, vector<6x1x64xf32> -> vector<6x6x64xf32>
    %61 = vector.extract_strided_slice %60 {offsets = [0, 0, 0], sizes = [4, 4, 64], strides = [1, 1, 1]} : vector<6x6x64xf32> to vector<4x4x64xf32>
    %62 = vector.extract_strided_slice %60 {offsets = [0, 1, 0], sizes = [4, 4, 64], strides = [1, 1, 1]} : vector<6x6x64xf32> to vector<4x4x64xf32>
    %63 = vector.extract_strided_slice %60 {offsets = [0, 2, 0], sizes = [4, 4, 64], strides = [1, 1, 1]} : vector<6x6x64xf32> to vector<4x4x64xf32>
    %64 = vector.extract_strided_slice %60 {offsets = [1, 0, 0], sizes = [4, 4, 64], strides = [1, 1, 1]} : vector<6x6x64xf32> to vector<4x4x64xf32>
    %65 = vector.extract_strided_slice %60 {offsets = [1, 1, 0], sizes = [4, 4, 64], strides = [1, 1, 1]} : vector<6x6x64xf32> to vector<4x4x64xf32>
    %66 = vector.extract_strided_slice %60 {offsets = [1, 2, 0], sizes = [4, 4, 64], strides = [1, 1, 1]} : vector<6x6x64xf32> to vector<4x4x64xf32>
    %67 = vector.extract_strided_slice %60 {offsets = [2, 0, 0], sizes = [4, 4, 64], strides = [1, 1, 1]} : vector<6x6x64xf32> to vector<4x4x64xf32>
    %68 = vector.extract_strided_slice %60 {offsets = [2, 1, 0], sizes = [4, 4, 64], strides = [1, 1, 1]} : vector<6x6x64xf32> to vector<4x4x64xf32>
    %69 = vector.extract_strided_slice %60 {offsets = [2, 2, 0], sizes = [4, 4, 64], strides = [1, 1, 1]} : vector<6x6x64xf32> to vector<4x4x64xf32>
    %70 = tpu.concatenate %61, %62, %63, %64, %65, %66, %67, %68, %69 in 2 : vector<4x4x64xf32>, vector<4x4x64xf32>, vector<4x4x64xf32>, vector<4x4x64xf32>, vector<4x4x64xf32>, vector<4x4x64xf32>, vector<4x4x64xf32>, vector<4x4x64xf32>, vector<4x4x64xf32> -> vector<4x4x576xf32>
    %71 = vector.shape_cast %70 : vector<4x4x576xf32> to vector<16x576xf32>
    %c0_17 = arith.constant 0 : index
    %c0_18 = arith.constant 0 : index
    %72 = vector.load %arg6[%c0_17, %c0_18] : memref<576x128xf32, #tpu.memory_space<vmem>>, vector<576x128xf32>
    %cst_19 = arith.constant dense<0.000000e+00> : vector<16x128xf32>
    %73 = tpu.matmul %71, %72, %cst_19 {dimension_numbers = #tpu.dot_dimension_numbers<[1], [0], [0], [1], [0, 0, 1, 1], [], []>} : vector<16x576xf32>, vector<576x128xf32>, vector<16x128xf32> -> vector<16x128xf32>
    %c0_20 = arith.constant 0 : index
    %c0_21 = arith.constant 0 : index
    %74 = vector.load %arg7[%c0_20, %c0_21] : memref<1x128xf32, #tpu.memory_space<vmem>>, vector<1x128xf32>
    %75 = vector.broadcast %74 : vector<1x128xf32> to vector<16x128xf32>
    %76 = arith.addf %73, %75 : vector<16x128xf32>
    %cst_22 = arith.constant 0.000000e+00 : f32
    %77 = vector.broadcast %cst_22 : f32 to vector<16x128xf32>
    %78 = arith.maximumf %76, %77 : vector<16x128xf32>
    %79 = vector.shape_cast %78 : vector<16x128xf32> to vector<4x4x128xf32>
    %cst_23 = arith.constant 0.000000e+00 : f32
    %80 = vector.broadcast %cst_23 : f32 to vector<1x4x128xf32>
    %81 = tpu.concatenate %80, %79, %80 in 0 : vector<1x4x128xf32>, vector<4x4x128xf32>, vector<1x4x128xf32> -> vector<6x4x128xf32>
    %cst_24 = arith.constant 0.000000e+00 : f32
    %82 = vector.broadcast %cst_24 : f32 to vector<6x1x128xf32>
    %83 = tpu.concatenate %82, %81, %82 in 1 : vector<6x1x128xf32>, vector<6x4x128xf32>, vector<6x1x128xf32> -> vector<6x6x128xf32>
    %84 = vector.extract_strided_slice %83 {offsets = [0, 0, 0], sizes = [4, 4, 128], strides = [1, 1, 1]} : vector<6x6x128xf32> to vector<4x4x128xf32>
    %85 = vector.extract_strided_slice %83 {offsets = [0, 1, 0], sizes = [4, 4, 128], strides = [1, 1, 1]} : vector<6x6x128xf32> to vector<4x4x128xf32>
    %86 = vector.extract_strided_slice %83 {offsets = [0, 2, 0], sizes = [4, 4, 128], strides = [1, 1, 1]} : vector<6x6x128xf32> to vector<4x4x128xf32>
    %87 = vector.extract_strided_slice %83 {offsets = [1, 0, 0], sizes = [4, 4, 128], strides = [1, 1, 1]} : vector<6x6x128xf32> to vector<4x4x128xf32>
    %88 = vector.extract_strided_slice %83 {offsets = [1, 1, 0], sizes = [4, 4, 128], strides = [1, 1, 1]} : vector<6x6x128xf32> to vector<4x4x128xf32>
    %89 = vector.extract_strided_slice %83 {offsets = [1, 2, 0], sizes = [4, 4, 128], strides = [1, 1, 1]} : vector<6x6x128xf32> to vector<4x4x128xf32>
    %90 = vector.extract_strided_slice %83 {offsets = [2, 0, 0], sizes = [4, 4, 128], strides = [1, 1, 1]} : vector<6x6x128xf32> to vector<4x4x128xf32>
    %91 = vector.extract_strided_slice %83 {offsets = [2, 1, 0], sizes = [4, 4, 128], strides = [1, 1, 1]} : vector<6x6x128xf32> to vector<4x4x128xf32>
    %92 = vector.extract_strided_slice %83 {offsets = [2, 2, 0], sizes = [4, 4, 128], strides = [1, 1, 1]} : vector<6x6x128xf32> to vector<4x4x128xf32>
    %93 = tpu.concatenate %84, %85, %86, %87, %88, %89, %90, %91, %92 in 2 : vector<4x4x128xf32>, vector<4x4x128xf32>, vector<4x4x128xf32>, vector<4x4x128xf32>, vector<4x4x128xf32>, vector<4x4x128xf32>, vector<4x4x128xf32>, vector<4x4x128xf32>, vector<4x4x128xf32> -> vector<4x4x1152xf32>
    %94 = vector.shape_cast %93 : vector<4x4x1152xf32> to vector<16x1152xf32>
    %c0_25 = arith.constant 0 : index
    %c0_26 = arith.constant 0 : index
    %95 = vector.load %arg8[%c0_25, %c0_26] : memref<1152x64xf32, #tpu.memory_space<vmem>>, vector<1152x64xf32>
    %cst_27 = arith.constant dense<0.000000e+00> : vector<16x64xf32>
    %96 = tpu.matmul %94, %95, %cst_27 {dimension_numbers = #tpu.dot_dimension_numbers<[1], [0], [0], [1], [0, 0, 1, 1], [], []>} : vector<16x1152xf32>, vector<1152x64xf32>, vector<16x64xf32> -> vector<16x64xf32>
    %c0_28 = arith.constant 0 : index
    %c0_29 = arith.constant 0 : index
    %97 = vector.load %arg9[%c0_28, %c0_29] : memref<1x64xf32, #tpu.memory_space<vmem>>, vector<1x64xf32>
    %98 = vector.broadcast %97 : vector<1x64xf32> to vector<16x64xf32>
    %99 = arith.addf %96, %98 : vector<16x64xf32>
    %cst_30 = arith.constant 0.000000e+00 : f32
    %100 = vector.broadcast %cst_30 : f32 to vector<16x64xf32>
    %101 = arith.maximumf %99, %100 : vector<16x64xf32>
    %102 = vector.shape_cast %101 : vector<16x64xf32> to vector<4x4x64xf32>
    %103 = vector.shape_cast %102 : vector<4x4x64xf32> to vector<4x1x4x64xf32>
    %104 = vector.shape_cast %103 : vector<4x1x4x64xf32> to vector<4x1x4x64xf32>
    %105 = vector.broadcast %104 : vector<4x1x4x64xf32> to vector<4x2x4x64xf32>
    %106 = vector.shape_cast %105 : vector<4x2x4x64xf32> to vector<8x4x64xf32>
    %107 = vector.shape_cast %106 : vector<8x4x64xf32> to vector<8x4x1x64xf32>
    %108 = vector.shape_cast %107 : vector<8x4x1x64xf32> to vector<8x4x1x64xf32>
    %109 = vector.broadcast %108 : vector<8x4x1x64xf32> to vector<8x4x2x64xf32>
    %110 = vector.shape_cast %109 : vector<8x4x2x64xf32> to vector<8x8x64xf32>
    %cst_31 = arith.constant 0.000000e+00 : f32
    %111 = vector.broadcast %cst_31 : f32 to vector<1x8x64xf32>
    %112 = tpu.concatenate %111, %110, %111 in 0 : vector<1x8x64xf32>, vector<8x8x64xf32>, vector<1x8x64xf32> -> vector<10x8x64xf32>
    %cst_32 = arith.constant 0.000000e+00 : f32
    %113 = vector.broadcast %cst_32 : f32 to vector<10x1x64xf32>
    %114 = tpu.concatenate %113, %112, %113 in 1 : vector<10x1x64xf32>, vector<10x8x64xf32>, vector<10x1x64xf32> -> vector<10x10x64xf32>
    %115 = vector.extract_strided_slice %114 {offsets = [0, 0, 0], sizes = [8, 8, 64], strides = [1, 1, 1]} : vector<10x10x64xf32> to vector<8x8x64xf32>
    %116 = vector.extract_strided_slice %114 {offsets = [0, 1, 0], sizes = [8, 8, 64], strides = [1, 1, 1]} : vector<10x10x64xf32> to vector<8x8x64xf32>
    %117 = vector.extract_strided_slice %114 {offsets = [0, 2, 0], sizes = [8, 8, 64], strides = [1, 1, 1]} : vector<10x10x64xf32> to vector<8x8x64xf32>
    %118 = vector.extract_strided_slice %114 {offsets = [1, 0, 0], sizes = [8, 8, 64], strides = [1, 1, 1]} : vector<10x10x64xf32> to vector<8x8x64xf32>
    %119 = vector.extract_strided_slice %114 {offsets = [1, 1, 0], sizes = [8, 8, 64], strides = [1, 1, 1]} : vector<10x10x64xf32> to vector<8x8x64xf32>
    %120 = vector.extract_strided_slice %114 {offsets = [1, 2, 0], sizes = [8, 8, 64], strides = [1, 1, 1]} : vector<10x10x64xf32> to vector<8x8x64xf32>
    %121 = vector.extract_strided_slice %114 {offsets = [2, 0, 0], sizes = [8, 8, 64], strides = [1, 1, 1]} : vector<10x10x64xf32> to vector<8x8x64xf32>
    %122 = vector.extract_strided_slice %114 {offsets = [2, 1, 0], sizes = [8, 8, 64], strides = [1, 1, 1]} : vector<10x10x64xf32> to vector<8x8x64xf32>
    %123 = vector.extract_strided_slice %114 {offsets = [2, 2, 0], sizes = [8, 8, 64], strides = [1, 1, 1]} : vector<10x10x64xf32> to vector<8x8x64xf32>
    %124 = tpu.concatenate %115, %116, %117, %118, %119, %120, %121, %122, %123 in 2 : vector<8x8x64xf32>, vector<8x8x64xf32>, vector<8x8x64xf32>, vector<8x8x64xf32>, vector<8x8x64xf32>, vector<8x8x64xf32>, vector<8x8x64xf32>, vector<8x8x64xf32>, vector<8x8x64xf32> -> vector<8x8x576xf32>
    %125 = vector.shape_cast %124 : vector<8x8x576xf32> to vector<64x576xf32>
    %c0_33 = arith.constant 0 : index
    %c0_34 = arith.constant 0 : index
    %126 = vector.load %arg10[%c0_33, %c0_34] : memref<576x32xf32, #tpu.memory_space<vmem>>, vector<576x32xf32>
    %cst_35 = arith.constant dense<0.000000e+00> : vector<64x32xf32>
    %127 = tpu.matmul %125, %126, %cst_35 {dimension_numbers = #tpu.dot_dimension_numbers<[1], [0], [0], [1], [0, 0, 1, 1], [], []>} : vector<64x576xf32>, vector<576x32xf32>, vector<64x32xf32> -> vector<64x32xf32>
    %c0_36 = arith.constant 0 : index
    %c0_37 = arith.constant 0 : index
    %128 = vector.load %arg11[%c0_36, %c0_37] : memref<1x32xf32, #tpu.memory_space<vmem>>, vector<1x32xf32>
    %129 = vector.broadcast %128 : vector<1x32xf32> to vector<64x32xf32>
    %130 = arith.addf %127, %129 : vector<64x32xf32>
    %cst_38 = arith.constant 0.000000e+00 : f32
    %131 = vector.broadcast %cst_38 : f32 to vector<64x32xf32>
    %132 = arith.maximumf %130, %131 : vector<64x32xf32>
    %133 = vector.shape_cast %132 : vector<64x32xf32> to vector<8x8x32xf32>
    %134 = vector.shape_cast %133 : vector<8x8x32xf32> to vector<8x1x8x32xf32>
    %135 = vector.shape_cast %134 : vector<8x1x8x32xf32> to vector<8x1x8x32xf32>
    %136 = vector.broadcast %135 : vector<8x1x8x32xf32> to vector<8x2x8x32xf32>
    %137 = vector.shape_cast %136 : vector<8x2x8x32xf32> to vector<16x8x32xf32>
    %138 = vector.shape_cast %137 : vector<16x8x32xf32> to vector<16x8x1x32xf32>
    %139 = vector.shape_cast %138 : vector<16x8x1x32xf32> to vector<16x8x1x32xf32>
    %140 = vector.broadcast %139 : vector<16x8x1x32xf32> to vector<16x8x2x32xf32>
    %141 = vector.shape_cast %140 : vector<16x8x2x32xf32> to vector<16x16x32xf32>
    %cst_39 = arith.constant 0.000000e+00 : f32
    %142 = vector.broadcast %cst_39 : f32 to vector<1x16x32xf32>
    %143 = tpu.concatenate %142, %141, %142 in 0 : vector<1x16x32xf32>, vector<16x16x32xf32>, vector<1x16x32xf32> -> vector<18x16x32xf32>
    %cst_40 = arith.constant 0.000000e+00 : f32
    %144 = vector.broadcast %cst_40 : f32 to vector<18x1x32xf32>
    %145 = tpu.concatenate %144, %143, %144 in 1 : vector<18x1x32xf32>, vector<18x16x32xf32>, vector<18x1x32xf32> -> vector<18x18x32xf32>
    %146 = vector.extract_strided_slice %145 {offsets = [0, 0, 0], sizes = [16, 16, 32], strides = [1, 1, 1]} : vector<18x18x32xf32> to vector<16x16x32xf32>
    %147 = vector.extract_strided_slice %145 {offsets = [0, 1, 0], sizes = [16, 16, 32], strides = [1, 1, 1]} : vector<18x18x32xf32> to vector<16x16x32xf32>
    %148 = vector.extract_strided_slice %145 {offsets = [0, 2, 0], sizes = [16, 16, 32], strides = [1, 1, 1]} : vector<18x18x32xf32> to vector<16x16x32xf32>
    %149 = vector.extract_strided_slice %145 {offsets = [1, 0, 0], sizes = [16, 16, 32], strides = [1, 1, 1]} : vector<18x18x32xf32> to vector<16x16x32xf32>
    %150 = vector.extract_strided_slice %145 {offsets = [1, 1, 0], sizes = [16, 16, 32], strides = [1, 1, 1]} : vector<18x18x32xf32> to vector<16x16x32xf32>
    %151 = vector.extract_strided_slice %145 {offsets = [1, 2, 0], sizes = [16, 16, 32], strides = [1, 1, 1]} : vector<18x18x32xf32> to vector<16x16x32xf32>
    %152 = vector.extract_strided_slice %145 {offsets = [2, 0, 0], sizes = [16, 16, 32], strides = [1, 1, 1]} : vector<18x18x32xf32> to vector<16x16x32xf32>
    %153 = vector.extract_strided_slice %145 {offsets = [2, 1, 0], sizes = [16, 16, 32], strides = [1, 1, 1]} : vector<18x18x32xf32> to vector<16x16x32xf32>
    %154 = vector.extract_strided_slice %145 {offsets = [2, 2, 0], sizes = [16, 16, 32], strides = [1, 1, 1]} : vector<18x18x32xf32> to vector<16x16x32xf32>
    %155 = tpu.concatenate %146, %147, %148, %149, %150, %151, %152, %153, %154 in 2 : vector<16x16x32xf32>, vector<16x16x32xf32>, vector<16x16x32xf32>, vector<16x16x32xf32>, vector<16x16x32xf32>, vector<16x16x32xf32>, vector<16x16x32xf32>, vector<16x16x32xf32>, vector<16x16x32xf32> -> vector<16x16x288xf32>
    %156 = vector.shape_cast %155 : vector<16x16x288xf32> to vector<256x288xf32>
    %c0_41 = arith.constant 0 : index
    %c0_42 = arith.constant 0 : index
    %157 = vector.load %arg12[%c0_41, %c0_42] : memref<288x1xf32, #tpu.memory_space<vmem>>, vector<288x1xf32>
    %cst_43 = arith.constant dense<0.000000e+00> : vector<256x1xf32>
    %158 = tpu.matmul %156, %157, %cst_43 {dimension_numbers = #tpu.dot_dimension_numbers<[1], [0], [0], [1], [0, 0, 1, 1], [], []>} : vector<256x288xf32>, vector<288x1xf32>, vector<256x1xf32> -> vector<256x1xf32>
    %c0_44 = arith.constant 0 : index
    %c0_45 = arith.constant 0 : index
    %159 = vector.load %arg13[%c0_44, %c0_45] : memref<1x1xf32, #tpu.memory_space<vmem>>, vector<1x1xf32>
    %160 = vector.broadcast %159 : vector<1x1xf32> to vector<256x1xf32>
    %161 = arith.addf %158, %160 : vector<256x1xf32>
    %cst_46 = arith.constant 0.000000e+00 : f32
    %162 = vector.broadcast %cst_46 : f32 to vector<256x1xf32>
    %163 = arith.subf %162, %161 : vector<256x1xf32>
    %164 = math.exp %163 : vector<256x1xf32>
    %cst_47 = arith.constant 1.000000e+00 : f32
    %165 = vector.broadcast %cst_47 : f32 to vector<256x1xf32>
    %166 = arith.addf %165, %164 : vector<256x1xf32>
    %cst_48 = arith.constant 1.000000e+00 : f32
    %167 = vector.broadcast %cst_48 : f32 to vector<256x1xf32>
    %168 = arith.divf %167, %166 : vector<256x1xf32>
    %c0_49 = arith.constant 0 : index
    %c0_50 = arith.constant 0 : index
    %c0_51 = arith.constant 0 : index
    %169 = vector.load %arg14[%c0_49, %c0_50, %c0_51] : memref<1x256x1xf32, #tpu.memory_space<vmem>>, vector<1x256x1xf32>
    %170 = vector.shape_cast %169 : vector<1x256x1xf32> to vector<256x1xf32>
    %171 = vector.shape_cast %168 : vector<256x1xf32> to vector<1x256x1xf32>
    tpu.vector_store %arg14[%c0_49, %c0_50, %c0_51], %171 {strides = array<i32>} : memref<1x256x1xf32, #tpu.memory_space<vmem>>, vector<1x256x1xf32>,
    return
  }
  func.func @transform_0(%arg0: i32) -> (i32, i32, i32) {
    %c0_i32 = arith.constant 0 : i32
    %c0_i32_0 = arith.constant 0 : i32
    %c0_i32_1 = arith.constant 0 : i32
    return %arg0, %c0_i32, %c0_i32_0 : i32, i32, i32
  }
  func.func @transform_1(%arg0: i32) -> (i32, i32) {
    %c0_i32 = arith.constant 0 : i32
    %c0_i32_0 = arith.constant 0 : i32
    %c0_i32_1 = arith.constant 0 : i32
    return %c0_i32, %c0_i32_0 : i32, i32
  }
  func.func @transform_2(%arg0: i32) -> (i32, i32) {
    %c0_i32 = arith.constant 0 : i32
    %c0_i32_0 = arith.constant 0 : i32
    %c0_i32_1 = arith.constant 0 : i32
    return %c0_i32, %c0_i32_0 : i32, i32
  }
  func.func @transform_3(%arg0: i32) -> (i32, i32) {
    %c0_i32 = arith.constant 0 : i32
    %c0_i32_0 = arith.constant 0 : i32
    %c0_i32_1 = arith.constant 0 : i32
    return %c0_i32, %c0_i32_0 : i32, i32
  }
  func.func @transform_4(%arg0: i32) -> (i32, i32) {
    %c0_i32 = arith.constant 0 : i32
    %c0_i32_0 = arith.constant 0 : i32
    %c0_i32_1 = arith.constant 0 : i32
    return %c0_i32, %c0_i32_0 : i32, i32
  }
  func.func @transform_5(%arg0: i32) -> (i32, i32) {
    %c0_i32 = arith.constant 0 : i32
    %c0_i32_0 = arith.constant 0 : i32
    %c0_i32_1 = arith.constant 0 : i32
    return %c0_i32, %c0_i32_0 : i32, i32
  }
  func.func @transform_6(%arg0: i32) -> (i32, i32) {
    %c0_i32 = arith.constant 0 : i32
    %c0_i32_0 = arith.constant 0 : i32
    %c0_i32_1 = arith.constant 0 : i32
    return %c0_i32, %c0_i32_0 : i32, i32
  }
  func.func @transform_7(%arg0: i32) -> (i32, i32) {
    %c0_i32 = arith.constant 0 : i32
    %c0_i32_0 = arith.constant 0 : i32
    %c0_i32_1 = arith.constant 0 : i32
    return %c0_i32, %c0_i32_0 : i32, i32
  }
  func.func @transform_8(%arg0: i32) -> (i32, i32) {
    %c0_i32 = arith.constant 0 : i32
    %c0_i32_0 = arith.constant 0 : i32
    %c0_i32_1 = arith.constant 0 : i32
    return %c0_i32, %c0_i32_0 : i32, i32
  }
  func.func @transform_9(%arg0: i32) -> (i32, i32) {
    %c0_i32 = arith.constant 0 : i32
    %c0_i32_0 = arith.constant 0 : i32
    %c0_i32_1 = arith.constant 0 : i32
    return %c0_i32, %c0_i32_0 : i32, i32
  }
  func.func @transform_10(%arg0: i32) -> (i32, i32) {
    %c0_i32 = arith.constant 0 : i32
    %c0_i32_0 = arith.constant 0 : i32
    %c0_i32_1 = arith.constant 0 : i32
    return %c0_i32, %c0_i32_0 : i32, i32
  }
  func.func @transform_11(%arg0: i32) -> (i32, i32) {
    %c0_i32 = arith.constant 0 : i32
    %c0_i32_0 = arith.constant 0 : i32
    %c0_i32_1 = arith.constant 0 : i32
    return %c0_i32, %c0_i32_0 : i32, i32
  }
  func.func @transform_12(%arg0: i32) -> (i32, i32) {
    %c0_i32 = arith.constant 0 : i32
    %c0_i32_0 = arith.constant 0 : i32
    %c0_i32_1 = arith.constant 0 : i32
    return %c0_i32, %c0_i32_0 : i32, i32
  }
  func.func @transform_13(%arg0: i32) -> (i32, i32, i32) {
    %c0_i32 = arith.constant 0 : i32
    %c0_i32_0 = arith.constant 0 : i32
    %c0_i32_1 = arith.constant 0 : i32
    return %arg0, %c0_i32, %c0_i32_0 : i32, i32, i32
  }
}

</mosaic_0001>

<bundles_post_ra>
// kernel: dyn_autoencoder_forward.1
= control target key start
LH: loop header
LB: loop body
LE: loop exit
PB: predicated region body
PF: predicated region fallthrough
CT: control target
= control target key end

     0   :  { %s6995_s27 = smov 0   ;;  %s11006_s0 = inlined_call_operand.vmem [shape: f32[2,256,9], index: 0, kind: input, shape index: {}]   ;;  %s11007_s1 = inlined_call_operand.vmem [shape: f32[9,32], index: 1, kind: input, shape index: {}]   ;;  %s11008_s2 = inlined_call_operand.vmem [shape: f32[1,32], index: 2, kind: input, shape index: {}]   ;;  %s11009_s3 = inlined_call_operand.vmem [shape: f32[288,64], index: 3, kind: input, shape index: {}]   ;;  %s11010_s4 = inlined_call_operand.vmem [shape: f32[1,64], index: 4, kind: input, shape index: {}]   ;;  %s11011_s5 = inlined_call_operand.vmem [shape: f32[576,128], index: 5, kind: input, shape index: {}]   ;;  %s11012_s6 = inlined_call_operand.vmem [shape: f32[1,128], index: 6, kind: input, shape index: {}]   ;;  %s11013_s7 = inlined_call_operand.vmem [shape: f32[1152,64], index: 7, kind: input, shape index: {}]   ;;  %s11014_s8 = inlined_call_operand.vmem [shape: f32[1,64], index: 8, kind: input, shape index: {}]   ;;  %s11015_s9 = inlined_call_operand.vmem [shape: f32[576,32], index: 9, kind: input, shape index: {}]   ;;  %s11016_s10 = inlined_call_operand.vmem [shape: f32[1,32], index: 10, kind: input, shape index: {}]   ;;  %s11017_s11 = inlined_call_operand.vmem [shape: f32[288,1], index: 11, kind: input, shape index: {}]   ;;  %s11018_s12 = inlined_call_operand.<no memory space> [shape: f32[1,1], index: 12, kind: input, shape index: {}]   ;;  %s11019_s13 = inlined_call_operand.vmem [shape: f32[2,256,1], index: 13, kind: output, shape index: {}]  }
   0x1   :  { %v18_v0 = vstv %s11018_s12 }
   0x2   :  { %19 = vst [vmem:[#allocation2] sm:$0x1] %v18_v0 }
   0x3 LB: > { %s5952_s28 = sadd.s32 4294967295, %s6916_s27   ;;  %p5956_p0 = scmp.ge.s32.totalorder %s6916_s27, 1  ;;  %s6916_s27 = sphi %s6995_s27, %s25_s27  }
   0x4   : > { %p389_p1 = scmp.lt.s32.totalorder %s6916_s27, 3 }
   0x6   : > { %p390_p2 = pnand %p5956_p0, %p389_p1 }
   0x8   : > { %393 = sbr.rel (%p390_p2) target bundleno = 2086 (0x826), region = 72 }
   0xd   : > { %v476_v1 = vld [vmem:[%s11007_s1 + $0x8] sm:$0x1]  ;;  %vm578_vm0 = vcmask 1040384   ;;  %v475_v2 = vld [vmem:[%s11007_s1] sm:$0xff]  ;;  %p433_p3 = scmp.lt.s32.totalorder %s5952_s28, 1  ;;  %vm481_vm1 = vcmask 72704  }
   0xe   : > { %5961 = vmatpush.msk.msra.mxu0 %vm578_vm0, %v476_v1  ;;  %6130 = vmatpush.msk.msra.mxu2 %vm578_vm0, %v476_v1  ;;  %v7077_v32 = vld [vmem:[%s11008_s2] ss:$0 sm:$0xff]  ;;  %vm1239_vm2 = vcmask 1041409   ;;  %vm1241_vm3 = vcmask 1042434   ;;  %vm1243_vm4 = vcmask 1043459   ;;  %vm1245_vm5 = vcmask 1044484  }
   0xf   : > { %s11147_s28 = smov (!%p433_p3, %s5952_s28), 1  ;;  %vm1247_vm6 = vcmask 1045509   ;;  %vm1249_vm7 = vcmask 1046534   ;;  %vm1251_vm8 = vcmask 1047559   ;;  %vm1355_vm9 = vcmask 1046528   ;;  %s6919_s12 = smov 32  }
  0x10   : > { %597 = vmatpush.msra.mxu0 %v475_v2  ;;  %6131 = vmatpush.msra.mxu2 %v475_v2  ;;  %s6128_s15 = sshll.u32 %s11147_s28, 8  ;;  %vm1404_vm10 = vcmask 1045504   ;;  %s6920_s14 = smov 64   ;;  %vm1565_vm11 = vcmask 261120   ;;  %vm1574_vm12 = vcmask 523264   ;;  %vm1583_vm13 = vcmask 785408  }
  0x11   : > { %s7019_s18 = scalar_lea.vmem %s11006_s0, %s6128_s15  ;;  %s6921_s16 = smov 96   ;;  %vm1955_vm14 = vcmask 1044480   ;;  %vm2057_vm15 = vcmask 1043456  }
  0x12   : > { %v443_v3 = vld [vmem:[%s7019_s18] sm:$0xff]  ;;  %v444_v4 = vld [vmem:[%s7019_s18 + $0x8] sm:$0xff]  ;;  %v445_v5 = vld [vmem:[%s7019_s18 + $0x10] sm:$0xff] }
  0x13   : > { %5962 = vmatmul.msk.f32.vlgmr.msra.gmra.mxu0 %vm481_vm1, %v443_v3  ;;  %v446_v6 = vld [vmem:[%s7019_s18 + $0x18] sm:$0xff]  ;;  %v447_v7 = vld [vmem:[%s7019_s18 + $0x20] sm:$0xff]  ;;  %v448_v8 = vld [vmem:[%s7019_s18 + $0x28] sm:$0xff] }
  0x14   : > { %v449_v9 = vld [vmem:[%s7019_s18 + $0x30] sm:$0xff]  ;;  %v466_v10 = vld [vmem:[%s7019_s18 + $0xb8] sm:$0xff]  ;;  %v467_v12 = vld [vmem:[%s7019_s18 + $0xc0] sm:$0xff] }
  0x15   : > { %5985 = vmatmul.msk.f32.vlgmr.msra.gmra.mxu2 %vm481_vm1, %v466_v10  ;;  %v450_v11 = vld [vmem:[%s7019_s18 + $0x38] sm:$0xff]  ;;  %v451_v13 = vld [vmem:[%s7019_s18 + $0x40] sm:$0xff]  ;;  %v468_v14 = vld [vmem:[%s7019_s18 + $0xc8] sm:$0xff]  ;;  %v6918_v10 = vmov 0.0  }
  0x16   : > { %v452_v15 = vld [vmem:[%s7019_s18 + $0x48] sm:$0xff]  ;;  %v469_v16 = vld [vmem:[%s7019_s18 + $0xd0] sm:$0xff]  ;;  %v470_v18 = vld [vmem:[%s7019_s18 + $0xd8] sm:$0xff] }
  0x17   : > { %v453_v17 = vld [vmem:[%s7019_s18 + $0x50] sm:$0xff]  ;;  %v454_v19 = vld [vmem:[%s7019_s18 + $0x58] sm:$0xff]  ;;  %v471_v20 = vld [vmem:[%s7019_s18 + $0xe0] sm:$0xff] }
  0x18   : > { %v455_v21 = vld [vmem:[%s7019_s18 + $0x60] sm:$0xff]  ;;  %v472_v22 = vld [vmem:[%s7019_s18 + $0xe8] sm:$0xff]  ;;  %v473_v24 = vld [vmem:[%s7019_s18 + $0xf0] sm:$0xff] }
  0x19   : > { %v456_v23 = vld [vmem:[%s7019_s18 + $0x68] sm:$0xff]  ;;  %v457_v25 = vld [vmem:[%s7019_s18 + $0x70] sm:$0xff]  ;;  %v474_v26 = vld [vmem:[%s7019_s18 + $0xf8] sm:$0xff] }
  0x1a   : > { %v458_v27 = vld [vmem:[%s7019_s18 + $0x78] sm:$0xff]  ;;  %v459_v29 = vld [vmem:[%s7019_s18 + $0x80] sm:$0xff]  ;;  %v460_v31 = vld [vmem:[%s7019_s18 + $0x88] sm:$0xff] }
  0x1b   : > { %5963 = vmatmul.msk.f32.gmra.mxu0 %vm481_vm1, %v444_v4  ;;  %v461_v35 = vld [vmem:[%s7019_s18 + $0x90] sm:$0xff]  ;;  %v462_v46 = vld [vmem:[%s7019_s18 + $0x98] sm:$0xff]  ;;  %v463_v3 = vld [vmem:[%s7019_s18 + $0xa0] sm:$0xff] }
  0x1d   : > { %5986 = vmatmul.msk.f32.gmra.mxu2 %vm481_vm1, %v467_v12 }
  0x23   : > { %5964 = vmatmul.msk.f32.gmra.mxu0 %vm481_vm1, %v445_v5 }
  0x25   : > { %5987 = vmatmul.msk.f32.gmra.mxu2 %vm481_vm1, %v468_v14 }
  0x2b   : > { %5965 = vmatmul.msk.f32.gmra.mxu0 %vm481_vm1, %v446_v6 }
  0x2d   : > { %5988 = vmatmul.msk.f32.gmra.mxu2 %vm481_vm1, %v469_v16 }
  0x33   : > { %5966 = vmatmul.msk.f32.gmra.mxu0 %vm481_vm1, %v447_v7 }
  0x35   : > { %5989 = vmatmul.msk.f32.gmra.mxu2 %vm481_vm1, %v470_v18 }
  0x3b   : > { %5967 = vmatmul.msk.f32.gmra.mxu0 %vm481_vm1, %v448_v8 }
  0x3d   : > { %5990 = vmatmul.msk.f32.gmra.mxu2 %vm481_vm1, %v471_v20 }
  0x43   : > { %5968 = vmatmul.msk.f32.gmra.mxu0 %vm481_vm1, %v449_v9 }
  0x45   : > { %5991 = vmatmul.msk.f32.gmra.mxu2 %vm481_vm1, %v472_v22 }
  0x4b   : > { %5969 = vmatmul.msk.f32.gmra.mxu0 %vm481_vm1, %v450_v11  ;;  %v7092_v11 = vrot.slane %v6918_v10, 7 }
  0x4d   : > { %5992 = vmatmul.msk.f32.gmra.mxu2 %vm481_vm1, %v473_v24  ;;  %11057 = vst [vmem:[#allocation3_spill] sm:$0xff] %v7092_v11  ;;  %v7098_v20 = vsel %vm578_vm0, 0.0, %v7092_v11 }
  0x4e   : > { %11058 = vst [vmem:[#allocation4_spill] sm:$0xff] %v7098_v20 }
  0x53   : > { %5970 = vmatmul.msk.f32.gmra.mxu0 %vm481_vm1, %v451_v13 }
  0x55   : > { %5993 = vmatmul.msk.f32.gmra.mxu2 %vm481_vm1, %v474_v26 }
  0x5b   : > { %5971 = vmatmul.msk.f32.gmra.mxu0 %vm481_vm1, %v452_v15 }
  0x63   : > { %5972 = vmatmul.msk.f32.gmra.mxu0 %vm481_vm1, %v453_v17 }
  0x6b   : > { %5973 = vmatmul.msk.f32.gmra.mxu0 %vm481_vm1, %v454_v19 }
  0x73   : > { %5974 = vmatmul.msk.f32.gmra.mxu0 %vm481_vm1, %v455_v21  ;;  %v7102_v21 = vsel %vm578_vm0, %v7092_v11, 0.0 }
  0x7b   : > { %5975 = vmatmul.msk.f32.gmra.mxu0 %vm481_vm1, %v456_v23  ;;  %v464_v23 = vld [vmem:[%s7019_s18 + $0xa8] sm:$0xff] }
  0x83   : > { %5976 = vmatmul.msk.f32.gmra.mxu0 %vm481_vm1, %v457_v25 }
  0x8b   : > { %5977 = vmatmul.msk.f32.gmra.mxu0 %vm481_vm1, %v458_v27 }
  0x90   : > { %v599_v28 = vpop.f32.mrf.mxu0 }
  0x91   : > { %v600_v33 = vadd.f32 %v7077_v32, %v599_v28  ;;  %v11023_v28 = vrot.slane %v7098_v20, 1 }
  0x93   : > { %5978 = vmatmul.msk.f32.gmra.mxu0 %vm481_vm1, %v459_v29  ;;  %v695_v37 = vmax.f32 %v600_v33, 0.0  ;;  %v11022_v29 = vrot.slane %v7102_v21, 1  ;;  %v1650_v33 = vld [vmem:[%s11009_s3 + $0x110] sm:$0xff] }
  0x98   : > { %v602_v30 = vpop.f32.mrf.mxu0 }
  0x99   : > { %v603_v44 = vadd.f32 %v7077_v32, %v602_v30  ;;  %v1651_v30 = vld [vmem:[%s11009_s3 + $0x118] sm:$0xff] }
  0x9a   : > { %1766 = vmatpush.msra.mxu3 %v1651_v30 }
  0x9b   : > { %5979 = vmatmul.msk.f32.gmra.mxu0 %vm481_vm1, %v460_v31  ;;  %v696_v54 = vmax.f32 %v603_v44, 0.0  ;;  %v465_v44 = vld [vmem:[%s7019_s18 + $0xb0] sm:$0xff] }
  0x9c   : > { %1767 = vmatpush.msra.mxu3 %v1650_v33 }
  0xa0   : > { %v605_v34 = vpop.f32.mrf.mxu0 }
  0xa1   : > { %v606_v36 = vadd.f32 %v7077_v32, %v605_v34  ;;  %v1649_v34 = vld [vmem:[%s11009_s3 + $0x108] sm:$0xff] }
  0xa2   : > { %1768 = vmatpush.msra.mxu3 %v1649_v34 }
  0xa3   : > { %v697_v38 = vmax.f32 %v606_v36, 0.0  ;;  %5980 = vmatmul.msk.f32.gmra.mxu0 %vm481_vm1, %v461_v35 }
  0xa5   : > { %v727_v39 = vmax.f32 %v695_v37, %v697_v38  ;;  %v7129_v37 = vsel %vm1355_vm9, %v11023_v28, %v11022_v29 }
  0xa7   : > { %v759_v40 = vrot.slane %v727_v39, 2  ;;  %v760_v41 = vrot.slane %v727_v39, 4  ;;  %v761_v42 = vrot.slane %v727_v39, 6  ;;  %v5994_v43 = vrot.slane %v727_v39, 9 }
  0xa8   : > { %v608_v45 = vpop.f32.mrf.mxu0 }
  0xa9   : > { %v5995_v47 = vrot.slane %v759_v40, 9  ;;  %v5996_v48 = vrot.slane %v760_v41, 9  ;;  %v1047_v49 = vmax.f32 %v727_v39, %v5994_v43  ;;  %v609_v50 = vadd.f32 %v7077_v32, %v608_v45 }
  0xaa   : > { %v5997_v51 = vrot.slane %v761_v42, 9 }
  0xab   : > { %v1048_v52 = vmax.f32 %v759_v40, %v5995_v47  ;;  %v1049_v53 = vmax.f32 %v760_v41, %v5996_v48  ;;  %5981 = vmatmul.msk.f32.gmra.mxu0 %vm481_vm1, %v462_v46  ;;  %v698_v55 = vmax.f32 %v609_v50, 0.0  ;;  %v1175_v56 = vperm.slane %v1047_v49, 0  ;;  %v1648_v40 = vld [vmem:[%s11009_s3 + $0x100] sm:$0xff] }
  0xac   : > { %v1050_v60 = vmax.f32 %v761_v42, %v5997_v51  ;;  %1769 = vmatpush.msra.mxu3 %v1648_v40  ;;  %v11020_v47 = vrot.slane %v7102_v21, 2  ;;  %v11021_v49 = vrot.slane %v7098_v20, 2 }
  0xad   : > { %v1176_v57 = vperm.slane %v1048_v52, 0  ;;  %v1177_v58 = vperm.slane %v1049_v53, 0  ;;  %v728_v59 = vmax.f32 %v696_v54, %v698_v55 }
  0xae   : > { %v1178_v9 = vperm.slane %v1050_v60, 0  ;;  %v7153_v54 = vsel %vm1404_vm10, %v11021_v49, %v11020_v47 }
  0xaf   : > { %v1240_v61 = vsel %vm1239_vm2, %v1176_v57, %v1175_v56  ;;  %v762_v62 = vrot.slane %v728_v59, 2  ;;  %v763_v63 = vrot.slane %v728_v59, 4  ;;  %v764_v0 = vrot.slane %v728_v59, 6 }
  0xb0   : > { %v5998_v1 = vrot.slane %v728_v59, 9  ;;  %v611_v2 = vpop.f32.mrf.mxu0  ;;  %v1242_v4 = vsel %vm1241_vm3, %v1177_v58, %v1240_v61 }
  0xb1   : > { %v5999_v5 = vrot.slane %v762_v62, 9  ;;  %v6000_v6 = vrot.slane %v763_v63, 9  ;;  %v6001_v8 = vrot.slane %v764_v0, 9  ;;  %v1244_v16 = vsel %vm1243_vm4, %v1178_v9, %v1242_v4 }
  0xb2   : > { %v1051_v7 = vmax.f32 %v728_v59, %v5998_v1  ;;  %v612_v41 = vadd.f32 %v7077_v32, %v611_v2 }
  0xb3   : > { %5982 = vmatmul.msk.f32.gmra.mxu0 %vm481_vm1, %v463_v3  ;;  %v1052_v12 = vmax.f32 %v762_v62, %v5999_v5  ;;  %v1053_v14 = vmax.f32 %v763_v63, %v6000_v6  ;;  %v1054_v15 = vmax.f32 %v764_v0, %v6001_v8 }
  0xb4   : > { %v1179_v13 = vperm.slane %v1051_v7, 0  ;;  %v699_v51 = vmax.f32 %v612_v41, 0.0 }
  0xb5   : > { %v1180_v17 = vperm.slane %v1052_v12, 0  ;;  %v1181_v18 = vperm.slane %v1053_v14, 0  ;;  %v1182_v24 = vperm.slane %v1054_v15, 0 }
  0xb6   : > { %v1246_v19 = vsel %vm1245_vm5, %v1179_v13, %v1244_v16 }
  0xb7   : > { %v1248_v25 = vsel %vm1247_vm6, %v1180_v17, %v1246_v19 }
  0xb8   : > { %v614_v22 = vpop.f32.mrf.mxu0  ;;  %v1250_v26 = vsel %vm1249_vm7, %v1181_v18, %v1248_v25 }
  0xb9   : > { %v1252_v27 = vsel %vm1251_vm8, %v1182_v24, %v1250_v26  ;;  %v615_v60 = vadd.f32 %v7077_v32, %v614_v22 }
  0xba   : > { %v1304_v31 = vrot.slane %v1252_v27, 7 }
  0xbb   : > { %5983 = vmatmul.msk.f32.gmra.mxu0 %vm481_vm1, %v464_v23  ;;  %v700_v6 = vmax.f32 %v615_v60, 0.0 }
  0xbc   : > { %v7121_v35 = vsel %vm578_vm0, 0.0, %v1304_v31  ;;  %v1331_v36 = vsel %vm578_vm0, %v1304_v31, 0.0 }
  0xbd   : > { %v1359_v38 = vrot.slane %v7121_v35, 1  ;;  %v1360_v39 = vrot.slane %v1331_v36, 1  ;;  %v1409_v48 = vrot.slane %v1331_v36, 2  ;;  %v1408_v50 = vrot.slane %v7121_v35, 2 }
  0xbf   : > { %v7137_v43 = vsel %vm1355_vm9, %v1359_v38, %v1360_v39  ;;  %v7156_v55 = vsel %vm1404_vm10, %v1408_v50, %v1409_v48 }
  0xc0   : > { %v617_v42 = vpop.f32.mrf.mxu0  ;;  %v6160_v46 = vpack.i.bf16 %v7137_v43, %v7129_v37  ;;  %v6165_v1 = vpack.i.bf16 %v7156_v55, %v7153_v54 }
  0xc1   : > { %v618_v45 = vadd.f32 %v7077_v32, %v617_v42 }
  0xc2   : > { %6161 = vrot.lane.b32.xlu0 %v6160_v46, %s6919_s12 }
  0xc3   : > { %v701_v52 = vmax.f32 %v618_v45, 0.0  ;;  %5984 = vmatmul.msk.f32.gmra.mxu0 %vm481_vm1, %v465_v44 }
  0xc5   : > { %v729_v53 = vmax.f32 %v699_v51, %v701_v52 }
  0xc7   : > { %v765_v56 = vrot.slane %v729_v53, 2  ;;  %v766_v57 = vrot.slane %v729_v53, 4  ;;  %v767_v58 = vrot.slane %v729_v53, 6  ;;  %v6002_v59 = vrot.slane %v729_v53, 9 }
  0xc8   : > { %v620_v61 = vpop.f32.mrf.mxu0 }
  0xc9   : > { %v6003_v62 = vrot.slane %v765_v56, 9  ;;  %v6004_v63 = vrot.slane %v766_v57, 9  ;;  %v1055_v0 = vmax.f32 %v729_v53, %v6002_v59  ;;  %v621_v2 = vadd.f32 %v7077_v32, %v620_v61 }
  0xca   : > { %v6005_v3 = vrot.slane %v767_v58, 9  ;;  %6166 = vrot.lane.b32.xlu0 %v6165_v1, %s6920_s14 }
  0xcb   : > { %v1056_v4 = vmax.f32 %v765_v56, %v6003_v62  ;;  %v1057_v5 = vmax.f32 %v766_v57, %v6004_v63  ;;  %v702_v7 = vmax.f32 %v621_v2, 0.0  ;;  %v1183_v8 = vperm.slane %v1055_v0, 0  ;;  %v7180_v57 = vpop.f32.mrf.mxu2 }
  0xcc   : > { %v1058_v13 = vmax.f32 %v767_v58, %v6005_v3 }
  0xcd   : > { %v1184_v9 = vperm.slane %v1056_v4, 0  ;;  %v1185_v10 = vperm.slane %v1057_v5, 0  ;;  %v730_v12 = vmax.f32 %v700_v6, %v702_v7 }
  0xce   : > { %v1186_v27 = vperm.slane %v1058_v13, 0 }
  0xcf   : > { %v1253_v14 = vsel %vm1239_vm2, %v1184_v9, %v1183_v8  ;;  %v768_v15 = vrot.slane %v730_v12, 2  ;;  %v769_v16 = vrot.slane %v730_v12, 4  ;;  %v770_v17 = vrot.slane %v730_v12, 6 }
  0xd0   : > { %v6006_v18 = vrot.slane %v730_v12, 9  ;;  %v623_v19 = vpop.f32.mrf.mxu0  ;;  %v1254_v22 = vsel %vm1241_vm3, %v1185_v10, %v1253_v14 }
  0xd1   : > { %v6007_v23 = vrot.slane %v768_v15, 9  ;;  %v6008_v24 = vrot.slane %v769_v16, 9  ;;  %v6009_v26 = vrot.slane %v770_v17, 9  ;;  %v1255_v36 = vsel %vm1243_vm4, %v1186_v27, %v1254_v22 }
  0xd2   : > { %v1059_v25 = vmax.f32 %v730_v12, %v6006_v18  ;;  %v624_v58 = vadd.f32 %v7077_v32, %v623_v19 }
  0xd3   : > { %v1060_v30 = vmax.f32 %v768_v15, %v6007_v23  ;;  %v1061_v33 = vmax.f32 %v769_v16, %v6008_v24  ;;  %v1062_v34 = vmax.f32 %v770_v17, %v6009_v26  ;;  %v7193_v8 = vpop.f32.mrf.mxu2 }
  0xd4   : > { %v1187_v31 = vperm.slane %v1059_v25, 0  ;;  %v703_v63 = vmax.f32 %v624_v58, 0.0 }
  0xd5   : > { %v1188_v38 = vperm.slane %v1060_v30, 0  ;;  %v1189_v39 = vperm.slane %v1061_v33, 0  ;;  %v1190_v42 = vperm.slane %v1062_v34, 0 }
  0xd6   : > { %v1256_v40 = vsel %vm1245_vm5, %v1187_v31, %v1255_v36 }
  0xd7   : > { %v1257_v44 = vsel %vm1247_vm6, %v1188_v38, %v1256_v40 }
  0xd8   : > { %v626_v41 = vpop.f32.mrf.mxu0  ;;  %v1258_v45 = vsel %vm1249_vm7, %v1189_v39, %v1257_v44 }
  0xd9   : > { %v1259_v46 = vsel %vm1251_vm8, %v1190_v42, %v1258_v45  ;;  %v627_v6 = vadd.f32 %v7077_v32, %v626_v41 }
  0xda   : > { %v1305_v48 = vrot.slane %v1259_v46, 7 }
  0xdb   : > { %v704_v17 = vmax.f32 %v627_v6, 0.0  ;;  %v7198_v40 = vpop.f32.mrf.mxu2 }
  0xdc   : > { %v7171_v50 = vsel %vm578_vm0, 0.0, %v1305_v48  ;;  %v7174_v51 = vsel %vm578_vm0, %v1305_v48, 0.0 }
  0xdd   : > { %v6170_v52 = vpack.i.bf16 %v7171_v50, %v7121_v35  ;;  %v1411_v53 = vrot.slane %v7171_v50, 2  ;;  %v1412_v56 = vrot.slane %v7174_v51, 2 }
  0xdf   : > { %6171 = vrot.lane.b32.xlu1 %v6170_v52, %s6921_s16  ;;  %v7185_v60 = vsel %vm1404_vm10, %v1411_v53, %v1412_v56 }
  0xe0   : > { %v629_v59 = vpop.f32.mrf.mxu0  ;;  %6058 = vmatmul.msk.f32.vlgmr.msra.gmra.mxu3 %vm1565_vm11, %v7185_v60  ;;  %v6220_v62 = vpack.i.bf16 %v7185_v60, %v7156_v55 }
  0xe1   : > { %v630_v61 = vadd.f32 %v7077_v32, %v629_v59 }
  0xe3   : > { %v705_v0 = vmax.f32 %v630_v61, 0.0 }
  0xe5   : > { %v731_v1 = vmax.f32 %v703_v63, %v705_v0 }
  0xe7   : > { %v771_v2 = vrot.slane %v731_v1, 2  ;;  %v772_v3 = vrot.slane %v731_v1, 4  ;;  %v773_v4 = vrot.slane %v731_v1, 6  ;;  %v6010_v5 = vrot.slane %v731_v1, 9 }
  0xe8   : > { %v632_v7 = vpop.f32.mrf.mxu0 }
  0xe9   : > { %v6011_v9 = vrot.slane %v771_v2, 9  ;;  %v6012_v10 = vrot.slane %v772_v3, 9  ;;  %v1063_v12 = vmax.f32 %v731_v1, %v6010_v5  ;;  %v633_v13 = vadd.f32 %v7077_v32, %v632_v7 }
  0xea   : > { %v6013_v14 = vrot.slane %v773_v4, 9  ;;  %v1363_v5 = vrot.slane %v7174_v51, 1 }
  0xeb   : > { %v1064_v15 = vmax.f32 %v771_v2, %v6011_v9  ;;  %v1065_v16 = vmax.f32 %v772_v3, %v6012_v10  ;;  %v706_v18 = vmax.f32 %v633_v13, 0.0  ;;  %v1191_v19 = vperm.slane %v1063_v12, 0 }
  0xec   : > { %v1066_v25 = vmax.f32 %v773_v4, %v6013_v14  ;;  %v677_v4 = vpop.f32.mrf.mxu2  ;;  %v1362_v9 = vrot.slane %v7171_v50, 1 }
  0xed   : > { %v1192_v22 = vperm.slane %v1064_v15, 0  ;;  %v1193_v23 = vperm.slane %v1065_v16, 0  ;;  %v732_v24 = vmax.f32 %v704_v17, %v706_v18 }
  0xee   : > { %v1194_v44 = vperm.slane %v1066_v25, 0 }
  0xef   : > { %v1260_v26 = vsel %vm1239_vm2, %v1192_v22, %v1191_v19  ;;  %v774_v27 = vrot.slane %v732_v24, 2  ;;  %v775_v30 = vrot.slane %v732_v24, 4  ;;  %v6014_v31 = vrot.slane %v732_v24, 9 }
  0xf0   : > { %v635_v33 = vpop.f32.mrf.mxu0  ;;  %v776_v34 = vrot.slane %v732_v24, 6  ;;  %v1261_v36 = vsel %vm1241_vm3, %v1193_v23, %v1260_v26  ;;  %v7223_v19 = vsel %vm1355_vm9, %v1362_v9, %v1363_v5 }
  0xf1   : > { %v6015_v38 = vrot.slane %v774_v27, 9  ;;  %v1067_v39 = vmax.f32 %v732_v24, %v6014_v31  ;;  %v6016_v41 = vrot.slane %v775_v30, 9  ;;  %v1262_v53 = vsel %vm1243_vm4, %v1194_v44, %v1261_v36 }
  0xf2   : > { %v6017_v42 = vrot.slane %v776_v34, 9  ;;  %v636_v14 = vadd.f32 %v7077_v32, %v635_v33 }
  0xf3   : > { %v1068_v45 = vmax.f32 %v774_v27, %v6015_v38  ;;  %v1195_v46 = vperm.slane %v1067_v39, 0  ;;  %v1069_v48 = vmax.f32 %v775_v30, %v6016_v41 }
  0xf4   : > { %v1070_v52 = vmax.f32 %v776_v34, %v6017_v42  ;;  %v707_v24 = vmax.f32 %v636_v14, 0.0  ;;  %v7235_v27 = vpop.f32.mrf.mxu2 }
  0xf5   : > { %v1196_v56 = vperm.slane %v1068_v45, 0  ;;  %v1197_v58 = vperm.slane %v1069_v48, 0  ;;  %v1263_v59 = vsel %vm1245_vm5, %v1195_v46, %v1262_v53 }
  0xf6   : > { %v1198_v63 = vperm.slane %v1070_v52, 0 }
  0xf7   : > { %v1264_v0 = vsel %vm1247_vm6, %v1196_v56, %v1263_v59 }
  0xf8   : > { %v638_v61 = vpop.f32.mrf.mxu0  ;;  %v1265_v1 = vsel %vm1249_vm7, %v1197_v58, %v1264_v0 }
  0xf9   : > { %v1266_v2 = vsel %vm1251_vm8, %v1198_v63, %v1265_v1  ;;  %v639_v36 = vadd.f32 %v7077_v32, %v638_v61 }
  0xfa   : > { %v1306_v3 = vrot.slane %v1266_v2, 7 }
  0xfb   : > { %v708_v52 = vmax.f32 %v639_v36, 0.0 }
  0xfc   : > { %v7207_v6 = vsel %vm578_vm0, 0.0, %v1306_v3  ;;  %v1333_v7 = vsel %vm578_vm0, %v1306_v3, 0.0  ;;  %v7240_v9 = vpop.f32.mrf.mxu2 }
  0xfd   : > { %v1366_v10 = vrot.slane %v1333_v7, 1  ;;  %v1414_v12 = vrot.slane %v7207_v6, 2  ;;  %v1415_v13 = vrot.slane %v1333_v7, 2  ;;  %v1365_v15 = vrot.slane %v7207_v6, 1 }
  0xff   : > { %v7215_v17 = vsel %vm1404_vm10, %v1414_v12, %v1415_v13  ;;  %v7226_v22 = vsel %vm1355_vm9, %v1365_v15, %v1366_v10  ;;  %v672_v10 = vadd.f32 %v7077_v32, %v7193_v8  ;;  %v678_v12 = vadd.f32 %v7077_v32, %v677_v4  ;;  %v1631_v4 = vld [vmem:[%s11009_s3 + $0x78] sm:$0xff] }
 0x100   : > { %v641_v16 = vpop.f32.mrf.mxu0  ;;  %6059 = vmatmul.msk.f32.gmra.mxu3 %vm1565_vm11, %v7215_v17  ;;  %v6180_v18 = vpack.i.bf16 %v7215_v17, %v7185_v60  ;;  %v7230_v23 = vpack.i.bf16 %v7226_v22, %v7223_v19  ;;  %1672 = vmatpush.msrb.mxu2 %v1631_v4  ;;  %v684_v4 = vadd.f32 %v7077_v32, %v7240_v9 }
 0x101   : > { %v642_v51 = vadd.f32 %v7077_v32, %v641_v16 }
 0x102   : > { %6181 = vrot.lane.b32.xlu2 %v6180_v18, %s6920_s14  ;;  %6176 = vrot.lane.b32.xlu1 %v7230_v23, %s6919_s12 }
 0x103   : > { %v709_v25 = vmax.f32 %v642_v51, 0.0 }
 0x105   : > { %v733_v26 = vmax.f32 %v707_v24, %v709_v25 }
 0x107   : > { %v777_v30 = vrot.slane %v733_v26, 2  ;;  %v778_v31 = vrot.slane %v733_v26, 4  ;;  %v779_v33 = vrot.slane %v733_v26, 6  ;;  %v6018_v34 = vrot.slane %v733_v26, 9 }
 0x108   : > { %v644_v38 = vpop.f32.mrf.mxu0 }
 0x109   : > { %v6019_v39 = vrot.slane %v777_v30, 9  ;;  %v6020_v41 = vrot.slane %v778_v31, 9  ;;  %v1071_v42 = vmax.f32 %v733_v26, %v6018_v34  ;;  %v645_v44 = vadd.f32 %v7077_v32, %v644_v38 }
 0x10a   : > { %v6021_v45 = vrot.slane %v779_v33, 9  ;;  %v721_v34 = vmax.f32 %v678_v12, 0.0 }
 0x10b   : > { %v1072_v46 = vmax.f32 %v777_v30, %v6019_v39  ;;  %v1073_v48 = vmax.f32 %v778_v31, %v6020_v41  ;;  %v710_v53 = vmax.f32 %v645_v44, 0.0  ;;  %v1199_v56 = vperm.slane %v1071_v42, 0 }
 0x10c   : > { %v1074_v0 = vmax.f32 %v779_v33, %v6021_v45  ;;  %v719_v31 = vmax.f32 %v672_v10, 0.0  ;;  %v1630_v45 = vld [vmem:[%s11009_s3 + $0x70] sm:$0xff] }
 0x10d   : > { %v1200_v58 = vperm.slane %v1072_v46, 0  ;;  %v1201_v59 = vperm.slane %v1073_v48, 0  ;;  %v734_v63 = vmax.f32 %v708_v52, %v710_v53  ;;  %v7258_v48 = vpop.f32.mrf.mxu2  ;;  %1673 = vmatpush.msrb.mxu2 %v1630_v45 }
 0x10e   : > { %v1202_v18 = vperm.slane %v1074_v0, 0  ;;  %v7256_v46 = vmax.f32 %v719_v31, %v721_v34  ;;  %v1625_v31 = vld [vmem:[%s11009_s3 + $0x48] sm:$0xff] }
 0x10f   : > { %v1267_v1 = vsel %vm1239_vm2, %v1200_v58, %v1199_v56  ;;  %v780_v2 = vrot.slane %v734_v63, 2  ;;  %v781_v61 = vrot.slane %v734_v63, 4  ;;  %v782_v3 = vrot.slane %v734_v63, 6  ;;  %v1629_v56 = vld [vmem:[%s11009_s3 + $0x68] sm:$0xff] }
 0x110   : > { %v6022_v5 = vrot.slane %v734_v63, 9  ;;  %v647_v7 = vpop.f32.mrf.mxu0  ;;  %v1268_v13 = vsel %vm1241_vm3, %v1201_v59, %v1267_v1  ;;  %1674 = vmatpush.msrb.mxu2 %v1629_v56  ;;  %v795_v0 = vrot.slane %v7256_v46, 2  ;;  %v796_v10 = vrot.slane %v7256_v46, 4 }
 0x111   : > { %v6023_v14 = vrot.slane %v780_v2, 9  ;;  %v6024_v15 = vrot.slane %v781_v61, 9  ;;  %v6025_v16 = vrot.slane %v782_v3, 9  ;;  %v1269_v33 = vsel %vm1243_vm4, %v1202_v18, %v1268_v13 }
 0x112   : > { %v1075_v51 = vmax.f32 %v734_v63, %v6022_v5  ;;  %v1628_v63 = vld [vmem:[%s11009_s3 + $0x60] sm:$0xff]  ;;  %v1627_v5 = vld [vmem:[%s11009_s3 + $0x58] sm:$0xff]  ;;  %v6043_v18 = vrot.slane %v795_v0, 9 }
 0x113   : > { %v1076_v24 = vmax.f32 %v780_v2, %v6023_v14  ;;  %v1077_v25 = vmax.f32 %v781_v61, %v6024_v15  ;;  %v1078_v30 = vmax.f32 %v782_v3, %v6025_v16  ;;  %1675 = vmatpush.msrb.mxu2 %v1628_v63  ;;  %v648_v3 = vadd.f32 %v7077_v32, %v647_v7  ;;  %v1626_v16 = vld [vmem:[%s11009_s3 + $0x50] sm:$0xff] }
 0x114   : > { %v1203_v26 = vperm.slane %v1075_v51, 0  ;;  %v675_v14 = vadd.f32 %v7077_v32, %v7198_v40  ;;  %v681_v15 = vadd.f32 %v7077_v32, %v7235_v27  ;;  %v6042_v51 = vrot.slane %v7256_v46, 9 }
 0x115   : > { %v1204_v36 = vperm.slane %v1076_v24, 0  ;;  %v1205_v38 = vperm.slane %v1077_v25, 0  ;;  %v1206_v41 = vperm.slane %v1078_v30, 0  ;;  %1676 = vmatpush.msrb.mxu2 %v1627_v5  ;;  %v711_v40 = vmax.f32 %v648_v3, 0.0  ;;  %v689_v30 = vpop.f32.mrf.mxu2  ;;  %v1623_v3 = vld [vmem:[%s11009_s3 + $0x38] sm:$0xff] }
 0x116   : > { %v1270_v8 = vsel %vm1245_vm5, %v1203_v26, %v1269_v33  ;;  %v797_v27 = vrot.slane %v7256_v46, 6  ;;  %v6044_v26 = vrot.slane %v796_v10, 9  ;;  %v720_v33 = vmax.f32 %v675_v14, 0.0 }
 0x117   : > { %v1271_v42 = vsel %vm1247_vm6, %v1204_v36, %v1270_v8  ;;  %1677 = vmatpush.msrb.mxu2 %v1626_v16  ;;  %v722_v34 = vmax.f32 %v681_v15, 0.0  ;;  %v1096_v8 = vmax.f32 %v795_v0, %v6043_v18  ;;  %v723_v14 = vmax.f32 %v684_v4, 0.0 }
 0x118   : > { %v650_v39 = vpop.f32.mrf.mxu0  ;;  %v1272_v44 = vsel %vm1249_vm7, %v1205_v38, %v1271_v42  ;;  %v1095_v38 = vmax.f32 %v7256_v46, %v6042_v51  ;;  %v6045_v56 = vrot.slane %v797_v27, 9  ;;  %v7311_v63 = vmax.f32 %v796_v10, %v6044_v26  ;;  %v1622_v51 = vld [vmem:[%s11009_s3 + $0x30] sm:$0xff] }
 0x119   : > { %v1273_v52 = vsel %vm1251_vm8, %v1206_v41, %v1272_v44  ;;  %1678 = vmatpush.msrb.mxu2 %v1625_v31  ;;  %v690_v41 = vadd.f32 %v7077_v32, %v689_v30  ;;  %v7314_v0 = vmax.f32 %v720_v33, %v722_v34  ;;  %v7325_v18 = vadd.f32 %v7077_v32, %v7180_v57 }
 0x11a   : > { %v1307_v53 = vrot.slane %v1273_v52, 7  ;;  %v1223_v5 = vperm.slane %v1095_v38, 0  ;;  %v1225_v30 = vperm.slane %v7311_v63, 0 }
 0x11b   : > { %v725_v16 = vmax.f32 %v690_v41, 0.0  ;;  %v798_v31 = vrot.slane %v7314_v0, 2  ;;  %v799_v57 = vrot.slane %v7314_v0, 4  ;;  %v718_v49 = vmax.f32 %v7325_v18, 0.0 }
 0x11c   : > { %v7265_v58 = vsel %vm578_vm0, 0.0, %v1307_v53  ;;  %v7268_v59 = vsel %vm578_vm0, %v1307_v53, 0.0  ;;  %v1624_v53 = vld [vmem:[%s11009_s3 + $0x40] sm:$0xff] }
 0x11d   : > { %v6185_v1 = vpack.i.bf16 %v7265_v58, %v7207_v6  ;;  %v1417_v2 = vrot.slane %v7265_v58, 2  ;;  %v1418_v61 = vrot.slane %v7268_v59, 2  ;;  %1679 = vmatpush.msrb.mxu2 %v1624_v53  ;;  %v692_v4 = vpop.f32.mrf.mxu2  ;;  %v1620_v53 = vld [vmem:[%s11009_s3 + $0x20] sm:$0xff] }
 0x11f   : > { %6186 = vrot.lane.b32.xlu2 %v6185_v1, %s6921_s16  ;;  %v7285_v13 = vsel %vm1404_vm10, %v1417_v2, %v1418_v61  ;;  %v651_v1 = vadd.f32 %v7077_v32, %v650_v39  ;;  %1680 = vmatpush.msrb.mxu2 %v1623_v3  ;;  %v6047_v3 = vrot.slane %v798_v31, 9 }
 0x120   : > { %v653_v12 = vpop.f32.mrf.mxu0  ;;  %6060 = vmatmul.msk.f32.gmra.mxu3 %vm1565_vm11, %v7285_v13 }
 0x121   : > { %v654_v7 = vadd.f32 %v7077_v32, %v653_v12  ;;  %v1224_v12 = vperm.slane %v1096_v8, 0  ;;  %1681 = vmatpush.msrb.mxu2 %v1622_v51 }
 0x123   : > { %v713_v25 = vmax.f32 %v654_v7, 0.0  ;;  %v7335_v38 = vsel %vm1239_vm2, %v1224_v12, %v1223_v5  ;;  %v693_v5 = vadd.f32 %v7077_v32, %v692_v4  ;;  %v1618_v12 = vld [vmem:[%s11009_s3 + $0x10] sm:$0xff] }
 0x125   : > { %v735_v36 = vmax.f32 %v711_v40, %v713_v25  ;;  %v7327_v40 = vmax.f32 %v797_v27, %v6045_v56  ;;  %v712_v25 = vmax.f32 %v651_v1, 0.0  ;;  %v7340_v27 = vadd.f32 %v7077_v32, %v7258_v48 }
 0x127   : > { %v783_v42 = vrot.slane %v735_v36, 2  ;;  %v784_v44 = vrot.slane %v735_v36, 4  ;;  %v785_v45 = vrot.slane %v735_v36, 6  ;;  %v6026_v52 = vrot.slane %v735_v36, 9 }
 0x128   : > { %v656_v46 = vpop.f32.mrf.mxu0 }
 0x129   : > { %v6027_v9 = vrot.slane %v783_v42, 9  ;;  %v6028_v2 = vrot.slane %v784_v44, 9  ;;  %v1079_v61 = vmax.f32 %v735_v36, %v6026_v52  ;;  %v657_v15 = vadd.f32 %v7077_v32, %v656_v46  ;;  %v1621_v36 = vld [vmem:[%s11009_s3 + $0x28] sm:$0xff] }
 0x12a   : > { %v6029_v10 = vrot.slane %v785_v45, 9  ;;  %1682 = vmatpush.msrb.mxu2 %v1621_v36  ;;  %v7343_v52 = vmax.f32 %v723_v14, %v725_v16 }
 0x12b   : > { %v1080_v7 = vmax.f32 %v783_v42, %v6027_v9  ;;  %v1081_v39 = vmax.f32 %v784_v44, %v6028_v2  ;;  %v714_v26 = vmax.f32 %v657_v15, 0.0  ;;  %v1207_v33 = vperm.slane %v1079_v61, 0 }
 0x12c   : > { %v1082_v41 = vmax.f32 %v785_v45, %v6029_v10  ;;  %1683 = vmatpush.msrb.mxu2 %v1620_v53  ;;  %v1619_v45 = vld [vmem:[%s11009_s3 + $0x18] sm:$0xff]  ;;  %v800_v2 = vrot.slane %v7314_v0, 6  ;;  %v6046_v61 = vrot.slane %v7314_v0, 9  ;;  %v801_v16 = vrot.slane %v7343_v52, 2 }
 0x12d   : > { %v1208_v34 = vperm.slane %v1080_v7, 0  ;;  %v736_v8 = vmax.f32 %v712_v25, %v714_v26  ;;  %v1209_v42 = vperm.slane %v1081_v39, 0  ;;  %v802_v51 = vrot.slane %v7343_v52, 4  ;;  %v1617_v26 = vld [vmem:[%s11009_s3 + $0x8] sm:$0xff] }
 0x12e   : > { %1684 = vmatpush.msrb.mxu2 %v1619_v45  ;;  %v1210_v39 = vperm.slane %v1082_v41, 0  ;;  %v6049_v53 = vrot.slane %v800_v2, 9  ;;  %v1099_v41 = vmax.f32 %v7314_v0, %v6046_v61  ;;  %v803_v61 = vrot.slane %v7343_v52, 6 }
 0x12f   : > { %v1274_v44 = vsel %vm1239_vm2, %v1208_v34, %v1207_v33  ;;  %v786_v56 = vrot.slane %v736_v8, 2  ;;  %v787_v1 = vrot.slane %v736_v8, 4  ;;  %v6030_v46 = vrot.slane %v736_v8, 9 }
 0x130   : > { %v7348_v9 = vpop.f32.mrf.mxu0  ;;  %v788_v48 = vrot.slane %v736_v8, 6  ;;  %v1275_v25 = vsel %vm1241_vm3, %v1209_v42, %v1274_v44  ;;  %1685 = vmatpush.msrb.mxu2 %v1618_v12  ;;  %v1616_v42 = vld [vmem:[%s11009_s3] sm:$0xff]  ;;  %v6050_v44 = vrot.slane %v7343_v52, 9  ;;  %v6051_v12 = vrot.slane %v801_v16, 9 }
 0x131   : > { %v6031_v14 = vrot.slane %v786_v56, 9  ;;  %v1083_v15 = vmax.f32 %v736_v8, %v6030_v46  ;;  %v6032_v10 = vrot.slane %v787_v1, 9  ;;  %v6048_v8 = vrot.slane %v799_v57, 9 }
 0x132   : > { %v6033_v7 = vrot.slane %v788_v48, 9  ;;  %v724_v46 = vmax.f32 %v7340_v27, 0.0  ;;  %1686 = vmatpush.msrb.mxu2 %v1617_v26  ;;  %v1104_v18 = vmax.f32 %v801_v16, %v6051_v12 }
 0x133   : > { %v1084_v33 = vmax.f32 %v786_v56, %v6031_v14  ;;  %v1211_v34 = vperm.slane %v1083_v15, 0  ;;  %v1085_v36 = vmax.f32 %v787_v1, %v6032_v10  ;;  %v1276_v1 = vsel %vm1243_vm4, %v1210_v39, %v1275_v25 }
 0x134   : > { %v1086_v4 = vmax.f32 %v788_v48, %v6033_v7  ;;  %v1100_v48 = vmax.f32 %v798_v31, %v6047_v3  ;;  %v726_v14 = vmax.f32 %v693_v5, 0.0  ;;  %v6052_v10 = vrot.slane %v802_v51, 9  ;;  %1687 = vmatpush.msrb.mxu2 %v1616_v42 }
 0x135   : > { %v1212_v45 = vperm.slane %v1084_v33, 0  ;;  %v1213_v56 = vperm.slane %v1085_v36, 0  ;;  %v1277_v15 = vsel %vm1245_vm5, %v1211_v34, %v1276_v1  ;;  %v1226_v33 = vperm.slane %v7327_v40, 0 }
 0x136   : > { %v1214_v7 = vperm.slane %v1086_v4, 0  ;;  %v1289_v3 = vsel %vm1241_vm3, %v1225_v30, %v7335_v38  ;;  %v1101_v5 = vmax.f32 %v799_v57, %v6048_v8  ;;  %v1103_v25 = vmax.f32 %v7343_v52, %v6050_v44 }
 0x137   : > { %v1278_v47 = vsel %vm1247_vm6, %v1212_v45, %v1277_v15  ;;  %v7389_v34 = vmax.f32 %v800_v2, %v6049_v53  ;;  %v7391_v40 = vmax.f32 %v724_v46, %v726_v14  ;;  %v1227_v4 = vperm.slane %v1099_v41, 0 }
 0x138   : > { %v662_v27 = vpop.f32.mrf.mxu0  ;;  %v1279_v31 = vsel %vm1249_vm7, %v1213_v56, %v1278_v47  ;;  %v1228_v47 = vperm.slane %v1100_v48, 0  ;;  %v6053_v42 = vrot.slane %v803_v61, 9  ;;  %v1105_v45 = vmax.f32 %v802_v51, %v6052_v10 }
 0x139   : > { %v663_v39 = vadd.f32 %v7077_v32, %v662_v27  ;;  %v1280_v26 = vsel %vm1251_vm8, %v1214_v7, %v1279_v31  ;;  %v1290_v38 = vsel %vm1243_vm4, %v1226_v33, %v1289_v3  ;;  %v1229_v57 = vperm.slane %v1101_v5, 0 }
 0x13a   : > { %v1308_v36 = vrot.slane %v1280_v26, 7  ;;  %v1231_v52 = vperm.slane %v1103_v25, 0  ;;  %v1369_v8 = vrot.slane %v7268_v59, 1  ;;  %v1232_v53 = vperm.slane %v1104_v18, 0 }
 0x13b   : > { %v716_v63 = vmax.f32 %v663_v39, 0.0  ;;  %v804_v41 = vrot.slane %v7391_v40, 2  ;;  %v1368_v51 = vrot.slane %v7265_v58, 1  ;;  %v660_v46 = vadd.f32 %v7077_v32, %v7348_v9  ;;  %v7417_v39 = vpop.permute.xlu0 %6161 }
 0x13c   : > { %v7394_v30 = vsel %vm578_vm0, 0.0, %v1308_v36  ;;  %v1335_v0 = vsel %vm578_vm0, %v1308_v36, 0.0  ;;  %v1291_v48 = vsel %vm1245_vm5, %v1227_v4, %v1290_v38  ;;  %v1106_v12 = vmax.f32 %v803_v61, %v6053_v42 }
 0x13d   : > { %v1372_v2 = vrot.slane %v1335_v0, 1  ;;  %v1420_v16 = vrot.slane %v7394_v30, 2  ;;  %v1421_v56 = vrot.slane %v1335_v0, 2  ;;  %v1371_v1 = vrot.slane %v7394_v30, 1 }
 0x13e   : > { %v1233_v14 = vperm.slane %v1105_v45, 0  ;;  %v805_v15 = vrot.slane %v7391_v40, 4  ;;  %v7407_v10 = vmax.f32 %v716_v63, %v718_v49  ;;  %v6054_v59 = vrot.slane %v7391_v40, 9 }
 0x13f   : > { %v7412_v7 = vsel %vm1404_vm10, %v1420_v16, %v1421_v56  ;;  %v7415_v9 = vsel %vm1355_vm9, %v1371_v1, %v1372_v2  ;;  %v6055_v33 = vrot.slane %v804_v41, 9  ;;  %v7424_v61 = vsel %vm1355_vm9, %v1368_v51, %v1369_v8 }
 0x140   : > { %v665_v44 = vpop.f32.mrf.mxu0  ;;  %6061 = vmatmul.msk.f32.gmra.mxu3 %vm1565_vm11, %v7412_v7  ;;  %v6195_v49 = vpack.i.bf16 %v7412_v7, %v7285_v13  ;;  %v1295_v31 = vsel %vm1239_vm2, %v1232_v53, %v1231_v52  ;;  %v715_v3 = vmax.f32 %v660_v46, 0.0  ;;  %v6190_v25 = vpack.i.bf16 %v7415_v9, %v7424_v61 }
 0x141   : > { %v666_v27 = vadd.f32 %v7077_v32, %v665_v44  ;;  %v1292_v32 = vsel %vm1247_vm6, %v1228_v47, %v1291_v48  ;;  %v1234_v26 = vperm.slane %v1106_v12, 0  ;;  %v806_v18 = vrot.slane %v7391_v40, 6 }
 0x142   : > { %v792_v36 = vrot.slane %v7407_v10, 2  ;;  %6196 = vrot.lane.b32.xlu1 %v6195_v49, %s6920_s14  ;;  %v1230_v4 = vperm.slane %v7389_v34, 0  ;;  %v6056_v42 = vrot.slane %v805_v15, 9  ;;  %v1107_v45 = vmax.f32 %v7391_v40, %v6054_v59  ;;  %6191 = vrot.lane.b32.xlu0 %v6190_v25, %s6919_s12 }
 0x143   : > { %v717_v5 = vmax.f32 %v666_v27, 0.0  ;;  %v1293_v63 = vsel %vm1249_vm7, %v1229_v57, %v1292_v32  ;;  %v1108_v0 = vmax.f32 %v804_v41, %v6055_v33  ;;  %v793_v38 = vrot.slane %v7407_v10, 4 }
 0x144   : > { %v794_v52 = vrot.slane %v7407_v10, 6  ;;  %v1296_v2 = vsel %vm1241_vm3, %v1233_v14, %v1295_v31  ;;  %v6038_v34 = vrot.slane %v7407_v10, 9  ;;  %v6039_v46 = vrot.slane %v792_v36, 9 }
 0x145   : > { %v737_v47 = vmax.f32 %v715_v3, %v717_v5  ;;  %v1294_v40 = vsel %vm1251_vm8, %v1230_v4, %v1293_v63  ;;  %v6057_v44 = vrot.slane %v806_v18, 9  ;;  %v1235_v48 = vperm.slane %v1107_v45, 0  ;;  %v6167_v3 = vpop.permute.xlu0 %6166 }
 0x146   : > { %v6040_v12 = vrot.slane %v793_v38, 9  ;;  %v1109_v59 = vmax.f32 %v805_v15, %v6056_v42  ;;  %v1297_v27 = vsel %vm1243_vm4, %v1234_v26, %v1296_v2  ;;  %v6041_v14 = vrot.slane %v794_v52, 9 }
 0x147   : > { %v789_v16 = vrot.slane %v737_v47, 2  ;;  %v790_v8 = vrot.slane %v737_v47, 4  ;;  %v791_v53 = vrot.slane %v737_v47, 6  ;;  %v6034_v51 = vrot.slane %v737_v47, 9 }
 0x148   : > { %v1091_v31 = vmax.f32 %v7407_v10, %v6038_v34  ;;  %v1310_v5 = vrot.slane %v1294_v40, 7  ;;  %v1110_v25 = vmax.f32 %v806_v18, %v6057_v44  ;;  %v1236_v4 = vperm.slane %v1108_v0, 0 }
 0x149   : > { %v6035_v56 = vrot.slane %v789_v16, 9  ;;  %v6036_v1 = vrot.slane %v790_v8, 9  ;;  %v6037_v57 = vrot.slane %v791_v53, 9  ;;  %v1087_v41 = vmax.f32 %v737_v47, %v6034_v51 }
 0x14a   : > { %v1092_v63 = vmax.f32 %v792_v36, %v6039_v46  ;;  %v6163_v45 = vunpack.i.l.bf16 %v7417_v39  ;;  %v1093_v47 = vmax.f32 %v793_v38, %v6040_v12  ;;  %v1298_v15 = vsel %vm1245_vm5, %v1235_v48, %v1297_v27 }
 0x14b   : > { %v1088_v33 = vmax.f32 %v789_v16, %v6035_v56  ;;  %v1089_v49 = vmax.f32 %v790_v8, %v6036_v1  ;;  %v1090_v32 = vmax.f32 %v791_v53, %v6037_v57  ;;  %v1215_v29 = vperm.slane %v1087_v41, 0 }
 0x14c   : > { %v6168_v26 = vunpack.i.l.bf16 %v6167_v3  ;;  %v1094_v16 = vmax.f32 %v794_v52, %v6041_v14  ;;  %v1219_v10 = vperm.slane %v1091_v31, 0  ;;  %v7449_v18 = vsel %vm578_vm0, 0.0, %v1310_v5 }
 0x14d   : > { %v1216_v28 = vperm.slane %v1088_v33, 0  ;;  %v1217_v24 = vperm.slane %v1089_v49, 0  ;;  %v1218_v42 = vperm.slane %v1090_v32, 0  ;;  %v1237_v36 = vperm.slane %v1109_v59, 0 }
 0x14e   : > { %v1220_v0 = vperm.slane %v1092_v63, 0  ;;  %v1299_v51 = vsel %vm1247_vm6, %v1236_v4, %v1298_v15  ;;  %v1566_v46 = vsel %vm1565_vm11, %v7098_v20, %v6163_v45  ;;  %v1222_v52 = vperm.slane %v1094_v16, 0 }
 0x14f   : > { %v1281_v2 = vsel %vm1239_vm2, %v1216_v28, %v1215_v29  ;;  %v1221_v28 = vperm.slane %v1093_v47, 0  ;;  %v1238_v44 = vperm.slane %v1110_v25, 0  ;;  %v1337_v57 = vsel %vm578_vm0, %v1310_v5, 0.0 }
 0x150   : > { %v1282_v8 = vsel %vm1241_vm3, %v1217_v24, %v1281_v2  ;;  %v1575_v24 = vsel %vm1574_vm12, %v1566_v46, %v6168_v26  ;;  %v1300_v41 = vsel %vm1249_vm7, %v1237_v36, %v1299_v51  ;;  %v6164_v12 = vunpack.i.h.bf16 %v7417_v39 }
 0x151   : > { %v6172_v53 = vpop.permute.xlu1 %6171  ;;  %v1283_v38 = vsel %vm1243_vm4, %v1218_v42, %v1282_v8  ;;  %v1426_v27 = vrot.slane %v7449_v18, 2  ;;  %v6169_v14 = vunpack.i.h.bf16 %v6167_v3  ;;  %v1427_v33 = vrot.slane %v1337_v57, 2 }
 0x152   : > { %v6173_v34 = vunpack.i.l.bf16 %v6172_v53  ;;  %v1284_v29 = vsel %vm1245_vm5, %v1219_v10, %v1283_v38  ;;  %v1377_v49 = vrot.slane %v7449_v18, 1  ;;  %v1301_v32 = vsel %vm1251_vm8, %v1238_v44, %v1300_v41 }
 0x153   : > { %v1285_v40 = vsel %vm1247_vm6, %v1220_v0, %v1284_v29  ;;  %v6174_v31 = vunpack.i.h.bf16 %v6172_v53  ;;  %v1378_v4 = vrot.slane %v1337_v57, 1  ;;  %v1567_v3 = vsel %vm1565_vm11, %v7121_v35, %v6164_v12  ;;  %v1647_v12 = vld [vmem:[%s11009_s3 + $0xf8] sm:$0xff] }
 0x154   : > { %v1584_v56 = vsel %vm1583_vm13, %v1575_v24, %v6173_v34  ;;  %v1286_v1 = vsel %vm1249_vm7, %v1221_v28, %v1285_v40  ;;  %v1311_v26 = vrot.slane %v1301_v32, 7  ;;  %v1576_v2 = vsel %vm1574_vm12, %v1567_v3, %v6169_v14  ;;  %1713 = vmatpush.msra.mxu2 %v1647_v12  ;;  %v1636_v3 = vld [vmem:[%s11009_s3 + $0xa0] sm:$0xff] }
 0x155   : > { %1688 = vmatmul.f32.vlgmr.msrb.gmra.mxu2 %v1584_v56  ;;  %v1287_v48 = vsel %vm1251_vm8, %v1222_v52, %v1286_v1  ;;  %v1428_v16 = vsel %vm1404_vm10, %v1426_v27, %v1427_v33  ;;  %v1585_v10 = vsel %vm1583_vm13, %v1576_v2, %v6174_v31  ;;  %v7487_v35 = vsel %vm1355_vm9, %v1377_v49, %v1378_v4  ;;  %v1644_v49 = vld [vmem:[%s11009_s3 + $0xe0] sm:$0xff]  ;;  %v1643_v31 = vld [vmem:[%s11009_s3 + $0xd8] sm:$0xff]  ;;  %v1641_v4 = vld [vmem:[%s11009_s3 + $0xc8] sm:$0xff] }
 0x156   : > { %v1309_v59 = vrot.slane %v1287_v48, 7  ;;  %v1329_v53 = vsel %vm578_vm0, 0.0, %v1311_v26  ;;  %v6225_v51 = vpack.i.bf16 %v7207_v6, %v7171_v50  ;;  %v1338_v34 = vsel %vm578_vm0, %v1311_v26, 0.0 }
 0x157   : > { %v6215_v38 = vpack.i.bf16 %v1329_v53, %v7449_v18  ;;  %v1490_v46 = vrot.slane %v1329_v53, 2  ;;  %v1491_v28 = vrot.slane %v1338_v34, 2  ;;  %v6240_v24 = vpack.i.bf16 %v7394_v30, %v7265_v58 }
 0x158   : > { %v7468_v25 = vsel %vm578_vm0, 0.0, %v1309_v59  ;;  %v1336_v5 = vsel %vm578_vm0, %v1309_v59, 0.0  ;;  %v11059_v52 = vpack.i.bf16 %v7285_v13, %v7215_v17  ;;  %v1646_v59 = vld [vmem:[%s11009_s3 + $0xf0] sm:$0xff]  ;;  %v1479_v14 = vrot.slane %v1329_v53, 1 }
 0x159   : > { %v6200_v63 = vpack.i.bf16 %v7468_v25, %v7394_v30  ;;  %v1375_v39 = vrot.slane %v1336_v5, 1  ;;  %v1423_v45 = vrot.slane %v7468_v25, 2  ;;  %v1424_v47 = vrot.slane %v1336_v5, 2  ;;  %1714 = vmatpush.msra.mxu2 %v1646_v59  ;;  %v1642_v5 = vld [vmem:[%s11009_s3 + $0xd0] sm:$0xff] }
 0x15a   : > { %v1374_v15 = vrot.slane %v7468_v25, 1  ;;  %v1492_v29 = vsel %vm1404_vm10, %v1490_v46, %v1491_v28  ;;  %v1480_v33 = vrot.slane %v1338_v34, 1  ;;  %v1634_v34 = vld [vmem:[%s11009_s3 + $0x90] sm:$0xff] }
 0x15b   : > { %6201 = vrot.lane.b32.xlu2 %v6200_v63, %s6921_s16  ;;  %v1425_v42 = vsel %vm1404_vm10, %v1423_v45, %v1424_v47  ;;  %v1640_v63 = vld [vmem:[%s11009_s3 + $0xc0] sm:$0xff]  ;;  %v1638_v45 = vld [vmem:[%s11009_s3 + $0xb0] sm:$0xff]  ;;  %v1637_v47 = vld [vmem:[%s11009_s3 + $0xa8] sm:$0xff] }
 0x15c   : > { %6062 = vmatmul.msk.f32.gmra.mxu3 %vm1565_vm11, %v1425_v42  ;;  %v6210_v8 = vpack.i.bf16 %v1428_v16, %v1425_v42  ;;  %v7484_v36 = vsel %vm1355_vm9, %v1374_v15, %v1375_v39  ;;  %v6182_v55 = vpop.permute.xlu2 %6181  ;;  %v6245_v60 = vpack.i.bf16 %v1425_v42, %v7412_v7  ;;  %v7555_v32 = vsel %vm1355_vm9, %v1479_v14, %v1480_v33  ;;  %v1639_v39 = vld [vmem:[%s11009_s3 + $0xb8] sm:$0xff] }
 0x15d   : > { %1691 = vmatmul.f32.gmra.mxu2 %v1585_v10  ;;  %v6205_v0 = vpack.i.bf16 %v7487_v35, %v7484_v36  ;;  %v6183_v13 = vunpack.i.l.bf16 %v6182_v55  ;;  %v6184_v41 = vunpack.i.h.bf16 %v6182_v55 }
 0x15e   : > { %6211 = vrot.lane.b32.xlu1 %v6210_v8, %s6920_s14 }
 0x15f   : > { %6206 = vrot.lane.b32.xlu0 %v6205_v0, %s6919_s12 }
 0x163   : > { %6216 = vrot.lane.b32.xlu2 %v6215_v38, %s6921_s16 }
 0x164   : > { %6063 = vmatmul.msk.f32.gmra.mxu3 %vm1565_vm11, %v1428_v16 }
 0x166   : > { %6226 = vrot.lane.b32.xlu1 %v6225_v51, %s6920_s14 }
 0x167   : > { %6221 = vrot.lane.b32.xlu0 %v6220_v62, %s6919_s12 }
 0x16b   : > { %6231 = vrot.lane.b32.xlu2 %v7230_v23, %s6921_s16 }
 0x16c   : > { %6064 = vmatmul.msk.f32.gmra.mxu3 %vm1565_vm11, %v1492_v29 }
 0x16e   : > { %6241 = vrot.lane.b32.xlu1 %v6240_v24, %s6920_s14 }
 0x16f   : > { %6236 = vrot.lane.b32.xlu0 %v11059_v52, %s6919_s12  ;;  %v1632_v52 = vld [vmem:[%s11009_s3 + $0x80] sm:$0xff] }
 0x173   : > { %1545 = vrot.lane.b32.xlu2 %v7424_v61, %s6921_s16 }
 0x174   : > { %6065 = vmatmul.msk.f32.gmra.mxu3 %vm1565_vm11, %v7153_v54  ;;  %v6177_v62 = vpop.permute.xlu1 %6176 }
 0x175   : > { %v6178_v23 = vunpack.i.l.bf16 %v6177_v62  ;;  %v6179_v56 = vunpack.i.h.bf16 %v6177_v62 }
 0x176   : > { %6246 = vrot.lane.b32.xlu1 %v6245_v60, %s6919_s12 }
 0x177   : > { %1547 = vrot.lane.b32.xlu0 %v7415_v9, %s6921_s16  ;;  %v1568_v17 = vsel %vm1565_vm11, %v7171_v50, %v6178_v23  ;;  %v1569_v50 = vsel %vm1565_vm11, %v7207_v6, %v6179_v56  ;;  %v1645_v6 = vld [vmem:[%s11009_s3 + $0xe8] sm:$0xff] }
 0x178   : > { %v1577_v7 = vsel %vm1574_vm12, %v1568_v17, %v6183_v13  ;;  %v1578_v48 = vsel %vm1574_vm12, %v1569_v50, %v6184_v41  ;;  %1715 = vmatpush.msra.mxu2 %v1645_v6 }
 0x179   : > { %v6187_v40 = vpop.permute.xlu2 %6186 }
 0x17a   : > { %v6188_v44 = vunpack.i.l.bf16 %v6187_v40  ;;  %v6189_v57 = vunpack.i.h.bf16 %v6187_v40  ;;  %1716 = vmatpush.msra.mxu2 %v1644_v49 }
 0x17b   : > { %1525 = vrot.lane.b32.xlu2 %v7468_v25, %s6920_s14 }
 0x17c   : > { %v1586_v1 = vsel %vm1583_vm13, %v1577_v7, %v6188_v44  ;;  %v1587_v27 = vsel %vm1583_vm13, %v1578_v48, %v6189_v57  ;;  %1717 = vmatpush.msra.mxu2 %v1643_v31 }
 0x17d   : > { %1694 = vmatmul.f32.gmra.mxu2 %v1586_v1 }
 0x17e   : > { %1527 = vrot.lane.b32.xlu1 %v7449_v18, %s6920_s14  ;;  %1718 = vmatpush.msra.mxu2 %v1642_v5 }
 0x17f   : > { %1549 = vrot.lane.b32.xlu0 %v7484_v36, %s6921_s16 }
 0x180   : > { %1719 = vmatpush.msra.mxu2 %v1641_v4 }
 0x182   : > { %1720 = vmatpush.msra.mxu2 %v1640_v63 }
 0x183   : > { %1551 = vrot.lane.b32.xlu2 %v7487_v35, %s6921_s16 }
 0x184   : > { %1721 = vmatpush.msra.mxu2 %v1639_v39 }
 0x185   : > { %1697 = vmatmul.f32.gmra.mxu2 %v1587_v27 }
 0x186   : > { %1529 = vrot.lane.b32.xlu1 %v1329_v53, %s6920_s14  ;;  %1722 = vmatpush.msra.mxu2 %v1638_v45 }
 0x187   : > { %1505 = vrot.lane.b32.xlu0 %v1428_v16, %s6919_s12  ;;  %v1635_v16 = vld [vmem:[%s11009_s3 + $0x98] sm:$0xff] }
 0x188   : > { %1723 = vmatpush.msra.mxu2 %v1637_v47 }
 0x18a   : > { %1724 = vmatpush.msra.mxu2 %v1636_v3 }
 0x18b   : > { %1553 = vrot.lane.b32.xlu2 %v7555_v32, %s6921_s16 }
 0x18c   : > { %1725 = vmatpush.msra.mxu2 %v1635_v16 }
 0x18e   : > { %1531 = vrot.lane.b32.xlu1 %v7098_v20, %s6920_s14  ;;  %1726 = vmatpush.msra.mxu2 %v1634_v34 }
 0x18f   : > { %1507 = vrot.lane.b32.xlu0 %v1492_v29, %s6919_s12  ;;  %v1633_v29 = vld [vmem:[%s11009_s3 + $0x88] sm:$0xff] }
 0x190   : > { %1727 = vmatpush.msra.mxu2 %v1633_v29 }
 0x192   : > { %1728 = vmatpush.msra.mxu2 %v1632_v52 }
 0x193   : > { %1555 = vrot.lane.b32.xlu2 %v7129_v37, %s6921_s16 }
 0x1b4   : > { %v6197_v26 = vpop.permute.xlu1 %6196  ;;  %v6192_v2 = vpop.permute.xlu0 %6191 }
 0x1b5   : > { %v6202_v15 = vpop.permute.xlu2 %6201  ;;  %v6198_v42 = vunpack.i.l.bf16 %v6197_v26  ;;  %v6193_v10 = vunpack.i.l.bf16 %v6192_v2  ;;  %v6194_v0 = vunpack.i.h.bf16 %v6192_v2  ;;  %v6199_v46 = vunpack.i.h.bf16 %v6197_v26 }
 0x1b6   : > { %v6203_v8 = vunpack.i.l.bf16 %v6202_v15  ;;  %v6204_v24 = vunpack.i.h.bf16 %v6202_v15 }
 0x1b7   : > { %v1570_v53 = vsel %vm1565_vm11, %v7265_v58, %v6193_v10  ;;  %v1571_v28 = vsel %vm1565_vm11, %v7394_v30, %v6194_v0 }
 0x1b8   : > { %v1579_v38 = vsel %vm1574_vm12, %v1570_v53, %v6198_v42  ;;  %v1580_v58 = vsel %vm1574_vm12, %v1571_v28, %v6199_v46 }
 0x1b9   : > { %v1588_v51 = vsel %vm1583_vm13, %v1579_v38, %v6203_v8  ;;  %v1589_v55 = vsel %vm1583_vm13, %v1580_v58, %v6204_v24 }
 0x1ba   : > { %1700 = vmatmul.f32.gmra.mxu2 %v1588_v51 }
 0x1bd   : > { %v6217_v62 = vpop.permute.xlu2 %6216 }
 0x1be   : > { %v6218_v13 = vunpack.i.l.bf16 %v6217_v62  ;;  %v6219_v48 = vunpack.i.h.bf16 %v6217_v62 }
 0x1c2   : > { %1703 = vmatmul.f32.gmra.mxu2 %v1589_v55 }
 0x1c5   : > { %v6232_v14 = vpop.permute.xlu2 %6231 }
 0x1c6   : > { %v6233_v49 = vunpack.i.l.bf16 %v6232_v14  ;;  %v6234_v45 = vunpack.i.h.bf16 %v6232_v14 }
 0x1cd   : > { %v1546_v2 = vpop.permute.xlu2 %1545 }
 0x1d0   : > { %v6212_v60 = vpop.permute.xlu1 %6211 }
 0x1d1   : > { %v6213_v30 = vunpack.i.l.bf16 %v6212_v60  ;;  %v6207_v23 = vpop.permute.xlu0 %6206  ;;  %v6214_v1 = vunpack.i.h.bf16 %v6212_v60 }
 0x1d2   : > { %v6208_v17 = vunpack.i.l.bf16 %v6207_v23  ;;  %v6209_v40 = vunpack.i.h.bf16 %v6207_v23 }
 0x1d4   : > { %v1572_v44 = vsel %vm1565_vm11, %v7468_v25, %v6208_v17  ;;  %v1573_v57 = vsel %vm1565_vm11, %v7449_v18, %v6209_v40 }
 0x1d5   : > { %v1581_v7 = vsel %vm1574_vm12, %v1572_v44, %v6213_v30  ;;  %v1582_v41 = vsel %vm1574_vm12, %v1573_v57, %v6214_v1  ;;  %v1526_v46 = vpop.permute.xlu2 %1525 }
 0x1d6   : > { %v1590_v56 = vsel %vm1583_vm13, %v1581_v7, %v6218_v13  ;;  %v1591_v27 = vsel %vm1583_vm13, %v1582_v41, %v6219_v48 }
 0x1d7   : > { %1706 = vmatmul.f32.gmra.mxu2 %v1590_v56 }
 0x1d8   : > { %v6227_v12 = vpop.permute.xlu1 %6226 }
 0x1d9   : > { %v6222_v50 = vpop.permute.xlu0 %6221  ;;  %v6228_v6 = vunpack.i.l.bf16 %v6227_v12  ;;  %v6229_v5 = vunpack.i.h.bf16 %v6227_v12 }
 0x1da   : > { %v6223_v59 = vunpack.i.l.bf16 %v6222_v50  ;;  %v6224_v31 = vunpack.i.h.bf16 %v6222_v50 }
 0x1dc   : > { %v1592_v25 = vsel %vm1565_vm11, %v7137_v43, %v6223_v59  ;;  %v1593_v4 = vsel %vm1565_vm11, %v7223_v19, %v6224_v31 }
 0x1dd   : > { %v1600_v33 = vsel %vm1574_vm12, %v1592_v25, %v6228_v6  ;;  %v1601_v39 = vsel %vm1574_vm12, %v1593_v4, %v6229_v5  ;;  %v1552_v55 = vpop.permute.xlu2 %1551  ;;  %v1771_v6 = vpop.f32.mrf.mxu3  ;;  %v7662_v25 = vld [vmem:[%s11010_s4] ss:$0 sm:$0xff] }
 0x1de   : > { %v1608_v18 = vsel %vm1583_vm13, %v1600_v33, %v6233_v49  ;;  %v1609_v43 = vsel %vm1583_vm13, %v1601_v39, %v6234_v45 }
 0x1df   : > { %1709 = vmatmul.f32.gmra.mxu2 %v1591_v27 }
 0x1e0   : > { %v6242_v47 = vpop.permute.xlu1 %6241 }
 0x1e1   : > { %v6237_v63 = vpop.permute.xlu0 %6236  ;;  %v6243_v15 = vunpack.i.l.bf16 %v6242_v47  ;;  %v6244_v8 = vunpack.i.h.bf16 %v6242_v47 }
 0x1e2   : > { %v6238_v3 = vunpack.i.l.bf16 %v6237_v63  ;;  %v6239_v16 = vunpack.i.h.bf16 %v6237_v63 }
 0x1e4   : > { %v1594_v26 = vsel %vm1565_vm11, %v7226_v22, %v6238_v3  ;;  %v1595_v53 = vsel %vm1565_vm11, %v7424_v61, %v6239_v16 }
 0x1e5   : > { %v1602_v42 = vsel %vm1574_vm12, %v1594_v26, %v6243_v15  ;;  %v1603_v38 = vsel %vm1574_vm12, %v1595_v53, %v6244_v8  ;;  %v1554_v17 = vpop.permute.xlu2 %1553  ;;  %v1774_v49 = vpop.f32.mrf.mxu3 }
 0x1e6   : > { %v1610_v10 = vsel %vm1583_vm13, %v1602_v42, %v1546_v2 }
 0x1e7   : > { %1729 = vmatmul.f32.vlgmr.msra.gmra.mxu2 %v1608_v18 }
 0x1e8   : > { %v6247_v0 = vpop.permute.xlu1 %6246 }
 0x1e9   : > { %v1548_v19 = vpop.permute.xlu0 %1547  ;;  %v6248_v51 = vunpack.i.l.bf16 %v6247_v0  ;;  %v6249_v58 = vunpack.i.h.bf16 %v6247_v0 }
 0x1ea   : > { %v1611_v34 = vsel %vm1583_vm13, %v1603_v38, %v1548_v19 }
 0x1eb   : > { %v1596_v28 = vsel %vm1565_vm11, %v7415_v9, %v6248_v51  ;;  %v1597_v61 = vsel %vm1565_vm11, %v7484_v36, %v6249_v58 }
 0x1ec   : > { %v1604_v24 = vsel %vm1574_vm12, %v1596_v28, %v1526_v46 }
 0x1ed   : > { %v1556_v1 = vpop.permute.xlu2 %1555  ;;  %v1777_v45 = vpop.f32.mrf.mxu3 }
 0x1ef   : > { %1732 = vmatmul.f32.gmra.mxu2 %v1609_v43 }
 0x1f0   : > { %v1528_v29 = vpop.permute.xlu1 %1527 }
 0x1f1   : > { %v1550_v22 = vpop.permute.xlu0 %1549  ;;  %v1605_v60 = vsel %vm1574_vm12, %v1597_v61, %v1528_v29 }
 0x1f2   : > { %v1612_v52 = vsel %vm1583_vm13, %v1604_v24, %v1550_v22  ;;  %v1613_v23 = vsel %vm1583_vm13, %v1605_v60, %v1552_v55 }
 0x1f5   : > { %v1780_v53 = vpop.f32.mrf.mxu3 }
 0x1f7   : > { %1735 = vmatmul.f32.gmra.mxu2 %v1610_v10 }
 0x1f8   : > { %v1530_v30 = vpop.permute.xlu1 %1529 }
 0x1f9   : > { %v1506_v62 = vpop.permute.xlu0 %1505 }
 0x1fa   : > { %v1598_v9 = vsel %vm1565_vm11, %v7487_v35, %v1506_v62  ;;  %v1689_v35 = vpop.f32.mrf.mxu2 }
 0x1fb   : > { %v1606_v13 = vsel %vm1574_vm12, %v1598_v9, %v1530_v30  ;;  %v1690_v33 = vadd.f32 %v7662_v25, %v1689_v35 }
 0x1fc   : > { %v1614_v44 = vsel %vm1583_vm13, %v1606_v13, %v1554_v17 }
 0x1fd   : > { %v1783_v17 = vpop.f32.mrf.mxu3 }
 0x1ff   : > { %1738 = vmatmul.f32.gmra.mxu2 %v1611_v34 }
 0x200   : > { %v7646_v7 = vpop.permute.xlu1 %1531 }
 0x201   : > { %v1508_v40 = vpop.permute.xlu0 %1507  ;;  %11060 = vst [vmem:[#allocation5_spill] sm:$0xff] %v7646_v7 }
 0x202   : > { %v1599_v36 = vsel %vm1565_vm11, %v7555_v32, %v1508_v40  ;;  %v1692_v50 = vpop.f32.mrf.mxu2 }
 0x203   : > { %v1607_v56 = vsel %vm1574_vm12, %v1599_v36, %v7646_v7  ;;  %v1693_v18 = vadd.f32 %v7662_v25, %v1692_v50  ;;  %v7673_v36 = vsel %vm1955_vm14, %v7098_v20, 0.0 }
 0x204   : > { %v1615_v57 = vsel %vm1583_vm13, %v1607_v56, %v1556_v1  ;;  %v1965_v1 = vrot.slane %v7673_v36, 1 }
 0x206   : > { %1969 = vrot.lane.b32.xlu2 %v1965_v1, %s6920_s14 }
 0x207   : > { %1741 = vmatmul.f32.gmra.mxu2 %v1612_v52 }
 0x20a   : > { %v1695_v41 = vpop.f32.mrf.mxu2 }
 0x20b   : > { %v1696_v10 = vadd.f32 %v7662_v25, %v1695_v41 }
 0x20f   : > { %1744 = vmatmul.f32.gmra.mxu2 %v1613_v23 }
 0x212   : > { %v1698_v48 = vpop.f32.mrf.mxu2 }
 0x213   : > { %v1699_v28 = vadd.f32 %v7662_v25, %v1698_v48 }
 0x217   : > { %1747 = vmatmul.f32.gmra.mxu2 %v1614_v44 }
 0x21f   : > { %1750 = vmatmul.f32.gmra.mxu2 %v1615_v57 }
 0x23d   : > { %v7651_v12 = vpop.f32.mrf.mxu2 }
 0x245   : > { %v7653_v59 = vpop.f32.mrf.mxu2 }
 0x25a   : > { %v7655_v27 = vpop.f32.mrf.mxu2 }
 0x262   : > { %v7657_v32 = vpop.f32.mrf.mxu2 }
 0x26a   : > { %v1730_v14 = vpop.f32.mrf.mxu2 }
 0x26b   : > { %v1731_v31 = vadd.f32 %v1730_v14, %v1690_v33  ;;  %v1702_v33 = vadd.f32 %v7662_v25, %v7651_v12 }
 0x26d   : > { %v1772_v4 = vadd.f32 %v1771_v6, %v1731_v31 }
 0x26f   : > { %v1795_v47 = vmax.f32 %v1772_v4, 0.0 }
 0x272   : > { %v1733_v5 = vpop.f32.mrf.mxu2 }
 0x273   : > { %v1734_v63 = vadd.f32 %v1733_v5, %v1693_v18 }
 0x275   : > { %v1775_v39 = vadd.f32 %v1774_v49, %v1734_v63 }
 0x277   : > { %v1796_v3 = vmax.f32 %v1775_v39, 0.0 }
 0x279   : > { %v1803_v43 = vmax.f32 %v1795_v47, %v1796_v3  ;;  %v1786_v47 = vpop.f32.mrf.mxu3 }
 0x27a   : > { %v1736_v15 = vpop.f32.mrf.mxu2 }
 0x27b   : > { %v1811_v26 = vrot.slane %v1803_v43, 2  ;;  %v1812_v42 = vrot.slane %v1803_v43, 4  ;;  %v1813_v2 = vrot.slane %v1803_v43, 6  ;;  %v6066_v16 = vrot.slane %v1803_v43, 9 }
 0x27c   : > { %v1737_v51 = vadd.f32 %v1736_v15, %v1696_v10 }
 0x27d   : > { %v6067_v19 = vrot.slane %v1811_v26, 9  ;;  %v6068_v8 = vrot.slane %v1812_v42, 9  ;;  %v6069_v0 = vrot.slane %v1813_v2, 9  ;;  %v1883_v38 = vmax.f32 %v1803_v43, %v6066_v16 }
 0x27e   : > { %v1778_v55 = vadd.f32 %v1777_v45, %v1737_v51  ;;  %v1705_v43 = vadd.f32 %v7662_v25, %v7653_v59 }
 0x27f   : > { %v1884_v34 = vmax.f32 %v1811_v26, %v6067_v19  ;;  %v1885_v46 = vmax.f32 %v1812_v42, %v6068_v8  ;;  %v1886_v22 = vmax.f32 %v1813_v2, %v6069_v0  ;;  %v1915_v29 = vperm.slane %v1883_v38, 0 }
 0x280   : > { %v1797_v40 = vmax.f32 %v1778_v55, 0.0 }
 0x281   : > { %v1916_v24 = vperm.slane %v1884_v34, 0  ;;  %v1917_v58 = vperm.slane %v1885_v46, 0  ;;  %v1918_v60 = vperm.slane %v1886_v22, 0 }
 0x282   : > { %v1739_v52 = vpop.f32.mrf.mxu2 }
 0x283   : > { %v1740_v61 = vadd.f32 %v1739_v52, %v1699_v28  ;;  %v1931_v62 = vsel %vm1239_vm2, %v1916_v24, %v1915_v29  ;;  %v1789_v28 = vpop.f32.mrf.mxu3 }
 0x284   : > { %v1932_v30 = vsel %vm1241_vm3, %v1917_v58, %v1931_v62  ;;  %v1708_v62 = vadd.f32 %v7662_v25, %v7655_v27 }
 0x285   : > { %v1781_v23 = vadd.f32 %v1780_v53, %v1740_v61  ;;  %v1933_v9 = vsel %vm1243_vm4, %v1918_v60, %v1932_v30 }
 0x286   : > { %v1943_v13 = vrot.slane %v1933_v9, 7 }
 0x287   : > { %v1798_v44 = vmax.f32 %v1781_v23, 0.0 }
 0x288   : > { %v1951_v56 = vsel %vm578_vm0, 0.0, %v1943_v13 }
 0x289   : > { %v1804_v57 = vmax.f32 %v1797_v40, %v1798_v44  ;;  %v7678_v35 = vsel %vm1955_vm14, %v1951_v56, 0.0 }
 0x28a   : > { %v1742_v50 = vpop.f32.mrf.mxu2  ;;  %1990 = vrot.lane.b32.xlu0 %v7678_v35, %s6920_s14  ;;  %v1966_v3 = vrot.slane %v7678_v35, 1 }
 0x28b   : > { %v1814_v41 = vrot.slane %v1804_v57, 2  ;;  %v1815_v48 = vrot.slane %v1804_v57, 4  ;;  %v1816_v6 = vrot.slane %v1804_v57, 6  ;;  %v6070_v14 = vrot.slane %v1804_v57, 9 }
 0x28c   : > { %v1743_v4 = vadd.f32 %v1742_v50, %v1702_v33 }
 0x28d   : > { %v6071_v49 = vrot.slane %v1814_v41, 9  ;;  %v6072_v31 = vrot.slane %v1815_v48, 9  ;;  %v6073_v18 = vrot.slane %v1816_v6, 9  ;;  %v1887_v5 = vmax.f32 %v1804_v57, %v6070_v14  ;;  %v1792_v14 = vpop.f32.mrf.mxu3 }
 0x28e   : > { %v1784_v12 = vadd.f32 %v1783_v17, %v1743_v4  ;;  %v1711_v57 = vadd.f32 %v7662_v25, %v7657_v32 }
 0x28f   : > { %v1888_v63 = vmax.f32 %v1814_v41, %v6071_v49  ;;  %v1889_v39 = vmax.f32 %v1815_v48, %v6072_v31  ;;  %v1890_v45 = vmax.f32 %v1816_v6, %v6073_v18  ;;  %v1919_v15 = vperm.slane %v1887_v5, 0 }
 0x290   : > { %v1799_v59 = vmax.f32 %v1784_v12, 0.0 }
 0x291   : > { %v1920_v26 = vperm.slane %v1888_v63, 0  ;;  %v1921_v42 = vperm.slane %v1889_v39, 0  ;;  %v1922_v10 = vperm.slane %v1890_v45, 0 }
 0x292   : > { %v1745_v2 = vpop.f32.mrf.mxu2  ;;  %1971 = vrot.lane.b32.xlu0 %v1966_v3, %s6920_s14 }
 0x293   : > { %v1746_v16 = vadd.f32 %v1745_v2, %v1705_v43  ;;  %v1934_v19 = vsel %vm1239_vm2, %v1920_v26, %v1919_v15  ;;  %v2081_v15 = vld [vmem:[%s11011_s5 + $0x78] sm:$0xff]  ;;  %v2080_v26 = vld [vmem:[%s11011_s5 + $0x70] sm:$0xff] }
 0x294   : > { %v1935_v8 = vsel %vm1241_vm3, %v1921_v42, %v1934_v19  ;;  %2183 = vmatpush.msrb.mxu3 %v2081_v15  ;;  %v2079_v19 = vld [vmem:[%s11011_s5 + $0x68] sm:$0xff]  ;;  %v2089_v15 = vld [vmem:[%s11011_s5 + $0xb8] sm:$0xff] }
 0x295   : > { %v1787_v0 = vadd.f32 %v1786_v47, %v1746_v16  ;;  %v1936_v53 = vsel %vm1243_vm4, %v1922_v10, %v1935_v8  ;;  %v2113_v10 = vld [vmem:[%s11011_s5 + $0x178] sm:$0xff]  ;;  %v2112_v8 = vld [vmem:[%s11011_s5 + $0x170] sm:$0xff] }
 0x296   : > { %v1944_v38 = vrot.slane %v1936_v53, 7  ;;  %2229 = vmatpush.msrb.mxu2 %v2113_v10  ;;  %2184 = vmatpush.msrb.mxu3 %v2080_v26  ;;  %v2088_v26 = vld [vmem:[%s11011_s5 + $0xb0] sm:$0xff]  ;;  %v2069_v10 = vld [vmem:[%s11011_s5 + $0x18] sm:$0xff] }
 0x297   : > { %v1800_v51 = vmax.f32 %v1787_v0, 0.0  ;;  %v2097_v0 = vld [vmem:[%s11011_s5 + $0xf8] sm:$0xff] }
 0x298   : > { %v1952_v34 = vsel %vm578_vm0, 0.0, %v1944_v38  ;;  %2206 = vmatpush.msra.mxu1 %v2097_v0  ;;  %2230 = vmatpush.msrb.mxu2 %v2112_v8  ;;  %v2107_v8 = vld [vmem:[%s11011_s5 + $0x148] sm:$0xff]  ;;  %v2106_v0 = vld [vmem:[%s11011_s5 + $0x140] sm:$0xff] }
 0x299   : > { %v1805_v46 = vmax.f32 %v1799_v59, %v1800_v51  ;;  %v7698_v22 = vsel %vm1955_vm14, %v1952_v34, 0.0  ;;  %v2096_v34 = vld [vmem:[%s11011_s5 + $0xf0] sm:$0xff]  ;;  %2185 = vmatpush.msrb.mxu3 %v2079_v19  ;;  %v2085_v19 = vld [vmem:[%s11011_s5 + $0x98] sm:$0xff] }
 0x29a   : > { %v1748_v29 = vpop.f32.mrf.mxu2  ;;  %1992 = vrot.lane.b32.xlu1 %v7698_v22, %s6920_s14  ;;  %v1967_v24 = vrot.slane %v7698_v22, 1  ;;  %v7704_v58 = vrot.slane %v7698_v22, 2  ;;  %2207 = vmatpush.msra.mxu1 %v2096_v34  ;;  %v1970_v34 = vpop.permute.xlu2 %1969 }
 0x29b   : > { %v1817_v52 = vrot.slane %v1805_v46, 2  ;;  %v1818_v55 = vrot.slane %v1805_v46, 4  ;;  %v1819_v61 = vrot.slane %v1805_v46, 6  ;;  %v6074_v60 = vrot.slane %v1805_v46, 9 }
 0x29c   : > { %1973 = vrot.lane.b32.xlu0 %v1967_v24, %s6920_s14  ;;  %2150 = vst [vmem:[#allocation1 + $0x20] ss:$2 sm:$0xff] %v7704_v58  ;;  %v1749_v13 = vadd.f32 %v1748_v29, %v1708_v62 }
 0x29d   : > { %v6075_v30 = vrot.slane %v1817_v52, 9  ;;  %v6076_v23 = vrot.slane %v1818_v55, 9  ;;  %v6077_v9 = vrot.slane %v1819_v61, 9  ;;  %v1891_v17 = vmax.f32 %v1805_v46, %v6074_v60  ;;  %v2078_v46 = vld [vmem:[%s11011_s5 + $0x60] sm:$0xff] }
 0x29e   : > { %v1790_v33 = vadd.f32 %v1789_v28, %v1749_v13  ;;  %2186 = vmatpush.msrb.mxu3 %v2078_v46  ;;  %v2105_v46 = vld [vmem:[%s11011_s5 + $0x138] sm:$0xff] }
 0x29f   : > { %v1892_v40 = vmax.f32 %v1817_v52, %v6075_v30  ;;  %v1893_v44 = vmax.f32 %v1818_v55, %v6076_v23  ;;  %v1894_v56 = vmax.f32 %v1819_v61, %v6077_v9  ;;  %v1923_v50 = vperm.slane %v1891_v17, 0  ;;  %v2077_v61 = vld [vmem:[%s11011_s5 + $0x58] sm:$0xff]  ;;  %v2076_v23 = vld [vmem:[%s11011_s5 + $0x50] sm:$0xff] }
 0x2a0   : > { %v1801_v32 = vmax.f32 %v1790_v33, 0.0  ;;  %2187 = vmatpush.msrb.mxu3 %v2077_v61  ;;  %v2075_v33 = vld [vmem:[%s11011_s5 + $0x48] sm:$0xff]  ;;  %v2129_v61 = vld [vmem:[%s11011_s5 + $0x1f8] sm:$0xff] }
 0x2a1   : > { %v1924_v41 = vperm.slane %v1892_v40, 0  ;;  %v1925_v48 = vperm.slane %v1893_v44, 0  ;;  %v1926_v31 = vperm.slane %v1894_v56, 0 }
 0x2a2   : > { %v1751_v6 = vpop.f32.mrf.mxu2  ;;  %2188 = vmatpush.msrb.mxu3 %v2076_v23  ;;  %v7892_v23 = vsel %vm1574_vm12, %v7673_v36, %v1970_v34  ;;  %v2132_v34 = vld [vmem:[%s11011_s5 + $0x210] sm:$0xff] }
 0x2a3   : > { %v1752_v49 = vadd.f32 %v1751_v6, %v1711_v57  ;;  %v1937_v27 = vsel %vm1239_vm2, %v1924_v41, %v1923_v50  ;;  %v2111_v6 = vld [vmem:[%s11011_s5 + $0x168] sm:$0xff] }
 0x2a4   : > { %2010 = vrot.lane.b32.xlu0 %v7704_v58, %s6920_s14  ;;  %v1938_v18 = vsel %vm1241_vm3, %v1925_v48, %v1937_v27  ;;  %v1982_v48 = vrot.slane %v7678_v35, 2  ;;  %2231 = vmatpush.msrb.mxu2 %v2111_v6  ;;  %v2093_v27 = vld [vmem:[%s11011_s5 + $0xd8] sm:$0xff]  ;;  %v2102_v6 = vld [vmem:[%s11011_s5 + $0x120] sm:$0xff] }
 0x2a5   : > { %v1793_v5 = vadd.f32 %v1792_v14, %v1752_v49  ;;  %v1939_v4 = vsel %vm1243_vm4, %v1926_v31, %v1938_v18  ;;  %v2095_v14 = vld [vmem:[%s11011_s5 + $0xe8] sm:$0xff]  ;;  %v2094_v49 = vld [vmem:[%s11011_s5 + $0xe0] sm:$0xff]  ;;  %2189 = vmatpush.msrb.mxu3 %v2075_v33  ;;  %v2124_v33 = vld [vmem:[%s11011_s5 + $0x1d0] sm:$0xff] }
 0x2a6   : > { %v1945_v63 = vrot.slane %v1939_v4, 7  ;;  %2208 = vmatpush.msra.mxu1 %v2095_v14  ;;  %v2110_v31 = vld [vmem:[%s11011_s5 + $0x160] sm:$0xff]  ;;  %v2109_v4 = vld [vmem:[%s11011_s5 + $0x158] sm:$0xff] }
 0x2a7   : > { %v1802_v25 = vmax.f32 %v1793_v5, 0.0  ;;  %v2074_v18 = vld [vmem:[%s11011_s5 + $0x40] sm:$0xff]  ;;  %2232 = vmatpush.msrb.mxu2 %v2110_v31  ;;  %v2092_v5 = vld [vmem:[%s11011_s5 + $0xd0] sm:$0xff]  ;;  %v2125_v14 = vld [vmem:[%s11011_s5 + $0x1d8] sm:$0xff] }
 0x2a8   : > { %v1953_v39 = vsel %vm578_vm0, 0.0, %v1945_v63  ;;  %2209 = vmatpush.msra.mxu1 %v2094_v49  ;;  %2190 = vmatpush.msrb.mxu3 %v2074_v18  ;;  %v2091_v63 = vld [vmem:[%s11011_s5 + $0xc8] sm:$0xff]  ;;  %v2122_v31 = vld [vmem:[%s11011_s5 + $0x1c0] sm:$0xff] }
 0x2a9   : > { %v1806_v45 = vmax.f32 %v1801_v32, %v1802_v25  ;;  %v7721_v47 = vsel %vm1955_vm14, %v1953_v39, 0.0  ;;  %v2073_v32 = vld [vmem:[%s11011_s5 + $0x38] sm:$0xff]  ;;  %2233 = vmatpush.msrb.mxu2 %v2109_v4  ;;  %v2108_v25 = vld [vmem:[%s11011_s5 + $0x150] sm:$0xff]  ;;  %v2090_v39 = vld [vmem:[%s11011_s5 + $0xc0] sm:$0xff] }
 0x2aa   : > { %1994 = vrot.lane.b32.xlu1 %v7721_v47, %s6920_s14  ;;  %v7726_v43 = vrot.slane %v7721_v47, 2  ;;  %v1968_v55 = vrot.slane %v7721_v47, 1  ;;  %2210 = vmatpush.msra.mxu1 %v2093_v27  ;;  %v2123_v49 = vld [vmem:[%s11011_s5 + $0x1c8] sm:$0xff]  ;;  %v2121_v4 = vld [vmem:[%s11011_s5 + $0x1b8] sm:$0xff] }
 0x2ab   : > { %v1820_v42 = vrot.slane %v1806_v45, 2  ;;  %v6078_v2 = vrot.slane %v1806_v45, 9  ;;  %v1821_v12 = vrot.slane %v1806_v45, 4  ;;  %v1822_v16 = vrot.slane %v1806_v45, 6  ;;  %2191 = vmatpush.msrb.mxu3 %v2073_v32  ;;  %2234 = vmatpush.msrb.mxu2 %v2108_v25 }
 0x2ac   : > { %2152 = vst [vmem:[#allocation1 + $0x21] ss:$2 sm:$0xff] %v7726_v43  ;;  %2211 = vmatpush.msra.mxu1 %v2092_v5 }
 0x2ad   : > { %v6079_v53 = vrot.slane %v1820_v42, 9  ;;  %v6080_v38 = vrot.slane %v1821_v12, 9  ;;  %v6081_v59 = vrot.slane %v1822_v16, 9  ;;  %v1895_v51 = vmax.f32 %v1806_v45, %v6078_v2  ;;  %v2072_v45 = vld [vmem:[%s11011_s5 + $0x30] sm:$0xff]  ;;  %v2087_v2 = vld [vmem:[%s11011_s5 + $0xa8] sm:$0xff]  ;;  %2235 = vmatpush.msrb.mxu2 %v2107_v8  ;;  %v2098_v8 = vld [vmem:[%s11011_s5 + $0x100] sm:$0xff] }
 0x2ae   : > { %2212 = vmatpush.msra.mxu1 %v2091_v63  ;;  %2192 = vmatpush.msrb.mxu3 %v2072_v45  ;;  %v2137_v63 = vld [vmem:[%s11011_s5 + $0x238] sm:$0xff]  ;;  %v2136_v45 = vld [vmem:[%s11011_s5 + $0x230] sm:$0xff] }
 0x2af   : > { %v1896_v28 = vmax.f32 %v1820_v42, %v6079_v53  ;;  %v1897_v29 = vmax.f32 %v1821_v12, %v6080_v38  ;;  %v1898_v52 = vmax.f32 %v1822_v16, %v6081_v59  ;;  %v1927_v60 = vperm.slane %v1895_v51, 0  ;;  %v2071_v42 = vld [vmem:[%s11011_s5 + $0x28] sm:$0xff]  ;;  %v2070_v12 = vld [vmem:[%s11011_s5 + $0x20] sm:$0xff]  ;;  %v2068_v53 = vld [vmem:[%s11011_s5 + $0x10] sm:$0xff]  ;;  %2236 = vmatpush.msrb.mxu2 %v2106_v0 }
 0x2b0   : > { %2213 = vmatpush.msra.mxu1 %v2090_v39  ;;  %2193 = vmatpush.msrb.mxu3 %v2071_v42  ;;  %v2086_v16 = vld [vmem:[%s11011_s5 + $0xa0] sm:$0xff]  ;;  %v7862_v38 = vrot.slane %v7673_v36, 2  ;;  %v2084_v59 = vld [vmem:[%s11011_s5 + $0x90] sm:$0xff]  ;;  %v2067_v51 = vld [vmem:[%s11011_s5 + $0x8] sm:$0xff] }
 0x2b1   : > { %v1928_v62 = vperm.slane %v1896_v28, 0  ;;  %v1929_v30 = vperm.slane %v1897_v29, 0  ;;  %v1930_v9 = vperm.slane %v1898_v52, 0  ;;  %v2083_v28 = vld [vmem:[%s11011_s5 + $0x88] sm:$0xff]  ;;  %v2066_v29 = vld [vmem:[%s11011_s5] sm:$0xff]  ;;  %2237 = vmatpush.msrb.mxu2 %v2105_v46  ;;  %v2101_v39 = vld [vmem:[%s11011_s5 + $0x118] sm:$0xff] }
 0x2b2   : > { %1975 = vrot.lane.b32.xlu1 %v1968_v55, %s6920_s14  ;;  %2214 = vmatpush.msra.mxu1 %v2089_v15  ;;  %v2082_v52 = vld [vmem:[%s11011_s5 + $0x80] sm:$0xff]  ;;  %v2119_v42 = vld [vmem:[%s11011_s5 + $0x1a8] sm:$0xff]  ;;  %v2117_v0 = vld [vmem:[%s11011_s5 + $0x198] sm:$0xff] }
 0x2b3   : > { %v1940_v17 = vsel %vm1239_vm2, %v1928_v62, %v1927_v60  ;;  %2194 = vmatpush.msrb.mxu3 %v2070_v12  ;;  %v2104_v62 = vld [vmem:[%s11011_s5 + $0x130] sm:$0xff]  ;;  %v2099_v12 = vld [vmem:[%s11011_s5 + $0x108] sm:$0xff] }
 0x2b4   : > { %v1941_v13 = vsel %vm1241_vm3, %v1929_v30, %v1940_v17  ;;  %2215 = vmatpush.msra.mxu1 %v2088_v26  ;;  %2238 = vmatpush.msrb.mxu2 %v2104_v62  ;;  %v2100_v26 = vld [vmem:[%s11011_s5 + $0x110] sm:$0xff]  ;;  %v2130_v62 = vld [vmem:[%s11011_s5 + $0x200] sm:$0xff] }
 0x2b5   : > { %v1942_v40 = vsel %vm1243_vm4, %v1930_v9, %v1941_v13  ;;  %2195 = vmatpush.msrb.mxu3 %v2069_v10  ;;  %v2128_v9 = vld [vmem:[%s11011_s5 + $0x1f0] sm:$0xff]  ;;  %v2127_v13 = vld [vmem:[%s11011_s5 + $0x1e8] sm:$0xff]  ;;  %v2134_v10 = vld [vmem:[%s11011_s5 + $0x220] sm:$0xff] }
 0x2b6   : > { %v1946_v44 = vrot.slane %v1942_v40, 7  ;;  %2216 = vmatpush.msra.mxu1 %v2087_v2  ;;  %v2135_v2 = vld [vmem:[%s11011_s5 + $0x228] sm:$0xff] }
 0x2b7   : > { %2196 = vmatpush.msrb.mxu3 %v2068_v53  ;;  %v2133_v53 = vld [vmem:[%s11011_s5 + $0x218] sm:$0xff] }
 0x2b8   : > { %v1954_v56 = vsel %vm578_vm0, 0.0, %v1946_v44  ;;  %2217 = vmatpush.msra.mxu1 %v2086_v16  ;;  %v2103_v44 = vld [vmem:[%s11011_s5 + $0x128] sm:$0xff]  ;;  %v2118_v16 = vld [vmem:[%s11011_s5 + $0x1a0] sm:$0xff] }
 0x2b9   : > { %v7768_v57 = vsel %vm1955_vm14, %v1954_v56, 0.0  ;;  %2197 = vmatpush.msrb.mxu3 %v2067_v51  ;;  %v2126_v56 = vld [vmem:[%s11011_s5 + $0x1e0] sm:$0xff]  ;;  %2239 = vmatpush.msrb.mxu2 %v2103_v44  ;;  %v2116_v51 = vld [vmem:[%s11011_s5 + $0x190] sm:$0xff] }
 0x2ba   : > { %1996 = vrot.lane.b32.xlu2 %v7768_v57, %s6920_s14  ;;  %v2002_v50 = vrot.slane %v7768_v57, 1  ;;  %v2007_v41 = vrot.slane %v7768_v57, 2  ;;  %2218 = vmatpush.msra.mxu1 %v2085_v19 }
 0x2bb   : > { %2198 = vmatpush.msrb.mxu3 %v2066_v29  ;;  %2240 = vmatpush.msrb.mxu2 %v2102_v6  ;;  %v2373_v6 = vld [vmem:[%s11013_s7 + $0x78] sm:$0xff] }
 0x2bc   : > { %2020 = vrot.lane.b32.xlu1 %v2002_v50, %s6920_s14  ;;  %2014 = vrot.lane.b32.xlu0 %v2007_v41, %s6920_s14 }
 0x2bd   : > { %2219 = vmatpush.msra.mxu1 %v2084_v59  ;;  %2252 = vmatpush.msra.mxu3 %v2129_v61  ;;  %v2131_v61 = vld [vmem:[%s11011_s5 + $0x208] sm:$0xff] }
 0x2be   : > { %2241 = vmatpush.msrb.mxu2 %v2101_v39 }
 0x2bf   : > { %2220 = vmatpush.msra.mxu1 %v2083_v28  ;;  %2253 = vmatpush.msra.mxu3 %v2128_v9 }
 0x2c0   : > { %2242 = vmatpush.msrb.mxu2 %v2100_v26 }
 0x2c1   : > { %2221 = vmatpush.msra.mxu1 %v2082_v52  ;;  %2254 = vmatpush.msra.mxu3 %v2127_v13  ;;  %v2115_v52 = vld [vmem:[%s11011_s5 + $0x188] sm:$0xff] }
 0x2c2   : > { %2008 = vrot.lane.b32.xlu2 %v1982_v48, %s6920_s14  ;;  %2243 = vmatpush.msrb.mxu2 %v2099_v12 }
 0x2c3   : > { %2255 = vmatpush.msra.mxu3 %v2126_v56  ;;  %2283 = vmatpush.msrb.mxu1 %v2137_v63 }
 0x2c4   : > { %2244 = vmatpush.msrb.mxu2 %v2098_v8  ;;  %v2387_v8 = vld [vmem:[%s11013_s7 + $0xe8] sm:$0xff] }
 0x2c5   : > { %2256 = vmatpush.msra.mxu3 %v2125_v14  ;;  %2284 = vmatpush.msrb.mxu1 %v2136_v45  ;;  %v2389_v14 = vld [vmem:[%s11013_s7 + $0xf8] sm:$0xff] }
 0x2c6   : > { %2569 = vmatpush.msra.mxu2 %v2373_v6  ;;  %v2364_v6 = vld [vmem:[%s11013_s7 + $0x30] sm:$0xff] }
 0x2c7   : > { %2257 = vmatpush.msra.mxu3 %v2124_v33  ;;  %2285 = vmatpush.msrb.mxu1 %v2135_v2 }
 0x2c9   : > { %2258 = vmatpush.msra.mxu3 %v2123_v49  ;;  %2286 = vmatpush.msrb.mxu1 %v2134_v10 }
 0x2ca   : > { %2012 = vrot.lane.b32.xlu2 %v7726_v43, %s6920_s14 }
 0x2cb   : > { %2259 = vmatpush.msra.mxu3 %v2122_v31  ;;  %2287 = vmatpush.msrb.mxu1 %v2133_v53  ;;  %v2370_v53 = vld [vmem:[%s11013_s7 + $0x60] sm:$0xff] }
 0x2cd   : > { %2260 = vmatpush.msra.mxu3 %v2121_v4  ;;  %2288 = vmatpush.msrb.mxu1 %v2132_v34  ;;  %v2369_v34 = vld [vmem:[%s11013_s7 + $0x58] sm:$0xff] }
 0x2cf   : > { %2289 = vmatpush.msrb.mxu1 %v2131_v61  ;;  %v2400_v61 = vld [vmem:[%s11013_s7 + $0x150] sm:$0xff] }
 0x2d1   : > { %2290 = vmatpush.msrb.mxu1 %v2130_v62  ;;  %v2383_v62 = vld [vmem:[%s11013_s7 + $0xc8] sm:$0xff] }
 0x2fc   : > { %v1991_v60 = vpop.permute.xlu0 %1990 }
 0x2fd   : > { %v2027_v30 = vsel %vm1574_vm12, %v7862_v38, %v1991_v60  ;;  %v2114_v60 = vld [vmem:[%s11011_s5 + $0x180] sm:$0xff] }
 0x2fe   : > { %v2049_v17 = vrot.slane %v2027_v30, 4 }
 0x300   : > { %v2058_v40 = vsel %vm2057_vm15, %v7892_v23, %v2049_v17 }
 0x301   : > { %2142 = vst [vmem:[#allocation1] ss:$2 sm:$0xff] %v2058_v40 }
 0x304   : > { %v1972_v27 = vpop.permute.xlu0 %1971 }
 0x305   : > { %v2024_v25 = vsel %vm1574_vm12, %v7678_v35, %v1972_v27 }
 0x30c   : > { %v1993_v18 = vpop.permute.xlu1 %1992 }
 0x30d   : > { %v2028_v5 = vsel %vm1574_vm12, %v1982_v48, %v1993_v18  ;;  %v2120_v48 = vld [vmem:[%s11011_s5 + $0x1b0] sm:$0xff] }
 0x30e   : > { %v2051_v32 = vrot.slane %v2028_v5, 4  ;;  %2261 = vmatpush.msra.mxu3 %v2120_v48  ;;  %v1974_v59 = vpop.permute.xlu0 %1973 }
 0x30f   : > { %v2025_v29 = vsel %vm1574_vm12, %v7698_v22, %v1974_v59  ;;  %v2386_v59 = vld [vmem:[%s11013_s7 + $0xe0] sm:$0xff] }
 0x310   : > { %v2060_v15 = vsel %vm2057_vm15, %v2024_v25, %v2051_v32  ;;  %2262 = vmatpush.msra.mxu3 %v2119_v42  ;;  %v2050_v30 = vrot.slane %v2025_v29, 4 }
 0x311   : > { %2144 = vst [vmem:[#allocation1 + $0x1] ss:$2 sm:$0xff] %v2060_v15 }
 0x312   : > { %2263 = vmatpush.msra.mxu3 %v2118_v16  ;;  %v2161_v16 = vld.sshfl [vmem:[#allocation1 + $0x20] sm:$0xff pattern:$0x75316420] }
 0x314   : > { %v1997_v19 = vpop.permute.xlu2 %1996  ;;  %2264 = vmatpush.msra.mxu3 %v2117_v0  ;;  %v2403_v0 = vld [vmem:[%s11013_s7 + $0x168] sm:$0xff] }
 0x316   : > { %2265 = vmatpush.msra.mxu3 %v2116_v51  ;;  %v2011_v49 = vpop.permute.xlu0 %2010  ;;  %v2402_v51 = vld [vmem:[%s11013_s7 + $0x160] sm:$0xff] }
 0x317   : > { %v2032_v4 = vsel %vm1574_vm12, %v1967_v24, %v2011_v49  ;;  %v2362_v49 = vld [vmem:[%s11013_s7 + $0x20] sm:$0xff] }
 0x318   : > { %v2157_v46 = vld.sshfl [vmem:[#allocation1] sm:$0xff pattern:$0x75316420]  ;;  %v2158_v28 = vld.sshfl [vmem:[#allocation1 + $0x8] sm:$0xff pattern:$0x75316420]  ;;  %2266 = vmatpush.msra.mxu3 %v2115_v52 }
 0x319   : > { %2199 = vmatmul.f32.vlgmr.msrb.gmra.mxu3 %v2157_v46  ;;  %2222 = vmatmul.f32.vlgmr.msra.gmra.mxu1 %v2158_v28  ;;  %v2385_v46 = vld [vmem:[%s11013_s7 + $0xd8] sm:$0xff]  ;;  %v2384_v52 = vld [vmem:[%s11013_s7 + $0xd0] sm:$0xff] }
 0x31a   : > { %2267 = vmatpush.msra.mxu3 %v2114_v60  ;;  %v2401_v28 = vld [vmem:[%s11013_s7 + $0x158] sm:$0xff]  ;;  %v2367_v60 = vld [vmem:[%s11013_s7 + $0x48] sm:$0xff] }
 0x31c   : > { %v1995_v9 = vpop.permute.xlu1 %1994  ;;  %v2009_v17 = vpop.permute.xlu2 %2008  ;;  %2592 = vmatpush.msrb.mxu3 %v2389_v14  ;;  %v2380_v14 = vld [vmem:[%s11013_s7 + $0xb0] sm:$0xff] }
 0x31d   : > { %v2029_v13 = vsel %vm1574_vm12, %v7704_v58, %v1995_v9  ;;  %v2031_v40 = vsel %vm1574_vm12, %v1966_v3, %v2009_v17  ;;  %v2405_v58 = vld [vmem:[%s11013_s7 + $0x178] sm:$0xff]  ;;  %v2030_v3 = vsel %vm1574_vm12, %v7726_v43, %v1997_v19  ;;  %v2056_v43 = vrot.slane %v7892_v23, 4  ;;  %v2371_v19 = vld [vmem:[%s11013_s7 + $0x68] sm:$0xff]  ;;  %v2366_v9 = vld [vmem:[%s11013_s7 + $0x40] sm:$0xff] }
 0x31e   : > { %v2053_v44 = vrot.slane %v2029_v13, 4  ;;  %v2059_v56 = vsel %vm2057_vm15, %v2031_v40, %v2050_v30  ;;  %2615 = vmatpush.msra.mxu1 %v2405_v58  ;;  %v2055_v33 = vrot.slane %v2030_v3, 4  ;;  %v2399_v30 = vld [vmem:[%s11013_s7 + $0x148] sm:$0xff]  ;;  %v2382_v17 = vld [vmem:[%s11013_s7 + $0xc0] sm:$0xff]  ;;  %v2365_v40 = vld [vmem:[%s11013_s7 + $0x38] sm:$0xff] }
 0x31f   : > { %2146 = vst [vmem:[#allocation1 + $0x10] ss:$2 sm:$0xff] %v2059_v56  ;;  %v2398_v13 = vld [vmem:[%s11013_s7 + $0x140] sm:$0xff]  ;;  %v2397_v56 = vld [vmem:[%s11013_s7 + $0x138] sm:$0xff]  ;;  %v2396_v58 = vld [vmem:[%s11013_s7 + $0x130] sm:$0xff] }
 0x320   : > { %v2062_v35 = vsel %vm2057_vm15, %v2025_v29, %v2053_v44  ;;  %v2368_v29 = vld [vmem:[%s11013_s7 + $0x50] sm:$0xff]  ;;  %v2381_v44 = vld [vmem:[%s11013_s7 + $0xb8] sm:$0xff]  ;;  %v2379_v3 = vld [vmem:[%s11013_s7 + $0xa8] sm:$0xff] }
 0x321   : > { %2154 = vst [vmem:[#allocation1 + $0x30] ss:$2 sm:$0xff] %v2062_v35  ;;  %v2363_v35 = vld [vmem:[%s11013_s7 + $0x28] sm:$0xff] }
 0x324   : > { %v1976_v31 = vpop.permute.xlu1 %1975  ;;  %v2013_v45 = vpop.permute.xlu2 %2012 }
 0x325   : > { %v2026_v27 = vsel %vm1574_vm12, %v7721_v47, %v1976_v31  ;;  %v2033_v2 = vsel %vm1574_vm12, %v1968_v55, %v2013_v45  ;;  %v2388_v55 = vld [vmem:[%s11013_s7 + $0xf0] sm:$0xff]  ;;  %v2378_v31 = vld [vmem:[%s11013_s7 + $0xa0] sm:$0xff] }
 0x326   : > { %v2052_v18 = vrot.slane %v2026_v27, 4  ;;  %v2064_v5 = vsel %vm2057_vm15, %v2026_v27, %v2055_v33  ;;  %2593 = vmatpush.msrb.mxu3 %v2388_v55  ;;  %v2395_v33 = vld [vmem:[%s11013_s7 + $0x128] sm:$0xff]  ;;  %v2394_v27 = vld [vmem:[%s11013_s7 + $0x120] sm:$0xff]  ;;  %v2417_v55 = vld [vmem:[%s11013_s7 + $0x1d8] sm:$0xff] }
 0x327   : > { %2156 = vst [vmem:[#allocation1 + $0x31] ss:$2 sm:$0xff] %v2064_v5  ;;  %v2377_v5 = vld [vmem:[%s11013_s7 + $0x98] sm:$0xff]  ;;  %v2358_v45 = vld [vmem:[%s11013_s7] sm:$0xff] }
 0x328   : > { %v2061_v63 = vsel %vm2057_vm15, %v2032_v4, %v2052_v18  ;;  %2594 = vmatpush.msrb.mxu3 %v2387_v8  ;;  %v2361_v18 = vld [vmem:[%s11013_s7 + $0x18] sm:$0xff]  ;;  %v2416_v8 = vld [vmem:[%s11013_s7 + $0x1d0] sm:$0xff] }
 0x329   : > { %2148 = vst [vmem:[#allocation1 + $0x11] ss:$2 sm:$0xff] %v2061_v63  ;;  %v2393_v4 = vld [vmem:[%s11013_s7 + $0x118] sm:$0xff]  ;;  %v2360_v63 = vld [vmem:[%s11013_s7 + $0x10] sm:$0xff] }
 0x32a   : > { %2595 = vmatpush.msrb.mxu3 %v2386_v59  ;;  %v2415_v59 = vld [vmem:[%s11013_s7 + $0x1c8] sm:$0xff] }
 0x32c   : > { %2596 = vmatpush.msrb.mxu3 %v2385_v46 }
 0x32e   : > { %v2162_v32 = vld.sshfl [vmem:[#allocation1 + $0x30] sm:$0xff pattern:$0x75316420]  ;;  %v2163_v25 = vld.sshfl [vmem:[#allocation1 + $0x38] sm:$0xff pattern:$0x75316420]  ;;  %v2021_v39 = vpop.permute.xlu1 %2020  ;;  %v2015_v48 = vpop.permute.xlu0 %2014  ;;  %2597 = vmatpush.msrb.mxu3 %v2384_v52 }
 0x32f   : > { %v2035_v15 = vsel %vm1574_vm12, %v7768_v57, %v2021_v39  ;;  %v2034_v22 = vsel %vm1574_vm12, %v2002_v50, %v2015_v48  ;;  %2202 = vmatmul.f32.gmra.mxu3 %v2162_v32  ;;  %2225 = vmatmul.f32.gmra.mxu1 %v2163_v25  ;;  %v2332_v50 = vrot.slane %v1965_v1, 4  ;;  %v2372_v1 = vld [vmem:[%s11013_s7 + $0x70] sm:$0xff]  ;;  %v2359_v25 = vld [vmem:[%s11013_s7 + $0x8] sm:$0xff]  ;;  %v2430_v52 = vld [vmem:[%s11013_s7 + $0x240] sm:$0xff] }
 0x330   : > { %v2159_v24 = vld.sshfl [vmem:[#allocation1 + $0x10] sm:$0xff pattern:$0x75316420]  ;;  %v2160_v26 = vld.sshfl [vmem:[#allocation1 + $0x18] sm:$0xff pattern:$0x75316420]  ;;  %v2065_v42 = vsel %vm2057_vm15, %v2034_v22, %v2056_v43  ;;  %2570 = vmatpush.msra.mxu2 %v2372_v1  ;;  %2598 = vmatpush.msrb.mxu3 %v2383_v62 }
 0x331   : > { %2166 = vst [vmem:[#allocation1 + $0x10] ss:$2 sm:$0xff] %v2007_v41  ;;  %v2054_v23 = vrot.slane %v2035_v15, 4  ;;  %2245 = vmatmul.f32.vlgmr.msrb.gmra.mxu2 %v2159_v24  ;;  %v8035_v57 = vsel %vm2057_vm15, %v7673_v36, %v2332_v50  ;;  %v2404_v36 = vld [vmem:[%s11013_s7 + $0x170] sm:$0xff]  ;;  %v2375_v39 = vld [vmem:[%s11013_s7 + $0x88] sm:$0xff]  ;;  %v2374_v15 = vld [vmem:[%s11013_s7 + $0x80] sm:$0xff] }
 0x332   : > { %2167 = vst [vmem:[#allocation1 + $0x11] ss:$2 sm:$0xff] %v7862_v38  ;;  %2616 = vmatpush.msra.mxu1 %v2404_v36  ;;  %2571 = vmatpush.msra.mxu2 %v2371_v19  ;;  %v2376_v43 = vld [vmem:[%s11013_s7 + $0x90] sm:$0xff]  ;;  %v2391_v48 = vld [vmem:[%s11013_s7 + $0x108] sm:$0xff]  ;;  %v2390_v22 = vld [vmem:[%s11013_s7 + $0x100] sm:$0xff] }
 0x333   : > { %v2063_v12 = vsel %vm2057_vm15, %v2033_v2, %v2054_v23  ;;  %2165 = vst [vmem:[#allocation1 + $0x1] ss:$2 sm:$0xff] %v2065_v42  ;;  %2599 = vmatpush.msrb.mxu3 %v2382_v17  ;;  %v2392_v32 = vld [vmem:[%s11013_s7 + $0x110] sm:$0xff]  ;;  %v2421_v24 = vld [vmem:[%s11013_s7 + $0x1f8] sm:$0xff]  ;;  %v2419_v50 = vld [vmem:[%s11013_s7 + $0x1e8] sm:$0xff] }
 0x334   : > { %2164 = vst [vmem:[#allocation1] ss:$2 sm:$0xff] %v2063_v12  ;;  %2617 = vmatpush.msra.mxu1 %v2403_v0  ;;  %2572 = vmatpush.msra.mxu2 %v2370_v53  ;;  %v2453_v42 = vld [vmem:[%s11013_s7 + $0x2f8] sm:$0xff]  ;;  %v2420_v23 = vld [vmem:[%s11013_s7 + $0x1f0] sm:$0xff]  ;;  %v2450_v1 = vld [vmem:[%s11013_s7 + $0x2e0] sm:$0xff] }
 0x335   : > { %2600 = vmatpush.msrb.mxu3 %v2381_v44  ;;  %v2436_v2 = vld [vmem:[%s11013_s7 + $0x270] sm:$0xff]  ;;  %v2433_v36 = vld [vmem:[%s11013_s7 + $0x258] sm:$0xff] }
 0x336   : > { %2618 = vmatpush.msra.mxu1 %v2402_v51  ;;  %2573 = vmatpush.msra.mxu2 %v2369_v34  ;;  %v2452_v12 = vld [vmem:[%s11013_s7 + $0x2f0] sm:$0xff]  ;;  %v2449_v19 = vld [vmem:[%s11013_s7 + $0x2d8] sm:$0xff]  ;;  %v2431_v51 = vld [vmem:[%s11013_s7 + $0x248] sm:$0xff] }
 0x337   : > { %2268 = vmatmul.f32.vlgmr.msra.gmra.mxu3 %v2160_v26  ;;  %6082 = vmatmul.msk.f32.vlgmr.msrb.gmra.mxu1 %vm1574_vm12, %v2161_v16  ;;  %v2437_v26 = vld [vmem:[%s11013_s7 + $0x278] sm:$0xff]  ;;  %v2435_v16 = vld [vmem:[%s11013_s7 + $0x268] sm:$0xff]  ;;  %v2432_v0 = vld [vmem:[%s11013_s7 + $0x250] sm:$0xff] }
 0x338   : > { %2619 = vmatpush.msra.mxu1 %v2401_v28  ;;  %2574 = vmatpush.msra.mxu2 %v2368_v29  ;;  %v2448_v53 = vld [vmem:[%s11013_s7 + $0x2d0] sm:$0xff]  ;;  %v2447_v34 = vld [vmem:[%s11013_s7 + $0x2c8] sm:$0xff]  ;;  %v2414_v29 = vld [vmem:[%s11013_s7 + $0x1c0] sm:$0xff] }
 0x339   : > { %v2170_v47 = vld.sshfl [vmem:[#allocation1 + $0x10] sm:$0xff pattern:$0x75316420]  ;;  %2601 = vmatpush.msrb.mxu3 %v2380_v14  ;;  %v2429_v62 = vld [vmem:[%s11013_s7 + $0x238] sm:$0xff]  ;;  %v2443_v14 = vld [vmem:[%s11013_s7 + $0x2a8] sm:$0xff] }
 0x33a   : > { %2620 = vmatpush.msra.mxu1 %v2400_v61  ;;  %2575 = vmatpush.msra.mxu2 %v2367_v60  ;;  %v2446_v61 = vld [vmem:[%s11013_s7 + $0x2c0] sm:$0xff]  ;;  %v2413_v60 = vld [vmem:[%s11013_s7 + $0x1b8] sm:$0xff]  ;;  %v2412_v17 = vld [vmem:[%s11013_s7 + $0x1b0] sm:$0xff] }
 0x33b   : > { %v2168_v41 = vld.sshfl [vmem:[#allocation1] sm:$0xff pattern:$0x75316420]  ;;  %v2169_v10 = vld.sshfl [vmem:[#allocation1 + $0x8] sm:$0xff pattern:$0x75316420]  ;;  %2602 = vmatpush.msrb.mxu3 %v2379_v3 }
 0x33c   : > { %2506 = vst [vmem:[#allocation1] ss:$2 sm:$0xff] %v8035_v57  ;;  %2248 = vmatmul.f32.gmra.mxu2 %v2168_v41  ;;  %2621 = vmatpush.msra.mxu1 %v2399_v30  ;;  %v2451_v41 = vld [vmem:[%s11013_s7 + $0x2e8] sm:$0xff]  ;;  %v2445_v30 = vld [vmem:[%s11013_s7 + $0x2b8] sm:$0xff]  ;;  %v2410_v3 = vld [vmem:[%s11013_s7 + $0x1a0] sm:$0xff] }
 0x33d   : > { %2576 = vmatpush.msra.mxu2 %v2366_v9  ;;  %2603 = vmatpush.msrb.mxu3 %v2378_v31  ;;  %v6777_v9 = vld [vmem:[%s11012_s6] ss:$0 sm:$0xff]  ;;  %v2409_v31 = vld [vmem:[%s11013_s7 + $0x198] sm:$0xff] }
 0x33e   : > { %2622 = vmatpush.msra.mxu1 %v2398_v13  ;;  %v2428_v13 = vld [vmem:[%s11013_s7 + $0x230] sm:$0xff] }
 0x33f   : > { %2271 = vmatmul.f32.gmra.mxu3 %v2169_v10  ;;  %6083 = vmatmul.msk.f32.gmra.mxu1 %vm1574_vm12, %v2170_v47  ;;  %v2418_v10 = vld [vmem:[%s11013_s7 + $0x1e0] sm:$0xff] }
 0x340   : > { %2577 = vmatpush.msra.mxu2 %v2365_v40  ;;  %2623 = vmatpush.msra.mxu1 %v2397_v56  ;;  %v2434_v47 = vld [vmem:[%s11013_s7 + $0x260] sm:$0xff]  ;;  %v2444_v40 = vld [vmem:[%s11013_s7 + $0x2b0] sm:$0xff]  ;;  %v2411_v56 = vld [vmem:[%s11013_s7 + $0x1a8] sm:$0xff] }
 0x341   : > { %2604 = vmatpush.msrb.mxu3 %v2377_v5 }
 0x342   : > { %2578 = vmatpush.msra.mxu2 %v2364_v6  ;;  %2624 = vmatpush.msra.mxu1 %v2396_v58  ;;  %v2427_v6 = vld [vmem:[%s11013_s7 + $0x228] sm:$0xff] }
 0x343   : > { %2605 = vmatpush.msrb.mxu3 %v2376_v43  ;;  %v2424_v43 = vld [vmem:[%s11013_s7 + $0x210] sm:$0xff] }
 0x344   : > { %2579 = vmatpush.msra.mxu2 %v2363_v35  ;;  %2625 = vmatpush.msra.mxu1 %v2395_v33  ;;  %v2426_v33 = vld [vmem:[%s11013_s7 + $0x220] sm:$0xff] }
 0x345   : > { %2606 = vmatpush.msrb.mxu3 %v2375_v39  ;;  %v2407_v39 = vld [vmem:[%s11013_s7 + $0x188] sm:$0xff] }
 0x346   : > { %2580 = vmatpush.msra.mxu2 %v2362_v49  ;;  %2626 = vmatpush.msra.mxu1 %v2394_v27  ;;  %v2442_v49 = vld [vmem:[%s11013_s7 + $0x2a0] sm:$0xff]  ;;  %v2425_v27 = vld [vmem:[%s11013_s7 + $0x218] sm:$0xff] }
 0x347   : > { %2607 = vmatpush.msrb.mxu3 %v2374_v15 }
 0x348   : > { %2581 = vmatpush.msra.mxu2 %v2361_v18  ;;  %2627 = vmatpush.msra.mxu1 %v2393_v4  ;;  %v2441_v18 = vld [vmem:[%s11013_s7 + $0x298] sm:$0xff] }
 0x349   : > { %2661 = vmatpush.msra.mxu3 %v2437_v26 }
 0x34a   : > { %2582 = vmatpush.msra.mxu2 %v2360_v63  ;;  %2628 = vmatpush.msra.mxu1 %v2392_v32  ;;  %v2408_v63 = vld [vmem:[%s11013_s7 + $0x190] sm:$0xff] }
 0x34b   : > { %2662 = vmatpush.msra.mxu3 %v2436_v2  ;;  %v2440_v32 = vld [vmem:[%s11013_s7 + $0x290] sm:$0xff]  ;;  %v2438_v2 = vld [vmem:[%s11013_s7 + $0x280] sm:$0xff] }
 0x34c   : > { %2583 = vmatpush.msra.mxu2 %v2359_v25  ;;  %2629 = vmatpush.msra.mxu1 %v2391_v48  ;;  %v2423_v48 = vld [vmem:[%s11013_s7 + $0x208] sm:$0xff] }
 0x34d   : > { %2663 = vmatpush.msra.mxu3 %v2435_v16 }
 0x34e   : > { %2584 = vmatpush.msra.mxu2 %v2358_v45  ;;  %2630 = vmatpush.msra.mxu1 %v2390_v22  ;;  %v2439_v45 = vld [vmem:[%s11013_s7 + $0x288] sm:$0xff] }
 0x34f   : > { %2664 = vmatpush.msra.mxu3 %v2434_v47 }
 0x350   : > { %2638 = vmatpush.msrb.mxu2 %v2421_v24  ;;  %2684 = vmatpush.msrb.mxu1 %v2453_v42  ;;  %v2406_v42 = vld [vmem:[%s11013_s7 + $0x180] sm:$0xff] }
 0x351   : > { %2665 = vmatpush.msra.mxu3 %v2433_v36 }
 0x352   : > { %2639 = vmatpush.msrb.mxu2 %v2420_v23  ;;  %2685 = vmatpush.msrb.mxu1 %v2452_v12  ;;  %v2422_v23 = vld [vmem:[%s11013_s7 + $0x200] sm:$0xff] }
 0x353   : > { %2666 = vmatpush.msra.mxu3 %v2432_v0 }
 0x354   : > { %2640 = vmatpush.msrb.mxu2 %v2419_v50  ;;  %2686 = vmatpush.msrb.mxu1 %v2451_v41 }
 0x355   : > { %2667 = vmatpush.msra.mxu3 %v2431_v51 }
 0x356   : > { %2641 = vmatpush.msrb.mxu2 %v2418_v10  ;;  %2687 = vmatpush.msrb.mxu1 %v2450_v1 }
 0x357   : > { %2668 = vmatpush.msra.mxu3 %v2430_v52 }
 0x358   : > { %2642 = vmatpush.msrb.mxu2 %v2417_v55  ;;  %2688 = vmatpush.msrb.mxu1 %v2449_v19 }
 0x359   : > { %2669 = vmatpush.msra.mxu3 %v2429_v62 }
 0x35a   : > { %2643 = vmatpush.msrb.mxu2 %v2416_v8  ;;  %2689 = vmatpush.msrb.mxu1 %v2448_v53 }
 0x35b   : > { %2670 = vmatpush.msra.mxu3 %v2428_v13 }
 0x35c   : > { %2644 = vmatpush.msrb.mxu2 %v2415_v59  ;;  %2690 = vmatpush.msrb.mxu1 %v2447_v34 }
 0x35d   : > { %2671 = vmatpush.msra.mxu3 %v2427_v6 }
 0x35e   : > { %2645 = vmatpush.msrb.mxu2 %v2414_v29  ;;  %2691 = vmatpush.msrb.mxu1 %v2446_v61 }
 0x35f   : > { %2672 = vmatpush.msra.mxu3 %v2426_v33 }
 0x360   : > { %2646 = vmatpush.msrb.mxu2 %v2413_v60  ;;  %2692 = vmatpush.msrb.mxu1 %v2445_v30 }
 0x361   : > { %2673 = vmatpush.msra.mxu3 %v2425_v27 }
 0x362   : > { %2647 = vmatpush.msrb.mxu2 %v2412_v17  ;;  %2693 = vmatpush.msrb.mxu1 %v2444_v40 }
 0x363   : > { %2674 = vmatpush.msra.mxu3 %v2424_v43 }
 0x364   : > { %2648 = vmatpush.msrb.mxu2 %v2411_v56  ;;  %2694 = vmatpush.msrb.mxu1 %v2443_v14 }
 0x365   : > { %2675 = vmatpush.msra.mxu3 %v2423_v48 }
 0x366   : > { %2649 = vmatpush.msrb.mxu2 %v2410_v3  ;;  %2695 = vmatpush.msrb.mxu1 %v2442_v49 }
 0x367   : > { %2676 = vmatpush.msra.mxu3 %v2422_v23  ;;  %v2483_v23 = vld [vmem:[%s11013_s7 + $0x3e8] sm:$0xff] }
 0x368   : > { %2650 = vmatpush.msrb.mxu2 %v2409_v31  ;;  %2696 = vmatpush.msrb.mxu1 %v2441_v18 }
 0x36a   : > { %2651 = vmatpush.msrb.mxu2 %v2408_v63  ;;  %2697 = vmatpush.msrb.mxu1 %v2440_v32  ;;  %v2501_v63 = vld [vmem:[%s11013_s7 + $0x478] sm:$0xff] }
 0x36c   : > { %2652 = vmatpush.msrb.mxu2 %v2407_v39  ;;  %2698 = vmatpush.msrb.mxu1 %v2439_v45  ;;  %v2468_v45 = vld [vmem:[%s11013_s7 + $0x370] sm:$0xff] }
 0x36e   : > { %2653 = vmatpush.msrb.mxu2 %v2406_v42  ;;  %2699 = vmatpush.msrb.mxu1 %v2438_v2  ;;  %v2467_v42 = vld [vmem:[%s11013_s7 + $0x368] sm:$0xff] }
 0x36f   : > { %v2499_v2 = vld [vmem:[%s11013_s7 + $0x468] sm:$0xff] }
 0x396   : > { %v2223_v46 = vpop.f32.mrf.mxu1 }
 0x39c   : > { %v2200_v28 = vpop.f32.mrf.mxu3 }
 0x39d   : > { %v2201_v35 = vadd.f32 %v6777_v9, %v2200_v28 }
 0x39f   : > { %v2224_v4 = vadd.f32 %v2223_v46, %v2201_v35 }
 0x3ac   : > { %v2226_v44 = vpop.f32.mrf.mxu1 }
 0x3b2   : > { %v2203_v58 = vpop.f32.mrf.mxu3 }
 0x3b3   : > { %v2204_v22 = vadd.f32 %v6777_v9, %v2203_v58 }
 0x3b4   : > { %v2246_v5 = vpop.f32.mrf.mxu2  ;;  %v2292_v24 = vpop.f32.mrf.mxu1 }
 0x3b5   : > { %v2247_v25 = vadd.f32 %v2246_v5, %v2224_v4  ;;  %v2227_v16 = vadd.f32 %v2226_v44, %v2204_v22  ;;  %v2469_v5 = vld [vmem:[%s11013_s7 + $0x378] sm:$0xff]  ;;  %v2500_v22 = vld [vmem:[%s11013_s7 + $0x470] sm:$0xff] }
 0x3b6   : > { %v2485_v4 = vld [vmem:[%s11013_s7 + $0x3f8] sm:$0xff] }
 0x3ba   : > { %v2269_v15 = vpop.f32.mrf.mxu3 }
 0x3bb   : > { %v2270_v26 = vadd.f32 %v2269_v15, %v2247_v25  ;;  %v2484_v15 = vld [vmem:[%s11013_s7 + $0x3f0] sm:$0xff] }
 0x3bc   : > { %v2295_v28 = vpop.f32.mrf.mxu1 }
 0x3bd   : > { %v2293_v12 = vadd.f32 %v2292_v24, %v2270_v26 }
 0x3bf   : > { %v2298_v50 = vmax.f32 %v2293_v12, 0.0  ;;  %v2249_v41 = vpop.f32.mrf.mxu2 }
 0x3c0   : > { %v2250_v1 = vadd.f32 %v2249_v41, %v2227_v16 }
 0x3c1   : > { %v2304_v10 = vrot.slane %v2298_v50, 7  ;;  %v6084_v47 = vrot.slane %v2298_v50, 11 }
 0x3c2   : > { %v2272_v55 = vpop.f32.mrf.mxu3 }
 0x3c3   : > { %v2312_v36 = vsel %vm578_vm0, 0.0, %v2304_v10  ;;  %v2313_v19 = vsel %vm578_vm0, 0.0, %v6084_v47  ;;  %v2273_v8 = vadd.f32 %v2272_v55, %v2250_v1  ;;  %v2466_v47 = vld [vmem:[%s11013_s7 + $0x360] sm:$0xff] }
 0x3c4   : > { %v2316_v0 = vsel %vm1955_vm14, %v2312_v36, 0.0  ;;  %v2317_v53 = vsel %vm1955_vm14, %v2313_v19, 0.0  ;;  %v2482_v1 = vld [vmem:[%s11013_s7 + $0x3e0] sm:$0xff] }
 0x3c5   : > { %v2323_v59 = vrot.slane %v2316_v0, 1  ;;  %v2324_v51 = vrot.slane %v2317_v53, 1  ;;  %v2326_v34 = vrot.slane %v2316_v0, 2  ;;  %v8325_v46 = vrot.slane %v2317_v53, 2  ;;  %v2498_v36 = vld [vmem:[%s11013_s7 + $0x460] sm:$0xff] }
 0x3c6   : > { %v2333_v29 = vrot.slane %v2316_v0, 4  ;;  %v2337_v52 = vrot.slane %v2317_v53, 4  ;;  %v2296_v61 = vadd.f32 %v2295_v28, %v2273_v8  ;;  %v2480_v28 = vld [vmem:[%s11013_s7 + $0x3d0] sm:$0xff] }
 0x3c7   : > { %v2334_v60 = vrot.slane %v2326_v34, 4  ;;  %v2335_v62 = vrot.slane %v2324_v51, 4  ;;  %v2336_v30 = vrot.slane %v2323_v59, 4  ;;  %v2338_v9 = vrot.slane %v8325_v46, 4 }
 0x3c8   : > { %v2346_v17 = vsel %vm2057_vm15, %v7862_v38, %v2333_v29  ;;  %v2350_v13 = vsel %vm2057_vm15, %v2326_v34, %v2337_v52  ;;  %v2299_v40 = vmax.f32 %v2296_v61, 0.0  ;;  %v2496_v29 = vld [vmem:[%s11013_s7 + $0x450] sm:$0xff]  ;;  %v2463_v52 = vld [vmem:[%s11013_s7 + $0x348] sm:$0xff] }
 0x3c9   : > { %v2347_v44 = vsel %vm2057_vm15, %v2323_v59, %v2334_v60  ;;  %v2349_v56 = vsel %vm2057_vm15, %v2316_v0, %v2336_v30  ;;  %2510 = vst [vmem:[#allocation1 + $0x10] ss:$2 sm:$0xff] %v2346_v17  ;;  %v2351_v6 = vsel %vm2057_vm15, %v2324_v51, %v2338_v9  ;;  %v2348_v35 = vsel %vm2057_vm15, %v2317_v53, %v2335_v62  ;;  %v2465_v0 = vld [vmem:[%s11013_s7 + $0x358] sm:$0xff]  ;;  %v2479_v61 = vld [vmem:[%s11013_s7 + $0x3c8] sm:$0xff] }
 0x3ca   : > { %2508 = vst [vmem:[#allocation1 + $0x1] ss:$2 sm:$0xff] %v2349_v56  ;;  %v2306_v14 = vrot.slane %v2299_v40, 7  ;;  %v6085_v58 = vrot.slane %v2299_v40, 11  ;;  %v2481_v53 = vld [vmem:[%s11013_s7 + $0x3d8] sm:$0xff]  ;;  %v2478_v56 = vld [vmem:[%s11013_s7 + $0x3c0] sm:$0xff] }
 0x3cb   : > { %2512 = vst [vmem:[#allocation1 + $0x11] ss:$2 sm:$0xff] %v2350_v13  ;;  %v2497_v51 = vld [vmem:[%s11013_s7 + $0x458] sm:$0xff]  ;;  %v2495_v13 = vld [vmem:[%s11013_s7 + $0x448] sm:$0xff] }
 0x3cc   : > { %2514 = vst [vmem:[#allocation1 + $0x20] ss:$2 sm:$0xff] %v2347_v44  ;;  %v2314_v3 = vsel %vm578_vm0, 0.0, %v2306_v14  ;;  %v2315_v33 = vsel %vm578_vm0, 0.0, %v6085_v58  ;;  %v2462_v14 = vld [vmem:[%s11013_s7 + $0x340] sm:$0xff] }
 0x3cd   : > { %2516 = vst [vmem:[#allocation1 + $0x21] ss:$2 sm:$0xff] %v2351_v6  ;;  %v8338_v49 = vsel %vm1955_vm14, %v2314_v3, 0.0  ;;  %v8342_v27 = vsel %vm1955_vm14, %v2315_v33, 0.0  ;;  %v2494_v3 = vld [vmem:[%s11013_s7 + $0x440] sm:$0xff]  ;;  %v2461_v33 = vld [vmem:[%s11013_s7 + $0x338] sm:$0xff] }
 0x3ce   : > { %2518 = vst [vmem:[#allocation1 + $0x30] ss:$2 sm:$0xff] %v2348_v35  ;;  %v2325_v31 = vrot.slane %v8338_v49, 1  ;;  %v2328_v24 = vrot.slane %v8338_v49, 2  ;;  %v2340_v26 = vrot.slane %v8338_v49, 4  ;;  %v2343_v50 = vrot.slane %v8342_v27, 4 }
 0x3cf   : > { %v2331_v41 = vrot.slane %v8342_v27, 2  ;;  %v2330_v10 = vrot.slane %v8342_v27, 1 }
 0x3d0   : > { %v2339_v18 = vrot.slane %v2325_v31, 4  ;;  %v2353_v55 = vsel %vm2057_vm15, %v8325_v46, %v2340_v26  ;;  %v2341_v19 = vrot.slane %v2328_v24, 4  ;;  %v2356_v8 = vsel %vm2057_vm15, %v2328_v24, %v2343_v50  ;;  %v2488_v26 = vld [vmem:[%s11013_s7 + $0x410] sm:$0xff]  ;;  %v2454_v50 = vld [vmem:[%s11013_s7 + $0x300] sm:$0xff] }
 0x3d1   : > { %v2521_v43 = vld.sshfl [vmem:[#allocation1] sm:$0xff pattern:$0x75316420]  ;;  %v2522_v32 = vld.sshfl [vmem:[#allocation1 + $0x8] sm:$0xff pattern:$0x75316420] }
 0x3d2   : > { %v2523_v25 = vld.sshfl [vmem:[#allocation1 + $0x10] sm:$0xff pattern:$0x75316420]  ;;  %v8355_v39 = vld.sshfl [vmem:[#allocation1 + $0x18] sm:$0xff pattern:$0x75316420]  ;;  %2585 = vmatmul.f32.vlgmr.msra.gmra.mxu2 %v2521_v43  ;;  %v2352_v48 = vsel %vm2057_vm15, %v8338_v49, %v2339_v18  ;;  %2608 = vmatmul.f32.vlgmr.msrb.gmra.mxu3 %v2522_v32  ;;  %v2354_v60 = vsel %vm2057_vm15, %v2325_v31, %v2341_v19 }
 0x3d3   : > { %2529 = vst [vmem:[#allocation1] ss:$2 sm:$0xff] %v8325_v46  ;;  %2631 = vmatmul.f32.vlgmr.msra.gmra.mxu1 %v2523_v25  ;;  %2707 = vmatpush.msra.mxu2 %v2469_v5  ;;  %v2344_v59 = vrot.slane %v2331_v41, 4  ;;  %v2342_v34 = vrot.slane %v2330_v10, 4  ;;  %v2464_v46 = vld [vmem:[%s11013_s7 + $0x350] sm:$0xff]  ;;  %v2459_v18 = vld [vmem:[%s11013_s7 + $0x328] sm:$0xff] }
 0x3d4   : > { %2730 = vmatpush.msrb.mxu3 %v2485_v4  ;;  %v8380_v12 = vld.sshfl [vmem:[#allocation1 + $0x20] sm:$0xff pattern:$0x75316420]  ;;  %2531 = vst [vmem:[#allocation1 + $0x10] ss:$2 sm:$0xff] %v2348_v35  ;;  %2753 = vmatpush.msra.mxu1 %v2501_v63  ;;  %v2477_v35 = vld [vmem:[%s11013_s7 + $0x3b8] sm:$0xff] }
 0x3d5   : > { %v8383_v16 = vld.sshfl [vmem:[#allocation1 + $0x28] sm:$0xff pattern:$0x75316420]  ;;  %2520 = vst [vmem:[#allocation1 + $0x31] ss:$2 sm:$0xff] %v2352_v48  ;;  %2708 = vmatpush.msra.mxu2 %v2468_v45  ;;  %v2357_v9 = vsel %vm2057_vm15, %v2330_v10, %v2344_v59  ;;  %v2355_v40 = vsel %vm2057_vm15, %v8342_v27, %v2342_v34  ;;  %v2476_v49 = vld [vmem:[%s11013_s7 + $0x3b0] sm:$0xff] }
 0x3d6   : > { %2731 = vmatpush.msrb.mxu3 %v2484_v15  ;;  %2530 = vst [vmem:[#allocation1 + $0x1] ss:$2 sm:$0xff] %v2328_v24  ;;  %2754 = vmatpush.msra.mxu1 %v2500_v22  ;;  %v2460_v31 = vld [vmem:[%s11013_s7 + $0x330] sm:$0xff]  ;;  %v2475_v27 = vld [vmem:[%s11013_s7 + $0x3a8] sm:$0xff]  ;;  %v2474_v4 = vld [vmem:[%s11013_s7 + $0x3a0] sm:$0xff] }
 0x3d7   : > { %2532 = vst [vmem:[#allocation1 + $0x11] ss:$2 sm:$0xff] %v2352_v48  ;;  %2709 = vmatpush.msra.mxu2 %v2467_v42  ;;  %v2491_v5 = vld [vmem:[%s11013_s7 + $0x428] sm:$0xff]  ;;  %v2458_v63 = vld [vmem:[%s11013_s7 + $0x320] sm:$0xff]  ;;  %v2473_v32 = vld [vmem:[%s11013_s7 + $0x398] sm:$0xff] }
 0x3d8   : > { %2732 = vmatpush.msrb.mxu3 %v2483_v23  ;;  %2533 = vst [vmem:[#allocation1 + $0x20] ss:$2 sm:$0xff] %v2353_v55  ;;  %2755 = vmatpush.msra.mxu1 %v2499_v2  ;;  %v2490_v43 = vld [vmem:[%s11013_s7 + $0x420] sm:$0xff]  ;;  %v2457_v25 = vld [vmem:[%s11013_s7 + $0x318] sm:$0xff]  ;;  %v2472_v48 = vld [vmem:[%s11013_s7 + $0x390] sm:$0xff] }
 0x3d9   : > { %2534 = vst [vmem:[#allocation1 + $0x21] ss:$2 sm:$0xff] %v2356_v8  ;;  %2710 = vmatpush.msra.mxu2 %v2466_v47  ;;  %v2456_v45 = vld [vmem:[%s11013_s7 + $0x310] sm:$0xff]  ;;  %v2471_v22 = vld [vmem:[%s11013_s7 + $0x388] sm:$0xff]  ;;  %v2470_v2 = vld [vmem:[%s11013_s7 + $0x380] sm:$0xff] }
 0x3da   : > { %2733 = vmatpush.msrb.mxu3 %v2482_v1  ;;  %2756 = vmatpush.msra.mxu1 %v2498_v36  ;;  %v2455_v42 = vld [vmem:[%s11013_s7 + $0x308] sm:$0xff] }
 0x3db   : > { %2711 = vmatpush.msra.mxu2 %v2465_v0  ;;  %v6778_v0 = vld [vmem:[%s11014_s8] ss:$0 sm:$0xff] }
 0x3dc   : > { %2734 = vmatpush.msrb.mxu3 %v2481_v53  ;;  %v8426_v62 = vld.sshfl [vmem:[#allocation1 + $0x30] sm:$0xff pattern:$0x75316420]  ;;  %v8428_v30 = vld.sshfl [vmem:[#allocation1 + $0x38] sm:$0xff pattern:$0x75316420]  ;;  %2757 = vmatpush.msra.mxu1 %v2497_v51 }
 0x3dd   : > { %2535 = vst [vmem:[#allocation1 + $0x30] ss:$2 sm:$0xff] %v2354_v60  ;;  %v8431_v17 = vld.sshfl [vmem:[#allocation1] sm:$0xff pattern:$0x75316420]  ;;  %2712 = vmatpush.msra.mxu2 %v2464_v46 }
 0x3de   : > { %2735 = vmatpush.msrb.mxu3 %v2480_v28  ;;  %2536 = vst [vmem:[#allocation1 + $0x31] ss:$2 sm:$0xff] %v2357_v9  ;;  %v2538_v44 = vld.sshfl [vmem:[#allocation1 + $0x10] sm:$0xff pattern:$0x75316420]  ;;  %2758 = vmatpush.msra.mxu1 %v2496_v29 }
 0x3df   : > { %v2539_v6 = vld.sshfl [vmem:[#allocation1 + $0x18] sm:$0xff pattern:$0x75316420]  ;;  %2544 = vst [vmem:[#allocation1] ss:$2 sm:$0xff] %v2355_v40  ;;  %2588 = vmatmul.f32.gmra.mxu2 %v2538_v44 }
 0x3e0   : > { %2736 = vmatpush.msrb.mxu3 %v2479_v61  ;;  %v2540_v58 = vld.sshfl [vmem:[#allocation1 + $0x20] sm:$0xff pattern:$0x75316420]  ;;  %2713 = vmatpush.msra.mxu2 %v2463_v52  ;;  %2545 = vst [vmem:[#allocation1 + $0x1] ss:$2 sm:$0xff] %v8035_v57  ;;  %v2493_v57 = vld [vmem:[%s11013_s7 + $0x438] sm:$0xff] }
 0x3e1   : > { %2611 = vmatmul.f32.gmra.mxu3 %v2539_v6  ;;  %2634 = vmatmul.f32.gmra.mxu1 %v2540_v58  ;;  %2546 = vst [vmem:[#allocation1 + $0x10] ss:$2 sm:$0xff] %v2331_v41  ;;  %v2541_v15 = vld.sshfl [vmem:[#allocation1 + $0x28] sm:$0xff pattern:$0x75316420] }
 0x3e2   : > { %2737 = vmatpush.msrb.mxu3 %v2478_v56  ;;  %2759 = vmatpush.msra.mxu1 %v2495_v13  ;;  %2547 = vst [vmem:[#allocation1 + $0x11] ss:$2 sm:$0xff] %v7862_v38  ;;  %v2492_v38 = vld [vmem:[%s11013_s7 + $0x430] sm:$0xff] }
 0x3e3   : > { %2714 = vmatpush.msra.mxu2 %v2462_v14 }
 0x3e4   : > { %2738 = vmatpush.msrb.mxu3 %v2477_v35  ;;  %2760 = vmatpush.msra.mxu1 %v2494_v3 }
 0x3e5   : > { %2715 = vmatpush.msra.mxu2 %v2461_v33  ;;  %v2542_v24 = vld.sshfl [vmem:[#allocation1 + $0x30] sm:$0xff pattern:$0x75316420]  ;;  %v2543_v23 = vld.sshfl [vmem:[#allocation1 + $0x38] sm:$0xff pattern:$0x75316420] }
 0x3e6   : > { %2739 = vmatpush.msrb.mxu3 %v2476_v49  ;;  %2761 = vmatpush.msra.mxu1 %v2493_v57 }
 0x3e7   : > { %2716 = vmatpush.msra.mxu2 %v2460_v31  ;;  %v2548_v41 = vld.sshfl [vmem:[#allocation1] sm:$0xff pattern:$0x75316420]  ;;  %v2549_v10 = vld.sshfl [vmem:[#allocation1 + $0x8] sm:$0xff pattern:$0x75316420] }
 0x3e8   : > { %2654 = vmatmul.f32.vlgmr.msrb.gmra.mxu2 %v8355_v39  ;;  %2740 = vmatpush.msrb.mxu3 %v2475_v27  ;;  %v2489_v39 = vld [vmem:[%s11013_s7 + $0x418] sm:$0xff] }
 0x3e9   : > { %2677 = vmatmul.f32.vlgmr.msra.gmra.mxu3 %v8380_v12  ;;  %2762 = vmatpush.msra.mxu1 %v2492_v38  ;;  %v2487_v12 = vld [vmem:[%s11013_s7 + $0x408] sm:$0xff]  ;;  %v2550_v47 = vld.sshfl [vmem:[#allocation1 + $0x10] sm:$0xff pattern:$0x75316420] }
 0x3ea   : > { %2700 = vmatmul.f32.vlgmr.msrb.gmra.mxu1 %v8383_v16  ;;  %2717 = vmatpush.msra.mxu2 %v2459_v18  ;;  %v2486_v16 = vld [vmem:[%s11013_s7 + $0x400] sm:$0xff] }
 0x3eb   : > { %2763 = vmatpush.msra.mxu1 %v2491_v5  ;;  %2741 = vmatpush.msrb.mxu3 %v2474_v4 }
 0x3ec   : > { %2718 = vmatpush.msra.mxu2 %v2458_v63 }
 0x3ed   : > { %2764 = vmatpush.msra.mxu1 %v2490_v43  ;;  %2742 = vmatpush.msrb.mxu3 %v2473_v32 }
 0x3ee   : > { %2719 = vmatpush.msra.mxu2 %v2457_v25 }
 0x3ef   : > { %2765 = vmatpush.msra.mxu1 %v2489_v39  ;;  %2743 = vmatpush.msrb.mxu3 %v2472_v48 }
 0x3f0   : > { %2657 = vmatmul.f32.gmra.mxu2 %v2541_v15 }
 0x3f1   : > { %2680 = vmatmul.f32.gmra.mxu3 %v2542_v24  ;;  %2720 = vmatpush.msra.mxu2 %v2456_v45 }
 0x3f2   : > { %2703 = vmatmul.f32.gmra.mxu1 %v2543_v23  ;;  %2744 = vmatpush.msrb.mxu3 %v2471_v22 }
 0x3f3   : > { %2766 = vmatpush.msra.mxu1 %v2488_v26  ;;  %2721 = vmatpush.msra.mxu2 %v2455_v42 }
 0x3f4   : > { %2745 = vmatpush.msrb.mxu3 %v2470_v2 }
 0x3f5   : > { %2767 = vmatpush.msra.mxu1 %v2487_v12  ;;  %2722 = vmatpush.msra.mxu2 %v2454_v50 }
 0x3f7   : > { %2768 = vmatpush.msra.mxu1 %v2486_v16 }
 0x3f8   : > { %2723 = vmatmul.f32.vlgmr.msra.gmra.mxu2 %v8426_v62 }
 0x3f9   : > { %2746 = vmatmul.f32.vlgmr.msrb.gmra.mxu3 %v8428_v30 }
 0x3fa   : > { %2769 = vmatmul.f32.vlgmr.msra.gmra.mxu1 %v8431_v17 }
 0x400   : > { %2726 = vmatmul.f32.gmra.mxu2 %v2548_v41 }
 0x401   : > { %2749 = vmatmul.f32.gmra.mxu3 %v2549_v10 }
 0x402   : > { %2772 = vmatmul.f32.gmra.mxu1 %v2550_v47 }
 0x450   : > { %v2632_v1 = vpop.f32.mrf.mxu1 }
 0x455   : > { %v2586_v55 = vpop.f32.mrf.mxu2  ;;  %v2609_v36 = vpop.f32.mrf.mxu3 }
 0x456   : > { %v2587_v59 = vadd.f32 %v6778_v0, %v2586_v55 }
 0x458   : > { %v2610_v46 = vadd.f32 %v2609_v36, %v2587_v59 }
 0x45a   : > { %v2633_v29 = vadd.f32 %v2632_v1, %v2610_v46 }
 0x45e   : > { %v2635_v19 = vpop.f32.mrf.mxu1 }
 0x462   : > { %v2589_v8 = vpop.f32.mrf.mxu2 }
 0x463   : > { %v2590_v52 = vadd.f32 %v6778_v0, %v2589_v8 }
 0x464   : > { %v2612_v53 = vpop.f32.mrf.mxu3 }
 0x465   : > { %v2613_v9 = vadd.f32 %v2612_v53, %v2590_v52 }
 0x467   : > { %v2701_v51 = vpop.f32.mrf.mxu1  ;;  %v2636_v13 = vadd.f32 %v2635_v19, %v2613_v9 }
 0x46b   : > { %v2655_v34 = vpop.f32.mrf.mxu2 }
 0x46c   : > { %v2678_v28 = vpop.f32.mrf.mxu3  ;;  %v2656_v61 = vadd.f32 %v2655_v34, %v2633_v29  ;;  %v3152_v29 = vld [vmem:[%s11015_s9 + $0x1f8] sm:$0xff] }
 0x46d   : > { %3304 = vmatpush.msrb.mxu0 %v3152_v29 }
 0x46e   : > { %v2679_v17 = vadd.f32 %v2678_v28, %v2656_v61 }
 0x46f   : > { %v2704_v30 = vpop.f32.mrf.mxu1 }
 0x470   : > { %v2702_v40 = vadd.f32 %v2701_v51, %v2679_v17 }
 0x473   : > { %v2658_v60 = vpop.f32.mrf.mxu2 }
 0x474   : > { %v2681_v62 = vpop.f32.mrf.mxu3  ;;  %v2659_v56 = vadd.f32 %v2658_v60, %v2636_v13 }
 0x476   : > { %v2682_v3 = vadd.f32 %v2681_v62, %v2659_v56  ;;  %v3151_v62 = vld [vmem:[%s11015_s9 + $0x1f0] sm:$0xff] }
 0x477   : > { %v2770_v35 = vpop.f32.mrf.mxu1  ;;  %3305 = vmatpush.msrb.mxu0 %v3151_v62 }
 0x478   : > { %v2705_v27 = vadd.f32 %v2704_v30, %v2682_v3  ;;  %v3150_v3 = vld [vmem:[%s11015_s9 + $0x1e8] sm:$0xff] }
 0x479   : > { %3306 = vmatpush.msrb.mxu0 %v3150_v3 }
 0x47b   : > { %v2724_v44 = vpop.f32.mrf.mxu2 }
 0x47c   : > { %v2725_v6 = vadd.f32 %v2724_v44, %v2702_v40  ;;  %v2747_v14 = vpop.f32.mrf.mxu3 }
 0x47e   : > { %v2748_v58 = vadd.f32 %v2747_v14, %v2725_v6 }
 0x47f   : > { %v2773_v23 = vpop.f32.mrf.mxu1 }
 0x480   : > { %v2771_v33 = vadd.f32 %v2770_v35, %v2748_v58 }
 0x482   : > { %v2776_v49 = vmax.f32 %v2771_v33, 0.0 }
 0x483   : > { %v2727_v57 = vpop.f32.mrf.mxu2 }
 0x484   : > { %v2782_v31 = vrot.slane %v2776_v49, 3  ;;  %v2780_v38 = vrot.slane %v2776_v49, 4  ;;  %v2728_v63 = vadd.f32 %v2727_v57, %v2705_v27  ;;  %v2750_v26 = vpop.f32.mrf.mxu3 }
 0x486   : > { %v2786_v18 = vsel %vm578_vm0, %v2776_v49, %v2782_v31  ;;  %v2787_v5 = vsel %vm1239_vm2, %v2776_v49, %v2782_v31  ;;  %v2789_v4 = vsel %vm1241_vm3, %v2776_v49, %v2782_v31  ;;  %v2791_v25 = vsel %vm1243_vm4, %v2776_v49, %v2782_v31 }
 0x487   : > { %v2788_v43 = vrot.slane %v2787_v5, 1  ;;  %v2790_v32 = vrot.slane %v2789_v4, 2  ;;  %v2814_v39 = vperm.slane %v2786_v18, 0  ;;  %v2792_v48 = vrot.slane %v2791_v25, 3 }
 0x488   : > { %v2783_v45 = vrot.slane %v2780_v38, 3  ;;  %v2751_v42 = vadd.f32 %v2750_v26, %v2728_v63 }
 0x489   : > { %v2815_v15 = vperm.slane %v2788_v43, 0  ;;  %2830 = vst [vmem:[#allocation1] ss:$4 sm:$0xff] %v2814_v39  ;;  %v2816_v22 = vperm.slane %v2790_v32, 0  ;;  %v2817_v24 = vperm.slane %v2792_v48, 0 }
 0x48a   : > { %2839 = vst [vmem:[#allocation1 + $0x20] ss:$4 sm:$0xff] %v2814_v39  ;;  %v2794_v2 = vsel %vm1239_vm2, %v2780_v38, %v2783_v45  ;;  %v2774_v12 = vadd.f32 %v2773_v23, %v2751_v42  ;;  %v2796_v50 = vsel %vm1241_vm3, %v2780_v38, %v2783_v45  ;;  %v2798_v16 = vsel %vm1243_vm4, %v2780_v38, %v2783_v45 }
 0x48b   : > { %2832 = vst [vmem:[#allocation1 + $0x1] ss:$4 sm:$0xff] %v2815_v15  ;;  %v2793_v41 = vsel %vm578_vm0, %v2780_v38, %v2783_v45  ;;  %v2795_v10 = vrot.slane %v2794_v2, 1  ;;  %v2797_v1 = vrot.slane %v2796_v50, 2  ;;  %v2799_v55 = vrot.slane %v2798_v16, 3  ;;  %v3149_v2 = vld [vmem:[%s11015_s9 + $0x1e0] sm:$0xff] }
 0x48c   : > { %2834 = vst [vmem:[#allocation1 + $0x2] ss:$4 sm:$0xff] %v2816_v22  ;;  %v2777_v47 = vmax.f32 %v2774_v12, 0.0  ;;  %v2818_v36 = vperm.slane %v2793_v41, 0  ;;  %3307 = vmatpush.msrb.mxu0 %v3149_v2 }
 0x48d   : > { %2836 = vst [vmem:[#allocation1 + $0x3] ss:$4 sm:$0xff] %v2817_v24  ;;  %v2819_v19 = vperm.slane %v2795_v10, 0  ;;  %v2820_v53 = vperm.slane %v2797_v1, 0  ;;  %v2821_v59 = vperm.slane %v2799_v55, 0 }
 0x48e   : > { %2841 = vst [vmem:[#allocation1 + $0x21] ss:$4 sm:$0xff] %v2815_v15  ;;  %v2784_v0 = vrot.slane %v2777_v47, 3  ;;  %v2781_v52 = vrot.slane %v2777_v47, 4 }
 0x48f   : > { %2843 = vst [vmem:[#allocation1 + $0x22] ss:$4 sm:$0xff] %v2816_v22 }
 0x490   : > { %2845 = vst [vmem:[#allocation1 + $0x23] ss:$4 sm:$0xff] %v2817_v24  ;;  %v2801_v34 = vsel %vm1239_vm2, %v2777_v47, %v2784_v0  ;;  %v2803_v46 = vsel %vm1241_vm3, %v2777_v47, %v2784_v0  ;;  %v2800_v61 = vsel %vm578_vm0, %v2777_v47, %v2784_v0  ;;  %v2805_v60 = vsel %vm1243_vm4, %v2777_v47, %v2784_v0 }
 0x491   : > { %v2802_v30 = vrot.slane %v2801_v34, 1  ;;  %v2804_v40 = vrot.slane %v2803_v46, 2  ;;  %v2806_v6 = vrot.slane %v2805_v60, 3  ;;  %v2785_v14 = vrot.slane %v2781_v52, 3 }
 0x492   : > { %v2822_v58 = vperm.slane %v2800_v61, 0 }
 0x493   : > { %v2823_v49 = vperm.slane %v2802_v30, 0  ;;  %v2824_v38 = vperm.slane %v2804_v40, 0  ;;  %v2825_v5 = vperm.slane %v2806_v6, 0  ;;  %v2808_v25 = vsel %vm1239_vm2, %v2781_v52, %v2785_v14  ;;  %v3148_v30 = vld [vmem:[%s11015_s9 + $0x1d8] sm:$0xff] }
 0x494   : > { %v2837_v8 = vld.sshfl [vmem:[#allocation1] sm:$0xff pattern:$0x73625140]  ;;  %v2810_v48 = vsel %vm1241_vm3, %v2781_v52, %v2785_v14  ;;  %v2807_v15 = vsel %vm578_vm0, %v2781_v52, %v2785_v14  ;;  %v2812_v22 = vsel %vm1243_vm4, %v2781_v52, %v2785_v14  ;;  %v2809_v24 = vrot.slane %v2808_v25, 1  ;;  %3308 = vmatpush.msrb.mxu0 %v3148_v30  ;;  %v3119_v25 = vld [vmem:[%s11015_s9 + $0xf0] sm:$0xff] }
 0x495   : > { %2847 = vst [vmem:[#allocation1] ss:$4 sm:$0xff] %v2818_v36  ;;  %v2877_v28 = vrot.slane %v2837_v8, 7  ;;  %v2811_v12 = vrot.slane %v2810_v48, 2  ;;  %v2813_v16 = vrot.slane %v2812_v22, 3  ;;  %v2826_v47 = vperm.slane %v2807_v15, 0 }
 0x496   : > { %2848 = vst [vmem:[#allocation1 + $0x1] ss:$4 sm:$0xff] %v2819_v19  ;;  %v2827_v1 = vperm.slane %v2809_v24, 0  ;;  %v3145_v24 = vld [vmem:[%s11015_s9 + $0x1c0] sm:$0xff] }
 0x497   : > { %v2846_v51 = vld.sshfl [vmem:[#allocation1 + $0x20] sm:$0xff pattern:$0x73625140]  ;;  %2849 = vst [vmem:[#allocation1 + $0x2] ss:$4 sm:$0xff] %v2820_v53  ;;  %v8549_v9 = vsel %vm578_vm0, 0.0, %v2877_v28 }
 0x498   : > { %2850 = vst [vmem:[#allocation1 + $0x3] ss:$4 sm:$0xff] %v2821_v59  ;;  %v8552_v17 = vsel %vm578_vm0, %v2877_v28, 0.0  ;;  %v2878_v13 = vrot.slane %v2846_v51, 7  ;;  %v2923_v44 = vrot.slane %v8549_v9, 1  ;;  %v2968_v41 = vrot.slane %v8549_v9, 2 }
 0x499   : > { %2852 = vst [vmem:[#allocation1 + $0x20] ss:$4 sm:$0xff] %v2818_v36  ;;  %v2924_v56 = vrot.slane %v8552_v17, 1  ;;  %v2969_v10 = vrot.slane %v8552_v17, 2  ;;  %v2828_v8 = vperm.slane %v2811_v12, 0 }
 0x49a   : > { %2853 = vst [vmem:[#allocation1 + $0x21] ss:$4 sm:$0xff] %v2819_v19  ;;  %v8565_v31 = vsel %vm578_vm0, 0.0, %v2878_v13  ;;  %v8568_v27 = vsel %vm578_vm0, %v2878_v13, 0.0 }
 0x49b   : > { %2854 = vst [vmem:[#allocation1 + $0x22] ss:$4 sm:$0xff] %v2820_v53  ;;  %v8557_v35 = vsel %vm1355_vm9, %v2923_v44, %v2924_v56  ;;  %v2926_v63 = vrot.slane %v8565_v31, 1  ;;  %v2927_v43 = vrot.slane %v8568_v27, 1  ;;  %v2829_v53 = vperm.slane %v2813_v16, 0 }
 0x49c   : > { %2855 = vst [vmem:[#allocation1 + $0x23] ss:$4 sm:$0xff] %v2821_v59  ;;  %v6250_v57 = vpack.i.bf16 %v8557_v35, %v7129_v37  ;;  %v8606_v59 = vsel %vm1404_vm10, %v2968_v41, %v2969_v10  ;;  %v2971_v44 = vrot.slane %v8565_v31, 2  ;;  %v2972_v56 = vrot.slane %v8568_v27, 2  ;;  %v3146_v27 = vld [vmem:[%s11015_s9 + $0x1c8] sm:$0xff]  ;;  %v3104_v10 = vld [vmem:[%s11015_s9 + $0x78] sm:$0xff] }
 0x49d   : > { %v8586_v26 = vsel %vm1355_vm9, %v2926_v63, %v2927_v43  ;;  %v6270_v61 = vpack.i.bf16 %v8606_v59, %v8549_v9  ;;  %v3134_v41 = vld [vmem:[%s11015_s9 + $0x168] sm:$0xff]  ;;  %3181 = vmatpush.msrb.mxu2 %v3104_v10  ;;  %v3100_v10 = vld [vmem:[%s11015_s9 + $0x58] sm:$0xff] }
 0x49e   : > { %6251 = vrot.lane.b32.xlu1 %v6250_v57, %s6920_s14  ;;  %v8640_v3 = vsel %vm1404_vm10, %v2971_v44, %v2972_v56  ;;  %v3147_v57 = vld [vmem:[%s11015_s9 + $0x1d0] sm:$0xff]  ;;  %v3102_v56 = vld [vmem:[%s11015_s9 + $0x68] sm:$0xff] }
 0x49f   : > { %v2851_v33 = vld.sshfl [vmem:[#allocation1] sm:$0xff pattern:$0x73625140]  ;;  %3309 = vmatpush.msrb.mxu0 %v3147_v57  ;;  %v6275_v16 = vpack.i.bf16 %v8640_v3, %v8565_v31  ;;  %v3115_v44 = vld [vmem:[%s11015_s9 + $0xd0] sm:$0xff] }
 0x4a0   : > { %2857 = vst [vmem:[#allocation1] ss:$4 sm:$0xff] %v2822_v58  ;;  %v2879_v18 = vrot.slane %v2851_v33, 7 }
 0x4a1   : > { %2858 = vst [vmem:[#allocation1 + $0x1] ss:$4 sm:$0xff] %v2823_v49  ;;  %3310 = vmatpush.msrb.mxu0 %v3146_v27  ;;  %v11061_v27 = vrot.slane %v7098_v20, 1 }
 0x4a2   : > { %2859 = vst [vmem:[#allocation1 + $0x2] ss:$4 sm:$0xff] %v2824_v38  ;;  %v8572_v4 = vsel %vm578_vm0, 0.0, %v2879_v18  ;;  %v8575_v37 = vsel %vm578_vm0, %v2879_v18, 0.0 }
 0x4a3   : > { %v2856_v32 = vld.sshfl [vmem:[#allocation1 + $0x20] sm:$0xff pattern:$0x73625140]  ;;  %2860 = vst [vmem:[#allocation1 + $0x3] ss:$4 sm:$0xff] %v2825_v5  ;;  %v2929_v39 = vrot.slane %v8572_v4, 1  ;;  %3311 = vmatpush.msrb.mxu0 %v3145_v24 }
 0x4a4   : > { %2862 = vst [vmem:[#allocation1 + $0x20] ss:$4 sm:$0xff] %v2822_v58  ;;  %v2930_v45 = vrot.slane %v8575_v37, 1  ;;  %v2880_v23 = vrot.slane %v2856_v32, 7  ;;  %v3136_v32 = vld [vmem:[%s11015_s9 + $0x178] sm:$0xff] }
 0x4a5   : > { %2863 = vst [vmem:[#allocation1 + $0x21] ss:$4 sm:$0xff] %v2823_v49  ;;  %3263 = vmatpush.msrb.mxu1 %v3136_v32 }
 0x4a6   : > { %2864 = vst [vmem:[#allocation1 + $0x22] ss:$4 sm:$0xff] %v2824_v38  ;;  %v8589_v42 = vsel %vm1355_vm9, %v2929_v39, %v2930_v45  ;;  %v8600_v36 = vsel %vm578_vm0, 0.0, %v2880_v23  ;;  %v8603_v19 = vsel %vm578_vm0, %v2880_v23, 0.0  ;;  %v3120_v38 = vld [vmem:[%s11015_s9 + $0xf8] sm:$0xff]  ;;  %v3135_v39 = vld [vmem:[%s11015_s9 + $0x170] sm:$0xff] }
 0x4a7   : > { %2865 = vst [vmem:[#allocation1 + $0x23] ss:$4 sm:$0xff] %v2825_v5  ;;  %v6255_v50 = vpack.i.bf16 %v8589_v42, %v8586_v26  ;;  %v2932_v46 = vrot.slane %v8600_v36, 1  ;;  %v2933_v28 = vrot.slane %v8603_v19, 1  ;;  %3222 = vmatpush.msra.mxu3 %v3120_v38  ;;  %3264 = vmatpush.msrb.mxu1 %v3135_v39  ;;  %v6280_v24 = vpack.i.bf16 %v8600_v36, %v8572_v4 }
 0x4a9   : > { %6256 = vrot.lane.b32.xlu2 %v6255_v50, %s6920_s14  ;;  %v8625_v17 = vsel %vm1355_vm9, %v2932_v46, %v2933_v28  ;;  %v3118_v50 = vld [vmem:[%s11015_s9 + $0xe8] sm:$0xff]  ;;  %3223 = vmatpush.msra.mxu3 %v3119_v25  ;;  %v3133_v28 = vld [vmem:[%s11015_s9 + $0x160] sm:$0xff] }
 0x4aa   : > { %v2861_v55 = vld.sshfl [vmem:[#allocation1] sm:$0xff pattern:$0x73625140]  ;;  %3265 = vmatpush.msrb.mxu1 %v3134_v41 }
 0x4ab   : > { %2867 = vst [vmem:[#allocation1] ss:$4 sm:$0xff] %v2826_v47  ;;  %v2881_v0 = vrot.slane %v2861_v55, 7  ;;  %3224 = vmatpush.msra.mxu3 %v3118_v50  ;;  %v2977_v50 = vrot.slane %v8600_v36, 2 }
 0x4ac   : > { %2868 = vst [vmem:[#allocation1 + $0x1] ss:$4 sm:$0xff] %v2827_v1  ;;  %3266 = vmatpush.msrb.mxu1 %v3133_v28  ;;  %v3111_v28 = vld [vmem:[%s11015_s9 + $0xb0] sm:$0xff] }
 0x4ad   : > { %2869 = vst [vmem:[#allocation1 + $0x2] ss:$4 sm:$0xff] %v2828_v8  ;;  %v8609_v51 = vsel %vm578_vm0, 0.0, %v2881_v0  ;;  %v8612_v34 = vsel %vm578_vm0, %v2881_v0, 0.0  ;;  %v3144_v0 = vld [vmem:[%s11015_s9 + $0x1b8] sm:$0xff] }
 0x4ae   : > { %v2866_v29 = vld.sshfl [vmem:[#allocation1 + $0x20] sm:$0xff pattern:$0x73625140]  ;;  %2870 = vst [vmem:[#allocation1 + $0x3] ss:$4 sm:$0xff] %v2829_v53  ;;  %v2935_v52 = vrot.slane %v8609_v51, 1  ;;  %3312 = vmatpush.msrb.mxu0 %v3144_v0 }
 0x4af   : > { %2872 = vst [vmem:[#allocation1 + $0x20] ss:$4 sm:$0xff] %v2826_v47  ;;  %v2936_v60 = vrot.slane %v8612_v34, 1  ;;  %v2882_v62 = vrot.slane %v2866_v29, 7  ;;  %v2980_v49 = vrot.slane %v8609_v51, 2  ;;  %v2981_v43 = vrot.slane %v8612_v34, 2 }
 0x4b0   : > { %2873 = vst [vmem:[#allocation1 + $0x21] ss:$4 sm:$0xff] %v2827_v1  ;;  %v3103_v29 = vld [vmem:[%s11015_s9 + $0x70] sm:$0xff]  ;;  %v3140_v0 = vld [vmem:[%s11015_s9 + $0x198] sm:$0xff] }
 0x4b1   : > { %2874 = vst [vmem:[#allocation1 + $0x22] ss:$4 sm:$0xff] %v2828_v8  ;;  %6271 = vrot.lane.b32.xlu2 %v6270_v61, %s6920_s14  ;;  %v8628_v13 = vsel %vm1355_vm9, %v2935_v52, %v2936_v60  ;;  %v8636_v6 = vsel %vm578_vm0, 0.0, %v2882_v62  ;;  %v2906_v14 = vsel %vm578_vm0, %v2882_v62, 0.0  ;;  %v3117_v8 = vld [vmem:[%s11015_s9 + $0xe0] sm:$0xff]  ;;  %v8705_v34 = vsel %vm1404_vm10, %v2980_v49, %v2981_v43  ;;  %v3116_v52 = vld [vmem:[%s11015_s9 + $0xd8] sm:$0xff]  ;;  %3182 = vmatpush.msrb.mxu2 %v3103_v29 }
 0x4b2   : > { %2875 = vst [vmem:[#allocation1 + $0x23] ss:$4 sm:$0xff] %v2829_v53  ;;  %v6260_v40 = vpack.i.bf16 %v8628_v13, %v8625_v17  ;;  %v6285_v18 = vpack.i.bf16 %v8636_v6, %v8609_v51  ;;  %v2938_v5 = vrot.slane %v8636_v6, 1  ;;  %v2939_v63 = vrot.slane %v2906_v14, 1  ;;  %v3143_v61 = vld [vmem:[%s11015_s9 + $0x1b0] sm:$0xff]  ;;  %3225 = vmatpush.msra.mxu3 %v3117_v8  ;;  %v3132_v62 = vld [vmem:[%s11015_s9 + $0x158] sm:$0xff] }
 0x4b3   : > { %v2983_v15 = vrot.slane %v8636_v6, 2  ;;  %v2984_v22 = vrot.slane %v2906_v14, 2  ;;  %v3848_v60 = vrot.slane %v7092_v11, 1  ;;  %3313 = vmatpush.msrb.mxu0 %v3143_v61  ;;  %3267 = vmatpush.msrb.mxu1 %v3132_v62  ;;  %v3114_v49 = vld [vmem:[%s11015_s9 + $0xc8] sm:$0xff]  ;;  %v3101_v43 = vld [vmem:[%s11015_s9 + $0x60] sm:$0xff]  ;;  %v3127_v29 = vld [vmem:[%s11015_s9 + $0x130] sm:$0xff] }
 0x4b4   : > { %6261 = vrot.lane.b32.xlu0 %v6260_v40, %s6920_s14  ;;  %v8690_v47 = vsel %vm1355_vm9, %v2938_v5, %v2939_v63  ;;  %3226 = vmatpush.msra.mxu3 %v3116_v52  ;;  %v3130_v63 = vld [vmem:[%s11015_s9 + $0x148] sm:$0xff] }
 0x4b5   : > { %v2871_v58 = vld.sshfl [vmem:[#allocation1] sm:$0xff pattern:$0x73625140]  ;;  %v8708_v46 = vsel %vm1404_vm10, %v2983_v15, %v2984_v22  ;;  %v8756_v38 = vsel %vm1355_vm9, %v11061_v27, %v3848_v60  ;;  %3183 = vmatpush.msrb.mxu2 %v3102_v56 }
 0x4b6   : > { %v2883_v33 = vrot.slane %v2871_v58, 7  ;;  %v6300_v30 = vpack.i.bf16 %v8708_v46, %v8705_v34  ;;  %v3131_v58 = vld [vmem:[%s11015_s9 + $0x150] sm:$0xff]  ;;  %11062 = vst [vmem:[#allocation6_spill] sm:$0xff] %v8756_v38  ;;  %3227 = vmatpush.msra.mxu3 %v3115_v44  ;;  %v3113_v22 = vld [vmem:[%s11015_s9 + $0xc0] sm:$0xff] }
 0x4b7   : > { %3268 = vmatpush.msrb.mxu1 %v3131_v58  ;;  %3184 = vmatpush.msrb.mxu2 %v3101_v43  ;;  %v4022_v58 = vrot.slane %v7092_v11, 2  ;;  %v3138_v43 = vld [vmem:[%s11015_s9 + $0x188] sm:$0xff] }
 0x4b8   : > { %v8666_v48 = vsel %vm578_vm0, 0.0, %v2883_v33  ;;  %v8669_v45 = vsel %vm578_vm0, %v2883_v33, 0.0  ;;  %v3142_v33 = vld [vmem:[%s11015_s9 + $0x1a8] sm:$0xff]  ;;  %3228 = vmatpush.msra.mxu3 %v3114_v49  ;;  %v11065_v49 = vrot.slane %v7098_v20, 2 }
 0x4b9   : > { %v2876_v23 = vld.sshfl [vmem:[#allocation1 + $0x20] sm:$0xff pattern:$0x73625140]  ;;  %6286 = vrot.lane.b32.xlu2 %v6285_v18, %s6920_s14  ;;  %v2941_v2 = vrot.slane %v8666_v48, 1  ;;  %v2942_v12 = vrot.slane %v8669_v45, 1  ;;  %v11063_v18 = vrot.slane %v7102_v21, 1  ;;  %3314 = vmatpush.msrb.mxu0 %v3142_v33 }
 0x4ba   : > { %v2884_v55 = vrot.slane %v2876_v23, 7  ;;  %v2986_v32 = vrot.slane %v8666_v48, 2  ;;  %v2987_v25 = vrot.slane %v8669_v45, 2  ;;  %v2974_v23 = vrot.slane %v8572_v4, 2  ;;  %v3129_v45 = vld [vmem:[%s11015_s9 + $0x140] sm:$0xff]  ;;  %3269 = vmatpush.msrb.mxu1 %v3130_v63  ;;  %3229 = vmatpush.msra.mxu3 %v3113_v22  ;;  %v3126_v63 = vld [vmem:[%s11015_s9 + $0x128] sm:$0xff] }
 0x4bb   : > { %v8693_v1 = vsel %vm1355_vm9, %v2941_v2, %v2942_v12  ;;  %v8761_v5 = vsel %vm1355_vm9, %v3848_v60, %v11063_v18  ;;  %v3141_v2 = vld [vmem:[%s11015_s9 + $0x1a0] sm:$0xff]  ;;  %v2975_v12 = vrot.slane %v8575_v37, 2  ;;  %v3128_v37 = vld [vmem:[%s11015_s9 + $0x138] sm:$0xff]  ;;  %3185 = vmatpush.msrb.mxu2 %v3100_v10  ;;  %v3139_v60 = vld [vmem:[%s11015_s9 + $0x190] sm:$0xff] }
 0x4bc   : > { %6276 = vrot.lane.b32.xlu0 %v6275_v16, %s6920_s14  ;;  %v6265_v53 = vpack.i.bf16 %v8693_v1, %v8690_v47  ;;  %v8730_v40 = vsel %vm578_vm0, 0.0, %v2884_v55  ;;  %v8739_v14 = vsel %vm578_vm0, %v2884_v55, 0.0  ;;  %11064 = vst [vmem:[#allocation7_spill] sm:$0xff] %v8761_v5  ;;  %v2978_v16 = vrot.slane %v8603_v19, 2  ;;  %v3112_v55 = vld [vmem:[%s11015_s9 + $0xb8] sm:$0xff]  ;;  %3270 = vmatpush.msrb.mxu1 %v3129_v45  ;;  %v3110_v18 = vld [vmem:[%s11015_s9 + $0xa8] sm:$0xff] }
 0x4bd   : > { %v6290_v57 = vpack.i.bf16 %v8730_v40, %v8666_v48  ;;  %v3034_v39 = vrot.slane %v8730_v40, 2  ;;  %v3035_v15 = vrot.slane %v8739_v14, 2  ;;  %v6305_v41 = vpack.i.bf16 %v8761_v5, %v8756_v38  ;;  %3315 = vmatpush.msrb.mxu0 %v3141_v2  ;;  %3230 = vmatpush.msra.mxu3 %v3112_v55  ;;  %v3096_v22 = vld [vmem:[%s11015_s9 + $0x38] sm:$0xff]  ;;  %v3095_v45 = vld [vmem:[%s11015_s9 + $0x30] sm:$0xff]  ;;  %v3093_v10 = vld [vmem:[%s11015_s9 + $0x20] sm:$0xff] }
 0x4be   : > { %6266 = vrot.lane.b32.xlu1 %v6265_v53, %s6920_s14  ;;  %v8802_v19 = vsel %vm1404_vm10, %v2986_v32, %v2987_v25  ;;  %v3099_v53 = vld [vmem:[%s11015_s9 + $0x50] sm:$0xff]  ;;  %v8820_v52 = vsel %vm1404_vm10, %v2974_v23, %v2975_v12  ;;  %v8823_v61 = vsel %vm1404_vm10, %v2977_v50, %v2978_v16  ;;  %3271 = vmatpush.msrb.mxu1 %v3128_v37  ;;  %v3023_v44 = vrot.slane %v8730_v40, 1  ;;  %v3097_v32 = vld [vmem:[%s11015_s9 + $0x40] sm:$0xff]  ;;  %v3124_v23 = vld [vmem:[%s11015_s9 + $0x118] sm:$0xff] }
 0x4bf   : > { %v8805_v8 = vsel %vm1404_vm10, %v3034_v39, %v3035_v15  ;;  %3316 = vmatpush.msrb.mxu0 %v3140_v0  ;;  %3186 = vmatpush.msrb.mxu2 %v3099_v53  ;;  %v3024_v56 = vrot.slane %v8739_v14, 1  ;;  %v3098_v14 = vld [vmem:[%s11015_s9 + $0x48] sm:$0xff]  ;;  %v3109_v25 = vld [vmem:[%s11015_s9 + $0xa0] sm:$0xff]  ;;  %v3107_v2 = vld [vmem:[%s11015_s9 + $0x90] sm:$0xff] }
 0x4c0   : > { %v6310_v62 = vpack.i.bf16 %v8805_v8, %v8802_v19  ;;  %3231 = vmatpush.msra.mxu3 %v3111_v28  ;;  %3272 = vmatpush.msrb.mxu1 %v3127_v29  ;;  %v3125_v39 = vld [vmem:[%s11015_s9 + $0x120] sm:$0xff]  ;;  %v3123_v12 = vld [vmem:[%s11015_s9 + $0x110] sm:$0xff]  ;;  %v3094_v50 = vld [vmem:[%s11015_s9 + $0x28] sm:$0xff] }
 0x4c1   : > { %6301 = vrot.lane.b32.xlu2 %v6300_v30, %s6920_s14  ;;  %v6295_v30 = vpack.i.bf16 %v8823_v61, %v8820_v52  ;;  %3317 = vmatpush.msrb.mxu0 %v3139_v60  ;;  %v8839_v33 = vsel %vm1355_vm9, %v3023_v44, %v3024_v56  ;;  %v3137_v15 = vld [vmem:[%s11015_s9 + $0x180] sm:$0xff]  ;;  %v3106_v16 = vld [vmem:[%s11015_s9 + $0x88] sm:$0xff]  ;;  %v3092_v0 = vld [vmem:[%s11015_s9 + $0x18] sm:$0xff] }
 0x4c2   : > { %3187 = vmatpush.msrb.mxu2 %v3098_v14  ;;  %3232 = vmatpush.msra.mxu3 %v3110_v18  ;;  %v3105_v55 = vld [vmem:[%s11015_s9 + $0x80] sm:$0xff]  ;;  %v3091_v53 = vld [vmem:[%s11015_s9 + $0x10] sm:$0xff]  ;;  %v3090_v28 = vld [vmem:[%s11015_s9 + $0x8] sm:$0xff] }
 0x4c3   : > { %3273 = vmatpush.msrb.mxu1 %v3126_v63  ;;  %3318 = vmatpush.msrb.mxu0 %v3138_v43  ;;  %v3121_v37 = vld [vmem:[%s11015_s9 + $0x100] sm:$0xff]  ;;  %v3160_v60 = vld [vmem:[%s11015_s9 + $0x238] sm:$0xff] }
 0x4c4   : > { %6291 = vrot.lane.b32.xlu0 %v6290_v57, %s6920_s14  ;;  %v8846_v57 = vsel %vm1404_vm10, %v11065_v49, %v4022_v58  ;;  %3188 = vmatpush.msrb.mxu2 %v3097_v32  ;;  %v3089_v29 = vld [vmem:[%s11015_s9] sm:$0xff]  ;;  %v3158_v49 = vld [vmem:[%s11015_s9 + $0x228] sm:$0xff] }
 0x4c5   : > { %11066 = vst [vmem:[#allocation8_spill] sm:$0xff] %v8846_v57  ;;  %v6315_v27 = vpack.i.bf16 %v8846_v57, %v8839_v33  ;;  %3233 = vmatpush.msra.mxu3 %v3109_v25  ;;  %3274 = vmatpush.msrb.mxu1 %v3125_v39  ;;  %v3157_v39 = vld [vmem:[%s11015_s9 + $0x220] sm:$0xff] }
 0x4c6   : > { %6281 = vrot.lane.b32.xlu1 %v6280_v24, %s6920_s14  ;;  %v3108_v24 = vld [vmem:[%s11015_s9 + $0x98] sm:$0xff]  ;;  %3319 = vmatpush.msrb.mxu0 %v3137_v15 }
 0x4c7   : > { %3189 = vmatpush.msrb.mxu2 %v3096_v22  ;;  %3234 = vmatpush.msra.mxu3 %v3108_v24  ;;  %v3156_v24 = vld [vmem:[%s11015_s9 + $0x218] sm:$0xff] }
 0x4c8   : > { %3275 = vmatpush.msrb.mxu1 %v3124_v23  ;;  %v3155_v23 = vld [vmem:[%s11015_s9 + $0x210] sm:$0xff] }
 0x4c9   : > { %6306 = vrot.lane.b32.xlu2 %v6305_v41, %s6919_s12  ;;  %3190 = vmatpush.msrb.mxu2 %v3095_v45  ;;  %v3122_v41 = vld [vmem:[%s11015_s9 + $0x108] sm:$0xff] }
 0x4ca   : > { %3235 = vmatpush.msra.mxu3 %v3107_v2  ;;  %3276 = vmatpush.msrb.mxu1 %v3123_v12 }
 0x4cb   : > { %3191 = vmatpush.msrb.mxu2 %v3094_v50  ;;  %v3154_v50 = vld [vmem:[%s11015_s9 + $0x208] sm:$0xff] }
 0x4cc   : > { %6311 = vrot.lane.b32.xlu0 %v6310_v62, %s6920_s14  ;;  %3236 = vmatpush.msra.mxu3 %v3106_v16  ;;  %v3159_v62 = vld [vmem:[%s11015_s9 + $0x230] sm:$0xff] }
 0x4cd   : > { %3277 = vmatpush.msrb.mxu1 %v3122_v41  ;;  %3192 = vmatpush.msrb.mxu2 %v3093_v10 }
 0x4ce   : > { %6296 = vrot.lane.b32.xlu1 %v6295_v30, %s6920_s14  ;;  %3237 = vmatpush.msra.mxu3 %v3105_v55 }
 0x4cf   : > { %3278 = vmatpush.msrb.mxu1 %v3121_v37  ;;  %3193 = vmatpush.msrb.mxu2 %v3092_v0 }
 0x4d1   : > { %3194 = vmatpush.msrb.mxu2 %v3091_v53  ;;  %v3153_v53 = vld [vmem:[%s11015_s9 + $0x200] sm:$0xff] }
 0x4d3   : > { %3195 = vmatpush.msrb.mxu2 %v3090_v28 }
 0x4d5   : > { %3196 = vmatpush.msrb.mxu2 %v3089_v29 }
 0x4d6   : > { %6316 = vrot.lane.b32.xlu1 %v6315_v27, %s6920_s14 }
 0x4d7   : > { %3353 = vmatpush.msra.mxu2 %v3160_v60 }
 0x4d9   : > { %3354 = vmatpush.msra.mxu2 %v3159_v62 }
 0x4db   : > { %3355 = vmatpush.msra.mxu2 %v3158_v49 }
 0x4dd   : > { %3356 = vmatpush.msra.mxu2 %v3157_v39 }
 0x4df   : > { %3357 = vmatpush.msra.mxu2 %v3156_v24 }
 0x4e1   : > { %3358 = vmatpush.msra.mxu2 %v3155_v23 }
 0x4e3   : > { %3359 = vmatpush.msra.mxu2 %v3154_v50 }
 0x4e5   : > { %3360 = vmatpush.msra.mxu2 %v3153_v53 }
 0x503   : > { %v6257_v30 = vpop.permute.xlu2 %6256 }
 0x504   : > { %v6258_v44 = vunpack.i.l.bf16 %v6257_v30  ;;  %v6259_v27 = vunpack.i.h.bf16 %v6257_v30 }
 0x506   : > { %v3066_v56 = vsel %vm1574_vm12, %v8565_v31, %v6258_v44  ;;  %v3067_v31 = vsel %vm1574_vm12, %v8572_v4, %v6259_v27 }
 0x507   : > { %3320 = vmatmul.f32.vlgmr.msrb.gmra.mxu0 %v3066_v56 }
 0x50b   : > { %v6272_v14 = vpop.permute.xlu2 %6271 }
 0x50c   : > { %v6274_v18 = vunpack.i.h.bf16 %v6272_v14  ;;  %v6273_v63 = vunpack.i.l.bf16 %v6272_v14 }
 0x50e   : > { %v3072_v43 = vsel %vm1574_vm12, %v7153_v54, %v6273_v63  ;;  %v3080_v32 = vsel %vm1574_vm12, %v8557_v35, %v6274_v18 }
 0x50f   : > { %3238 = vmatmul.f32.vlgmr.msra.gmra.mxu3 %v3072_v43  ;;  %3279 = vmatmul.f32.vlgmr.msrb.gmra.mxu1 %v3080_v32 }
 0x510   : > { %3323 = vmatmul.f32.gmra.mxu0 %v3067_v31  ;;  %v6252_v25 = vpop.permute.xlu1 %6251 }
 0x511   : > { %v6253_v15 = vunpack.i.l.bf16 %v6252_v25  ;;  %v6254_v35 = vunpack.i.h.bf16 %v6252_v25 }
 0x513   : > { %v8945_v22 = vsel %vm1574_vm12, %v7098_v20, %v6253_v15  ;;  %v3065_v4 = vsel %vm1574_vm12, %v8549_v9, %v6254_v35 }
 0x514   : > { %3197 = vmatmul.f32.vlgmr.msrb.gmra.mxu2 %v8945_v22 }
 0x51c   : > { %3200 = vmatmul.f32.gmra.mxu2 %v3065_v4 }
 0x524   : > { %3203 = vmatmul.f32.gmra.mxu2 %v3066_v56  ;;  %v6287_v56 = vpop.permute.xlu2 %6286 }
 0x525   : > { %v6288_v14 = vunpack.i.l.bf16 %v6287_v56  ;;  %v6289_v25 = vunpack.i.h.bf16 %v6287_v56 }
 0x526   : > { %v6262_v45 = vpop.permute.xlu0 %6261 }
 0x527   : > { %v6263_v2 = vunpack.i.l.bf16 %v6262_v45  ;;  %v6264_v16 = vunpack.i.h.bf16 %v6262_v45  ;;  %v3076_v32 = vsel %vm1574_vm12, %v8823_v61, %v6288_v14  ;;  %v3077_v35 = vsel %vm1574_vm12, %v8705_v34, %v6289_v25 }
 0x529   : > { %v3068_v12 = vsel %vm1574_vm12, %v8600_v36, %v6263_v2  ;;  %v3069_v36 = vsel %vm1574_vm12, %v8609_v51, %v6264_v16 }
 0x52a   : > { %3326 = vmatmul.f32.gmra.mxu0 %v3068_v12 }
 0x52c   : > { %3206 = vmatmul.f32.gmra.mxu2 %v3067_v31 }
 0x52e   : > { %v6277_v41 = vpop.permute.xlu0 %6276 }
 0x52f   : > { %v6279_v9 = vunpack.i.h.bf16 %v6277_v41  ;;  %v6278_v10 = vunpack.i.l.bf16 %v6277_v41 }
 0x530   : > { %v6267_v55 = vpop.permute.xlu1 %6266 }
 0x531   : > { %v3073_v37 = vsel %vm1574_vm12, %v8606_v59, %v6278_v10  ;;  %v3081_v0 = vsel %vm1574_vm12, %v8586_v26, %v6279_v9  ;;  %v6268_v28 = vunpack.i.l.bf16 %v6267_v55  ;;  %v6269_v62 = vunpack.i.h.bf16 %v6267_v55 }
 0x532   : > { %3241 = vmatmul.f32.gmra.mxu3 %v3073_v37  ;;  %3282 = vmatmul.f32.gmra.mxu1 %v3081_v0 }
 0x533   : > { %3329 = vmatmul.f32.gmra.mxu0 %v3069_v36  ;;  %v3070_v59 = vsel %vm1574_vm12, %v8636_v6, %v6268_v28  ;;  %v3071_v49 = vsel %vm1574_vm12, %v8666_v48, %v6269_v62 }
 0x534   : > { %3209 = vmatmul.f32.gmra.mxu2 %v3068_v12 }
 0x536   : > { %v6292_v15 = vpop.permute.xlu0 %6291 }
 0x537   : > { %v6294_v2 = vunpack.i.h.bf16 %v6292_v15 }
 0x538   : > { %v6282_v29 = vpop.permute.xlu1 %6281 }
 0x539   : > { %v6283_v60 = vunpack.i.l.bf16 %v6282_v29  ;;  %v6284_v51 = vunpack.i.h.bf16 %v6282_v29 }
 0x53b   : > { %v3074_v26 = vsel %vm1574_vm12, %v8640_v3, %v6283_v60  ;;  %3332 = vmatmul.f32.gmra.mxu0 %v3070_v59  ;;  %v3075_v27 = vsel %vm1574_vm12, %v8820_v52, %v6284_v51 }
 0x53c   : > { %3244 = vmatmul.f32.gmra.mxu3 %v3074_v26  ;;  %3212 = vmatmul.f32.gmra.mxu2 %v3069_v36 }
 0x53e   : > { %v6312_v45 = vpop.permute.xlu0 %6311 }
 0x53f   : > { %v6314_v12 = vunpack.i.h.bf16 %v6312_v45 }
 0x540   : > { %v6297_v30 = vpop.permute.xlu1 %6296 }
 0x541   : > { %v6298_v44 = vunpack.i.l.bf16 %v6297_v30  ;;  %v6299_v18 = vunpack.i.h.bf16 %v6297_v30 }
 0x543   : > { %v3082_v6 = vsel %vm1574_vm12, %v8589_v42, %v6298_v44  ;;  %3335 = vmatmul.f32.gmra.mxu0 %v3071_v49  ;;  %v3083_v48 = vsel %vm1574_vm12, %v8625_v17, %v6299_v18  ;;  %v6302_v42 = vpop.permute.xlu2 %6301 }
 0x544   : > { %3247 = vmatmul.f32.gmra.mxu3 %v3075_v27  ;;  %3285 = vmatmul.f32.gmra.mxu1 %v3082_v6  ;;  %v6303_v39 = vunpack.i.l.bf16 %v6302_v42  ;;  %v6304_v17 = vunpack.i.h.bf16 %v6302_v42 }
 0x545   : > { %3215 = vmatmul.f32.gmra.mxu2 %v3070_v59 }
 0x546   : > { %v3084_v24 = vsel %vm1574_vm12, %v8628_v13, %v6303_v39  ;;  %v3085_v23 = vsel %vm1574_vm12, %v8690_v47, %v6304_v17  ;;  %v6313_v13 = vunpack.i.l.bf16 %v6312_v45  ;;  %v3087_v47 = vsel %vm1574_vm12, %v8839_v33, %v6314_v12 }
 0x548   : > { %v8980_v63 = vpop.permute.xlu1 %6316 }
 0x549   : > { %11067 = vst [vmem:[#allocation9_spill] sm:$0xff] %v8980_v63  ;;  %v6318_v43 = vunpack.i.l.bf16 %v8980_v63  ;;  %v4824_v63 = vld [vmem:[%s11017_s11 + $0x58] sm:$0xff] }
 0x54b   : > { %v3088_v31 = vsel %vm1574_vm12, %v8730_v40, %v6318_v43  ;;  %v6293_v40 = vunpack.i.l.bf16 %v6292_v15 }
 0x54c   : > { %3250 = vmatmul.f32.gmra.mxu3 %v3076_v32  ;;  %3288 = vmatmul.f32.gmra.mxu1 %v3083_v48 }
 0x54d   : > { %3338 = vmatmul.f32.gmra.mxu0 %v3088_v31  ;;  %3218 = vmatmul.f32.gmra.mxu2 %v3071_v49  ;;  %v3078_v4 = vsel %vm1574_vm12, %v8708_v46, %v6293_v40 }
 0x554   : > { %3253 = vmatmul.f32.gmra.mxu3 %v3077_v35  ;;  %3291 = vmatmul.f32.gmra.mxu1 %v3084_v24 }
 0x555   : > { %3341 = vmatmul.f32.gmra.mxu0 %v8945_v22  ;;  %6086 = vmatmul.msk.f32.vlgmr.msra.gmra.mxu2 %vm1574_vm12, %v8640_v3  ;;  %v3079_v22 = vsel %vm1574_vm12, %v8802_v19, %v6294_v2  ;;  %v3086_v3 = vsel %vm1574_vm12, %v8693_v1, %v6313_v13  ;;  %v4848_v2 = vld [vmem:[%s11017_s11 + $0x118] sm:$0xff] }
 0x556   : > { %5155 = vmatpush.msra.mxu0 %v4848_v2 }
 0x55c   : > { %3256 = vmatmul.f32.gmra.mxu3 %v3078_v4  ;;  %3294 = vmatmul.f32.gmra.mxu1 %v3085_v23 }
 0x55d   : > { %6087 = vmatmul.msk.f32.gmra.mxu2 %vm1574_vm12, %v8820_v52 }
 0x564   : > { %3259 = vmatmul.f32.gmra.mxu3 %v3079_v22  ;;  %3297 = vmatmul.f32.gmra.mxu1 %v3086_v3 }
 0x565   : > { %6088 = vmatmul.msk.f32.gmra.mxu2 %vm1574_vm12, %v8823_v61 }
 0x56c   : > { %3300 = vmatmul.f32.gmra.mxu1 %v3087_v47 }
 0x56d   : > { %6089 = vmatmul.msk.f32.gmra.mxu2 %vm1574_vm12, %v8705_v34  ;;  %v9025_v34 = vld [vmem:[%s11016_s10] ss:$0 sm:$0xff] }
 0x575   : > { %6090 = vmatmul.msk.f32.gmra.mxu2 %vm1574_vm12, %v8708_v46 }
 0x57d   : > { %6091 = vmatmul.msk.f32.gmra.mxu2 %vm1574_vm12, %v8802_v19 }
 0x584   : > { %v3321_v28 = vpop.f32.mrf.mxu0 }
 0x585   : > { %6092 = vmatmul.msk.f32.gmra.mxu2 %vm1574_vm12, %v8805_v8 }
 0x58c   : > { %v3280_v36 = vpop.f32.mrf.mxu1 }
 0x58d   : > { %6093 = vmatmul.msk.f32.gmra.mxu2 %vm1574_vm12, %v7153_v54  ;;  %v3324_v17 = vpop.f32.mrf.mxu0 }
 0x592   : > { %v3239_v10 = vpop.f32.mrf.mxu3 }
 0x597   : > { %v3198_v1 = vpop.f32.mrf.mxu2 }
 0x598   : > { %v3199_v9 = vadd.f32 %v9025_v34, %v3198_v1  ;;  %v4847_v1 = vld [vmem:[%s11017_s11 + $0x110] sm:$0xff] }
 0x599   : > { %5156 = vmatpush.msra.mxu0 %v4847_v1 }
 0x59a   : > { %v3240_v55 = vadd.f32 %v3239_v10, %v3199_v9 }
 0x59c   : > { %v3281_v53 = vadd.f32 %v3280_v36, %v3240_v55 }
 0x59e   : > { %v3322_v29 = vadd.f32 %v3321_v28, %v3281_v53 }
 0x59f   : > { %v3201_v52 = vpop.f32.mrf.mxu2 }
 0x5a0   : > { %v3202_v49 = vadd.f32 %v9025_v34, %v3201_v52 }
 0x5a7   : > { %v9020_v61 = vpop.f32.mrf.mxu2 }
 0x5a8   : > { %v3205_v52 = vadd.f32 %v9025_v34, %v9020_v61 }
 0x5af   : > { %v3207_v33 = vpop.f32.mrf.mxu2  ;;  %v3283_v39 = vpop.f32.mrf.mxu1 }
 0x5b0   : > { %v9028_v46 = vadd.f32 %v9025_v34, %v3207_v33 }
 0x5b5   : > { %v3242_v62 = vpop.f32.mrf.mxu3 }
 0x5b6   : > { %v3243_v32 = vadd.f32 %v3242_v62, %v3202_v49 }
 0x5b7   : > { %v3210_v19 = vpop.f32.mrf.mxu2 }
 0x5b8   : > { %v9031_v50 = vadd.f32 %v9025_v34, %v3210_v19  ;;  %v3284_v35 = vadd.f32 %v3283_v39, %v3243_v32 }
 0x5ba   : > { %v3325_v4 = vadd.f32 %v3324_v17, %v3284_v35 }
 0x5bf   : > { %v3213_v8 = vpop.f32.mrf.mxu2  ;;  %v3245_v12 = vpop.f32.mrf.mxu3 }
 0x5c0   : > { %v9034_v54 = vadd.f32 %v9025_v34, %v3213_v8  ;;  %v4846_v8 = vld [vmem:[%s11017_s11 + $0x108] sm:$0xff]  ;;  %v3246_v55 = vadd.f32 %v3245_v12, %v3205_v52 }
 0x5c1   : > { %5157 = vmatpush.msra.mxu0 %v4846_v8  ;;  %v3286_v28 = vpop.f32.mrf.mxu1 }
 0x5c8   : > { %v3216_v16 = vpop.f32.mrf.mxu2 }
 0x5c9   : > { %v9037_v41 = vadd.f32 %v9025_v34, %v3216_v16 }
 0x5d0   : > { %v3219_v37 = vpop.f32.mrf.mxu2 }
 0x5d1   : > { %v9041_v0 = vadd.f32 %v9025_v34, %v3219_v37  ;;  %v4845_v34 = vld [vmem:[%s11017_s11 + $0x100] sm:$0xff] }
 0x5d2   : > { %5158 = vmatpush.msra.mxu0 %v4845_v34 }
 0x5d8   : > { %v3362_v60 = vpop.f32.mrf.mxu2 }
 0x5d9   : > { %v3363_v59 = vadd.f32 %v3362_v60, %v3322_v29 }
 0x5db   : > { %v3386_v26 = vmax.f32 %v3363_v59, 0.0 }
 0x5dd   : > { %v3402_v51 = vrot.slane %v3386_v26, 1  ;;  %v3403_v30 = vrot.slane %v3386_v26, 2  ;;  %v3404_v44 = vrot.slane %v3386_v26, 3  ;;  %v3405_v56 = vrot.slane %v3386_v26, 4 }
 0x5de   : > { %v3406_v27 = vrot.slane %v3386_v26, 5  ;;  %v3407_v6 = vrot.slane %v3386_v26, 6  ;;  %v3458_v14 = vperm.slane %v3386_v26, 0  ;;  %v3408_v48 = vrot.slane %v3386_v26, 7 }
 0x5df   : > { %v3459_v18 = vperm.slane %v3402_v51, 0  ;;  %v3460_v43 = vperm.slane %v3403_v30, 0  ;;  %v3461_v31 = vperm.slane %v3404_v44, 0  ;;  %v3462_v42 = vperm.slane %v3405_v56, 0 }
 0x5e0   : > { %3522 = vst [vmem:[#allocation1] ss:$4 sm:$0xff] %v3458_v14  ;;  %v3463_v25 = vperm.slane %v3406_v27, 0  ;;  %v3464_v15 = vperm.slane %v3407_v6, 0  ;;  %v3465_v24 = vperm.slane %v3408_v48, 0  ;;  %v3365_v40 = vpop.f32.mrf.mxu2  ;;  %v3287_v27 = vadd.f32 %v3286_v28, %v3246_v55 }
 0x5e1   : > { %3524 = vst [vmem:[#allocation1 + $0x1] ss:$4 sm:$0xff] %v3459_v18  ;;  %v3366_v23 = vadd.f32 %v3365_v40, %v3325_v4  ;;  %v3327_v40 = vpop.f32.mrf.mxu0 }
 0x5e2   : > { %3526 = vst [vmem:[#allocation1 + $0x2] ss:$4 sm:$0xff] %v3460_v43 }
 0x5e3   : > { %3528 = vst [vmem:[#allocation1 + $0x3] ss:$4 sm:$0xff] %v3461_v31  ;;  %v9047_v13 = vmax.f32 %v3366_v23, 0.0 }
 0x5e4   : > { %3530 = vst [vmem:[#allocation1 + $0x20] ss:$4 sm:$0xff] %v3462_v42 }
 0x5e5   : > { %3532 = vst [vmem:[#allocation1 + $0x21] ss:$4 sm:$0xff] %v3463_v25  ;;  %v3409_v33 = vrot.slane %v9047_v13, 1  ;;  %v3410_v16 = vrot.slane %v9047_v13, 2  ;;  %v3411_v37 = vrot.slane %v9047_v13, 3  ;;  %v3412_v36 = vrot.slane %v9047_v13, 4 }
 0x5e6   : > { %3534 = vst [vmem:[#allocation1 + $0x22] ss:$4 sm:$0xff] %v3464_v15  ;;  %v3466_v29 = vperm.slane %v9047_v13, 0  ;;  %v3413_v51 = vrot.slane %v9047_v13, 5  ;;  %v3414_v44 = vrot.slane %v9047_v13, 6  ;;  %v3415_v6 = vrot.slane %v9047_v13, 7 }
 0x5e7   : > { %3536 = vst [vmem:[#allocation1 + $0x23] ss:$4 sm:$0xff] %v3465_v24  ;;  %v3467_v30 = vperm.slane %v3409_v33, 0  ;;  %v3468_v56 = vperm.slane %v3410_v16, 0  ;;  %v3328_v13 = vadd.f32 %v3327_v40, %v3287_v27  ;;  %v11068_v16 = vrot.slane %v7102_v21, 2  ;;  %v3289_v40 = vpop.f32.mrf.mxu1 }
 0x5e8   : > { %v3473_v4 = vperm.slane %v3415_v6, 0  ;;  %v3368_v23 = vpop.f32.mrf.mxu2 }
 0x5ea   : > { %v3537_v45 = vld.sshfl [vmem:[#allocation1] sm:$0xff pattern:$0x73625140] }
 0x5eb   : > { %3539 = vst [vmem:[#allocation1] ss:$4 sm:$0xff] %v3458_v14  ;;  %v3690_v22 = vrot.slane %v3537_v45, 7  ;;  %v3469_v14 = vperm.slane %v3411_v37, 0 }
 0x5ec   : > { %3540 = vst [vmem:[#allocation1 + $0x1] ss:$4 sm:$0xff] %v3459_v18  ;;  %v3470_v18 = vperm.slane %v3412_v36, 0 }
 0x5ed   : > { %3541 = vst [vmem:[#allocation1 + $0x2] ss:$4 sm:$0xff] %v3460_v43  ;;  %v9056_v19 = vsel %vm578_vm0, 0.0, %v3690_v22 }
 0x5ee   : > { %v3538_v3 = vld.sshfl [vmem:[#allocation1 + $0x20] sm:$0xff pattern:$0x73625140]  ;;  %3542 = vst [vmem:[#allocation1 + $0x3] ss:$4 sm:$0xff] %v3461_v31  ;;  %v4025_v61 = vrot.slane %v9056_v19, 2 }
 0x5ef   : > { %3543 = vst [vmem:[#allocation1 + $0x20] ss:$4 sm:$0xff] %v3462_v42  ;;  %v3691_v47 = vrot.slane %v3538_v3, 7  ;;  %v3851_v59 = vrot.slane %v9056_v19, 1 }
 0x5f0   : > { %3544 = vst [vmem:[#allocation1 + $0x21] ss:$4 sm:$0xff] %v3463_v25  ;;  %v3471_v25 = vperm.slane %v3413_v51, 0 }
 0x5f1   : > { %3545 = vst [vmem:[#allocation1 + $0x22] ss:$4 sm:$0xff] %v3464_v15  ;;  %v9063_v9 = vsel %vm578_vm0, %v3690_v22, %v3691_v47  ;;  %v3802_v10 = vsel %vm578_vm0, %v3691_v47, 0.0  ;;  %v3472_v15 = vperm.slane %v3414_v44, 0  ;;  %v3369_v47 = vadd.f32 %v3368_v23, %v3328_v13 }
 0x5f2   : > { %3546 = vst [vmem:[#allocation1 + $0x23] ss:$4 sm:$0xff] %v3465_v24  ;;  %v4026_v53 = vrot.slane %v9063_v9, 2  ;;  %v4028_v60 = vrot.slane %v3802_v10, 2  ;;  %v3852_v26 = vrot.slane %v9063_v9, 1  ;;  %v3854_v48 = vrot.slane %v3802_v10, 1 }
 0x5f3   : > { %v9117_v10 = vsel %vm1404_vm10, %v4022_v58, %v11068_v16  ;;  %v9120_v34 = vmax.f32 %v3369_v47, 0.0 }
 0x5f4   : > { %v4027_v49 = vsel %vm1404_vm10, %v4025_v61, %v4026_v53  ;;  %v9081_v43 = vsel %vm1404_vm10, %v4026_v53, %v4028_v60  ;;  %v9084_v32 = vsel %vm1355_vm9, %v3851_v59, %v3852_v26  ;;  %v9088_v35 = vsel %vm1355_vm9, %v3852_v26, %v3854_v48  ;;  %11069 = vst [vmem:[#allocation10_spill] sm:$0xff] %v9117_v10 }
 0x5f5   : > { %v3547_v62 = vld.sshfl [vmem:[#allocation1] sm:$0xff pattern:$0x73625140]  ;;  %v6330_v39 = vpack.i.bf16 %v9081_v43, %v4027_v49  ;;  %v6320_v45 = vpack.i.bf16 %v9088_v35, %v9084_v32  ;;  %v6325_v36 = vpack.i.bf16 %v4027_v49, %v9117_v10  ;;  %v3418_v27 = vrot.slane %v9120_v34, 3 }
 0x5f6   : > { %3549 = vst [vmem:[#allocation1] ss:$4 sm:$0xff] %v3466_v29  ;;  %v3693_v31 = vrot.slane %v3547_v62, 7  ;;  %v3416_v62 = vrot.slane %v9120_v34, 1  ;;  %v3419_v6 = vrot.slane %v9120_v34, 4  ;;  %v3422_v23 = vrot.slane %v9120_v34, 7 }
 0x5f7   : > { %3550 = vst [vmem:[#allocation1 + $0x1] ss:$4 sm:$0xff] %v3467_v30  ;;  %6331 = vrot.lane.b32.xlu1 %v6330_v39, %s6919_s12  ;;  %6321 = vrot.lane.b32.xlu0 %v6320_v45, %s6919_s12 }
 0x5f8   : > { %3551 = vst [vmem:[#allocation1 + $0x2] ss:$4 sm:$0xff] %v3468_v56  ;;  %v9091_v17 = vsel %vm578_vm0, 0.0, %v3693_v31  ;;  %v3475_v48 = vperm.slane %v3416_v62, 0  ;;  %v3478_v47 = vperm.slane %v3419_v6, 0 }
 0x5f9   : > { %v3548_v42 = vld.sshfl [vmem:[#allocation1 + $0x20] sm:$0xff pattern:$0x73625140]  ;;  %3552 = vst [vmem:[#allocation1 + $0x3] ss:$4 sm:$0xff] %v3469_v14  ;;  %v4030_v2 = vrot.slane %v9091_v17, 2 }
 0x5fa   : > { %3553 = vst [vmem:[#allocation1 + $0x20] ss:$4 sm:$0xff] %v3470_v18  ;;  %v3694_v24 = vrot.slane %v3548_v42, 7  ;;  %v3856_v33 = vrot.slane %v9091_v17, 1 }
 0x5fb   : > { %3554 = vst [vmem:[#allocation1 + $0x21] ss:$4 sm:$0xff] %v3471_v25 }
 0x5fc   : > { %3555 = vst [vmem:[#allocation1 + $0x22] ss:$4 sm:$0xff] %v3472_v15  ;;  %v9098_v22 = vsel %vm578_vm0, %v3693_v31, %v3694_v24  ;;  %v3803_v52 = vsel %vm578_vm0, %v3694_v24, 0.0 }
 0x5fd   : > { %3556 = vst [vmem:[#allocation1 + $0x23] ss:$4 sm:$0xff] %v3473_v4  ;;  %v6335_v3 = vpack.i.bf16 %v9098_v22, %v9091_v17  ;;  %v4031_v12 = vrot.slane %v9098_v22, 2  ;;  %v3857_v61 = vrot.slane %v9098_v22, 1  ;;  %v3859_v55 = vrot.slane %v3803_v52, 1 }
 0x5fe   : > { %v4033_v21 = vrot.slane %v3803_v52, 2 }
 0x5ff   : > { %6336 = vrot.lane.b32.xlu2 %v6335_v3, %s6920_s14  ;;  %v9106_v1 = vsel %vm1404_vm10, %v4030_v2, %v4031_v12  ;;  %v9124_v53 = vsel %vm1355_vm9, %v3856_v33, %v3857_v61  ;;  %v9127_v58 = vsel %vm1355_vm9, %v3857_v61, %v3859_v55  ;;  %6326 = vrot.lane.b32.xlu0 %v6325_v36, %s6920_s14  ;;  %v3477_v2 = vperm.slane %v3418_v27, 0  ;;  %v3371_v36 = vpop.f32.mrf.mxu2 }
 0x600   : > { %v3557_v8 = vld.sshfl [vmem:[#allocation1] sm:$0xff pattern:$0x73625140]  ;;  %6094 = vmatmul.msk.f32.vlgmr.msra.gmra.mxu0 %vm1565_vm11, %v9106_v1  ;;  %v6340_v60 = vpack.i.bf16 %v9127_v58, %v9124_v53  ;;  %v6345_v13 = vpack.i.bf16 %v9106_v1, %v9081_v43  ;;  %v3481_v55 = vperm.slane %v3422_v23, 0 }
 0x601   : > { %3559 = vst [vmem:[#allocation1] ss:$4 sm:$0xff] %v3466_v29  ;;  %v3696_v37 = vrot.slane %v3557_v8, 7  ;;  %v3248_v29 = vpop.f32.mrf.mxu3 }
 0x602   : > { %3560 = vst [vmem:[#allocation1 + $0x1] ss:$4 sm:$0xff] %v3467_v30  ;;  %6341 = vrot.lane.b32.xlu1 %v6340_v60, %s6919_s12  ;;  %v9141_v30 = vsel %vm1404_vm10, %v4031_v12, %v4033_v21  ;;  %v3249_v44 = vadd.f32 %v3248_v29, %v9028_v46 }
 0x603   : > { %3561 = vst [vmem:[#allocation1 + $0x2] ss:$4 sm:$0xff] %v3468_v56  ;;  %v9133_v26 = vsel %vm578_vm0, 0.0, %v3696_v37  ;;  %v3417_v56 = vrot.slane %v9120_v34, 2  ;;  %v6355_v62 = vpack.i.bf16 %v9141_v30, %v9106_v1 }
 0x604   : > { %v3558_v28 = vld.sshfl [vmem:[#allocation1 + $0x20] sm:$0xff pattern:$0x73625140]  ;;  %3562 = vst [vmem:[#allocation1 + $0x3] ss:$4 sm:$0xff] %v3469_v14  ;;  %v3420_v14 = vrot.slane %v9120_v34, 5  ;;  %v3290_v52 = vadd.f32 %v3289_v40, %v3249_v44 }
 0x605   : > { %3563 = vst [vmem:[#allocation1 + $0x20] ss:$4 sm:$0xff] %v3470_v18  ;;  %v3697_v59 = vrot.slane %v3558_v28, 7  ;;  %v3474_v18 = vperm.slane %v9120_v34, 0  ;;  %v3861_v31 = vrot.slane %v9133_v26, 1  ;;  %v3476_v45 = vperm.slane %v3417_v56, 0 }
 0x606   : > { %3564 = vst [vmem:[#allocation1 + $0x21] ss:$4 sm:$0xff] %v3471_v25  ;;  %v3479_v8 = vperm.slane %v3420_v14, 0 }
 0x607   : > { %3565 = vst [vmem:[#allocation1 + $0x22] ss:$4 sm:$0xff] %v3472_v15  ;;  %v9138_v51 = vsel %vm578_vm0, %v3696_v37, %v3697_v59  ;;  %v3804_v46 = vsel %vm578_vm0, %v3697_v59, 0.0  ;;  %v4035_v15 = vrot.slane %v9133_v26, 2  ;;  %6351 = vrot.lane.b32.xlu0 %v6340_v60, %s6921_s16  ;;  %v3330_v37 = vpop.f32.mrf.mxu0 }
 0x608   : > { %3566 = vst [vmem:[#allocation1 + $0x23] ss:$4 sm:$0xff] %v3473_v4  ;;  %v6360_v49 = vpack.i.bf16 %v9138_v51, %v9133_v26  ;;  %6095 = vmatmul.msk.f32.gmra.mxu0 %vm1565_vm11, %v9141_v30  ;;  %v3862_v42 = vrot.slane %v9138_v51, 1  ;;  %v3864_v39 = vrot.slane %v3804_v46, 1  ;;  %v4036_v24 = vrot.slane %v9138_v51, 2 }
 0x609   : > { %v3421_v4 = vrot.slane %v9120_v34, 6  ;;  %v3331_v21 = vadd.f32 %v3330_v37, %v3290_v52  ;;  %v4038_v28 = vrot.slane %v3804_v46, 2  ;;  %v3251_v40 = vpop.f32.mrf.mxu3  ;;  %v3292_v37 = vpop.f32.mrf.mxu1 }
 0x60a   : > { %6361 = vrot.lane.b32.xlu2 %v6360_v49, %s6920_s14  ;;  %v9165_v3 = vsel %vm1355_vm9, %v3861_v31, %v3862_v42  ;;  %v9168_v12 = vsel %vm1355_vm9, %v3862_v42, %v3864_v39  ;;  %6346 = vrot.lane.b32.xlu1 %v6345_v13, %s6920_s14  ;;  %v4037_v16 = vsel %vm1404_vm10, %v4035_v15, %v4036_v24 }
 0x60b   : > { %v3567_v25 = vld.sshfl [vmem:[#allocation1] sm:$0xff pattern:$0x73625140]  ;;  %v3480_v61 = vperm.slane %v3421_v4, 0  ;;  %v6365_v43 = vpack.i.bf16 %v9168_v12, %v9165_v3  ;;  %v3372_v59 = vadd.f32 %v3371_v36, %v3331_v21  ;;  %v4039_v1 = vsel %vm1404_vm10, %v4036_v24, %v4038_v28 }
 0x60c   : > { %3569 = vst [vmem:[#allocation1] ss:$4 sm:$0xff] %v3474_v18  ;;  %v3699_v34 = vrot.slane %v3567_v25, 7  ;;  %v6370_v46 = vpack.i.bf16 %v4037_v16, %v9141_v30  ;;  %v6380_v24 = vpack.i.bf16 %v4039_v1, %v4037_v16 }
 0x60d   : > { %3570 = vst [vmem:[#allocation1 + $0x1] ss:$4 sm:$0xff] %v3475_v48  ;;  %v9195_v31 = vmax.f32 %v3372_v59, 0.0 }
 0x60e   : > { %3571 = vst [vmem:[#allocation1 + $0x2] ss:$4 sm:$0xff] %v3476_v45  ;;  %v9177_v60 = vsel %vm578_vm0, 0.0, %v3699_v34 }
 0x60f   : > { %v3568_v33 = vld.sshfl [vmem:[#allocation1 + $0x20] sm:$0xff pattern:$0x73625140]  ;;  %3572 = vst [vmem:[#allocation1 + $0x3] ss:$4 sm:$0xff] %v3477_v2  ;;  %6376 = vrot.lane.b32.xlu0 %v6365_v43, %s6921_s16  ;;  %v3866_v27 = vrot.slane %v9177_v60, 1 }
 0x610   : > { %3573 = vst [vmem:[#allocation1 + $0x20] ss:$4 sm:$0xff] %v3478_v47  ;;  %6096 = vmatmul.msk.f32.gmra.mxu0 %vm1565_vm11, %v4037_v16  ;;  %v3700_v29 = vrot.slane %v3568_v33, 7  ;;  %v4040_v30 = vrot.slane %v9177_v60, 2  ;;  %v3423_v15 = vrot.slane %v9195_v31, 1  ;;  %v3424_v4 = vrot.slane %v9195_v31, 2 }
 0x611   : > { %3574 = vst [vmem:[#allocation1 + $0x21] ss:$4 sm:$0xff] %v3479_v8  ;;  %v3425_v23 = vrot.slane %v9195_v31, 3  ;;  %v3427_v52 = vrot.slane %v9195_v31, 5  ;;  %v3482_v33 = vperm.slane %v9195_v31, 0  ;;  %v3252_v16 = vadd.f32 %v3251_v40, %v9031_v50  ;;  %v3374_v40 = vpop.f32.mrf.mxu2 }
 0x612   : > { %3575 = vst [vmem:[#allocation1 + $0x22] ss:$4 sm:$0xff] %v3480_v61  ;;  %6366 = vrot.lane.b32.xlu2 %v6365_v43, %s6919_s12  ;;  %v9183_v44 = vsel %vm578_vm0, %v3699_v34, %v3700_v29  ;;  %v9186_v56 = vsel %vm578_vm0, %v3700_v29, 0.0  ;;  %6356 = vrot.lane.b32.xlu1 %v6355_v62, %s6919_s12  ;;  %v3483_v43 = vperm.slane %v3423_v15, 0  ;;  %v3429_v36 = vrot.slane %v9195_v31, 7  ;;  %v4844_v29 = vld [vmem:[%s11017_s11 + $0xf8] sm:$0xff] }
 0x613   : > { %3576 = vst [vmem:[#allocation1 + $0x23] ss:$4 sm:$0xff] %v3481_v55  ;;  %v3867_v6 = vrot.slane %v9183_v44, 1  ;;  %v3869_v14 = vrot.slane %v9186_v56, 1  ;;  %v4041_v39 = vrot.slane %v9183_v44, 2  ;;  %v4043_v34 = vrot.slane %v9186_v56, 2  ;;  %5030 = vmatpush.msra.mxu1 %v4844_v29 }
 0x614   : > { %v3484_v21 = vperm.slane %v3424_v4, 0  ;;  %v9224_v28 = vperm.slane %v3425_v23, 0  ;;  %v3489_v15 = vperm.slane %v3429_v36, 0 }
 0x615   : > { %v9199_v25 = vsel %vm1355_vm9, %v3866_v27, %v3867_v6  ;;  %v3293_v27 = vadd.f32 %v3292_v37, %v3252_v16 }
 0x616   : > { %v3577_v49 = vld.sshfl [vmem:[#allocation1] sm:$0xff pattern:$0x73625140]  ;;  %v6400_v16 = vpack.i.bf16 %v9177_v60, %v9199_v25 }
 0x617   : > { %3579 = vst [vmem:[#allocation1] ss:$4 sm:$0xff] %v3474_v18  ;;  %v9202_v18 = vsel %vm1355_vm9, %v3867_v6, %v3869_v14  ;;  %v3487_v14 = vperm.slane %v3427_v52, 0 }
 0x618   : > { %3580 = vst [vmem:[#allocation1 + $0x1] ss:$4 sm:$0xff] %v3475_v48  ;;  %6097 = vmatmul.msk.f32.gmra.mxu0 %vm1565_vm11, %v4039_v1  ;;  %v6390_v48 = vpack.i.bf16 %v9202_v18, %v9199_v25 }
 0x619   : > { %3581 = vst [vmem:[#allocation1 + $0x2] ss:$4 sm:$0xff] %v3476_v45  ;;  %v4042_v45 = vsel %vm1404_vm10, %v4040_v30, %v4041_v39 }
 0x61a   : > { %v3578_v42 = vld.sshfl [vmem:[#allocation1 + $0x20] sm:$0xff pattern:$0x73625140]  ;;  %3582 = vst [vmem:[#allocation1 + $0x3] ss:$4 sm:$0xff] %v3477_v2  ;;  %6371 = vrot.lane.b32.xlu2 %v6370_v46, %s6920_s14  ;;  %6391 = vrot.lane.b32.xlu0 %v6390_v48, %s6919_s12  ;;  %v3702_v2 = vrot.slane %v3577_v49, 7  ;;  %v6395_v50 = vpack.i.bf16 %v4042_v45, %v4039_v1  ;;  %v6405_v46 = vpack.i.bf16 %v9183_v44, %v9202_v18 }
 0x61b   : > { %3583 = vst [vmem:[#allocation1 + $0x20] ss:$4 sm:$0xff] %v3478_v47  ;;  %6381 = vrot.lane.b32.xlu1 %v6380_v24, %s6919_s12  ;;  %v3703_v13 = vrot.slane %v3578_v42, 7  ;;  %v3426_v47 = vrot.slane %v9195_v31, 4  ;;  %v9243_v1 = vsel %vm1404_vm10, %v4041_v39, %v4043_v34  ;;  %v4843_v24 = vld [vmem:[%s11017_s11 + $0xf0] sm:$0xff]  ;;  %v3333_v39 = vpop.f32.mrf.mxu0 }
 0x61c   : > { %3584 = vst [vmem:[#allocation1 + $0x21] ss:$4 sm:$0xff] %v3479_v8  ;;  %v6385_v8 = vpack.i.bf16 %v9183_v44, %v9177_v60  ;;  %v9234_v62 = vsel %vm578_vm0, 0.0, %v3702_v2  ;;  %v6410_v4 = vpack.i.bf16 %v9243_v1, %v4042_v45  ;;  %5031 = vmatpush.msra.mxu1 %v4843_v24  ;;  %v3334_v23 = vadd.f32 %v3333_v39, %v3293_v27  ;;  %v3254_v39 = vpop.f32.mrf.mxu3 }
 0x61d   : > { %3585 = vst [vmem:[#allocation1 + $0x22] ss:$4 sm:$0xff] %v3480_v61  ;;  %v3428_v61 = vrot.slane %v9195_v31, 6  ;;  %v9231_v59 = vsel %vm578_vm0, %v3702_v2, %v3703_v13  ;;  %v9237_v56 = vsel %vm578_vm0, %v3703_v13, 0.0  ;;  %v3486_v49 = vperm.slane %v3426_v47, 0 }
 0x61e   : > { %3586 = vst [vmem:[#allocation1 + $0x23] ss:$4 sm:$0xff] %v3481_v55  ;;  %v3871_v42 = vrot.slane %v9234_v62, 1  ;;  %v3872_v48 = vrot.slane %v9231_v59, 1  ;;  %v3874_v30 = vrot.slane %v9237_v56, 1  ;;  %v4046_v34 = vrot.slane %v9231_v59, 2 }
 0x61f   : > { %v3488_v31 = vperm.slane %v3428_v61, 0  ;;  %v4045_v61 = vrot.slane %v9234_v62, 2 }
 0x620   : > { %6098 = vmatmul.msk.f32.gmra.mxu0 %vm1565_vm11, %v4042_v45  ;;  %v9258_v2 = vsel %vm1355_vm9, %v3871_v42, %v3872_v48  ;;  %v9261_v13 = vsel %vm1355_vm9, %v3872_v48, %v3874_v30  ;;  %v4842_v45 = vld [vmem:[%s11017_s11 + $0xe8] sm:$0xff]  ;;  %v4840_v30 = vld [vmem:[%s11017_s11 + $0xd8] sm:$0xff] }
 0x621   : > { %v3587_v55 = vld.sshfl [vmem:[#allocation1] sm:$0xff pattern:$0x73625140]  ;;  %5032 = vmatpush.msra.mxu1 %v4842_v45  ;;  %v6430_v42 = vpack.i.bf16 %v9231_v59, %v9261_v13 }
 0x622   : > { %6386 = vrot.lane.b32.xlu2 %v6385_v8, %s6920_s14  ;;  %3589 = vst [vmem:[#allocation1] ss:$4 sm:$0xff] %v3482_v33  ;;  %6396 = vrot.lane.b32.xlu0 %v6395_v50, %s6920_s14  ;;  %v3705_v47 = vrot.slane %v3587_v55, 7  ;;  %v3375_v8 = vadd.f32 %v3374_v40, %v3334_v23  ;;  %v6420_v55 = vpack.i.bf16 %v9261_v13, %v9258_v2 }
 0x623   : > { %3590 = vst [vmem:[#allocation1 + $0x1] ss:$4 sm:$0xff] %v3483_v43  ;;  %6406 = vrot.lane.b32.xlu1 %v6405_v46, %s6921_s16 }
 0x624   : > { %3591 = vst [vmem:[#allocation1 + $0x2] ss:$4 sm:$0xff] %v3484_v21  ;;  %v9279_v29 = vsel %vm578_vm0, 0.0, %v3705_v47  ;;  %v9284_v27 = vmax.f32 %v3375_v8, 0.0 }
 0x625   : > { %v3588_v6 = vld.sshfl [vmem:[#allocation1 + $0x20] sm:$0xff pattern:$0x73625140]  ;;  %3592 = vst [vmem:[#allocation1 + $0x3] ss:$4 sm:$0xff] %v9224_v28 }
 0x626   : > { %3593 = vst [vmem:[#allocation1 + $0x20] ss:$4 sm:$0xff] %v3486_v49  ;;  %v3706_v52 = vrot.slane %v3588_v6, 7  ;;  %v9288_v6 = vsel %vm1404_vm10, %v4045_v61, %v4046_v34  ;;  %v3430_v24 = vrot.slane %v9284_v27, 1  ;;  %v3431_v40 = vrot.slane %v9284_v27, 2 }
 0x627   : > { %3594 = vst [vmem:[#allocation1 + $0x21] ss:$4 sm:$0xff] %v3487_v14 }
 0x628   : > { %3595 = vst [vmem:[#allocation1 + $0x22] ss:$4 sm:$0xff] %v3488_v31  ;;  %6099 = vmatmul.msk.f32.gmra.mxu0 %vm1565_vm11, %v9243_v1  ;;  %v9276_v36 = vsel %vm578_vm0, %v3705_v47, %v3706_v52  ;;  %v9282_v50 = vsel %vm578_vm0, %v3706_v52, 0.0  ;;  %v3434_v47 = vrot.slane %v9284_v27, 5  ;;  %v3255_v52 = vadd.f32 %v3254_v39, %v9034_v54 }
 0x629   : > { %3596 = vst [vmem:[#allocation1 + $0x23] ss:$4 sm:$0xff] %v3489_v15  ;;  %v3879_v48 = vrot.slane %v9282_v50, 1  ;;  %v3491_v45 = vperm.slane %v3430_v24, 0  ;;  %v3436_v54 = vrot.slane %v9284_v27, 7  ;;  %v4838_v24 = vld [vmem:[%s11017_s11 + $0xc8] sm:$0xff] }
 0x62a   : > { %6411 = vrot.lane.b32.xlu2 %v6410_v4, %s6919_s12  ;;  %6401 = vrot.lane.b32.xlu0 %v6400_v16, %s6921_s16  ;;  %11070 = vst [vmem:[#allocation11_spill] sm:$0xff] %v9276_v36  ;;  %v6425_v4 = vpack.i.bf16 %v9234_v62, %v9258_v2  ;;  %v4839_v16 = vld [vmem:[%s11017_s11 + $0xd0] sm:$0xff]  ;;  %v4051_v39 = vrot.slane %v9276_v36, 2 }
 0x62b   : > { %11071 = vst [vmem:[#allocation12_spill] sm:$0xff] %v9279_v29  ;;  %6421 = vrot.lane.b32.xlu1 %v6420_v55, %s6919_s12  ;;  %v3295_v55 = vpop.f32.mrf.mxu1 }
 0x62c   : > { %v9270_v37 = vld.sshfl [vmem:[#allocation1] sm:$0xff pattern:$0x73625140] }
 0x62d   : > { %3599 = vst [vmem:[#allocation1] ss:$4 sm:$0xff] %v3482_v33  ;;  %v4841_v33 = vld [vmem:[%s11017_s11 + $0xe0] sm:$0xff] }
 0x62e   : > { %3600 = vst [vmem:[#allocation1 + $0x1] ss:$4 sm:$0xff] %v3483_v43  ;;  %5033 = vmatpush.msra.mxu1 %v4841_v33  ;;  %v3876_v43 = vrot.slane %v9279_v29, 1  ;;  %v3435_v33 = vrot.slane %v9284_v27, 6 }
 0x62f   : > { %3601 = vst [vmem:[#allocation1 + $0x2] ss:$4 sm:$0xff] %v3484_v21  ;;  %v3877_v21 = vrot.slane %v9276_v36, 1 }
 0x630   : > { %v9293_v46 = vld.sshfl [vmem:[#allocation1 + $0x20] sm:$0xff pattern:$0x73625140]  ;;  %6100 = vmatmul.msk.f32.gmra.mxu0 %vm1565_vm11, %v9288_v6  ;;  %3602 = vst [vmem:[#allocation1 + $0x3] ss:$4 sm:$0xff] %v9224_v28  ;;  %v6415_v28 = vpack.i.bf16 %v9231_v59, %v9234_v62  ;;  %5034 = vmatpush.msra.mxu1 %v4840_v30  ;;  %v4050_v30 = vrot.slane %v9279_v29, 2 }
 0x631   : > { %3603 = vst [vmem:[#allocation1 + $0x20] ss:$4 sm:$0xff] %v3486_v49  ;;  %v4048_v49 = vrot.slane %v9237_v56, 2  ;;  %v9320_v23 = vsel %vm1355_vm9, %v3877_v21, %v3879_v48  ;;  %v3433_v56 = vrot.slane %v9284_v27, 4  ;;  %v3495_v48 = vperm.slane %v3434_v47, 0  ;;  %v3377_v47 = vpop.f32.mrf.mxu2 }
 0x632   : > { %3604 = vst [vmem:[#allocation1 + $0x21] ss:$4 sm:$0xff] %v3487_v14  ;;  %6431 = vrot.lane.b32.xlu2 %v6430_v42, %s6921_s16  ;;  %v3432_v14 = vrot.slane %v9284_v27, 3  ;;  %6416 = vrot.lane.b32.xlu0 %v6415_v28, %s6920_s14  ;;  %v3492_v42 = vperm.slane %v3431_v40, 0  ;;  %v3296_v28 = vadd.f32 %v3295_v55, %v3255_v52  ;;  %v3496_v40 = vperm.slane %v3435_v33, 0 }
 0x633   : > { %3605 = vst [vmem:[#allocation1 + $0x22] ss:$4 sm:$0xff] %v3488_v31  ;;  %v9317_v31 = vsel %vm1355_vm9, %v3876_v43, %v3877_v21  ;;  %6426 = vrot.lane.b32.xlu1 %v6425_v4, %s6921_s16  ;;  %v9328_v8 = vsel %vm1404_vm10, %v4046_v34, %v4048_v49  ;;  %5035 = vmatpush.msra.mxu1 %v4839_v16  ;;  %v3494_v21 = vperm.slane %v3433_v56, 0  ;;  %v3336_v56 = vpop.f32.mrf.mxu0  ;;  %v3708_v52 = vrot.slane %v9270_v37, 7 }
 0x634   : > { %3606 = vst [vmem:[#allocation1 + $0x23] ss:$4 sm:$0xff] %v3489_v15  ;;  %v3490_v15 = vperm.slane %v9284_v27, 0  ;;  %v6450_v43 = vpack.i.bf16 %v9320_v23, %v9317_v31  ;;  %v3493_v34 = vperm.slane %v3432_v14, 0  ;;  %v6435_v49 = vpack.i.bf16 %v9328_v8, %v9288_v6 }
 0x635   : > { %11072 = vst [vmem:[#allocation13_spill] sm:$0xff] %v9317_v31  ;;  %5036 = vmatpush.msra.mxu1 %v4838_v24  ;;  %v3497_v14 = vperm.slane %v3436_v54, 0  ;;  %v6440_v4 = vpack.i.bf16 %v9279_v29, %v9243_v1  ;;  %v3337_v16 = vadd.f32 %v3336_v56, %v3296_v28  ;;  %v9357_v55 = vsel %vm1404_vm10, %v4050_v30, %v4051_v39 }
 0x636   : > { %11073 = vst [vmem:[#allocation14_spill] sm:$0xff] %v9320_v23  ;;  %v3709_v33 = vrot.slane %v9293_v46, 7  ;;  %v6455_v1 = vpack.i.bf16 %v9279_v29, %v9317_v31  ;;  %v4053_v54 = vrot.slane %v9282_v50, 2  ;;  %v9370_v30 = vsel %vm578_vm0, 0.0, %v3708_v52  ;;  %v4836_v46 = vld [vmem:[%s11017_s11 + $0xb8] sm:$0xff] }
 0x637   : > { %v9333_v61 = vld.sshfl [vmem:[#allocation1] sm:$0xff pattern:$0x73625140]  ;;  %v3378_v37 = vadd.f32 %v3377_v47, %v3337_v16  ;;  %11074 = vst [vmem:[#allocation15_spill] sm:$0xff] %v9370_v30  ;;  %v6445_v28 = vpack.i.bf16 %v9276_v36, %v9288_v6  ;;  %v3881_v47 = vrot.slane %v9370_v30, 1 }
 0x638   : > { %6101 = vmatmul.msk.f32.gmra.mxu0 %vm1565_vm11, %v9328_v8  ;;  %3609 = vst [vmem:[#allocation1] ss:$4 sm:$0xff] %v3490_v15  ;;  %v9388_v56 = vsel %vm1404_vm10, %v4051_v39, %v4053_v54  ;;  %v3808_v39 = vsel %vm578_vm0, %v3709_v33, 0.0 }
 0x639   : > { %3610 = vst [vmem:[#allocation1 + $0x1] ss:$4 sm:$0xff] %v3491_v45  ;;  %v9382_v50 = vmax.f32 %v3378_v37, 0.0  ;;  %v4058_v20 = vrot.slane %v3808_v39, 2 }
 0x63a   : > { %6451 = vrot.lane.b32.xlu2 %v6450_v43, %s6919_s12  ;;  %3611 = vst [vmem:[#allocation1 + $0x2] ss:$4 sm:$0xff] %v3492_v42  ;;  %6436 = vrot.lane.b32.xlu0 %v6435_v49, %s6919_s12  ;;  %v4837_v43 = vld [vmem:[%s11017_s11 + $0xc0] sm:$0xff]  ;;  %v9380_v49 = vsel %vm578_vm0, %v3708_v52, %v3709_v33 }
 0x63b   : > { %3612 = vst [vmem:[#allocation1 + $0x3] ss:$4 sm:$0xff] %v3493_v34  ;;  %v9349_v27 = vld.sshfl [vmem:[#allocation1 + $0x20] sm:$0xff pattern:$0x73625140]  ;;  %6441 = vrot.lane.b32.xlu1 %v6440_v4, %s6920_s14  ;;  %5037 = vmatpush.msra.mxu1 %v4837_v43  ;;  %v6460_v4 = vpack.i.bf16 %v9276_v36, %v9320_v23  ;;  %v3882_v6 = vrot.slane %v9380_v49, 1 }
 0x63c   : > { %3613 = vst [vmem:[#allocation1 + $0x20] ss:$4 sm:$0xff] %v3494_v21  ;;  %v3438_v16 = vrot.slane %v9382_v50, 2  ;;  %v4828_v43 = vld [vmem:[%s11017_s11 + $0x78] sm:$0xff]  ;;  %v3439_v33 = vrot.slane %v9382_v50, 3  ;;  %v4056_v37 = vrot.slane %v9380_v49, 2 }
 0x63d   : > { %3614 = vst [vmem:[#allocation1 + $0x21] ss:$4 sm:$0xff] %v3495_v48  ;;  %5038 = vmatpush.msra.mxu1 %v4836_v46  ;;  %6132 = vmatpush.msrb.mxu3 %v4828_v43  ;;  %v3441_v54 = vrot.slane %v9382_v50, 5  ;;  %v11026_v46 = vperm.slane %v9382_v50, 0 }
 0x63e   : > { %3615 = vst [vmem:[#allocation1 + $0x22] ss:$4 sm:$0xff] %v3496_v40  ;;  %4917 = vmatpush.msrb.mxu2 %v4828_v43  ;;  %v9432_v7 = vperm.slane %v3438_v16, 0  ;;  %v4827_v43 = vld [vmem:[%s11017_s11 + $0x70] sm:$0xff] }
 0x63f   : > { %3616 = vst [vmem:[#allocation1 + $0x23] ss:$4 sm:$0xff] %v3497_v14  ;;  %6133 = vmatpush.msrb.mxu3 %v4827_v43 }
 0x640   : > { %6102 = vmatmul.msk.f32.gmra.mxu0 %vm1565_vm11, %v9357_v55  ;;  %11075 = vst [vmem:[#allocation16_spill] sm:$0xff] %v9380_v49  ;;  %4918 = vmatpush.msrb.mxu2 %v4827_v43 }
 0x642   : > { %6456 = vrot.lane.b32.xlu2 %v6455_v1, %s6921_s16  ;;  %v9375_v24 = vld.sshfl [vmem:[#allocation1] sm:$0xff pattern:$0x73625140]  ;;  %6446 = vrot.lane.b32.xlu0 %v6445_v28, %s6920_s14  ;;  %v4055_v1 = vrot.slane %v9370_v30, 2  ;;  %v3884_v28 = vrot.slane %v3808_v39, 1 }
 0x643   : > { %3619 = vst [vmem:[#allocation1] ss:$4 sm:$0xff] %v3490_v15  ;;  %6461 = vrot.lane.b32.xlu1 %v6460_v4, %s6921_s16  ;;  %v4835_v15 = vld [vmem:[%s11017_s11 + $0xb0] sm:$0xff]  ;;  %v4833_v39 = vld [vmem:[%s11017_s11 + $0xa0] sm:$0xff] }
 0x644   : > { %3620 = vst [vmem:[#allocation1 + $0x1] ss:$4 sm:$0xff] %v3491_v45  ;;  %v6465_v45 = vpack.i.bf16 %v9388_v56, %v9357_v55  ;;  %5039 = vmatpush.msra.mxu1 %v4835_v15 }
 0x645   : > { %3621 = vst [vmem:[#allocation1 + $0x2] ss:$4 sm:$0xff] %v3492_v42  ;;  %v3437_v42 = vrot.slane %v9382_v50, 1 }
 0x646   : > { %v9392_v52 = vld.sshfl [vmem:[#allocation1 + $0x20] sm:$0xff pattern:$0x73625140]  ;;  %3622 = vst [vmem:[#allocation1 + $0x3] ss:$4 sm:$0xff] %v3493_v34  ;;  %v3257_v34 = vpop.f32.mrf.mxu3 }
 0x647   : > { %3623 = vst [vmem:[#allocation1 + $0x20] ss:$4 sm:$0xff] %v3494_v21  ;;  %v9407_v21 = vsel %vm1355_vm9, %v3881_v47, %v3882_v6  ;;  %v3258_v4 = vadd.f32 %v3257_v34, %v9037_v41  ;;  %v9424_v47 = vperm.slane %v3437_v42, 0  ;;  %v3443_v41 = vrot.slane %v9382_v50, 7 }
 0x648   : > { %6103 = vmatmul.msk.f32.gmra.mxu0 %vm1565_vm11, %v9388_v56  ;;  %3624 = vst [vmem:[#allocation1 + $0x21] ss:$4 sm:$0xff] %v3495_v48  ;;  %v4834_v48 = vld [vmem:[%s11017_s11 + $0xa8] sm:$0xff]  ;;  %v9437_v42 = vperm.slane %v3439_v33, 0  ;;  %v9441_v34 = vsel %vm1404_vm10, %v4055_v1, %v4056_v37  ;;  %v6475_v33 = vpack.i.bf16 %v9380_v49, %v9357_v55  ;;  %v9459_v1 = vsel %vm1355_vm9, %v3882_v6, %v3884_v28 }
 0x649   : > { %3625 = vst [vmem:[#allocation1 + $0x22] ss:$4 sm:$0xff] %v3496_v40  ;;  %v6470_v40 = vpack.i.bf16 %v9370_v30, %v9328_v8  ;;  %5040 = vmatpush.msra.mxu1 %v4834_v48  ;;  %v6485_v8 = vpack.i.bf16 %v9370_v30, %v9407_v21  ;;  %v3442_v48 = vrot.slane %v9382_v50, 6  ;;  %v9472_v6 = vsel %vm1404_vm10, %v4056_v37, %v4058_v20  ;;  %v3339_v20 = vpop.f32.mrf.mxu0 }
 0x64a   : > { %6466 = vrot.lane.b32.xlu2 %v6465_v45, %s6919_s12  ;;  %11076 = vst [vmem:[#allocation17_spill] sm:$0xff] %v9407_v21  ;;  %v3298_v45 = vpop.f32.mrf.mxu1  ;;  %v3712_v28 = vrot.slane %v9349_v27, 7  ;;  %v3380_v27 = vpop.f32.mrf.mxu2  ;;  %v6495_v43 = vpack.i.bf16 %v9472_v6, %v9441_v34 }
 0x64b   : > { %3626 = vst [vmem:[#allocation1 + $0x23] ss:$4 sm:$0xff] %v3497_v14  ;;  %v3440_v14 = vrot.slane %v9382_v50, 4  ;;  %6471 = vrot.lane.b32.xlu0 %v6470_v40, %s6920_s14  ;;  %6486 = vrot.lane.b32.xlu1 %v6485_v8, %s6921_s16  ;;  %v9452_v40 = vperm.slane %v3441_v54, 0  ;;  %v3299_v8 = vadd.f32 %v3298_v45, %v3258_v4  ;;  %v9466_v54 = vpop.permute.xlu2 %6306  ;;  %v9468_v55 = vperm.slane %v3442_v48, 0  ;;  %v4832_v4 = vld [vmem:[%s11017_s11 + $0x98] sm:$0xff] }
 0x64c   : > { %11077 = vst [vmem:[#allocation18_spill] sm:$0xff] %v9459_v1  ;;  %5041 = vmatpush.msra.mxu1 %v4833_v39  ;;  %v9482_v45 = vperm.slane %v3443_v41, 0  ;;  %v6480_v48 = vpack.i.bf16 %v9459_v1, %v9407_v21 }
 0x64d   : > { %v9429_v15 = vld.sshfl [vmem:[#allocation1] sm:$0xff pattern:$0x73625140]  ;;  %v9450_v16 = vperm.slane %v3440_v14, 0  ;;  %11078 = vst [vmem:[#allocation19_spill] sm:$0xff] %v9466_v54  ;;  %v3340_v37 = vadd.f32 %v3339_v20, %v3299_v8 }
 0x64e   : > { %3629 = vst [vmem:[#allocation1] ss:$4 sm:$0xff] %v11026_v46  ;;  %v3711_v46 = vrot.slane %v9333_v61, 7  ;;  %v4826_v61 = vld [vmem:[%s11017_s11 + $0x68] sm:$0xff]  ;;  %5042 = vmatpush.msra.mxu1 %v4832_v4  ;;  %v4825_v8 = vld [vmem:[%s11017_s11 + $0x60] sm:$0xff] }
 0x64f   : > { %3630 = vst [vmem:[#allocation1 + $0x1] ss:$4 sm:$0xff] %v9424_v47  ;;  %6134 = vmatpush.msrb.mxu3 %v4826_v61  ;;  %4919 = vmatpush.msrb.mxu2 %v4826_v61  ;;  %v3381_v4 = vadd.f32 %v3380_v27, %v3340_v37  ;;  %v4831_v61 = vld [vmem:[%s11017_s11 + $0x90] sm:$0xff]  ;;  %v11081_v27 = vperm.slane %v9382_v50, 0 }
 0x650   : > { %6104 = vmatmul.msk.f32.gmra.mxu0 %vm1565_vm11, %v9441_v34  ;;  %3631 = vst [vmem:[#allocation1 + $0x2] ss:$4 sm:$0xff] %v9432_v7  ;;  %v9492_v41 = vsel %vm578_vm0, 0.0, %v3711_v46  ;;  %v9496_v39 = vsel %vm578_vm0, %v3711_v46, %v3712_v28  ;;  %5043 = vmatpush.msra.mxu1 %v4831_v61  ;;  %v4830_v61 = vld [vmem:[%s11017_s11 + $0x88] sm:$0xff] }
 0x651   : > { %3632 = vst [vmem:[#allocation1 + $0x3] ss:$4 sm:$0xff] %v9437_v42  ;;  %6135 = vmatpush.msrb.mxu3 %v4825_v8  ;;  %4920 = vmatpush.msrb.mxu2 %v4825_v8  ;;  %v9530_v50 = vmax.f32 %v3381_v4, 0.0  ;;  %v6490_v8 = vpack.i.bf16 %v9380_v49, %v9459_v1 }
 0x652   : > { %v9463_v14 = vld.sshfl [vmem:[#allocation1 + $0x20] sm:$0xff pattern:$0x73625140]  ;;  %6476 = vrot.lane.b32.xlu2 %v6475_v33, %s6920_s14  ;;  %11079 = vst [vmem:[#allocation20_spill] sm:$0xff] %v9492_v41  ;;  %v9499_v33 = vsel %vm578_vm0, %v3712_v28, 0.0  ;;  %v3887_v28 = vrot.slane %v9496_v39, 1  ;;  %5044 = vmatpush.msra.mxu1 %v4830_v61 }
 0x653   : > { %3633 = vst [vmem:[#allocation1 + $0x20] ss:$4 sm:$0xff] %v9450_v16  ;;  %6481 = vrot.lane.b32.xlu0 %v6480_v48, %s6919_s12  ;;  %6496 = vrot.lane.b32.xlu1 %v6495_v43, %s6919_s12  ;;  %v6500_v48 = vpack.i.bf16 %v9492_v41, %v9388_v56  ;;  %v3889_v20 = vrot.slane %v9499_v33, 1  ;;  %v3714_v56 = vrot.slane %v9375_v24, 7  ;;  %v3715_v43 = vrot.slane %v9392_v52, 7 }
 0x654   : > { %3634 = vst [vmem:[#allocation1 + $0x21] ss:$4 sm:$0xff] %v9452_v40  ;;  %v11028_v24 = vrot.slane %v9496_v39, 2  ;;  %6136 = vmatpush.msrb.mxu3 %v4824_v63  ;;  %v3886_v52 = vrot.slane %v9492_v41, 1  ;;  %4921 = vmatpush.msrb.mxu2 %v4824_v63  ;;  %v3444_v63 = vrot.slane %v9530_v50, 1  ;;  %v11086_v38 = vperm.slane %v9530_v50, 0 }
 0x655   : > { %3635 = vst [vmem:[#allocation1 + $0x22] ss:$4 sm:$0xff] %v9468_v55  ;;  %v9545_v4 = vsel %vm1355_vm9, %v3887_v28, %v3889_v20  ;;  %v9549_v61 = vsel %vm578_vm0, %v3714_v56, %v3715_v43  ;;  %v4829_v20 = vld [vmem:[%s11017_s11 + $0x80] sm:$0xff]  ;;  %v3449_v57 = vrot.slane %v9530_v50, 6 }
 0x656   : > { %3636 = vst [vmem:[#allocation1 + $0x23] ss:$4 sm:$0xff] %v9482_v45  ;;  %5045 = vmatpush.msra.mxu1 %v4829_v20  ;;  %v4063_v20 = vrot.slane %v9499_v33, 2 }
 0x657   : > { %11080 = vst [vmem:[#allocation21_spill] sm:$0xff] %v9496_v39 }
 0x658   : > { %6105 = vmatmul.msk.f32.gmra.mxu0 %vm1565_vm11, %v9472_v6  ;;  %v9512_v46 = vld.sshfl [vmem:[#allocation1] sm:$0xff pattern:$0x73625140]  ;;  %11082 = vst [vmem:[#allocation22_spill] sm:$0xff] %v9545_v4 }
 0x659   : > { %3639 = vst [vmem:[#allocation1] ss:$4 sm:$0xff] %v11081_v27  ;;  %v9519_v37 = vpop.permute.xlu2 %6336 }
 0x65a   : > { %6501 = vrot.lane.b32.xlu2 %v6500_v48, %s6920_s14  ;;  %3640 = vst [vmem:[#allocation1 + $0x1] ss:$4 sm:$0xff] %v9424_v47  ;;  %v4060_v48 = vrot.slane %v9492_v41, 2  ;;  %v6505_v47 = vpack.i.bf16 %v9496_v39, %v9441_v34 }
 0x65b   : > { %3641 = vst [vmem:[#allocation1 + $0x2] ss:$4 sm:$0xff] %v9432_v7  ;;  %6491 = vrot.lane.b32.xlu0 %v6490_v8, %s6921_s16  ;;  %v9552_v7 = vsel %vm578_vm0, 0.0, %v3714_v56  ;;  %v6520_v56 = vpack.i.bf16 %v9496_v39, %v9545_v4  ;;  %v3260_v8 = vpop.f32.mrf.mxu3 }
 0x65c   : > { %3642 = vst [vmem:[#allocation1 + $0x3] ss:$4 sm:$0xff] %v9437_v42  ;;  %v9555_v42 = vsel %vm578_vm0, %v3715_v43, 0.0  ;;  %6506 = vrot.lane.b32.xlu1 %v6505_v47, %s6920_s14  ;;  %v9563_v34 = vsel %vm1404_vm10, %v4060_v48, %v11028_v24  ;;  %v9578_v43 = vsel %vm1355_vm9, %v3886_v52, %v3887_v28  ;;  %v3891_v48 = vrot.slane %v9552_v7, 1  ;;  %v4822_v28 = vld [vmem:[%s11017_s11 + $0x48] sm:$0xff] }
 0x65d   : > { %v9539_v27 = vld.sshfl [vmem:[#allocation1 + $0x20] sm:$0xff pattern:$0x73625140]  ;;  %11083 = vst [vmem:[#allocation23_spill] sm:$0xff] %v9549_v61  ;;  %v3892_v47 = vrot.slane %v9549_v61, 1  ;;  %v3446_v24 = vrot.slane %v9530_v50, 3  ;;  %v6515_v5 = vpack.i.bf16 %v9492_v41, %v9578_v43  ;;  %v3261_v54 = vadd.f32 %v3260_v8, %v9041_v0 }
 0x65e   : > { %3643 = vst [vmem:[#allocation1 + $0x20] ss:$4 sm:$0xff] %v9450_v16  ;;  %v4823_v16 = vld [vmem:[%s11017_s11 + $0x50] sm:$0xff]  ;;  %v9591_v52 = vperm.slane %v3444_v63, 0  ;;  %v3301_v63 = vpop.f32.mrf.mxu1  ;;  %v6510_v33 = vpack.i.bf16 %v9545_v4, %v9578_v43 }
 0x65f   : > { %11084 = vst [vmem:[#allocation24_spill] sm:$0xff] %v9552_v7  ;;  %6137 = vmatpush.msrb.mxu3 %v4823_v16  ;;  %4922 = vmatpush.msrb.mxu2 %v4823_v16  ;;  %v9609_v41 = vsel %vm1355_vm9, %v3891_v48, %v3892_v47  ;;  %v4821_v48 = vld [vmem:[%s11017_s11 + $0x40] sm:$0xff] }
 0x660   : > { %3644 = vst [vmem:[#allocation1 + $0x21] ss:$4 sm:$0xff] %v9452_v40  ;;  %v3445_v40 = vrot.slane %v9530_v50, 2  ;;  %6106 = vmatmul.msk.f32.gmra.mxu0 %vm1565_vm11, %v9563_v34 }
 0x661   : > { %3645 = vst [vmem:[#allocation1 + $0x22] ss:$4 sm:$0xff] %v9468_v55  ;;  %v3894_v55 = vrot.slane %v9555_v42, 1  ;;  %6138 = vmatpush.msrb.mxu3 %v4822_v28  ;;  %4923 = vmatpush.msrb.mxu2 %v4822_v28 }
 0x662   : > { %11085 = vst [vmem:[#allocation25_spill] sm:$0xff] %v9578_v43  ;;  %6521 = vrot.lane.b32.xlu2 %v6520_v56, %s6921_s16  ;;  %v3448_v56 = vrot.slane %v9530_v50, 5  ;;  %v3508_v11 = vperm.slane %v3445_v40, 0  ;;  %v3450_v40 = vrot.slane %v9530_v50, 7 }
 0x663   : > { %3646 = vst [vmem:[#allocation1 + $0x23] ss:$4 sm:$0xff] %v9482_v45  ;;  %v3447_v45 = vrot.slane %v9530_v50, 4  ;;  %v9596_v16 = vld.sshfl [vmem:[#allocation1] sm:$0xff pattern:$0x73625140]  ;;  %6516 = vrot.lane.b32.xlu0 %v6515_v5, %s6921_s16  ;;  %v9612_v0 = vsel %vm1355_vm9, %v3892_v47, %v3894_v55  ;;  %v3302_v55 = vadd.f32 %v3301_v63, %v3261_v54  ;;  %6139 = vmatpush.msrb.mxu3 %v4821_v48  ;;  %v3342_v54 = vpop.f32.mrf.mxu0 }
 0x664   : > { %v9600_v10 = vpop.permute.xlu2 %6361  ;;  %3649 = vst [vmem:[#allocation1] ss:$4 sm:$0xff] %v11086_v38  ;;  %v3509_v38 = vperm.slane %v3446_v24, 0  ;;  %6511 = vrot.lane.b32.xlu1 %v6510_v33, %s6919_s12  ;;  %v11089_v5 = vrot.slane %v9496_v39, 2  ;;  %v3511_v4 = vperm.slane %v3448_v56, 0  ;;  %v6540_v24 = vpack.i.bf16 %v9612_v0, %v9609_v41  ;;  %4924 = vmatpush.msrb.mxu2 %v4821_v48  ;;  %v4820_v33 = vld [vmem:[%s11017_s11 + $0x38] sm:$0xff]  ;;  %v3383_v56 = vpop.f32.mrf.mxu2 }
 0x665   : > { %11087 = vst [vmem:[#allocation26_spill] sm:$0xff] %v9609_v41  ;;  %v3510_v8 = vperm.slane %v3447_v45, 0  ;;  %v3512_v45 = vperm.slane %v3449_v57, 0  ;;  %v4066_v39 = vrot.slane %v9549_v61, 2  ;;  %6140 = vmatpush.msrb.mxu3 %v4820_v33  ;;  %v3343_v57 = vadd.f32 %v3342_v54, %v3302_v55  ;;  %v4819_v54 = vld [vmem:[%s11017_s11 + $0x30] sm:$0xff] }
 0x666   : > { %11088 = vst [vmem:[#allocation27_spill] sm:$0xff] %v9612_v0  ;;  %v9620_v28 = vsel %vm1404_vm10, %v11089_v5, %v4063_v20  ;;  %v3513_v20 = vperm.slane %v3450_v40, 0  ;;  %v4065_v5 = vrot.slane %v9552_v7, 2  ;;  %4925 = vmatpush.msrb.mxu2 %v4820_v33  ;;  %v6530_v48 = vpack.i.bf16 %v9552_v7, %v9472_v6 }
 0x667   : > { %3650 = vst [vmem:[#allocation1 + $0x1] ss:$4 sm:$0xff] %v9591_v52  ;;  %v6525_v63 = vpack.i.bf16 %v9620_v28, %v9563_v34  ;;  %v3717_v55 = vrot.slane %v9429_v15, 7  ;;  %v3718_v33 = vrot.slane %v9463_v14, 7  ;;  %v6545_v6 = vpack.i.bf16 %v9552_v7, %v9609_v41  ;;  %6141 = vmatpush.msrb.mxu3 %v4819_v54 }
 0x668   : > { %3651 = vst [vmem:[#allocation1 + $0x2] ss:$4 sm:$0xff] %v3508_v11  ;;  %6107 = vmatmul.msk.f32.gmra.mxu0 %vm1565_vm11, %v9620_v28  ;;  %v9650_v49 = vsel %vm1404_vm10, %v4065_v5, %v4066_v39  ;;  %v4068_v15 = vrot.slane %v9555_v42, 2  ;;  %v4818_v5 = vld [vmem:[%s11017_s11 + $0x28] sm:$0xff]  ;;  %4926 = vmatpush.msrb.mxu2 %v4819_v54 }
 0x669   : > { %3652 = vst [vmem:[#allocation1 + $0x3] ss:$4 sm:$0xff] %v3509_v38  ;;  %v9645_v43 = vpop.permute.xlu1 %6331  ;;  %v9647_v1 = vpop.permute.xlu0 %6321  ;;  %v9679_v42 = vsel %vm578_vm0, %v3717_v55, %v3718_v33  ;;  %6142 = vmatpush.msrb.mxu3 %v4818_v5 }
 0x66a   : > { %v9625_v47 = vld.sshfl [vmem:[#allocation1 + $0x20] sm:$0xff pattern:$0x73625140]  ;;  %6541 = vrot.lane.b32.xlu2 %v6540_v24, %s6919_s12  ;;  %v3384_v24 = vadd.f32 %v3383_v56, %v3343_v57  ;;  %v11090_v56 = vperm.slane %v9530_v50, 0  ;;  %v6535_v57 = vpack.i.bf16 %v9549_v61, %v9563_v34  ;;  %v9676_v50 = vsel %vm578_vm0, 0.0, %v3717_v55  ;;  %4927 = vmatpush.msrb.mxu2 %v4818_v5  ;;  %v4816_v5 = vld [vmem:[%s11017_s11 + $0x18] sm:$0xff] }
 0x66b   : > { %3653 = vst [vmem:[#allocation1 + $0x20] ss:$4 sm:$0xff] %v3510_v8  ;;  %6526 = vrot.lane.b32.xlu0 %v6525_v63, %s6919_s12  ;;  %v9689_v34 = vsel %vm1404_vm10, %v4066_v39, %v4068_v15  ;;  %v3896_v55 = vrot.slane %v9676_v50, 1  ;;  %v3897_v54 = vrot.slane %v9679_v42, 1  ;;  %v6334_v31 = vunpack.i.h.bf16 %v9645_v43 }
 0x66c   : > { %3654 = vst [vmem:[#allocation1 + $0x21] ss:$4 sm:$0xff] %v3511_v4  ;;  %v9639_v40 = vpop.permute.xlu2 %6366  ;;  %6531 = vrot.lane.b32.xlu1 %v6530_v48, %s6920_s14  ;;  %v9667_v14 = vmax.f32 %v3384_v24, 0.0 }
 0x66d   : > { %3655 = vst [vmem:[#allocation1 + $0x22] ss:$4 sm:$0xff] %v3512_v45  ;;  %v9719_v7 = vsel %vm1355_vm9, %v3896_v55, %v3897_v54 }
 0x66e   : > { %3656 = vst [vmem:[#allocation1 + $0x23] ss:$4 sm:$0xff] %v3513_v20  ;;  %v3451_v24 = vrot.slane %v9667_v14, 1  ;;  %v3453_v39 = vrot.slane %v9667_v14, 3  ;;  %v3456_v15 = vrot.slane %v9667_v14, 6  ;;  %v6575_v29 = vpack.i.bf16 %v9676_v50, %v9719_v7 }
 0x66f   : > { %11091 = vst [vmem:[#allocation28_spill] sm:$0xff] %v9676_v50 }
 0x670   : > { %v9657_v63 = vld.sshfl [vmem:[#allocation1] sm:$0xff pattern:$0x73625140]  ;;  %6108 = vmatmul.msk.f32.gmra.mxu0 %vm1565_vm11, %v9650_v49  ;;  %11093 = vst [vmem:[#allocation30_spill] sm:$0xff] %v9719_v7  ;;  %v9734_v55 = vperm.slane %v3453_v39, 0 }
 0x671   : > { %3659 = vst [vmem:[#allocation1] ss:$4 sm:$0xff] %v11090_v56  ;;  %v6555_v56 = vpack.i.bf16 %v9689_v34, %v9650_v49 }
 0x672   : > { %3660 = vst [vmem:[#allocation1 + $0x1] ss:$4 sm:$0xff] %v9591_v52  ;;  %6546 = vrot.lane.b32.xlu2 %v6545_v6, %s6921_s16  ;;  %v4817_v6 = vld [vmem:[%s11017_s11 + $0x20] sm:$0xff] }
 0x673   : > { %3661 = vst [vmem:[#allocation1 + $0x2] ss:$4 sm:$0xff] %v3508_v11  ;;  %6536 = vrot.lane.b32.xlu0 %v6535_v57, %s6920_s14  ;;  %v6550_v11 = vpack.i.bf16 %v9549_v61, %v9612_v0  ;;  %6143 = vmatpush.msrb.mxu3 %v4817_v6  ;;  %v9714_v0 = vperm.slane %v3451_v24, 0  ;;  %v6333_v61 = vunpack.i.l.bf16 %v9645_v43  ;;  %v4070_v24 = vrot.slane %v9676_v50, 2 }
 0x674   : > { %3662 = vst [vmem:[#allocation1 + $0x3] ss:$4 sm:$0xff] %v3509_v38  ;;  %v9683_v48 = vpop.permute.xlu2 %6371  ;;  %v3452_v38 = vrot.slane %v9667_v14, 2  ;;  %v9710_v57 = vpop.permute.xlu1 %6341  ;;  %4928 = vmatpush.msrb.mxu2 %v4817_v6  ;;  %v4071_v6 = vrot.slane %v9679_v42, 2 }
 0x675   : > { %v9681_v52 = vld.sshfl [vmem:[#allocation1 + $0x20] sm:$0xff pattern:$0x73625140]  ;;  %6551 = vrot.lane.b32.xlu1 %v6550_v11, %s6921_s16  ;;  %v3457_v11 = vrot.slane %v9667_v14, 7  ;;  %6144 = vmatpush.msrb.mxu3 %v4816_v5  ;;  %v4717_v39 = vsel %vm1565_vm11, %v9084_v32, %v6333_v61  ;;  %v4815_v32 = vld [vmem:[%s11017_s11 + $0x10] sm:$0xff] }
 0x676   : > { %3663 = vst [vmem:[#allocation1 + $0x20] ss:$4 sm:$0xff] %v3510_v8  ;;  %v9696_v8 = vpop.permute.xlu0 %6326  ;;  %v9726_v30 = vperm.slane %v3452_v38, 0  ;;  %4929 = vmatpush.msrb.mxu2 %v4816_v5 }
 0x677   : > { %3664 = vst [vmem:[#allocation1 + $0x21] ss:$4 sm:$0xff] %v3511_v4  ;;  %v3454_v4 = vrot.slane %v9667_v14, 4  ;;  %6145 = vmatpush.msrb.mxu3 %v4815_v32 }
 0x678   : > { %3665 = vst [vmem:[#allocation1 + $0x22] ss:$4 sm:$0xff] %v3512_v45  ;;  %6109 = vmatmul.msk.f32.gmra.mxu0 %vm1565_vm11, %v9689_v34  ;;  %v3455_v45 = vrot.slane %v9667_v14, 5  ;;  %4930 = vmatpush.msrb.mxu2 %v4815_v32 }
 0x679   : > { %11092 = vst [vmem:[#allocation29_spill] sm:$0xff] %v9696_v8  ;;  %v9739_v38 = vperm.slane %v3454_v4, 0  ;;  %v9754_v4 = vperm.slane %v3457_v11, 0 }
 0x67a   : > { %3666 = vst [vmem:[#allocation1 + $0x23] ss:$4 sm:$0xff] %v3513_v20  ;;  %v3811_v20 = vsel %vm578_vm0, %v3718_v33, 0.0  ;;  %6556 = vrot.lane.b32.xlu2 %v6555_v56, %s6919_s12  ;;  %v6560_v33 = vpack.i.bf16 %v9676_v50, %v9620_v28  ;;  %v11094_v56 = vperm.slane %v9667_v14, 0  ;;  %v9741_v36 = vperm.slane %v3455_v45, 0 }
 0x67b   : > { %v9724_v41 = vld.sshfl [vmem:[#allocation1] sm:$0xff pattern:$0x73625140]  ;;  %v3899_v23 = vrot.slane %v3811_v20, 1  ;;  %v9743_v28 = vperm.slane %v3456_v15, 0  ;;  %v4073_v5 = vrot.slane %v3811_v20, 2  ;;  %v6338_v45 = vunpack.i.l.bf16 %v9519_v37 }
 0x67c   : > { %3669 = vst [vmem:[#allocation1] ss:$4 sm:$0xff] %v11094_v56  ;;  %v9736_v21 = vpop.permute.xlu2 %6386  ;;  %6561 = vrot.lane.b32.xlu0 %v6560_v33, %s6920_s14  ;;  %v6565_v33 = vpack.i.bf16 %v9679_v42, %v9650_v49  ;;  %v9763_v50 = vsel %vm1404_vm10, %v4070_v24, %v4071_v6  ;;  %v3720_v20 = vrot.slane %v9512_v46, 7  ;;  %v3721_v49 = vrot.slane %v9539_v27, 7  ;;  %v9778_v11 = vpop.permute.xlu1 %6346  ;;  %v4814_v27 = vld [vmem:[%s11017_s11 + $0x8] sm:$0xff] }
 0x67d   : > { %3670 = vst [vmem:[#allocation1 + $0x1] ss:$4 sm:$0xff] %v9714_v0  ;;  %6576 = vrot.lane.b32.xlu1 %v6575_v29, %s6921_s16  ;;  %v9773_v29 = vsel %vm1355_vm9, %v3897_v54, %v3899_v23  ;;  %v4749_v24 = vsel %vm1574_vm12, %v4717_v39, %v6338_v45  ;;  %v9786_v46 = vsel %vm1404_vm10, %v4071_v6, %v4073_v5  ;;  %v4813_v54 = vld [vmem:[%s11017_s11] sm:$0xff] }
 0x67e   : > { %3671 = vst [vmem:[#allocation1 + $0x2] ss:$4 sm:$0xff] %v9726_v30  ;;  %v9758_v15 = vpop.permute.xlu0 %6351  ;;  %v6570_v43 = vpack.i.bf16 %v9773_v29, %v9719_v7  ;;  %6146 = vmatpush.msrb.mxu3 %v4814_v27  ;;  %v9800_v6 = vsel %vm578_vm0, 0.0, %v3720_v20  ;;  %v9803_v5 = vsel %vm578_vm0, %v3720_v20, %v3721_v49  ;;  %4931 = vmatpush.msrb.mxu2 %v4814_v27  ;;  %v11095_v27 = vperm.slane %v9667_v14, 0 }
 0x67f   : > { %3672 = vst [vmem:[#allocation1 + $0x3] ss:$4 sm:$0xff] %v9734_v55  ;;  %v6353_v61 = vunpack.i.l.bf16 %v9758_v15  ;;  %v6585_v45 = vpack.i.bf16 %v9786_v46, %v9763_v50  ;;  %v4718_v20 = vsel %vm1565_vm11, %v9088_v35, %v6334_v31  ;;  %v3902_v7 = vrot.slane %v9803_v5, 1 }
 0x680   : > { %6110 = vmatmul.msk.f32.gmra.mxu0 %vm1565_vm11, %v9763_v50  ;;  %6147 = vmatpush.msrb.mxu3 %v4813_v54  ;;  %v3723_v14 = vrot.slane %v9596_v16, 7 }
 0x681   : > { %v9752_v56 = vld.sshfl [vmem:[#allocation1 + $0x20] sm:$0xff pattern:$0x73625140]  ;;  %v4781_v23 = vsel %vm1583_vm13, %v4749_v24, %v6353_v61  ;;  %v6339_v61 = vunpack.i.h.bf16 %v9519_v37  ;;  %v6323_v24 = vunpack.i.l.bf16 %v9647_v1  ;;  %4932 = vmatpush.msrb.mxu2 %v4813_v54  ;;  %v6590_v37 = vpack.i.bf16 %v9800_v6, %v9689_v34 }
 0x682   : > { %3673 = vst [vmem:[#allocation1 + $0x20] ss:$4 sm:$0xff] %v9739_v38  ;;  %6566 = vrot.lane.b32.xlu2 %v6565_v33, %s6920_s14  ;;  %5046 = vmatmul.f32.vlgmr.msra.gmra.mxu1 %v4781_v23  ;;  %v9809_v33 = vsel %vm578_vm0, %v3721_v49, 0.0  ;;  %v6354_v23 = vunpack.i.h.bf16 %v9758_v15  ;;  %v4075_v15 = vrot.slane %v9800_v6, 2 }
 0x683   : > { %3674 = vst [vmem:[#allocation1 + $0x21] ss:$4 sm:$0xff] %v9741_v36  ;;  %v3904_v35 = vrot.slane %v9809_v33, 1 }
 0x684   : > { %3675 = vst [vmem:[#allocation1 + $0x22] ss:$4 sm:$0xff] %v9743_v28  ;;  %v9797_v39 = vpop.permute.xlu2 %6411  ;;  %6571 = vrot.lane.b32.xlu0 %v6570_v43, %s6919_s12  ;;  %v6329_v43 = vunpack.i.h.bf16 %v9696_v8  ;;  %v6357_v34 = vpop.permute.xlu1 %6356 }
 0x685   : > { %3676 = vst [vmem:[#allocation1 + $0x23] ss:$4 sm:$0xff] %v9754_v4  ;;  %6586 = vrot.lane.b32.xlu1 %v6585_v45, %s6919_s12  ;;  %v4750_v45 = vsel %vm1574_vm12, %v4718_v20, %v6339_v61  ;;  %v6358_v8 = vunpack.i.l.bf16 %v6357_v34 }
 0x686   : > { %v9811_v32 = vld.sshfl [vmem:[#allocation1] sm:$0xff pattern:$0x73625140]  ;;  %v9822_v49 = vpop.permute.xlu0 %6376  ;;  %v4782_v31 = vsel %vm1583_vm13, %v4750_v45, %v6354_v23  ;;  %v6595_v23 = vpack.i.bf16 %v9803_v5, %v9763_v50  ;;  %v11097_v50 = vrot.slane %v9803_v5, 2  ;;  %v6349_v45 = vunpack.i.h.bf16 %v9778_v11 }
 0x687   : > { %3679 = vst [vmem:[#allocation1] ss:$4 sm:$0xff] %v11095_v27  ;;  %v11056_v54 = vrot.slane %v9811_v32, 7  ;;  %v3724_v27 = vrot.slane %v9625_v47, 7  ;;  %v6580_v47 = vpack.i.bf16 %v9679_v42, %v9773_v29 }
 0x688   : > { %3680 = vst [vmem:[#allocation1 + $0x1] ss:$4 sm:$0xff] %v9714_v0  ;;  %6111 = vmatmul.msk.f32.gmra.mxu0 %vm1565_vm11, %v9786_v46 }
 0x689   : > { %3681 = vst [vmem:[#allocation1 + $0x2] ss:$4 sm:$0xff] %v9726_v30  ;;  %v4623_v30 = vsel %vm1565_vm11, %v9056_v19, %v6323_v24 }
 0x68a   : > { %3682 = vst [vmem:[#allocation1 + $0x3] ss:$4 sm:$0xff] %v9734_v55  ;;  %6591 = vrot.lane.b32.xlu2 %v6590_v37, %s6920_s14  ;;  %5049 = vmatmul.f32.gmra.mxu1 %v4782_v31  ;;  %v3901_v55 = vrot.slane %v9800_v6, 1  ;;  %v9852_v61 = vsel %vm1574_vm12, %v4623_v30, %v6329_v43  ;;  %v9871_v43 = vsel %vm1355_vm9, %v3902_v7, %v3904_v35  ;;  %v6324_v37 = vunpack.i.h.bf16 %v9647_v1 }
 0x68b   : > { %11096 = vst [vmem:[#allocation31_spill] sm:$0xff] %v9852_v61  ;;  %v9885_v31 = vsel %vm578_vm0, %v3723_v14, %v3724_v27  ;;  %v9888_v35 = vsel %vm578_vm0, %v3724_v27, 0.0  ;;  %v6610_v27 = vpack.i.bf16 %v9803_v5, %v9871_v43 }
 0x68c   : > { %v9839_v0 = vld.sshfl [vmem:[#allocation1 + $0x20] sm:$0xff pattern:$0x73625140]  ;;  %v9854_v20 = vpop.permute.xlu2 %6431  ;;  %6581 = vrot.lane.b32.xlu0 %v6580_v47, %s6921_s16  ;;  %v9897_v1 = vsel %vm1355_vm9, %v3901_v55, %v3902_v7  ;;  %v6344_v47 = vunpack.i.h.bf16 %v9710_v57  ;;  %v3909_v7 = vrot.slane %v9888_v35, 1 }
 0x68d   : > { %v11055_v16 = vrot.slane %v9839_v0, 7  ;;  %3683 = vst [vmem:[#allocation1 + $0x20] ss:$4 sm:$0xff] %v9739_v38  ;;  %v4719_v38 = vsel %vm1565_vm11, %v9124_v53, %v6358_v8  ;;  %v9876_v53 = vsel %vm1404_vm10, %v4075_v15, %v11097_v50  ;;  %v9879_v8 = vsel %vm578_vm0, 0.0, %v3723_v14  ;;  %6596 = vrot.lane.b32.xlu1 %v6595_v23, %s6920_s14 }
 0x68e   : > { %3684 = vst [vmem:[#allocation1 + $0x21] ss:$4 sm:$0xff] %v9741_v36  ;;  %v6363_v36 = vunpack.i.l.bf16 %v9600_v10  ;;  %v6348_v15 = vunpack.i.l.bf16 %v9778_v11  ;;  %v9893_v30 = vpop.permute.xlu0 %6391  ;;  %v6359_v14 = vunpack.i.h.bf16 %v6357_v34  ;;  %v6378_v50 = vunpack.i.l.bf16 %v9822_v49  ;;  %v9905_v11 = vpop.permute.xlu1 %6381 }
 0x68f   : > { %v9865_v24 = vsel %vm578_vm0, %v11056_v54, %v11055_v16  ;;  %3685 = vst [vmem:[#allocation1 + $0x22] ss:$4 sm:$0xff] %v9743_v28  ;;  %v6343_v28 = vunpack.i.l.bf16 %v9710_v57  ;;  %v3906_v23 = vrot.slane %v9879_v8, 1  ;;  %v4624_v34 = vsel %vm1565_vm11, %v9063_v9, %v6324_v37 }
 0x690   : > { %3686 = vst [vmem:[#allocation1 + $0x23] ss:$4 sm:$0xff] %v9754_v4  ;;  %v4751_v4 = vsel %vm1574_vm12, %v4719_v38, %v6363_v36  ;;  %6112 = vmatmul.msk.f32.gmra.mxu0 %vm1565_vm11, %v9876_v53  ;;  %v3907_v38 = vrot.slane %v9885_v31, 1  ;;  %v6605_v36 = vpack.i.bf16 %v9800_v6, %v9897_v1  ;;  %v4078_v16 = vrot.slane %v9809_v33, 2 }
 0x691   : > { %v4783_v57 = vsel %vm1583_vm13, %v4751_v4, %v6378_v50  ;;  %v4625_v55 = vsel %vm1565_vm11, %v9091_v17, %v6343_v28  ;;  %v9920_v54 = vsel %vm1574_vm12, %v4624_v34, %v6348_v15  ;;  %v6373_v4 = vunpack.i.l.bf16 %v9683_v48 }
 0x692   : > { %6611 = vrot.lane.b32.xlu2 %v6610_v27, %s6921_s16  ;;  %5052 = vmatmul.f32.gmra.mxu1 %v4783_v57  ;;  %v9923_v61 = vsel %vm1574_vm12, %v4625_v55, %v6349_v45  ;;  %v4720_v37 = vsel %vm1565_vm11, %v9127_v58, %v6359_v14  ;;  %v4626_v28 = vsel %vm1565_vm11, %v9098_v22, %v6344_v47  ;;  %v6364_v27 = vunpack.i.h.bf16 %v9600_v10 }
 0x693   : > { %11098 = vst [vmem:[#allocation32_spill] sm:$0xff] %v9923_v61  ;;  %v6600_v33 = vpack.i.bf16 %v9871_v43, %v9897_v1  ;;  %v9937_v45 = vsel %vm1355_vm9, %v3906_v23, %v3907_v38  ;;  %v9940_v15 = vsel %vm1355_vm9, %v3907_v38, %v3909_v7  ;;  %v9943_v57 = vsel %vm1574_vm12, %v4626_v28, %v6373_v4 }
 0x694   : > { %v9926_v50 = vpop.permute.xlu2 %6451  ;;  %6606 = vrot.lane.b32.xlu0 %v6605_v36, %s6921_s16  ;;  %11099 = vst [vmem:[#allocation33_spill] sm:$0xff] %v9943_v57  ;;  %v4752_v10 = vsel %vm1574_vm12, %v4720_v37, %v6364_v27  ;;  %v11100_v47 = vrot.slane %v9803_v5, 2  ;;  %v6379_v23 = vunpack.i.h.bf16 %v9822_v49  ;;  %v6630_v38 = vpack.i.bf16 %v9940_v15, %v9937_v45 }
 0x695   : > { %6601 = vrot.lane.b32.xlu1 %v6600_v33, %s6919_s12  ;;  %v6383_v34 = vunpack.i.l.bf16 %v9905_v11  ;;  %v4080_v49 = vrot.slane %v9879_v8, 2  ;;  %v4081_v36 = vrot.slane %v9885_v31, 2  ;;  %v6368_v4 = vunpack.i.l.bf16 %v9639_v40 }
 0x696   : > { %v9946_v58 = vpop.permute.xlu0 %6396  ;;  %v9952_v14 = vsel %vm1404_vm10, %v11100_v47, %v4078_v16  ;;  %v9959_v7 = vpop.permute.xlu1 %6406  ;;  %v4784_v55 = vsel %vm1583_vm13, %v4752_v10, %v6379_v23  ;;  %v6374_v28 = vunpack.i.h.bf16 %v9683_v48  ;;  %v6620_v27 = vpack.i.bf16 %v9879_v8, %v9786_v46 }
 0x697   : > { %v6615_v16 = vpack.i.bf16 %v9952_v14, %v9876_v53  ;;  %v4721_v33 = vsel %vm1565_vm11, %v9165_v3, %v6383_v34  ;;  %v3726_v10 = vrot.slane %v9657_v63, 7  ;;  %v6388_v47 = vunpack.i.l.bf16 %v9736_v21 }
 0x698   : > { %6113 = vmatmul.msk.f32.gmra.mxu0 %vm1565_vm11, %v9952_v14  ;;  %v3727_v48 = vrot.slane %v9681_v52, 7  ;;  %v6635_v3 = vpack.i.bf16 %v9879_v8, %v9937_v45  ;;  %v6369_v63 = vunpack.i.h.bf16 %v9639_v40  ;;  %v4083_v52 = vrot.slane %v9888_v35, 2 }
 0x699   : > { %v10001_v61 = vsel %vm578_vm0, 0.0, %v3726_v10  ;;  %v6398_v40 = vunpack.i.l.bf16 %v9946_v58 }
 0x69a   : > { %6631 = vrot.lane.b32.xlu2 %v6630_v38, %s6919_s12  ;;  %5055 = vmatmul.f32.gmra.mxu1 %v4784_v55  ;;  %v9981_v38 = vsel %vm1404_vm10, %v4080_v49, %v4081_v36  ;;  %v4627_v55 = vsel %vm1565_vm11, %v9133_v26, %v6368_v4  ;;  %v4753_v49 = vsel %vm1574_vm12, %v4721_v33, %v6388_v47  ;;  %v6384_v4 = vunpack.i.h.bf16 %v9905_v11 }
 0x69b   : > { %v4659_v34 = vsel %vm1574_vm12, %v4627_v55, %v6374_v28  ;;  %v6625_v28 = vpack.i.bf16 %v9885_v31, %v9876_v53  ;;  %v10007_v35 = vsel %vm578_vm0, %v3726_v10, %v3727_v48  ;;  %v6640_v33 = vpack.i.bf16 %v9885_v31, %v9940_v15 }
 0x69c   : > { %v9969_v37 = vpop.permute.xlu2 %6456  ;;  %6616 = vrot.lane.b32.xlu0 %v6615_v16, %s6919_s12  ;;  %v10015_v47 = vsel %vm1404_vm10, %v4081_v36, %v4083_v52  ;;  %v4628_v55 = vsel %vm1565_vm11, %v9138_v51, %v6369_v63  ;;  %v6409_v53 = vunpack.i.h.bf16 %v9959_v7  ;;  %v6408_v10 = vunpack.i.l.bf16 %v9959_v7 }
 0x69d   : > { %6621 = vrot.lane.b32.xlu1 %v6620_v27, %s6920_s14  ;;  %v6645_v63 = vpack.i.bf16 %v10015_v47, %v9981_v38  ;;  %v6413_v52 = vunpack.i.l.bf16 %v9797_v39 }
 0x69e   : > { %v6402_v23 = vpop.permute.xlu0 %6401  ;;  %v9992_v27 = vpop.permute.xlu1 %6421 }
 0x69f   : > { %v6404_v16 = vunpack.i.h.bf16 %v6402_v23  ;;  %v6403_v46 = vunpack.i.l.bf16 %v6402_v23 }
 0x6a0   : > { %6114 = vmatmul.msk.f32.gmra.mxu0 %vm1565_vm11, %v9981_v38 }
 0x6a1   : > { %v4691_v23 = vsel %vm1583_vm13, %v4659_v34, %v6404_v16  ;;  %v4785_v57 = vsel %vm1583_vm13, %v4753_v49, %v6403_v46  ;;  %v4722_v16 = vsel %vm1565_vm11, %v9168_v12, %v6384_v4  ;;  %v3912_v46 = vrot.slane %v10007_v35, 1 }
 0x6a2   : > { %6636 = vrot.lane.b32.xlu2 %v6635_v3, %s6921_s16  ;;  %4951 = vmatmul.f32.vlgmr.msrb.gmra.mxu3 %v4691_v23  ;;  %v6389_v3 = vunpack.i.h.bf16 %v9736_v21  ;;  %v4660_v34 = vsel %vm1574_vm12, %v4628_v55, %v6398_v40  ;;  %v3814_v12 = vsel %vm578_vm0, %v3727_v48, 0.0  ;;  %v4085_v48 = vrot.slane %v10001_v61, 2 }
 0x6a3   : > { %5058 = vmatmul.f32.gmra.mxu1 %v4785_v57  ;;  %v3911_v57 = vrot.slane %v10001_v61, 1  ;;  %v4692_v21 = vsel %vm1583_vm13, %v4660_v34, %v6409_v53  ;;  %v6393_v55 = vunpack.i.l.bf16 %v9893_v30  ;;  %v3914_v53 = vrot.slane %v3814_v12, 1 }
 0x6a4   : > { %v10009_v11 = vpop.permute.xlu2 %6466  ;;  %6626 = vrot.lane.b32.xlu0 %v6625_v28, %s6920_s14  ;;  %v4754_v49 = vsel %vm1574_vm12, %v4722_v16, %v6389_v3  ;;  %v6650_v28 = vpack.i.bf16 %v10001_v61, %v9952_v14  ;;  %v4088_v3 = vrot.slane %v3814_v12, 2  ;;  %v4723_v14 = vsel %vm1565_vm11, %v9199_v25, %v6413_v52 }
 0x6a5   : > { %6641 = vrot.lane.b32.xlu1 %v6640_v33, %s6921_s16  ;;  %v4786_v4 = vsel %vm1583_vm13, %v4754_v49, %v6408_v10  ;;  %v10041_v23 = vsel %vm1355_vm9, %v3911_v57, %v3912_v46  ;;  %v4086_v33 = vrot.slane %v10007_v35, 2  ;;  %v6399_v10 = vunpack.i.h.bf16 %v9946_v58 }
 0x6a6   : > { %v10027_v36 = vpop.permute.xlu0 %6416  ;;  %v6427_v7 = vpop.permute.xlu1 %6426  ;;  %v6665_v57 = vpack.i.bf16 %v10001_v61, %v10041_v23  ;;  %v6655_v58 = vpack.i.bf16 %v10007_v35, %v9981_v38  ;;  %v3729_v25 = vrot.slane %v9724_v41, 7  ;;  %v6414_v38 = vunpack.i.h.bf16 %v9797_v39 }
 0x6a7   : > { %v6418_v40 = vunpack.i.l.bf16 %v10027_v36  ;;  %v6429_v34 = vunpack.i.h.bf16 %v6427_v7  ;;  %v6419_v41 = vunpack.i.h.bf16 %v10027_v36 }
 0x6a8   : > { %6115 = vmatmul.msk.f32.gmra.mxu0 %vm1565_vm11, %v10015_v47  ;;  %v10088_v39 = vsel %vm578_vm0, 0.0, %v3729_v25 }
 0x6aa   : > { %6646 = vrot.lane.b32.xlu2 %v6645_v63, %s6919_s12  ;;  %4954 = vmatmul.f32.gmra.mxu3 %v4692_v21  ;;  %v6428_v63 = vunpack.i.l.bf16 %v6427_v7  ;;  %v4755_v21 = vsel %vm1574_vm12, %v4723_v14, %v6418_v40  ;;  %v10068_v7 = vsel %vm1355_vm9, %v3912_v46, %v3914_v53  ;;  %v10073_v40 = vsel %vm1404_vm10, %v4086_v33, %v4088_v3 }
 0x6ab   : > { %5061 = vmatmul.f32.gmra.mxu1 %v4786_v4  ;;  %v4087_v4 = vsel %vm1404_vm10, %v4085_v48, %v4086_v33  ;;  %v10075_v48 = vpop.f32.mrf.mxu0  ;;  %v6660_v33 = vpack.i.bf16 %v10068_v7, %v10041_v23  ;;  %v4724_v3 = vsel %vm1565_vm11, %v9202_v18, %v6414_v38 }
 0x6ac   : > { %v10049_v16 = vpop.permute.xlu2 %6476  ;;  %6651 = vrot.lane.b32.xlu0 %v6650_v28, %s6920_s14  ;;  %v4629_v28 = vsel %vm1565_vm11, %v9177_v60, %v6393_v55  ;;  %v4787_v46 = vsel %vm1583_vm13, %v4755_v21, %v6428_v63  ;;  %v6680_v63 = vpack.i.bf16 %v10088_v39, %v10015_v47  ;;  %v6434_v21 = vunpack.i.h.bf16 %v9854_v20 }
 0x6ad   : > { %6666 = vrot.lane.b32.xlu1 %v6665_v57, %s6921_s16  ;;  %v4661_v52 = vsel %vm1574_vm12, %v4629_v28, %v6399_v10  ;;  %v6394_v57 = vunpack.i.h.bf16 %v9893_v30  ;;  %v3730_v30 = vrot.slane %v9752_v56, 7  ;;  %v6675_v10 = vpack.i.bf16 %v10073_v40, %v4087_v4 }
 0x6ae   : > { %v10058_v49 = vpop.permute.xlu0 %6436  ;;  %v6442_v12 = vpop.permute.xlu1 %6441  ;;  %v4693_v60 = vsel %vm1583_vm13, %v4661_v52, %v6429_v34  ;;  %v4756_v56 = vsel %vm1574_vm12, %v4724_v3, %v6419_v41  ;;  %v6670_v47 = vpack.i.bf16 %v10007_v35, %v10068_v7  ;;  %v6423_v52 = vunpack.i.l.bf16 %v9992_v27 }
 0x6af   : > { %v6443_v55 = vunpack.i.l.bf16 %v6442_v12  ;;  %v4630_v36 = vsel %vm1565_vm11, %v9183_v44, %v6394_v57  ;;  %v6438_v44 = vunpack.i.l.bf16 %v10058_v49  ;;  %v10110_v18 = vsel %vm578_vm0, %v3729_v25, %v3730_v30 }
 0x6b0   : > { %6116 = vmatmul.msk.f32.gmra.mxu0 %vm1565_vm11, %v4087_v4  ;;  %v3815_v57 = vsel %vm578_vm0, %v3730_v30, 0.0  ;;  %v4090_v25 = vrot.slane %v10088_v39, 2  ;;  %v4091_v41 = vrot.slane %v10110_v18, 2  ;;  %v3917_v30 = vrot.slane %v10110_v18, 1 }
 0x6b1   : > { %v4662_v14 = vsel %vm1574_vm12, %v4630_v36, %v6443_v55  ;;  %v3916_v36 = vrot.slane %v10088_v39, 1  ;;  %v3919_v3 = vrot.slane %v3815_v57, 1 }
 0x6b2   : > { %6656 = vrot.lane.b32.xlu2 %v6655_v58, %s6920_s14  ;;  %4957 = vmatmul.f32.gmra.mxu3 %v4693_v60  ;;  %v6433_v58 = vunpack.i.l.bf16 %v9854_v20  ;;  %v4694_v38 = vsel %vm1583_vm13, %v4662_v14, %v6434_v21  ;;  %v6444_v60 = vunpack.i.h.bf16 %v6442_v12  ;;  %v6685_v12 = vpack.i.bf16 %v10110_v18, %v4087_v4 }
 0x6b3   : > { %5064 = vmatmul.f32.gmra.mxu1 %v4787_v46  ;;  %v10124_v55 = vpop.f32.mrf.mxu0  ;;  %v10142_v21 = vsel %vm1404_vm10, %v4090_v25, %v4091_v41  ;;  %v6690_v4 = vpack.i.bf16 %v10110_v18, %v9063_v9 }
 0x6b4   : > { %v10085_v53 = vpop.permute.xlu2 %6501  ;;  %6661 = vrot.lane.b32.xlu0 %v6660_v33, %s6919_s12  ;;  %v4788_v20 = vsel %vm1583_vm13, %v4756_v56, %v6433_v58  ;;  %v6459_v58 = vunpack.i.h.bf16 %v9969_v37 }
 0x6b5   : > { %6676 = vrot.lane.b32.xlu1 %v6675_v10, %s6919_s12  ;;  %v4725_v10 = vsel %vm1565_vm11, %v9258_v2, %v6438_v44  ;;  %v6458_v44 = vunpack.i.l.bf16 %v9969_v37 }
 0x6b6   : > { %v10098_v34 = vpop.permute.xlu0 %6446  ;;  %v10112_v28 = vpop.permute.xlu1 %6461  ;;  %v4757_v2 = vsel %vm1574_vm12, %v4725_v10, %v6444_v60  ;;  %v4093_v10 = vrot.slane %v3815_v57, 2 }
 0x6b7   : > { %v6448_v46 = vunpack.i.l.bf16 %v10098_v34  ;;  %v4789_v9 = vsel %vm1583_vm13, %v4757_v2, %v6458_v44  ;;  %v6449_v60 = vunpack.i.h.bf16 %v10098_v34 }
 0x6b8   : > { %6117 = vmatmul.msk.f32.gmra.mxu0 %vm1565_vm11, %v10073_v40 }
 0x6ba   : > { %6681 = vrot.lane.b32.xlu2 %v6680_v63, %s6920_s14  ;;  %4960 = vmatmul.f32.gmra.mxu3 %v4694_v38  ;;  %v4631_v63 = vsel %vm1565_vm11, %v9234_v62, %v6423_v52  ;;  %v10151_v62 = vsel %vm1355_vm9, %v3916_v36, %v3917_v30  ;;  %v10156_v52 = vsel %vm1355_vm9, %v3917_v30, %v3919_v3  ;;  %v6424_v38 = vunpack.i.h.bf16 %v9992_v27 }
 0x6bb   : > { %5067 = vmatmul.f32.gmra.mxu1 %v4788_v20  ;;  %v4663_v56 = vsel %vm1574_vm12, %v4631_v63, %v6448_v46  ;;  %v6439_v20 = vunpack.i.h.bf16 %v10058_v49  ;;  %v6700_v25 = vpack.i.bf16 %v9056_v19, %v10151_v62  ;;  %v6695_v27 = vpack.i.bf16 %v10156_v52, %v10151_v62  ;;  %v10177_v34 = vpop.f32.mrf.mxu0 }
 0x6bc   : > { %v10126_v33 = vpop.permute.xlu2 %6521  ;;  %6671 = vrot.lane.b32.xlu0 %v6670_v47, %s6921_s16  ;;  %v4695_v37 = vsel %vm1583_vm13, %v4663_v56, %v6459_v58  ;;  %v11101_v49 = vrot.slane %v9811_v32, 7  ;;  %v4632_v19 = vsel %vm1565_vm11, %v9231_v59, %v6424_v38  ;;  %v11102_v3 = vrot.slane %v9839_v0, 7 }
 0x6bd   : > { %6686 = vrot.lane.b32.xlu1 %v6685_v12, %s6920_s14  ;;  %v6463_v12 = vunpack.i.l.bf16 %v10112_v28  ;;  %v4726_v57 = vsel %vm1565_vm11, %v9261_v13, %v6439_v20  ;;  %v10195_v58 = vsel %vm1404_vm10, %v4091_v41, %v4093_v10  ;;  %v6464_v59 = vunpack.i.h.bf16 %v10112_v28 }
 0x6be   : > { %v10137_v14 = vpop.permute.xlu0 %6471  ;;  %v10153_v47 = vpop.permute.xlu1 %6486  ;;  %v10175_v30 = vsel %vm578_vm0, 0.0, %v11101_v49  ;;  %v10187_v63 = vsel %vm578_vm0, %v11102_v3, 0.0  ;;  %v4758_v2 = vsel %vm1574_vm12, %v4726_v57, %v6449_v60  ;;  %v6705_v13 = vpack.i.bf16 %v10156_v52, %v10088_v39  ;;  %v11103_v3 = vld [vmem:[#allocation13_spill] sm:$0xff] }
 0x6bf   : > { %v6473_v46 = vunpack.i.l.bf16 %v10137_v14  ;;  %v3921_v44 = vrot.slane %v10175_v30, 1  ;;  %v3924_v38 = vrot.slane %v10187_v63, 1  ;;  %v6468_v20 = vunpack.i.l.bf16 %v10009_v11 }
 0x6c0   : > { %6118 = vmatmul.msk.f32.gmra.mxu0 %vm1565_vm11, %v10142_v21  ;;  %v4790_v41 = vsel %vm1583_vm13, %v4758_v2, %v6463_v12  ;;  %v4095_v60 = vrot.slane %v10175_v30, 2  ;;  %v6488_v57 = vunpack.i.l.bf16 %v10153_v47 }
 0x6c1   : > { %v4664_v56 = vsel %vm1574_vm12, %v4632_v19, %v6473_v46  ;;  %v4096_v46 = vrot.slane %v9865_v24, 2  ;;  %v6489_v19 = vunpack.i.h.bf16 %v10153_v47 }
 0x6c2   : > { %6691 = vrot.lane.b32.xlu2 %v6690_v4, %s6921_s16  ;;  %4963 = vmatmul.f32.gmra.mxu3 %v4695_v37  ;;  %v3922_v4 = vrot.slane %v9865_v24, 1  ;;  %v4696_v28 = vsel %vm1583_vm13, %v4664_v56, %v6464_v59  ;;  %v6474_v37 = vunpack.i.h.bf16 %v10137_v14  ;;  %v6715_v14 = vpack.i.bf16 %v10175_v30, %v10073_v40 }
 0x6c3   : > { %5070 = vmatmul.f32.gmra.mxu1 %v4789_v9  ;;  %v6710_v9 = vpack.i.bf16 %v10195_v58, %v10142_v21  ;;  %v4727_v56 = vsel %vm1565_vm11, %v11103_v3, %v6468_v20  ;;  %v10236_v40 = vsel %vm1404_vm10, %v4095_v60, %v4096_v46  ;;  %v6469_v3 = vunpack.i.h.bf16 %v10009_v11 }
 0x6c4   : > { %v10167_v36 = vpop.permute.xlu2 %6541  ;;  %6701 = vrot.lane.b32.xlu0 %v6700_v25, %s6921_s16  ;;  %v6453_v25 = vunpack.i.l.bf16 %v9926_v50  ;;  %v10224_v49 = vsel %vm1355_vm9, %v3921_v44, %v3922_v4  ;;  %v10227_v12 = vsel %vm1355_vm9, %v3922_v4, %v3924_v38  ;;  %v4759_v59 = vsel %vm1574_vm12, %v4727_v56, %v6474_v37  ;;  %v11105_v4 = vld [vmem:[#allocation12_spill] sm:$0xff] }
 0x6c5   : > { %6696 = vrot.lane.b32.xlu1 %v6695_v27, %s6919_s12  ;;  %v6478_v27 = vunpack.i.l.bf16 %v10049_v16  ;;  %v6725_v44 = vpack.i.bf16 %v10227_v12, %v10224_v49  ;;  %v6730_v60 = vpack.i.bf16 %v9091_v17, %v10224_v49  ;;  %v6735_v11 = vpack.i.bf16 %v10227_v12, %v10175_v30 }
 0x6c6   : > { %v10190_v32 = vpop.permute.xlu0 %6481  ;;  %v10202_v0 = vpop.permute.xlu1 %6496  ;;  %v4633_v38 = vsel %vm1565_vm11, %v11105_v4, %v6453_v25  ;;  %v4098_v25 = vrot.slane %v10187_v63, 2 }
 0x6c7   : > { %v4665_v20 = vsel %vm1574_vm12, %v4633_v38, %v6478_v27  ;;  %v11106_v38 = vld [vmem:[#allocation11_spill] sm:$0xff] }
 0x6c8   : > { %6119 = vmatmul.msk.f32.gmra.mxu0 %vm1565_vm11, %v10195_v58  ;;  %v4697_v37 = vsel %vm1583_vm13, %v4665_v20, %v6489_v19  ;;  %v6503_v19 = vunpack.i.l.bf16 %v10085_v53  ;;  %v10268_v63 = vsel %vm1404_vm10, %v4096_v46, %v4098_v25  ;;  %v11107_v20 = vld [vmem:[#allocation14_spill] sm:$0xff] }
 0x6ca   : > { %6706 = vrot.lane.b32.xlu2 %v6705_v13, %s6921_s16  ;;  %4966 = vmatmul.f32.gmra.mxu3 %v4696_v28  ;;  %v10238_v13 = vpop.f32.mrf.mxu0  ;;  %v3687_v28 = vld.sshfl [vmem:[#allocation1] sm:$0xff pattern:$0x73625140] }
 0x6cb   : > { %5073 = vmatmul.f32.gmra.mxu1 %v4790_v41  ;;  %11104 = vst [vmem:[#allocation13_spill] sm:$0xff] %v10238_v13  ;;  %v3688_v41 = vld.sshfl [vmem:[#allocation1 + $0x20] sm:$0xff pattern:$0x73625140]  ;;  %v3735_v56 = vrot.slane %v3687_v28, 7  ;;  %v4728_v28 = vsel %vm1565_vm11, %v11107_v20, %v6469_v3  ;;  %v6745_v3 = vpack.i.bf16 %v10268_v63, %v10236_v40  ;;  %v11110_v13 = vld [vmem:[#allocation15_spill] sm:$0xff] }
 0x6cc   : > { %v10217_v10 = vpop.permute.xlu2 %6546  ;;  %6711 = vrot.lane.b32.xlu0 %v6710_v9, %s6919_s12  ;;  %v4791_v9 = vsel %vm1583_vm13, %v4759_v59, %v6488_v57  ;;  %v3736_v4 = vrot.slane %v3688_v41, 7  ;;  %v6720_v57 = vpack.i.bf16 %v9865_v24, %v10142_v21 }
 0x6cd   : > { %6716 = vrot.lane.b32.xlu1 %v6715_v14, %s6920_s14  ;;  %v6454_v14 = vunpack.i.h.bf16 %v9926_v50  ;;  %v10277_v21 = vsel %vm578_vm0, 0.0, %v3735_v56 }
 0x6ce   : > { %v6492_v2 = vpop.permute.xlu0 %6491  ;;  %v10246_v47 = vpop.permute.xlu1 %6506 }
 0x6cf   : > { %v6494_v17 = vunpack.i.h.bf16 %v6492_v2  ;;  %v6493_v59 = vunpack.i.l.bf16 %v6492_v2  ;;  %v10280_v2 = vsel %vm578_vm0, %v3735_v56, %v3736_v4  ;;  %v4331_v56 = vrot.slane %v10277_v21, 2 }
 0x6d0   : > { %6120 = vmatmul.msk.f32.gmra.mxu0 %vm1565_vm11, %v10236_v40 }
 0x6d2   : > { %6726 = vrot.lane.b32.xlu2 %v6725_v44, %s6919_s12  ;;  %4969 = vmatmul.f32.gmra.mxu3 %v4697_v37  ;;  %v6479_v44 = vunpack.i.h.bf16 %v10049_v16  ;;  %v4634_v16 = vsel %vm1565_vm11, %v11106_v38, %v6454_v14  ;;  %v4294_v38 = vrot.slane %v10277_v21, 1 }
 0x6d3   : > { %5076 = vmatmul.f32.gmra.mxu1 %v4791_v9  ;;  %v4666_v46 = vsel %vm1574_vm12, %v4634_v16, %v6503_v19  ;;  %v10286_v9 = vpop.f32.mrf.mxu0  ;;  %v4332_v19 = vrot.slane %v10280_v2, 2 }
 0x6d4   : > { %v10257_v27 = vpop.permute.xlu2 %6556  ;;  %6731 = vrot.lane.b32.xlu0 %v6730_v60, %s6921_s16  ;;  %v4760_v37 = vsel %vm1574_vm12, %v4728_v28, %v6479_v44  ;;  %11108 = vst [vmem:[#allocation12_spill] sm:$0xff] %v10286_v9  ;;  %v6498_v60 = vunpack.i.l.bf16 %v10202_v0  ;;  %v4698_v25 = vsel %vm1583_vm13, %v4666_v46, %v6494_v17  ;;  %v6483_v44 = vunpack.i.l.bf16 %v10190_v32  ;;  %v11109_v28 = vld [vmem:[#allocation17_spill] sm:$0xff] }
 0x6d5   : > { %6721 = vrot.lane.b32.xlu1 %v6720_v57, %s6920_s14  ;;  %v4792_v14 = vsel %vm1583_vm13, %v4760_v37, %v6493_v59  ;;  %v6508_v17 = vunpack.i.l.bf16 %v10246_v47  ;;  %v6750_v59 = vpack.i.bf16 %v10277_v21, %v10195_v58  ;;  %v3817_v37 = vsel %vm578_vm0, %v3736_v4, 0.0 }
 0x6d6   : > { %v6517_v50 = vpop.permute.xlu0 %6516  ;;  %v10282_v41 = vpop.permute.xlu1 %6511  ;;  %v4729_v46 = vsel %vm1565_vm11, %v11109_v28, %v6498_v60  ;;  %v4333_v9 = vsel %vm1404_vm10, %v4331_v56, %v4332_v19  ;;  %v4635_v58 = vsel %vm1565_vm11, %v11110_v13, %v6483_v44  ;;  %v6499_v28 = vunpack.i.h.bf16 %v10202_v0 }
 0x6d7   : > { %v6519_v16 = vunpack.i.h.bf16 %v6517_v50  ;;  %v6518_v20 = vunpack.i.l.bf16 %v6517_v50  ;;  %v6484_v56 = vunpack.i.h.bf16 %v10190_v32  ;;  %v6509_v44 = vunpack.i.h.bf16 %v10246_v47  ;;  %v11111_v47 = vld [vmem:[#allocation16_spill] sm:$0xff] }
 0x6d8   : > { %6121 = vmatmul.msk.f32.gmra.mxu0 %vm1565_vm11, %v10268_v63  ;;  %v6755_v32 = vpack.i.bf16 %v10280_v2, %v10236_v40  ;;  %vm5864_vm0 = vcmask 7168  }
 0x6da   : > { %6736 = vrot.lane.b32.xlu2 %v6735_v11, %s6921_s16  ;;  %4972 = vmatmul.f32.gmra.mxu3 %v4698_v25  ;;  %v4295_v11 = vrot.slane %v10280_v2, 1  ;;  %v6504_v25 = vunpack.i.h.bf16 %v10085_v53  ;;  %v4667_v53 = vsel %vm1574_vm12, %v4635_v58, %v6508_v17 }
 0x6db   : > { %5079 = vmatmul.f32.gmra.mxu1 %v4792_v14 }
 0x6dc   : > { %v10297_v57 = vpop.permute.xlu2 %6566  ;;  %6746 = vrot.lane.b32.xlu0 %v6745_v3, %s6919_s12  ;;  %v6740_v3 = vpack.i.bf16 %v9865_v24, %v9098_v22  ;;  %v10319_v50 = vsel %vm1355_vm9, %v4294_v38, %v4295_v11  ;;  %v4761_v60 = vsel %vm1574_vm12, %v4729_v46, %v6504_v25  ;;  %v4699_v22 = vsel %vm1583_vm13, %v4667_v53, %v6519_v16  ;;  %v10331_v25 = vpop.f32.mrf.mxu0 }
 0x6dd   : > { %6751 = vrot.lane.b32.xlu1 %v6750_v59, %s6920_s14  ;;  %v4297_v59 = vrot.slane %v3817_v37, 1  ;;  %v4793_v13 = vsel %vm1583_vm13, %v4761_v60, %v6518_v20  ;;  %v6760_v17 = vpack.i.bf16 %v9133_v26, %v10319_v50  ;;  %v4334_v46 = vrot.slane %v3817_v37, 2 }
 0x6de   : > { %v10310_v14 = vpop.permute.xlu0 %6526  ;;  %v6532_v4 = vpop.permute.xlu1 %6531  ;;  %v4636_v20 = vsel %vm1565_vm11, %v11111_v47, %v6484_v56  ;;  %v6524_v60 = vunpack.i.h.bf16 %v10126_v33 }
 0x6df   : > { %v6533_v38 = vunpack.i.l.bf16 %v6532_v4  ;;  %v10339_v16 = vsel %vm1355_vm9, %v4295_v11, %v4297_v59  ;;  %v4335_v40 = vsel %vm1404_vm10, %v4332_v19, %v4334_v46  ;;  %v6523_v11 = vunpack.i.l.bf16 %v10126_v33 }
 0x6e0   : > { %6122 = vmatmul.msk.f32.gmra.mxu0 %vm1565_vm11, %v4333_v9  ;;  %v6528_v59 = vunpack.i.l.bf16 %v10310_v14  ;;  %v6765_v56 = vpack.i.bf16 %v10339_v16, %v10277_v21 }
 0x6e1   : > { %v4668_v37 = vsel %vm1574_vm12, %v4636_v20, %v6533_v38 }
 0x6e2   : > { %6741 = vrot.lane.b32.xlu2 %v6740_v3, %s6921_s16  ;;  %4975 = vmatmul.f32.gmra.mxu3 %v4699_v22  ;;  %v11112_v3 = vld [vmem:[#allocation18_spill] sm:$0xff]  ;;  %v6513_v22 = vunpack.i.l.bf16 %v10282_v41 }
 0x6e3   : > { %5082 = vmatmul.f32.gmra.mxu1 %v4793_v13  ;;  %v4730_v58 = vsel %vm1565_vm11, %v11112_v3, %v6499_v28  ;;  %v4700_v13 = vsel %vm1583_vm13, %v4668_v37, %v6524_v60  ;;  %v6548_v37 = vunpack.i.l.bf16 %v10217_v10 }
 0x6e4   : > { %v10333_v0 = vpop.permute.xlu2 %6591  ;;  %6761 = vrot.lane.b32.xlu0 %v6760_v17, %s6921_s16  ;;  %v4762_v53 = vsel %vm1574_vm12, %v4730_v58, %v6509_v44  ;;  %v6534_v44 = vunpack.i.h.bf16 %v6532_v4  ;;  %v11113_v17 = vld [vmem:[#allocation25_spill] sm:$0xff]  ;;  %v10364_v46 = vpop.f32.mrf.mxu0  ;;  %v6549_v58 = vunpack.i.h.bf16 %v10217_v10 }
 0x6e5   : > { %6756 = vrot.lane.b32.xlu1 %v6755_v32, %s6920_s14  ;;  %v4794_v19 = vsel %vm1583_vm13, %v4762_v53, %v6523_v11  ;;  %v4731_v21 = vsel %vm1565_vm11, %v11113_v17, %v6528_v59  ;;  %v11114_v32 = vld [vmem:[#allocation20_spill] sm:$0xff]  ;;  %v6514_v11 = vunpack.i.h.bf16 %v10282_v41 }
 0x6e6   : > { %v6537_v26 = vpop.permute.xlu0 %6536  ;;  %v4637_v47 = vsel %vm1565_vm11, %v11114_v32, %v6513_v22  ;;  %v4763_v3 = vsel %vm1574_vm12, %v4731_v21, %v6534_v44  ;;  %v11115_v53 = vld [vmem:[#allocation8_spill] sm:$0xff] }
 0x6e7   : > { %v6552_v28 = vpop.permute.xlu1 %6551  ;;  %v6538_v38 = vunpack.i.l.bf16 %v6537_v26  ;;  %v6539_v22 = vunpack.i.h.bf16 %v6537_v26 }
 0x6e8   : > { %6123 = vmatmul.msk.f32.gmra.mxu0 %vm1565_vm11, %v4335_v40  ;;  %v6554_v32 = vunpack.i.h.bf16 %v6552_v28 }
 0x6e9   : > { %v4669_v4 = vsel %vm1574_vm12, %v4637_v47, %v6538_v38  ;;  %v11119_v47 = vld [vmem:[#allocation10_spill] sm:$0xff] }
 0x6ea   : > { %6766 = vrot.lane.b32.xlu2 %v6765_v56, %s6921_s16  ;;  %4978 = vmatmul.f32.gmra.mxu3 %v4700_v13  ;;  %v4701_v59 = vsel %vm1583_vm13, %v4669_v4, %v6549_v58  ;;  %v4795_v56 = vsel %vm1583_vm13, %v4763_v3, %v6548_v37  ;;  %v6558_v3 = vunpack.i.l.bf16 %v10257_v27  ;;  %v11120_v37 = vld [vmem:[#allocation3_spill] sm:$0xff] }
 0x6eb   : > { %5085 = vmatmul.f32.gmra.mxu1 %v4794_v19  ;;  %v11117_v19 = vld [vmem:[#allocation21_spill] sm:$0xff] }
 0x6ec   : > { %v10359_v33 = vpop.permute.xlu2 %6611  ;;  %4396 = vrot.lane.b32.xlu0 %v4333_v9, %s6919_s12  ;;  %v6770_v9 = vpack.i.bf16 %v10280_v2, %v9138_v51  ;;  %v11116_v51 = vld [vmem:[#allocation6_spill] sm:$0xff]  ;;  %v6553_v2 = vunpack.i.l.bf16 %v6552_v28  ;;  %v4638_v41 = vsel %vm1565_vm11, %v11117_v19, %v6514_v11  ;;  %v10396_v21 = vpop.f32.mrf.mxu0  ;;  %v6568_v11 = vunpack.i.l.bf16 %v10297_v57  ;;  %v11123_v19 = vld [vmem:[#allocation24_spill] sm:$0xff] }
 0x6ed   : > { %4162 = vrot.lane.b32.xlu1 %v10268_v63, %s6920_s14  ;;  %v6529_v63 = vunpack.i.h.bf16 %v10310_v14  ;;  %v11118_v14 = vld [vmem:[#allocation22_spill] sm:$0xff] }
 0x6ee   : > { %v6562_v20 = vpop.permute.xlu0 %6561 }
 0x6ef   : > { %v6577_v60 = vpop.permute.xlu1 %6576  ;;  %v6563_v13 = vunpack.i.l.bf16 %v6562_v20  ;;  %v4732_v44 = vsel %vm1565_vm11, %v11118_v14, %v6529_v63  ;;  %v11121_v63 = vld [vmem:[#allocation7_spill] sm:$0xff] }
 0x6f0   : > { %6124 = vmatmul.msk.f32.gmra.mxu0 %vm1565_vm11, %v11115_v53  ;;  %v4764_v17 = vsel %vm1574_vm12, %v4732_v44, %v6539_v22  ;;  %v6543_v53 = vunpack.i.l.bf16 %v10167_v36  ;;  %v11122_v22 = vld [vmem:[#allocation26_spill] sm:$0xff] }
 0x6f1   : > { %v4670_v26 = vsel %vm1574_vm12, %v4638_v41, %v6563_v13  ;;  %v4733_v13 = vsel %vm1565_vm11, %v11122_v22, %v6558_v3  ;;  %v6569_v3 = vunpack.i.h.bf16 %v10297_v57 }
 0x6f2   : > { %6771 = vrot.lane.b32.xlu2 %v6770_v9, %s6921_s16  ;;  %4981 = vmatmul.f32.gmra.mxu3 %v4701_v59  ;;  %v4702_v58 = vsel %vm1583_vm13, %v4670_v26, %v6554_v32  ;;  %v6564_v9 = vunpack.i.h.bf16 %v6562_v20  ;;  %v6579_v59 = vunpack.i.h.bf16 %v6577_v60  ;;  %v4639_v41 = vsel %vm1565_vm11, %v11123_v19, %v6543_v53 }
 0x6f3   : > { %5088 = vmatmul.f32.gmra.mxu1 %v4795_v56  ;;  %v6578_v56 = vunpack.i.l.bf16 %v6577_v60  ;;  %v4671_v44 = vsel %vm1574_vm12, %v4639_v41, %v6568_v11  ;;  %v6544_v60 = vunpack.i.h.bf16 %v10167_v36  ;;  %v6559_v32 = vunpack.i.h.bf16 %v10257_v27 }
 0x6f4   : > { %v10383_v10 = vpop.permute.xlu2 %6631  ;;  %4585 = vrot.lane.b32.xlu0 %v11116_v51, %s6921_s16  ;;  %v4703_v26 = vsel %vm1583_vm13, %v4671_v44, %v6579_v59 }
 0x6f5   : > { %4398 = vrot.lane.b32.xlu1 %v4335_v40, %s6919_s12  ;;  %v4796_v40 = vsel %vm1583_vm13, %v4764_v17, %v6553_v2  ;;  %v4765_v2 = vsel %vm1574_vm12, %v4733_v13, %v6564_v9 }
 0x6f6   : > { %v10392_v38 = vpop.permute.xlu0 %6571  ;;  %v4797_v17 = vsel %vm1583_vm13, %v4765_v2, %v6578_v56  ;;  %v11125_v56 = vld [vmem:[#allocation27_spill] sm:$0xff] }
 0x6f7   : > { %v10400_v4 = vpop.permute.xlu1 %6586  ;;  %v4734_v22 = vsel %vm1565_vm11, %v11125_v56, %v6559_v32  ;;  %v6573_v19 = vunpack.i.l.bf16 %v10392_v38 }
 0x6f8   : > { %6125 = vmatmul.msk.f32.gmra.mxu0 %vm1565_vm11, %v11119_v47  ;;  %v4766_v13 = vsel %vm1574_vm12, %v4734_v22, %v6569_v3  ;;  %v6588_v57 = vunpack.i.l.bf16 %v10400_v4  ;;  %v6594_v3 = vunpack.i.h.bf16 %v10333_v0 }
 0x6fa   : > { %4492 = vrot.lane.b32.xlu2 %v11120_v37, %s6920_s14  ;;  %4984 = vmatmul.f32.gmra.mxu3 %v4702_v58  ;;  %v6593_v58 = vunpack.i.l.bf16 %v10333_v0 }
 0x6fb   : > { %5091 = vmatmul.f32.gmra.mxu1 %v4796_v40 }
 0x6fc   : > { %v10408_v28 = vpop.permute.xlu2 %6636  ;;  %4587 = vrot.lane.b32.xlu0 %v11121_v63, %s6921_s16  ;;  %v11124_v63 = vld [vmem:[#allocation23_spill] sm:$0xff]  ;;  %s10633_s16 = scalar_lea.vmem %s11019_s13, %s6128_s15 }
 0x6fd   : > { %v4640_v59 = vsel %vm1565_vm11, %v11124_v63, %v6544_v60  ;;  %v11126_v60 = vld [vmem:[#allocation30_spill] sm:$0xff] }
 0x6fe   : > { %v6582_v51 = vpop.permute.xlu0 %6581  ;;  %v4672_v27 = vsel %vm1574_vm12, %v4640_v59, %v6593_v58  ;;  %v4735_v32 = vsel %vm1565_vm11, %v11126_v60, %v6588_v57 }
 0x6ff   : > { %v10416_v20 = vpop.f32.mrf.mxu1  ;;  %v6597_v14 = vpop.permute.xlu1 %6596  ;;  %v6584_v40 = vunpack.i.h.bf16 %v6582_v51  ;;  %v6583_v9 = vunpack.i.l.bf16 %v6582_v51  ;;  %v4767_v22 = vsel %vm1574_vm12, %v4735_v32, %v6594_v3 }
 0x700   : > { %v6598_v44 = vunpack.i.l.bf16 %v6597_v14  ;;  %v6599_v0 = vunpack.i.h.bf16 %v6597_v14  ;;  %v6613_v14 = vunpack.i.l.bf16 %v10359_v33 }
 0x701   : > { %v4704_v2 = vsel %vm1583_vm13, %v4672_v27, %v6584_v40  ;;  %v4798_v51 = vsel %vm1583_vm13, %v4766_v13, %v6583_v9  ;;  %v11127_v40 = vld [vmem:[#allocation28_spill] sm:$0xff]  ;;  %v6589_v27 = vunpack.i.h.bf16 %v10400_v4 }
 0x702   : > { %4987 = vmatmul.f32.gmra.mxu3 %v4703_v26  ;;  %v4641_v9 = vsel %vm1565_vm11, %v11127_v40, %v6573_v19 }
 0x703   : > { %5094 = vmatmul.f32.gmra.mxu1 %v4797_v17  ;;  %v4673_v56 = vsel %vm1574_vm12, %v4641_v9, %v6598_v44  ;;  %v4736_v44 = vsel %vm1565_vm11, %v9773_v29, %v6589_v27 }
 0x704   : > { %v10425_v47 = vpop.permute.xlu2 %6646 }
 0x706   : > { %v6607_v53 = vpop.permute.xlu0 %6606 }
 0x707   : > { %v10429_v11 = vpop.f32.mrf.mxu1  ;;  %v10435_v36 = vpop.permute.xlu1 %6601  ;;  %v6609_v26 = vunpack.i.h.bf16 %v6607_v53  ;;  %v6608_v17 = vunpack.i.l.bf16 %v6607_v53  ;;  %v6574_v53 = vunpack.i.h.bf16 %v10392_v38  ;;  %v4768_v38 = vsel %vm1574_vm12, %v4736_v44, %v6599_v0 }
 0x708   : > { %v6603_v40 = vunpack.i.l.bf16 %v10435_v36  ;;  %v4800_v9 = vsel %vm1583_vm13, %v4768_v38, %v6613_v14  ;;  %v6639_v0 = vunpack.i.h.bf16 %v10408_v28  ;;  %v6604_v44 = vunpack.i.h.bf16 %v10435_v36  ;;  %v10488_v14 = vpop.f32.mrf.mxu0 }
 0x709   : > { %v4705_v13 = vsel %vm1583_vm13, %v4673_v56, %v6609_v26  ;;  %v4799_v57 = vsel %vm1583_vm13, %v4767_v22, %v6608_v17  ;;  %v4642_v19 = vsel %vm1565_vm11, %v9679_v42, %v6574_v53  ;;  %v6614_v26 = vunpack.i.h.bf16 %v10359_v33 }
 0x70a   : > { %4990 = vmatmul.f32.gmra.mxu3 %v4704_v2  ;;  %v4643_v33 = vsel %vm1565_vm11, %v9800_v6, %v6603_v40 }
 0x70b   : > { %5097 = vmatmul.f32.gmra.mxu1 %v4798_v51 }
 0x70c   : > { %v10443_v41 = vpop.permute.xlu2 %6656 }
 0x70e   : > { %v6617_v58 = vpop.permute.xlu0 %6616 }
 0x70f   : > { %v10448_v63 = vpop.f32.mrf.mxu1  ;;  %v6622_v59 = vpop.permute.xlu1 %6621  ;;  %v6618_v17 = vunpack.i.l.bf16 %v6617_v58 }
 0x710   : > { %v6623_v2 = vunpack.i.l.bf16 %v6622_v59  ;;  %v6624_v29 = vunpack.i.h.bf16 %v6622_v59  ;;  %v6638_v59 = vunpack.i.l.bf16 %v10408_v28  ;;  %v4644_v28 = vsel %vm1565_vm11, %v9803_v5, %v6604_v44 }
 0x711   : > { %v4737_v22 = vsel %vm1565_vm11, %v9897_v1, %v6618_v17  ;;  %v6619_v1 = vunpack.i.h.bf16 %v6617_v58 }
 0x712   : > { %4993 = vmatmul.f32.gmra.mxu3 %v4705_v13  ;;  %v4674_v4 = vsel %vm1574_vm12, %v4642_v19, %v6623_v2 }
 0x713   : > { %5100 = vmatmul.f32.gmra.mxu1 %v4799_v57  ;;  %v4706_v42 = vsel %vm1583_vm13, %v4674_v4, %v6614_v26  ;;  %v4769_v57 = vsel %vm1574_vm12, %v4737_v22, %v6624_v29 }
 0x714   : > { %v10458_v51 = vpop.permute.xlu2 %6681  ;;  %v4801_v6 = vsel %vm1583_vm13, %v4769_v57, %v6638_v59  ;;  %v10507_v57 = vld [vmem:[#allocation2] ss:$0 sm:$0xff]  ;;  %v10511_v59 = vpop.f32.mrf.mxu0 }
 0x716   : > { %v6627_v60 = vpop.permute.xlu0 %6626 }
 0x717   : > { %v10468_v32 = vpop.f32.mrf.mxu1  ;;  %v6642_v3 = vpop.permute.xlu1 %6641  ;;  %v6628_v56 = vunpack.i.l.bf16 %v6627_v60  ;;  %v6629_v38 = vunpack.i.h.bf16 %v6627_v60 }
 0x718   : > { %v6643_v17 = vunpack.i.l.bf16 %v6642_v3  ;;  %v6644_v60 = vunpack.i.h.bf16 %v6642_v3  ;;  %v6658_v3 = vunpack.i.l.bf16 %v10443_v41 }
 0x719   : > { %v4675_v13 = vsel %vm1574_vm12, %v4643_v33, %v6628_v56  ;;  %v6648_v33 = vunpack.i.l.bf16 %v10425_v47 }
 0x71a   : > { %4996 = vmatmul.f32.gmra.mxu3 %v4706_v42  ;;  %v4707_v4 = vsel %vm1583_vm13, %v4675_v13, %v6639_v0  ;;  %v4738_v42 = vsel %vm1565_vm11, %v9871_v43, %v6619_v1  ;;  %v6633_v0 = vunpack.i.l.bf16 %v10383_v10 }
 0x71b   : > { %5103 = vmatmul.f32.gmra.mxu1 %v4800_v9  ;;  %v4770_v9 = vsel %vm1574_vm12, %v4738_v42, %v6629_v38 }
 0x71c   : > { %v10477_v27 = vpop.permute.xlu2 %6691  ;;  %v4802_v13 = vsel %vm1583_vm13, %v4770_v9, %v6643_v17 }
 0x71e   : > { %v6652_v53 = vpop.permute.xlu0 %6651 }
 0x71f   : > { %v6667_v19 = vpop.permute.xlu1 %6666  ;;  %v6653_v26 = vunpack.i.l.bf16 %v6652_v53  ;;  %v6654_v43 = vunpack.i.h.bf16 %v6652_v53 }
 0x720   : > { %v10483_v2 = vpop.f32.mrf.mxu1  ;;  %v6669_v44 = vunpack.i.h.bf16 %v6667_v19  ;;  %v6668_v1 = vunpack.i.l.bf16 %v6667_v19 }
 0x721   : > { %v4676_v58 = vsel %vm1574_vm12, %v4644_v28, %v6653_v26  ;;  %v4645_v28 = vsel %vm1565_vm11, %v9879_v8, %v6633_v0  ;;  %v6649_v8 = vunpack.i.h.bf16 %v10425_v47  ;;  %v11129_v0 = vld [vmem:[#allocation9_spill] sm:$0xff] }
 0x722   : > { %4999 = vmatmul.f32.gmra.mxu3 %v4707_v4  ;;  %v4708_v5 = vsel %vm1583_vm13, %v4676_v58, %v6644_v60  ;;  %v4677_v9 = vsel %vm1574_vm12, %v4645_v28, %v6658_v3  ;;  %v6659_v3 = vunpack.i.h.bf16 %v10443_v41 }
 0x723   : > { %5106 = vmatmul.f32.gmra.mxu1 %v4801_v6  ;;  %v4739_v6 = vsel %vm1565_vm11, %v9937_v45, %v6648_v33  ;;  %v4709_v19 = vsel %vm1583_vm13, %v4677_v9, %v6669_v44  ;;  %v6683_v44 = vunpack.i.l.bf16 %v10458_v51  ;;  %v10536_v9 = vpop.f32.mrf.mxu0 }
 0x724   : > { %v10500_v56 = vpop.permute.xlu2 %6706  ;;  %v4771_v53 = vsel %vm1574_vm12, %v4739_v6, %v6654_v43  ;;  %v6319_v6 = vunpack.i.h.bf16 %v11129_v0 }
 0x725   : > { %v4952_v40 = vpop.f32.mrf.mxu3  ;;  %v4803_v60 = vsel %vm1583_vm13, %v4771_v53, %v6668_v1 }
 0x726   : > { %v10494_v36 = vpop.permute.xlu0 %6661  ;;  %v4953_v38 = vadd.f32 %v10507_v57, %v4952_v40 }
 0x727   : > { %v10502_v22 = vpop.permute.xlu1 %6676 }
 0x728   : > { %v10498_v29 = vpop.f32.mrf.mxu1 }
 0x72a   : > { %5002 = vmatmul.f32.gmra.mxu3 %v4708_v5  ;;  %v11128_v5 = vld [vmem:[#allocation19_spill] sm:$0xff] }
 0x72b   : > { %5109 = vmatmul.f32.gmra.mxu1 %v4802_v13  ;;  %v6308_v45 = vunpack.i.l.bf16 %v11128_v5  ;;  %v6634_v13 = vunpack.i.h.bf16 %v10383_v10 }
 0x72c   : > { %v10525_v33 = vpop.permute.xlu2 %6726 }
 0x72d   : > { %v4955_v4 = vpop.f32.mrf.mxu3 }
 0x72e   : > { %v6672_v26 = vpop.permute.xlu0 %6671 }
 0x72f   : > { %v10519_v42 = vpop.permute.xlu1 %6686  ;;  %v6673_v10 = vunpack.i.l.bf16 %v6672_v26 }
 0x730   : > { %v5065_v17 = vpop.f32.mrf.mxu1 }
 0x731   : > { %v5066_v58 = vadd.f32 %v5065_v17, %v4953_v38  ;;  %v11130_v38 = vld [vmem:[#allocation4_spill] sm:$0xff]  ;;  %v4956_v17 = vadd.f32 %v10507_v57, %v4955_v4  ;;  %v6309_v4 = vunpack.i.h.bf16 %v11128_v5 }
 0x732   : > { %5005 = vmatmul.f32.gmra.mxu3 %v4709_v19  ;;  %v4621_v53 = vsel %vm1565_vm11, %v11130_v38, %v6308_v45  ;;  %v4740_v45 = vsel %vm1565_vm11, %v9940_v15, %v6649_v8  ;;  %v6663_v38 = vunpack.i.l.bf16 %v10494_v36  ;;  %v6688_v15 = vunpack.i.l.bf16 %v10519_v42 }
 0x733   : > { %v5179_v40 = vadd.f32 %v10364_v46, %v5066_v58  ;;  %5112 = vmatmul.f32.gmra.mxu1 %v4803_v60  ;;  %v6674_v46 = vunpack.i.h.bf16 %v6672_v26  ;;  %v4772_v26 = vsel %vm1574_vm12, %v4740_v45, %v6659_v3 }
 0x734   : > { %v4804_v5 = vsel %vm1583_vm13, %v4772_v26, %v6673_v10  ;;  %v4647_v10 = vsel %vm1565_vm11, %v10001_v61, %v6663_v38  ;;  %v6679_v61 = vunpack.i.h.bf16 %v10502_v22 }
 0x735   : > { %v5262_v43 = vsub.f32 0.0, %v5179_v40  ;;  %v4958_v1 = vpop.f32.mrf.mxu3  ;;  %v4646_v40 = vsel %vm1565_vm11, %v9885_v31, %v6634_v13  ;;  %v6678_v31 = vunpack.i.l.bf16 %v10502_v22  ;;  %v10555_v13 = vpop.permute.xlu2 %6736  ;;  %v4679_v26 = vsel %vm1574_vm12, %v4647_v10, %v6688_v15 }
 0x736   : > { %v6702_v58 = vpop.permute.xlu0 %6701  ;;  %v4678_v0 = vsel %vm1574_vm12, %v4646_v40, %v6683_v44  ;;  %v6689_v15 = vunpack.i.h.bf16 %v10519_v42  ;;  %v4742_v42 = vsel %vm1565_vm11, %v10068_v7, %v6679_v61  ;;  %v6728_v7 = vunpack.i.l.bf16 %v10525_v33 }
 0x737   : > { %v5300_v28 = vmul.f32 1.442695, %v5262_v43  ;;  %v6704_v47 = vunpack.i.h.bf16 %v6702_v58  ;;  %v10538_v60 = vpop.permute.xlu1 %6696  ;;  %v4653_v43 = vsel %vm1574_vm12, %v4621_v53, %v6319_v6  ;;  %v11131_v6 = vld [vmem:[#allocation29_spill] sm:$0xff] }
 0x738   : > { %v5068_v19 = vpop.f32.mrf.mxu1  ;;  %v6328_v3 = vunpack.i.l.bf16 %v11131_v6 }
 0x739   : > { %6781 = vpow2.f32 %v5300_v28  ;;  %v5069_v41 = vadd.f32 %v5068_v19, %v4956_v17  ;;  %v4685_v17 = vsel %vm1583_vm13, %v4653_v43, %v6704_v47  ;;  %v4710_v19 = vsel %vm1583_vm13, %v4678_v0, %v6674_v46 }
 0x73a   : > { %4933 = vmatmul.f32.vlgmr.msrb.gmra.mxu2 %v4685_v17  ;;  %5008 = vmatmul.f32.gmra.mxu3 %v4710_v19  ;;  %v6693_v46 = vunpack.i.l.bf16 %v10477_v27  ;;  %v4959_v47 = vadd.f32 %v10507_v57, %v4958_v1  ;;  %v6703_v43 = vunpack.i.l.bf16 %v6702_v58  ;;  %v10575_v19 = vpop.f32.mrf.mxu0 }
 0x73b   : > { %v5182_v28 = vadd.f32 %v10396_v21, %v5069_v41  ;;  %5115 = vmatmul.f32.gmra.mxu1 %v4804_v5  ;;  %v4622_v21 = vsel %vm1565_vm11, %v11120_v37, %v6309_v4  ;;  %v4741_v37 = vsel %vm1565_vm11, %v10041_v23, %v6678_v31  ;;  %v6684_v4 = vunpack.i.h.bf16 %v10458_v51 }
 0x73c   : > { %v4654_v58 = vsel %vm1574_vm12, %v4622_v21, %v6328_v3  ;;  %v6664_v3 = vunpack.i.h.bf16 %v10494_v36  ;;  %v4774_v36 = vsel %vm1574_vm12, %v4742_v42, %v6689_v15 }
 0x73d   : > { %v5263_v8 = vsub.f32 0.0, %v5182_v28  ;;  %v4961_v44 = vpop.f32.mrf.mxu3  ;;  %v6708_v28 = vunpack.i.l.bf16 %v10500_v56  ;;  %v4686_v23 = vsel %vm1583_vm13, %v4654_v58, %v6693_v46  ;;  %v4773_v31 = vsel %vm1574_vm12, %v4741_v37, %v6684_v4 }
 0x73e   : > { %v10562_v40 = vpop.permute.xlu0 %6711  ;;  %v4805_v5 = vsel %vm1583_vm13, %v4773_v31, %v6703_v43  ;;  %v4962_v21 = vadd.f32 %v10507_v57, %v4961_v44  ;;  %v6694_v4 = vunpack.i.h.bf16 %v10477_v27  ;;  %v4648_v58 = vsel %vm1565_vm11, %v10007_v35, %v6664_v3 }
 0x73f   : > { %v6782_v53 = vpop.eup %6781  ;;  %v5302_v41 = vmul.f32 1.442695, %v5263_v8  ;;  %v10573_v1 = vpop.permute.xlu1 %6716  ;;  %v4711_v51 = vsel %vm1583_vm13, %v4679_v26, %v6708_v28  ;;  %v6709_v26 = vunpack.i.h.bf16 %v10500_v56  ;;  %v6699_v3 = vunpack.i.h.bf16 %v10538_v60 }
 0x740   : > { %v10566_v45 = vadd.f32 1.0, %v6782_v53  ;;  %v5071_v0 = vpop.f32.mrf.mxu1  ;;  %v6718_v10 = vunpack.i.l.bf16 %v10573_v1 }
 0x741   : > { %6783 = vpow2.f32 %v5302_v41  ;;  %v5072_v17 = vadd.f32 %v5071_v0, %v4959_v47  ;;  %v4806_v56 = vsel %vm1583_vm13, %v4774_v36, %v6709_v26 }
 0x742   : > { %6785 = vrcp.f32 %v10566_v45  ;;  %4936 = vmatmul.f32.gmra.mxu2 %v4686_v23  ;;  %5011 = vmatmul.f32.gmra.mxu3 %v4711_v51  ;;  %v5483_v23 = vand.u32 2147483647, %v10566_v45  ;;  %v5485_v27 = vand.u32 2147483648, %v10566_v45  ;;  %v11132_v51 = vld [vmem:[#allocation31_spill] sm:$0xff]  ;;  %v4680_v15 = vsel %vm1574_vm12, %v4648_v58, %v6718_v10 }
 0x743   : > { %v5185_v38 = vadd.f32 %v10488_v14, %v5072_v17  ;;  %5118 = vmatmul.f32.gmra.mxu1 %v4805_v5  ;;  %v10589_v14 = vpop.permute.xlu2 %6741  ;;  %v4712_v35 = vsel %vm1583_vm13, %v4680_v15, %v6694_v4  ;;  %vm5479_vm2 = vweird.f32 %v10566_v45 }
 0x744   : > { %vm5484_vm4 = vcmp.eq.f32.partialorder %v5483_v23, 8.507059e+37 }
 0x745   : > { %v5264_v8 = vsub.f32 0.0, %v5185_v38  ;;  %v10586_v22 = vpop.f32.mrf.mxu3  ;;  %v10612_v38 = vpop.f32.mrf.mxu0 }
 0x746   : > { %v10592_v46 = vpop.permute.xlu0 %6731 }
 0x747   : > { %v6784_v6 = vpop.eup %6783  ;;  %v5304_v53 = vmul.f32 1.442695, %v5264_v8  ;;  %v6734_v43 = vunpack.i.h.bf16 %v10592_v46  ;;  %v10606_v28 = vpop.permute.xlu1 %6721 }
 0x748   : > { %v6786_v47 = vpop.eup %6785  ;;  %v10596_v41 = vadd.f32 1.0, %v6784_v6  ;;  %v5074_v0 = vpop.f32.mrf.mxu1  ;;  %v6738_v6 = vunpack.i.l.bf16 %v10555_v13 }
 0x749   : > { %v5475_v44 = vmul.f32 %v6786_v47, %v10566_v45  ;;  %6787 = vpow2.f32 %v5304_v53  ;;  %v5075_v37 = vadd.f32 %v5074_v0, %v4962_v21  ;;  %v4687_v31 = vsel %vm1583_vm13, %v11132_v51, %v6734_v43 }
 0x74a   : > { %6789 = vrcp.f32 %v10596_v41  ;;  %vm5480_vm1 = vweird.f32 %v6786_v47  ;;  %4939 = vmatmul.f32.gmra.mxu2 %v4687_v31  ;;  %v6698_v21 = vunpack.i.l.bf16 %v10538_v60  ;;  %5014 = vmatmul.f32.gmra.mxu3 %v4712_v35  ;;  %v6713_v43 = vunpack.i.l.bf16 %v10562_v40 }
 0x74b   : > { %v5476_v17 = vsub.f32 1.0, %v5475_v44  ;;  %v5188_v61 = vadd.f32 %v10511_v59, %v5075_v37  ;;  %5121 = vmatmul.f32.gmra.mxu1 %v4806_v56  ;;  %v6739_v59 = vunpack.i.h.bf16 %v10555_v13  ;;  %vm5481_vm3 = vmor %vm5479_vm2, %vm5480_vm1  ;;  %v5486_v44 = vor.u32 1.1754944e-38, %v5485_v27  ;;  %v10644_v56 = vpop.permute.xlu2 %6766 }
 0x74c   : > { %v6743_v37 = vunpack.i.l.bf16 %v10589_v14  ;;  %v6719_v31 = vunpack.i.h.bf16 %v10573_v1  ;;  %v4965_v27 = vadd.f32 %v10507_v57, %v10586_v22  ;;  %v5500_v23 = vand.u32 2147483648, %v10596_v41 }
 0x74d   : > { %v5477_v5 = vmul.f32 %v6786_v47, %v5476_v17  ;;  %v5265_v8 = vsub.f32 0.0, %v5188_v61  ;;  %v4967_v53 = vpop.f32.mrf.mxu3  ;;  %v10641_v17 = vsel %vm1565_vm11, %v10175_v30, %v6728_v7  ;;  %v6723_v30 = vunpack.i.l.bf16 %v10606_v28 }
 0x74e   : > { %v10626_v36 = vpop.permute.xlu0 %6746  ;;  %v4743_v7 = vsel %vm1565_vm11, %v10151_v62, %v6713_v43  ;;  %v4688_v22 = vsel %vm1583_vm13, %v9920_v54, %v6743_v37  ;;  %vm5494_vm6 = vweird.f32 %v10596_v41  ;;  %v4649_v43 = vsel %vm1565_vm11, %v10088_v39, %v6698_v21 }
 0x74f   : > { %v6788_v42 = vpop.eup %6787  ;;  %v5478_v10 = vadd.f32 %v6786_v47, %v5477_v5  ;;  %v5306_v0 = vmul.f32 1.442695, %v5265_v8  ;;  %v6744_v5 = vunpack.i.h.bf16 %v10589_v14  ;;  %v10658_v1 = vpop.permute.xlu1 %6751  ;;  %v6724_v37 = vunpack.i.h.bf16 %v10606_v28 }
 0x750   : > { %v6790_v26 = vpop.eup %6789  ;;  %v10637_v4 = vadd.f32 1.0, %v6788_v42  ;;  %v5077_v45 = vpop.f32.mrf.mxu1  ;;  %v5498_v42 = vand.u32 2147483647, %v10596_v41 }
 0x751   : > { %v5482_v61 = vsel %vm5481_vm3, %v6786_v47, %v5478_v10  ;;  %v5490_v58 = vmul.f32 %v6790_v26, %v10596_v41  ;;  %6791 = vpow2.f32 %v5306_v0  ;;  %v6733_v47 = vunpack.i.l.bf16 %v10592_v46  ;;  %v10664_v46 = vpop.f32.mrf.mxu0 }
 0x752   : > { %v5487_v51 = vsel %vm5484_vm4, %v5486_v44, %v5482_v61  ;;  %6793 = vrcp.f32 %v10637_v4  ;;  %v5078_v8 = vadd.f32 %v5077_v45, %v4965_v27  ;;  %vm5495_vm5 = vweird.f32 %v6790_v26  ;;  %4942 = vmatmul.f32.gmra.mxu2 %v4688_v22 }
 0x753   : > { %5871 = vst.msk [vmem:[%s10633_s16 + $0x30] sm:$0xff] %vm5864_vm0, %v5487_v51  ;;  %v5491_v15 = vsub.f32 1.0, %v5490_v58  ;;  %v6714_v10 = vunpack.i.h.bf16 %v10562_v40  ;;  %v4775_v0 = vsel %vm1574_vm12, %v4743_v7, %v6719_v31  ;;  %v4681_v45 = vsel %vm1574_vm12, %v4649_v43, %v6723_v30  ;;  %vm5496_vm7 = vmor %vm5494_vm6, %vm5495_vm5 }
 0x754   : > { %v5191_v62 = vadd.f32 %v10536_v9, %v5078_v8  ;;  %v4807_v40 = vsel %vm1583_vm13, %v4775_v0, %v6733_v47  ;;  %v5501_v41 = vor.u32 1.1754944e-38, %v5500_v23  ;;  %v4713_v39 = vsel %vm1583_vm13, %v4681_v45, %v6738_v6  ;;  %v10688_v8 = vpop.permute.xlu2 %6771 }
 0x755   : > { %v5492_v35 = vmul.f32 %v6790_v26, %v5491_v15  ;;  %v4970_v61 = vpop.f32.mrf.mxu3  ;;  %5124 = vmatmul.f32.gmra.mxu1 %v4807_v40  ;;  %vm5499_vm8 = vcmp.eq.f32.partialorder %v5498_v42, 8.507059e+37  ;;  %v4968_v15 = vadd.f32 %v10507_v57, %v4967_v53  ;;  %5017 = vmatmul.f32.gmra.mxu3 %v4713_v39  ;;  %v6753_v47 = vunpack.i.l.bf16 %v10658_v1 }
 0x756   : > { %v5266_v51 = vsub.f32 0.0, %v5191_v62  ;;  %v10678_v21 = vpop.permute.xlu0 %6761  ;;  %v6768_v23 = vunpack.i.l.bf16 %v10644_v56  ;;  %v4744_v22 = vsel %vm1565_vm11, %v10156_v52, %v6714_v10  ;;  %v5515_v53 = vand.u32 2147483648, %v10637_v4  ;;  %v11133_v10 = vld [vmem:[#allocation32_spill] sm:$0xff] }
 0x757   : > { %v6792_v44 = vpop.eup %6791  ;;  %v5493_v54 = vadd.f32 %v6790_v26, %v5492_v35  ;;  %v6764_v7 = vunpack.i.h.bf16 %v10678_v21  ;;  %v4650_v42 = vsel %vm1565_vm11, %v10110_v18, %v6699_v3  ;;  %v4776_v62 = vsel %vm1574_vm12, %v4744_v22, %v6724_v37 }
 0x758   : > { %v6794_v58 = vpop.eup %6793  ;;  %v10675_v9 = vadd.f32 1.0, %v6792_v44  ;;  %v5080_v31 = vpop.f32.mrf.mxu1  ;;  %v5513_v0 = vand.u32 2147483647, %v10637_v4  ;;  %v6773_v44 = vunpack.i.l.bf16 %v10688_v8  ;;  %v4682_v60 = vsel %vm1574_vm12, %v4650_v42, %v6753_v47 }
 0x759   : > { %v5497_v28 = vsel %vm5496_vm7, %v6790_v26, %v5493_v54  ;;  %v5505_v27 = vmul.f32 %v6794_v58, %v10637_v4  ;;  %v5308_v26 = vmul.f32 1.442695, %v5266_v51  ;;  %v5081_v35 = vadd.f32 %v5080_v31, %v4968_v15  ;;  %v10700_v54 = vpop.permute.xlu1 %6756  ;;  %v10711_v51 = vpop.f32.mrf.mxu0 }
 0x75a   : > { %v5502_v30 = vsel %vm5499_vm8, %v5501_v41, %v5497_v28  ;;  %6795 = vrcp.f32 %v10675_v9  ;;  %vm5510_vm9 = vweird.f32 %v6794_v58  ;;  %v4689_v45 = vsel %vm1583_vm13, %v11133_v10, %v6764_v7 }
 0x75b   : > { %5872 = vst.msk [vmem:[%s10633_s16 + $0x38] sm:$0xff] %vm5864_vm0, %v5502_v30  ;;  %v5506_v6 = vsub.f32 1.0, %v5505_v27  ;;  %6797 = vpow2.f32 %v5308_v26  ;;  %v5194_v52 = vadd.f32 %v10575_v19, %v5081_v35  ;;  %vm5509_vm10 = vweird.f32 %v10637_v4  ;;  %4945 = vmatmul.f32.gmra.mxu2 %v4689_v45 }
 0x75c   : > { %v6748_v18 = vunpack.i.l.bf16 %v10626_v36  ;;  %v4808_v3 = vsel %vm1583_vm13, %v4776_v62, %v6739_v59  ;;  %vm5511_vm14 = vmor %vm5509_vm10, %vm5510_vm9  ;;  %v5516_v19 = vor.u32 1.1754944e-38, %v5515_v53  ;;  %v4971_v39 = vadd.f32 %v10507_v57, %v4970_v61 }
 0x75d   : > { %v5507_v43 = vmul.f32 %v6794_v58, %v5506_v6  ;;  %v4973_v37 = vpop.f32.mrf.mxu3  ;;  %v5267_v31 = vsub.f32 0.0, %v5194_v52  ;;  %v4714_v4 = vsel %vm1583_vm13, %v4682_v60, %v6744_v5  ;;  %5127 = vmatmul.f32.gmra.mxu1 %v4808_v3  ;;  %vm5514_vm15 = vcmp.eq.f32.partialorder %v5513_v0, 8.507059e+37 }
 0x75e   : > { %v6758_v27 = vunpack.i.l.bf16 %v10700_v54  ;;  %5020 = vmatmul.f32.gmra.mxu3 %v4714_v4  ;;  %v6754_v30 = vunpack.i.h.bf16 %v10658_v1  ;;  %v6749_v5 = vunpack.i.h.bf16 %v10626_v36  ;;  %v6763_v6 = vunpack.i.l.bf16 %v10678_v21  ;;  %v11134_v36 = vld [vmem:[#allocation33_spill] sm:$0xff]  ;;  %v4397_v45 = vpop.permute.xlu0 %4396 }
 0x75f   : > { %v5508_v40 = vadd.f32 %v6794_v58, %v5507_v43  ;;  %v5310_v47 = vmul.f32 1.442695, %v5267_v31  ;;  %v5530_v26 = vand.u32 2147483648, %v10675_v9  ;;  %v5528_v35 = vand.u32 2147483647, %v10675_v9 }
 0x760   : > { %v6796_v41 = vpop.eup %6795  ;;  %v5083_v28 = vpop.f32.mrf.mxu1  ;;  %v4683_v42 = vsel %vm1574_vm12, %v10641_v17, %v6758_v27  ;;  %vm5524_vm2 = vweird.f32 %v10675_v9  ;;  %v4974_v43 = vadd.f32 %v10507_v57, %v4973_v37  ;;  %v6729_v10 = vunpack.i.h.bf16 %v10525_v33 }
 0x761   : > { %v5512_v13 = vsel %vm5511_vm14, %v6794_v58, %v5508_v40  ;;  %v5520_v59 = vmul.f32 %v6796_v41, %v10675_v9  ;;  %v5084_v7 = vadd.f32 %v5083_v28, %v4971_v39  ;;  %v6798_v61 = vpop.eup %6797  ;;  %v4745_v58 = vsel %vm1565_vm11, %v10224_v49, %v6748_v18  ;;  %v4163_v39 = vpop.permute.xlu1 %4162 }
 0x762   : > { %v5517_v15 = vsel %vm5514_vm15, %v5516_v19, %v5512_v13  ;;  %v10728_v22 = vadd.f32 1.0, %v6798_v61  ;;  %6799 = vpow2.f32 %v5310_v47  ;;  %vm5525_vm1 = vweird.f32 %v6796_v41  ;;  %v10746_v19 = vpop.f32.mrf.mxu0 }
 0x763   : > { %5873 = vst.msk [vmem:[%s10633_s16 + $0x40] sm:$0xff] %vm5864_vm0, %v5517_v15  ;;  %v5521_v14 = vsub.f32 1.0, %v5520_v59  ;;  %v5197_v1 = vadd.f32 %v10612_v38, %v5084_v7  ;;  %v4690_v49 = vsel %vm1583_vm13, %v11134_v36, %v6773_v44  ;;  %v4777_v21 = vsel %vm1574_vm12, %v4745_v58, %v6754_v30  ;;  %vm5526_vm3 = vmor %vm5524_vm2, %vm5525_vm1 }
 0x764   : > { %6801 = vrcp.f32 %v10728_v22  ;;  %4948 = vmatmul.f32.gmra.mxu2 %v4690_v49  ;;  %v4809_v0 = vsel %vm1583_vm13, %v4777_v21, %v6763_v6  ;;  %v5531_v17 = vor.u32 1.1754944e-38, %v5530_v26  ;;  %v6759_v9 = vunpack.i.h.bf16 %v10700_v54 }
 0x765   : > { %v5522_v53 = vmul.f32 %v6796_v41, %v5521_v14  ;;  %v5268_v38 = vsub.f32 0.0, %v5197_v1  ;;  %v4976_v52 = vpop.f32.mrf.mxu3  ;;  %v4715_v44 = vsel %vm1583_vm13, %v4683_v42, %v6768_v23  ;;  %5130 = vmatmul.f32.gmra.mxu1 %v4809_v0  ;;  %vm5529_vm4 = vcmp.eq.f32.partialorder %v5528_v35, 8.507059e+37 }
 0x766   : > { %5023 = vmatmul.f32.gmra.mxu3 %v4715_v44  ;;  %v4746_v23 = vsel %vm1565_vm11, %v10227_v12, %v6749_v5  ;;  %v4652_v4 = vsel %vm1565_vm11, %v9865_v24, %v6729_v10  ;;  %v6769_v13 = vunpack.i.h.bf16 %v10644_v56  ;;  %v6774_v15 = vunpack.i.h.bf16 %v10688_v8  ;;  %v4586_v1 = vpop.permute.xlu0 %4585  ;;  %v11135_v10 = vld [vmem:[#allocation5_spill] sm:$0xff] }
 0x767   : > { %v5523_v62 = vadd.f32 %v6796_v41, %v5522_v53  ;;  %v5312_v18 = vmul.f32 1.442695, %v5268_v38  ;;  %v4778_v28 = vsel %vm1574_vm12, %v4746_v23, %v6759_v9  ;;  %v4684_v27 = vsel %vm1574_vm12, %v4652_v4, %v4163_v39 }
 0x768   : > { %v5086_v60 = vpop.f32.mrf.mxu1  ;;  %v6800_v37 = vpop.eup %6799  ;;  %v4977_v12 = vadd.f32 %v10507_v57, %v4976_v52  ;;  %v4810_v47 = vsel %vm1583_vm13, %v4778_v28, %v6769_v13  ;;  %v5545_v24 = vand.u32 2147483648, %v10728_v22  ;;  %v4716_v56 = vsel %vm1583_vm13, %v4684_v27, %v6774_v15 }
 0x769   : > { %v5527_v40 = vsel %vm5526_vm3, %v6796_v41, %v5523_v62  ;;  %v5087_v3 = vadd.f32 %v5086_v60, %v4974_v43  ;;  %v10750_v54 = vadd.f32 1.0, %v6800_v37  ;;  %6803 = vpow2.f32 %v5312_v18  ;;  %v4399_v18 = vpop.permute.xlu1 %4398  ;;  %v4493_v28 = vpop.permute.xlu2 %4492 }
 0x76a   : > { %v5532_v33 = vsel %vm5529_vm4, %v5531_v17, %v5527_v40  ;;  %v6802_v41 = vpop.eup %6801  ;;  %v5543_v58 = vand.u32 2147483647, %v10728_v22  ;;  %vm5539_vm6 = vweird.f32 %v10728_v22  ;;  %v4747_v42 = vsel %vm1565_vm11, %v10319_v50, %v4397_v45  ;;  %v10774_v49 = vpop.f32.mrf.mxu0 }
 0x76b   : > { %5874 = vst.msk [vmem:[%s10633_s16 + $0x48] sm:$0xff] %vm5864_vm0, %v5532_v33  ;;  %v5200_v31 = vadd.f32 %v10664_v46, %v5087_v3  ;;  %v5535_v59 = vmul.f32 %v6802_v41, %v10728_v22  ;;  %6805 = vrcp.f32 %v10750_v54  ;;  %vm5540_vm5 = vweird.f32 %v6802_v41 }
 0x76c   : > { %vm5541_vm7 = vmor %vm5539_vm6, %vm5540_vm5  ;;  %v5546_v21 = vor.u32 1.1754944e-38, %v5545_v24  ;;  %vm5544_vm8 = vcmp.eq.f32.partialorder %v5543_v58, 8.507059e+37  ;;  %v4779_v22 = vsel %vm1574_vm12, %v4747_v42, %v11135_v10  ;;  %v5560_v50 = vand.u32 2147483648, %v10750_v54 }
 0x76d   : > { %v5269_v46 = vsub.f32 0.0, %v5200_v31  ;;  %v5536_v30 = vsub.f32 1.0, %v5535_v59  ;;  %v4979_v7 = vpop.f32.mrf.mxu3  ;;  %5133 = vmatmul.f32.gmra.mxu1 %v4810_v47  ;;  %v4811_v9 = vsel %vm1583_vm13, %v4779_v22, %v4586_v1  ;;  %v5558_v40 = vand.u32 2147483647, %v10750_v54 }
 0x76e   : > { %5026 = vmatmul.f32.gmra.mxu3 %v4716_v56  ;;  %vm5554_vm10 = vweird.f32 %v10750_v54  ;;  %v5561_v23 = vor.u32 1.1754944e-38, %v5560_v50  ;;  %v4748_v4 = vsel %vm1565_vm11, %v10339_v16, %v4399_v18  ;;  %v4588_v59 = vpop.permute.xlu0 %4587 }
 0x76f   : > { %v5314_v61 = vmul.f32 1.442695, %v5269_v46  ;;  %v6804_v5 = vpop.eup %6803  ;;  %v5537_v6 = vmul.f32 %v6802_v41, %v5536_v30  ;;  %vm5559_vm15 = vcmp.eq.f32.partialorder %v5558_v40, 8.507059e+37  ;;  %v4780_v47 = vsel %vm1574_vm12, %v4748_v4, %v4493_v28 }
 0x770   : > { %v5089_v14 = vpop.f32.mrf.mxu1  ;;  %v10768_v26 = vadd.f32 1.0, %v6804_v5  ;;  %v4812_v56 = vsel %vm1583_vm13, %v4780_v47, %v4588_v59 }
 0x771   : > { %v5090_v8 = vadd.f32 %v5089_v14, %v4977_v12  ;;  %6807 = vpow2.f32 %v5314_v61  ;;  %v6806_v53 = vpop.eup %6805  ;;  %v5538_v35 = vadd.f32 %v6802_v41, %v5537_v6 }
 0x772   : > { %v5550_v62 = vmul.f32 %v6806_v53, %v10750_v54  ;;  %6809 = vrcp.f32 %v10768_v26  ;;  %vm5555_vm9 = vweird.f32 %v6806_v53  ;;  %v5211_v30 = vpop.f32.mrf.mxu0  ;;  %v5573_v54 = vand.u32 2147483647, %v10768_v26 }
 0x773   : > { %v5203_v36 = vadd.f32 %v10711_v51, %v5090_v8  ;;  %v5542_v43 = vsel %vm5541_vm7, %v6802_v41, %v5538_v35  ;;  %v4980_v51 = vadd.f32 %v10507_v57, %v4979_v7  ;;  %vm5556_vm14 = vmor %vm5554_vm10, %vm5555_vm9  ;;  %v5575_v12 = vand.u32 2147483648, %v10768_v26 }
 0x774   : > { %v5547_v0 = vsel %vm5544_vm8, %v5546_v21, %v5542_v43  ;;  %v5551_v52 = vsub.f32 1.0, %v5550_v62  ;;  %vm5569_vm1 = vweird.f32 %v10768_v26  ;;  %vm5574_vm2 = vcmp.eq.f32.partialorder %v5573_v54, 8.507059e+37 }
 0x775   : > { %v5270_v38 = vsub.f32 0.0, %v5203_v36  ;;  %5875 = vst.msk [vmem:[%s10633_s16 + $0x50] sm:$0xff] %vm5864_vm0, %v5547_v0  ;;  %v4982_v45 = vpop.f32.mrf.mxu3  ;;  %5136 = vmatmul.f32.gmra.mxu1 %v4811_v9 }
 0x776   : > { %v5552_v60 = vmul.f32 %v6806_v53, %v5551_v52  ;;  %v4983_v61 = vadd.f32 %v10507_v57, %v4982_v45 }
 0x777   : > { %v5316_v17 = vmul.f32 1.442695, %v5270_v38  ;;  %v6808_v44 = vpop.eup %6807 }
 0x778   : > { %v5092_v3 = vpop.f32.mrf.mxu1  ;;  %v10786_v37 = vadd.f32 1.0, %v6808_v44  ;;  %v6810_v39 = vpop.eup %6809  ;;  %v5553_v31 = vadd.f32 %v6806_v53, %v5552_v60 }
 0x779   : > { %6811 = vpow2.f32 %v5316_v17  ;;  %v5093_v33 = vadd.f32 %v5092_v3, %v4980_v51  ;;  %v5565_v41 = vmul.f32 %v6810_v39, %v10768_v26  ;;  %vm5570_vm11 = vweird.f32 %v6810_v39 }
 0x77a   : > { %6813 = vrcp.f32 %v10786_v37  ;;  %v5557_v13 = vsel %vm5556_vm14, %v6806_v53, %v5553_v31  ;;  %vm5571_vm12 = vmor %vm5569_vm1, %vm5570_vm11  ;;  %v5576_v53 = vor.u32 1.1754944e-38, %v5575_v12  ;;  %v5590_v43 = vand.u32 2147483648, %v10786_v37  ;;  %v5214_v50 = vpop.f32.mrf.mxu0 }
 0x77b   : > { %v5206_v27 = vadd.f32 %v10746_v19, %v5093_v33  ;;  %v5562_v15 = vsel %vm5559_vm15, %v5561_v23, %v5557_v13  ;;  %v5566_v46 = vsub.f32 1.0, %v5565_v41  ;;  %v5588_v26 = vand.u32 2147483647, %v10786_v37 }
 0x77c   : > { %5876 = vst.msk [vmem:[%s10633_s16 + $0x58] sm:$0xff] %vm5864_vm0, %v5562_v15  ;;  %vm5584_vm3 = vweird.f32 %v10786_v37  ;;  %v5591_v45 = vor.u32 1.1754944e-38, %v5590_v43 }
 0x77d   : > { %v5271_v16 = vsub.f32 0.0, %v5206_v27  ;;  %v5567_v24 = vmul.f32 %v6810_v39, %v5566_v46  ;;  %v4985_v19 = vpop.f32.mrf.mxu3  ;;  %5139 = vmatmul.f32.gmra.mxu1 %v4812_v56  ;;  %vm5589_vm5 = vcmp.eq.f32.partialorder %v5588_v26, 8.507059e+37 }
 0x77e   : > { %v4986_v52 = vadd.f32 %v10507_v57, %v4985_v19 }
 0x77f   : > { %v6812_v7 = vpop.eup %6811  ;;  %v5318_v5 = vmul.f32 1.442695, %v5271_v16  ;;  %v5568_v8 = vadd.f32 %v6810_v39, %v5567_v24 }
 0x780   : > { %v5366_v14 = vadd.f32 1.0, %v6812_v7  ;;  %v5095_v6 = vpop.f32.mrf.mxu1  ;;  %v6814_v58 = vpop.eup %6813 }
 0x781   : > { %v5096_v1 = vadd.f32 %v5095_v6, %v4983_v61  ;;  %v5580_v35 = vmul.f32 %v6814_v58, %v10786_v37  ;;  %v5572_v42 = vsel %vm5571_vm12, %v6810_v39, %v5568_v8  ;;  %vm5585_vm13 = vweird.f32 %v6814_v58 }
 0x782   : > { %6815 = vrcp.f32 %v5366_v14  ;;  %v5577_v36 = vsel %vm5574_vm2, %v5576_v53, %v5572_v42  ;;  %vm5586_vm4 = vmor %vm5584_vm3, %vm5585_vm13  ;;  %v5603_v31 = vand.u32 2147483647, %v5366_v14  ;;  %v5605_v23 = vand.u32 2147483648, %v5366_v14  ;;  %v5217_v16 = vpop.f32.mrf.mxu0 }
 0x783   : > { %6817 = vpow2.f32 %v5318_v5  ;;  %v5581_v21 = vsub.f32 1.0, %v5580_v35  ;;  %v5209_v62 = vadd.f32 %v10774_v49, %v5096_v1  ;;  %5877 = vst.msk [vmem:[%s10633_s16 + $0x60] sm:$0xff] %vm5864_vm0, %v5577_v36  ;;  %vm5599_vm7 = vweird.f32 %v5366_v14 }
 0x784   : > { %vm5604_vm9 = vcmp.eq.f32.partialorder %v5603_v31, 8.507059e+37  ;;  %v5606_v15 = vor.u32 1.1754944e-38, %v5605_v23 }
 0x785   : > { %v5582_v38 = vmul.f32 %v6814_v58, %v5581_v21  ;;  %v5272_v0 = vsub.f32 0.0, %v5209_v62  ;;  %v4988_v10 = vpop.f32.mrf.mxu3 }
 0x786   : > { %v4989_v28 = vadd.f32 %v10507_v57, %v4988_v10 }
 0x787   : > { %v5583_v51 = vadd.f32 %v6814_v58, %v5582_v38  ;;  %v5320_v17 = vmul.f32 1.442695, %v5272_v0 }
 0x788   : > { %v6816_v22 = vpop.eup %6815  ;;  %v5098_v49 = vpop.f32.mrf.mxu1 }
 0x789   : > { %v6818_v9 = vpop.eup %6817  ;;  %v5595_v44 = vmul.f32 %v6816_v22, %v5366_v14  ;;  %v5099_v60 = vadd.f32 %v5098_v49, %v4986_v52  ;;  %v5587_v40 = vsel %vm5586_vm4, %v6814_v58, %v5583_v51  ;;  %6819 = vpow2.f32 %v5320_v17 }
 0x78a   : > { %v5367_v18 = vadd.f32 1.0, %v6818_v9  ;;  %v5592_v3 = vsel %vm5589_vm5, %v5591_v45, %v5587_v40  ;;  %vm5600_vm6 = vweird.f32 %v6816_v22  ;;  %v5220_v0 = vpop.f32.mrf.mxu0 }
 0x78b   : > { %v5596_v33 = vsub.f32 1.0, %v5595_v44  ;;  %v5212_v39 = vadd.f32 %v5211_v30, %v5099_v60  ;;  %5878 = vst.msk [vmem:[%s10633_s16 + $0x68] sm:$0xff] %vm5864_vm0, %v5592_v3  ;;  %vm5601_vm8 = vmor %vm5599_vm7, %vm5600_vm6 }
 0x78c   : > { %6821 = vrcp.f32 %v5367_v18  ;;  %v5620_v19 = vand.u32 2147483648, %v5367_v18  ;;  %v5618_v58 = vand.u32 2147483647, %v5367_v18  ;;  %vm5614_vm14 = vweird.f32 %v5367_v18 }
 0x78d   : > { %v5597_v37 = vmul.f32 %v6816_v22, %v5596_v33  ;;  %v5273_v41 = vsub.f32 0.0, %v5212_v39  ;;  %v4991_v59 = vpop.f32.mrf.mxu3 }
 0x78e   : > { %v4992_v8 = vadd.f32 %v10507_v57, %v4991_v59  ;;  %v5621_v43 = vor.u32 1.1754944e-38, %v5620_v19  ;;  %vm5619_vm11 = vcmp.eq.f32.partialorder %v5618_v58, 8.507059e+37 }
 0x78f   : > { %v5598_v4 = vadd.f32 %v6816_v22, %v5597_v37  ;;  %v5322_v13 = vmul.f32 1.442695, %v5273_v41  ;;  %v6820_v27 = vpop.eup %6819 }
 0x790   : > { %v5101_v46 = vpop.f32.mrf.mxu1  ;;  %v5368_v54 = vadd.f32 1.0, %v6820_v27 }
 0x791   : > { %v5602_v30 = vsel %vm5601_vm8, %v6816_v22, %v5598_v4  ;;  %6823 = vpow2.f32 %v5322_v13  ;;  %v5102_v12 = vadd.f32 %v5101_v46, %v4989_v28 }
 0x792   : > { %v6822_v47 = vpop.eup %6821  ;;  %v5607_v7 = vsel %vm5604_vm9, %v5606_v15, %v5602_v30  ;;  %6825 = vrcp.f32 %v5368_v54  ;;  %v5633_v17 = vand.u32 2147483647, %v5368_v54  ;;  %vm5629_vm12 = vweird.f32 %v5368_v54  ;;  %v5223_v15 = vpop.f32.mrf.mxu0  ;;  %v10821_v30 = vld [vmem:[#allocation2] ss:$0 sm:$0xff] }
 0x793   : > { %5879 = vst.msk [vmem:[%s10633_s16 + $0x70] sm:$0xff] %vm5864_vm0, %v5607_v7  ;;  %v5610_v24 = vmul.f32 %v6822_v47, %v5367_v18  ;;  %v5215_v61 = vadd.f32 %v5214_v50, %v5102_v12  ;;  %vm5615_vm10 = vweird.f32 %v6822_v47  ;;  %v5635_v50 = vand.u32 2147483648, %v5368_v54 }
 0x794   : > { %vm5616_vm15 = vmor %vm5614_vm14, %vm5615_vm10  ;;  %vm5634_vm13 = vcmp.eq.f32.partialorder %v5633_v17, 8.507059e+37 }
 0x795   : > { %v5611_v56 = vsub.f32 1.0, %v5610_v24  ;;  %v5274_v14 = vsub.f32 0.0, %v5215_v61  ;;  %v4994_v1 = vpop.f32.mrf.mxu3  ;;  %v5636_v33 = vor.u32 1.1754944e-38, %v5635_v50 }
 0x796   : > { %v4995_v9 = vadd.f32 %v10507_v57, %v4994_v1 }
 0x797   : > { %v6824_v5 = vpop.eup %6823  ;;  %v5612_v6 = vmul.f32 %v6822_v47, %v5611_v56  ;;  %v5324_v35 = vmul.f32 1.442695, %v5274_v14 }
 0x798   : > { %v5369_v53 = vadd.f32 1.0, %v6824_v5  ;;  %v5104_v42 = vpop.f32.mrf.mxu1  ;;  %v6826_v36 = vpop.eup %6825 }
 0x799   : > { %v5613_v21 = vadd.f32 %v6822_v47, %v5612_v6  ;;  %v5105_v62 = vadd.f32 %v5104_v42, %v4992_v8  ;;  %v5625_v38 = vmul.f32 %v6826_v36, %v5368_v54  ;;  %vm5630_vm1 = vweird.f32 %v6826_v36 }
 0x79a   : > { %6827 = vrcp.f32 %v5369_v53  ;;  %vm5631_vm2 = vmor %vm5629_vm12, %vm5630_vm1  ;;  %v5648_v57 = vand.u32 2147483647, %v5369_v53  ;;  %v5650_v13 = vand.u32 2147483648, %v5369_v53  ;;  %vm5644_vm4 = vweird.f32 %v5369_v53 }
 0x79b   : > { %v5617_v26 = vsel %vm5616_vm15, %v6822_v47, %v5613_v21  ;;  %6829 = vpow2.f32 %v5324_v35  ;;  %v5626_v10 = vsub.f32 1.0, %v5625_v38  ;;  %v5218_v22 = vadd.f32 %v5217_v16, %v5105_v62  ;;  %v5226_v62 = vpop.f32.mrf.mxu0 }
 0x79c   : > { %v5622_v52 = vsel %vm5619_vm11, %v5621_v43, %v5617_v26  ;;  %vm5649_vm6 = vcmp.eq.f32.partialorder %v5648_v57, 8.507059e+37  ;;  %v5651_v16 = vor.u32 1.1754944e-38, %v5650_v13 }
 0x79d   : > { %5880 = vst.msk [vmem:[%s10633_s16 + $0x78] sm:$0xff] %vm5864_vm0, %v5622_v52  ;;  %v5627_v51 = vmul.f32 %v6826_v36, %v5626_v10  ;;  %v5275_v49 = vsub.f32 0.0, %v5218_v22  ;;  %v4997_v45 = vpop.f32.mrf.mxu3 }
 0x79e   : > { %v4998_v54 = vadd.f32 %v10821_v30, %v4997_v45 }
 0x79f   : > { %v5628_v60 = vadd.f32 %v6826_v36, %v5627_v51  ;;  %v5326_v40 = vmul.f32 1.442695, %v5275_v49 }
 0x7a0   : > { %v6828_v44 = vpop.eup %6827  ;;  %v5107_v18 = vpop.f32.mrf.mxu1 }
 0x7a1   : > { %v6830_v3 = vpop.eup %6829  ;;  %v5640_v39 = vmul.f32 %v6828_v44, %v5369_v53  ;;  %v5108_v31 = vadd.f32 %v5107_v18, %v4995_v9  ;;  %v5632_v23 = vsel %vm5631_vm2, %v6826_v36, %v5628_v60  ;;  %6831 = vpow2.f32 %v5326_v40 }
 0x7a2   : > { %v5370_v37 = vadd.f32 1.0, %v6830_v3  ;;  %v5637_v41 = vsel %vm5634_vm13, %v5636_v33, %v5632_v23  ;;  %vm5645_vm3 = vweird.f32 %v6828_v44 }
 0x7a3   : > { %v5641_v4 = vsub.f32 1.0, %v5640_v39  ;;  %v5221_v28 = vadd.f32 %v5220_v0, %v5108_v31  ;;  %5881 = vst.msk [vmem:[%s10633_s16 + $0x80] sm:$0xff] %vm5864_vm0, %v5637_v41  ;;  %vm5646_vm5 = vmor %vm5644_vm4, %vm5645_vm3 }
 0x7a4   : > { %6833 = vrcp.f32 %v5370_v37  ;;  %v5665_v1 = vand.u32 2147483648, %v5370_v37  ;;  %v5663_v36 = vand.u32 2147483647, %v5370_v37  ;;  %vm5659_vm8 = vweird.f32 %v5370_v37 }
 0x7a5   : > { %v5642_v59 = vmul.f32 %v6828_v44, %v5641_v4  ;;  %v5276_v27 = vsub.f32 0.0, %v5221_v28  ;;  %v5000_v56 = vpop.f32.mrf.mxu3  ;;  %v5229_v4 = vpop.f32.mrf.mxu0 }
 0x7a6   : > { %v5001_v21 = vadd.f32 %v10821_v30, %v5000_v56  ;;  %v5666_v22 = vor.u32 1.1754944e-38, %v5665_v1  ;;  %vm5664_vm10 = vcmp.eq.f32.partialorder %v5663_v36, 8.507059e+37 }
 0x7a7   : > { %v5643_v46 = vadd.f32 %v6828_v44, %v5642_v59  ;;  %v5328_v12 = vmul.f32 1.442695, %v5276_v27  ;;  %v6832_v47 = vpop.eup %6831 }
 0x7a8   : > { %v5110_v7 = vpop.f32.mrf.mxu1  ;;  %v5371_v61 = vadd.f32 1.0, %v6832_v47 }
 0x7a9   : > { %v5647_v24 = vsel %vm5646_vm5, %v6828_v44, %v5643_v46  ;;  %6835 = vpow2.f32 %v5328_v12  ;;  %v5111_v19 = vadd.f32 %v5110_v7, %v4998_v54 }
 0x7aa   : > { %v6834_v14 = vpop.eup %6833  ;;  %v5652_v5 = vsel %vm5649_vm6, %v5651_v16, %v5647_v24  ;;  %6837 = vrcp.f32 %v5371_v61  ;;  %v5680_v44 = vand.u32 2147483648, %v5371_v61  ;;  %v5678_v40 = vand.u32 2147483647, %v5371_v61 }
 0x7ab   : > { %5882 = vst.msk [vmem:[%s10633_s16 + $0x88] sm:$0xff] %vm5864_vm0, %v5652_v5  ;;  %v5655_v6 = vmul.f32 %v6834_v14, %v5370_v37  ;;  %v5224_v58 = vadd.f32 %v5223_v15, %v5111_v19  ;;  %vm5660_vm7 = vweird.f32 %v6834_v14  ;;  %vm5674_vm15 = vweird.f32 %v5371_v61 }
 0x7ac   : > { %vm5661_vm9 = vmor %vm5659_vm8, %vm5660_vm7  ;;  %v5681_v23 = vor.u32 1.1754944e-38, %v5680_v44  ;;  %vm5679_vm1 = vcmp.eq.f32.partialorder %v5678_v40, 8.507059e+37 }
 0x7ad   : > { %v5656_v8 = vsub.f32 1.0, %v5655_v6  ;;  %v5277_v53 = vsub.f32 0.0, %v5224_v58  ;;  %v5003_v17 = vpop.f32.mrf.mxu3  ;;  %v5232_v36 = vpop.f32.mrf.mxu0 }
 0x7ae   : > { %v5004_v41 = vadd.f32 %v10821_v30, %v5003_v17 }
 0x7af   : > { %v6836_v35 = vpop.eup %6835  ;;  %v5657_v42 = vmul.f32 %v6834_v14, %v5656_v8  ;;  %v5330_v38 = vmul.f32 1.442695, %v5277_v53 }
 0x7b0   : > { %v5372_v43 = vadd.f32 1.0, %v6836_v35  ;;  %v5113_v26 = vpop.f32.mrf.mxu1  ;;  %v6838_v0 = vpop.eup %6837 }
 0x7b1   : > { %v5658_v52 = vadd.f32 %v6834_v14, %v5657_v42  ;;  %v5114_v10 = vadd.f32 %v5113_v26, %v5001_v21  ;;  %v5670_v50 = vmul.f32 %v6838_v0, %v5371_v61  ;;  %vm5675_vm14 = vweird.f32 %v6838_v0 }
 0x7b2   : > { %6839 = vrcp.f32 %v5372_v43  ;;  %vm5676_vm11 = vmor %vm5674_vm15, %vm5675_vm14  ;;  %v5695_v46 = vand.u32 2147483648, %v5372_v43  ;;  %v5693_v12 = vand.u32 2147483647, %v5372_v43  ;;  %vm5689_vm2 = vweird.f32 %v5372_v43 }
 0x7b3   : > { %v5662_v51 = vsel %vm5661_vm9, %v6834_v14, %v5658_v52  ;;  %6841 = vpow2.f32 %v5330_v38  ;;  %v5671_v9 = vsub.f32 1.0, %v5670_v50  ;;  %v5227_v45 = vadd.f32 %v5226_v62, %v5114_v10 }
 0x7b4   : > { %v5667_v49 = vsel %vm5664_vm10, %v5666_v22, %v5662_v51  ;;  %v5696_v19 = vor.u32 1.1754944e-38, %v5695_v46  ;;  %vm5694_vm3 = vcmp.eq.f32.partialorder %v5693_v12, 8.507059e+37 }
 0x7b5   : > { %5883 = vst.msk [vmem:[%s10633_s16 + $0x90] sm:$0xff] %vm5864_vm0, %v5667_v49  ;;  %v5672_v60 = vmul.f32 %v6838_v0, %v5671_v9  ;;  %v5278_v18 = vsub.f32 0.0, %v5227_v45  ;;  %v5006_v47 = vpop.f32.mrf.mxu3 }
 0x7b6   : > { %v5007_v42 = vadd.f32 %v10821_v30, %v5006_v47 }
 0x7b7   : > { %v5673_v33 = vadd.f32 %v6838_v0, %v5672_v60  ;;  %v5332_v39 = vmul.f32 1.442695, %v5278_v18 }
 0x7b8   : > { %v6840_v3 = vpop.eup %6839  ;;  %v5116_v13 = vpop.f32.mrf.mxu1 }
 0x7b9   : > { %v6842_v31 = vpop.eup %6841  ;;  %v5685_v37 = vmul.f32 %v6840_v3, %v5372_v43  ;;  %v5677_v28 = vsel %vm5676_vm11, %v6838_v0, %v5673_v33  ;;  %6843 = vpow2.f32 %v5332_v39  ;;  %v5117_v15 = vadd.f32 %v5116_v13, %v5004_v41 }
 0x7ba   : > { %v5373_v57 = vadd.f32 1.0, %v6842_v31  ;;  %v5682_v59 = vsel %vm5679_vm1, %v5681_v23, %v5677_v28  ;;  %vm5690_vm12 = vweird.f32 %v6840_v3 }
 0x7bb   : > { %v5686_v27 = vsub.f32 1.0, %v5685_v37  ;;  %5884 = vst.msk [vmem:[%s10633_s16 + $0x98] sm:$0xff] %vm5864_vm0, %v5682_v59  ;;  %v5230_v16 = vadd.f32 %v5229_v4, %v5117_v15  ;;  %vm5691_vm13 = vmor %vm5689_vm2, %vm5690_vm12  ;;  %v5235_v4 = vpop.f32.mrf.mxu0 }
 0x7bc   : > { %6845 = vrcp.f32 %v5373_v57  ;;  %v5708_v26 = vand.u32 2147483647, %v5373_v57  ;;  %v5710_v0 = vand.u32 2147483648, %v5373_v57  ;;  %vm5704_vm5 = vweird.f32 %v5373_v57 }
 0x7bd   : > { %v5687_v54 = vmul.f32 %v6840_v3, %v5686_v27  ;;  %v5279_v24 = vsub.f32 0.0, %v5230_v16  ;;  %v4934_v61 = vpop.f32.mrf.mxu2 }
 0x7be   : > { %v4935_v14 = vadd.f32 %v10821_v30, %v4934_v61  ;;  %vm5709_vm7 = vcmp.eq.f32.partialorder %v5708_v26, 8.507059e+37  ;;  %v5711_v44 = vor.u32 1.1754944e-38, %v5710_v0 }
 0x7bf   : > { %v5688_v7 = vadd.f32 %v6840_v3, %v5687_v54  ;;  %v6844_v56 = vpop.eup %6843  ;;  %v5334_v58 = vmul.f32 1.442695, %v5279_v24 }
 0x7c0   : > { %v10833_v6 = vadd.f32 1.0, %v6844_v56  ;;  %v5048_v53 = vadd.f32 %v10416_v20, %v4935_v14  ;;  %v5119_v62 = vpop.f32.mrf.mxu1  ;;  %v5009_v20 = vpop.f32.mrf.mxu3 }
 0x7c1   : > { %v5692_v5 = vsel %vm5691_vm13, %v6840_v3, %v5688_v7  ;;  %v5120_v38 = vadd.f32 %v5119_v62, %v5007_v42  ;;  %v5010_v41 = vadd.f32 %v10821_v30, %v5009_v20 }
 0x7c2   : > { %v6846_v8 = vpop.eup %6845  ;;  %v5697_v1 = vsel %vm5694_vm3, %v5696_v19, %v5692_v5  ;;  %6847 = vrcp.f32 %v10833_v6  ;;  %v5161_v21 = vadd.f32 %v10075_v48, %v5048_v53  ;;  %v5723_v23 = vand.u32 2147483647, %v10833_v6 }
 0x7c3   : > { %5885 = vst.msk [vmem:[%s10633_s16 + $0xa0] sm:$0xff] %vm5864_vm0, %v5697_v1  ;;  %v5700_v35 = vmul.f32 %v6846_v8, %v5373_v57  ;;  %6849 = vpow2.f32 %v5334_v58  ;;  %vm5705_vm4 = vweird.f32 %v6846_v8  ;;  %v5233_v22 = vadd.f32 %v5232_v36, %v5120_v38  ;;  %v5238_v53 = vpop.f32.mrf.mxu0 }
 0x7c4   : > { %v5256_v52 = vsub.f32 0.0, %v5161_v21  ;;  %vm5706_vm6 = vmor %vm5704_vm5, %vm5705_vm4  ;;  %v5725_v37 = vand.u32 2147483648, %v10833_v6  ;;  %vm5719_vm9 = vweird.f32 %v10833_v6  ;;  %vm5724_vm14 = vcmp.eq.f32.partialorder %v5723_v23, 8.507059e+37 }
 0x7c5   : > { %v5701_v43 = vsub.f32 1.0, %v5700_v35  ;;  %v4937_v51 = vpop.f32.mrf.mxu2  ;;  %v5280_v9 = vsub.f32 0.0, %v5233_v22 }
 0x7c6   : > { %v5288_v50 = vmul.f32 1.442695, %v5256_v52  ;;  %v4938_v45 = vadd.f32 %v10821_v30, %v4937_v51  ;;  %v5726_v46 = vor.u32 1.1754944e-38, %v5725_v37 }
 0x7c7   : > { %v5702_v10 = vmul.f32 %v6846_v8, %v5701_v43  ;;  %v5336_v3 = vmul.f32 1.442695, %v5280_v9 }
 0x7c8   : > { %v6848_v17 = vpop.eup %6847  ;;  %6851 = vpow2.f32 %v5288_v50  ;;  %v5051_v33 = vadd.f32 %v10429_v11, %v4938_v45  ;;  %v5122_v13 = vpop.f32.mrf.mxu1 }
 0x7c9   : > { %v5703_v49 = vadd.f32 %v6846_v8, %v5702_v10  ;;  %v6850_v48 = vpop.eup %6849  ;;  %v5715_v60 = vmul.f32 %v6848_v17, %v10833_v6  ;;  %vm5720_vm8 = vweird.f32 %v6848_v17  ;;  %v5123_v59 = vadd.f32 %v5122_v13, %v5010_v41  ;;  %v5012_v12 = vpop.f32.mrf.mxu3 }
 0x7ca   : > { %v5375_v18 = vadd.f32 1.0, %v6850_v48  ;;  %v5164_v57 = vadd.f32 %v10124_v55, %v5051_v33  ;;  %vm5721_vm10 = vmor %vm5719_vm9, %vm5720_vm8 }
 0x7cb   : > { %v5707_v40 = vsel %vm5706_vm6, %v6846_v8, %v5703_v49  ;;  %v5716_v31 = vsub.f32 1.0, %v5715_v60  ;;  %v5236_v47 = vadd.f32 %v5235_v4, %v5123_v59  ;;  %v5241_v41 = vpop.f32.mrf.mxu0 }
 0x7cc   : > { %v5712_v39 = vsel %vm5709_vm7, %v5711_v44, %v5707_v40  ;;  %6853 = vrcp.f32 %v5375_v18  ;;  %v5257_v15 = vsub.f32 0.0, %v5164_v57  ;;  %v5738_v8 = vand.u32 2147483647, %v5375_v18 }
 0x7cd   : > { %5886 = vst.msk [vmem:[%s10633_s16 + $0xa8] sm:$0xff] %vm5864_vm0, %v5712_v39  ;;  %v5717_v28 = vmul.f32 %v6848_v17, %v5716_v31  ;;  %6855 = vpow2.f32 %v5336_v3  ;;  %v4940_v19 = vpop.f32.mrf.mxu2  ;;  %v5281_v5 = vsub.f32 0.0, %v5236_v47  ;;  %v5740_v1 = vand.u32 2147483648, %v5375_v18 }
 0x7ce   : > { %v6852_v11 = vpop.eup %6851  ;;  %v5290_v7 = vmul.f32 1.442695, %v5257_v15  ;;  %v4941_v6 = vadd.f32 %v10821_v30, %v4940_v19  ;;  %vm5734_vm11 = vweird.f32 %v5375_v18  ;;  %vm5739_vm12 = vcmp.eq.f32.partialorder %v5738_v8, 8.507059e+37  ;;  %v11136_v8 = vld [vmem:[#allocation13_spill] sm:$0xff] }
 0x7cf   : > { %v5718_v27 = vadd.f32 %v6848_v17, %v5717_v28  ;;  %v10851_v54 = vadd.f32 1.0, %v6852_v11  ;;  %v5338_v42 = vmul.f32 1.442695, %v5281_v5  ;;  %v5741_v26 = vor.u32 1.1754944e-38, %v5740_v1 }
 0x7d0   : > { %v5054_v36 = vadd.f32 %v10448_v63, %v4941_v6 }
 0x7d1   : > { %v5722_v16 = vsel %vm5721_vm10, %v6848_v17, %v5718_v27  ;;  %6857 = vrcp.f32 %v10851_v54  ;;  %v5015_v10 = vpop.f32.mrf.mxu3  ;;  %v5395_v51 = vand.u32 2147483648, %v10851_v54  ;;  %v5013_v17 = vadd.f32 %v10821_v30, %v5012_v12 }
 0x7d2   : > { %v6854_v24 = vpop.eup %6853  ;;  %v5727_v61 = vsel %vm5724_vm14, %v5726_v46, %v5722_v16  ;;  %6859 = vpow2.f32 %v5290_v7  ;;  %v5167_v52 = vadd.f32 %v10177_v34, %v5054_v36  ;;  %v5125_v49 = vpop.f32.mrf.mxu1  ;;  %v5393_v45 = vand.u32 2147483647, %v10851_v54 }
 0x7d3   : > { %v6856_v55 = vpop.eup %6855  ;;  %5887 = vst.msk [vmem:[%s10633_s16 + $0xb0] sm:$0xff] %vm5864_vm0, %v5727_v61  ;;  %v5730_v56 = vmul.f32 %v6854_v24, %v5375_v18  ;;  %vm5735_vm15 = vweird.f32 %v6854_v24  ;;  %vm5389_vm13 = vweird.f32 %v10851_v54  ;;  %v5126_v44 = vadd.f32 %v5125_v49, %v5013_v17 }
 0x7d4   : > { %v10856_v14 = vadd.f32 1.0, %v6856_v55  ;;  %vm5736_vm1 = vmor %vm5734_vm11, %vm5735_vm15  ;;  %v5258_v48 = vsub.f32 0.0, %v5167_v52  ;;  %v5396_v39 = vor.u32 1.1754944e-38, %v5395_v51  ;;  %vm5394_vm4 = vcmp.eq.f32.partialorder %v5393_v45, 8.507059e+37 }
 0x7d5   : > { %v5731_v58 = vsub.f32 1.0, %v5730_v56  ;;  %v5239_v37 = vadd.f32 %v5238_v53, %v5126_v44  ;;  %v4943_v59 = vpop.f32.mrf.mxu2 }
 0x7d6   : > { %6861 = vrcp.f32 %v10856_v14  ;;  %v5753_v3 = vand.u32 2147483647, %v10856_v14  ;;  %v5755_v33 = vand.u32 2147483648, %v10856_v14  ;;  %v5292_v23 = vmul.f32 1.442695, %v5258_v48 }
 0x7d7   : > { %v5732_v35 = vmul.f32 %v6854_v24, %v5731_v58  ;;  %v6858_v21 = vpop.eup %6857  ;;  %6863 = vpow2.f32 %v5338_v42  ;;  %vm5749_vm6 = vweird.f32 %v10856_v14  ;;  %v5282_v12 = vsub.f32 0.0, %v5239_v37 }
 0x7d8   : > { %v6860_v62 = vpop.eup %6859  ;;  %v5385_v38 = vmul.f32 %v6858_v21, %v10851_v54  ;;  %vm5390_vm2 = vweird.f32 %v6858_v21  ;;  %vm5754_vm7 = vcmp.eq.f32.partialorder %v5753_v3, 8.507059e+37  ;;  %v5756_v15 = vor.u32 1.1754944e-38, %v5755_v33  ;;  %v11137_v3 = vld [vmem:[#allocation12_spill] sm:$0xff] }
 0x7d9   : > { %v5733_v43 = vadd.f32 %v6854_v24, %v5732_v35  ;;  %v10862_v0 = vadd.f32 1.0, %v6860_v62  ;;  %vm5391_vm3 = vmor %vm5389_vm13, %vm5390_vm2  ;;  %v5018_v11 = vpop.f32.mrf.mxu3  ;;  %v5016_v54 = vadd.f32 %v10821_v30, %v5015_v10  ;;  %v4944_v47 = vadd.f32 %v10821_v30, %v4943_v59 }
 0x7da   : > { %v5386_v22 = vsub.f32 1.0, %v5385_v38  ;;  %v5128_v16 = vpop.f32.mrf.mxu1  ;;  %v5340_v19 = vmul.f32 1.442695, %v5282_v12 }
 0x7db   : > { %v5737_v20 = vsel %vm5736_vm1, %v6854_v24, %v5733_v43  ;;  %6865 = vrcp.f32 %v10862_v0  ;;  %v5408_v61 = vand.u32 2147483647, %v10862_v0  ;;  %v5410_v55 = vand.u32 2147483648, %v10862_v0 }
 0x7dc   : > { %v6862_v50 = vpop.eup %6861  ;;  %v5742_v63 = vsel %vm5739_vm12, %v5741_v26, %v5737_v20  ;;  %v5387_v9 = vmul.f32 %v6858_v21, %v5386_v22  ;;  %v5129_v5 = vadd.f32 %v5128_v16, %v5016_v54  ;;  %vm5404_vm10 = vweird.f32 %v10862_v0  ;;  %v5244_v26 = vpop.f32.mrf.mxu0 }
 0x7dd   : > { %5888 = vst.msk [vmem:[%s10633_s16 + $0xb8] sm:$0xff] %vm5864_vm0, %v5742_v63  ;;  %v5745_v34 = vmul.f32 %v6862_v50, %v10856_v14  ;;  %v6864_v60 = vpop.eup %6863  ;;  %vm5750_vm5 = vweird.f32 %v6862_v50  ;;  %v5057_v14 = vadd.f32 %v10468_v32, %v4944_v47  ;;  %vm5409_vm14 = vcmp.eq.f32.partialorder %v5408_v61, 8.507059e+37 }
 0x7de   : > { %v5388_v40 = vadd.f32 %v6858_v21, %v5387_v9  ;;  %v10875_v31 = vadd.f32 1.0, %v6864_v60  ;;  %vm5751_vm8 = vmor %vm5749_vm6, %vm5750_vm5  ;;  %v5242_v53 = vadd.f32 %v5241_v41, %v5129_v5  ;;  %v4946_v38 = vpop.f32.mrf.mxu2  ;;  %v5019_v63 = vadd.f32 %v10821_v30, %v5018_v11 }
 0x7df   : > { %v5746_v18 = vsub.f32 1.0, %v5745_v34  ;;  %v5170_v1 = vadd.f32 %v11136_v8, %v5057_v14  ;;  %v4947_v22 = vadd.f32 %v10821_v30, %v4946_v38 }
 0x7e0   : > { %v5392_v4 = vsel %vm5391_vm3, %v6858_v21, %v5388_v40  ;;  %6867 = vrcp.f32 %v10875_v31  ;;  %v5411_v21 = vor.u32 1.1754944e-38, %v5410_v55  ;;  %v5770_v32 = vand.u32 2147483648, %v10875_v31 }
 0x7e1   : > { %v5747_v28 = vmul.f32 %v6862_v50, %v5746_v18  ;;  %v6866_v57 = vpop.eup %6865  ;;  %v5397_v13 = vsel %vm5394_vm4, %v5396_v39, %v5392_v4  ;;  %6869 = vpow2.f32 %v5292_v23  ;;  %v5259_v62 = vsub.f32 0.0, %v5170_v1  ;;  %v5021_v17 = vpop.f32.mrf.mxu3 }
 0x7e2   : > { %5865 = vst.msk [vmem:[%s10633_s16] sm:$0xff] %vm5864_vm0, %v5397_v13  ;;  %v5400_v46 = vmul.f32 %v6866_v57, %v10862_v0  ;;  %vm5405_vm9 = vweird.f32 %v6866_v57  ;;  %6871 = vpow2.f32 %v5340_v19  ;;  %v5283_v43 = vsub.f32 0.0, %v5242_v53  ;;  %v5131_v49 = vpop.f32.mrf.mxu1 }
 0x7e3   : > { %v5748_v27 = vadd.f32 %v6862_v50, %v5747_v28  ;;  %vm5406_vm15 = vmor %vm5404_vm10, %vm5405_vm9  ;;  %v5768_v45 = vand.u32 2147483647, %v10875_v31  ;;  %v5060_v48 = vadd.f32 %v10483_v2, %v4947_v22  ;;  %v5132_v44 = vadd.f32 %v5131_v49, %v5019_v63 }
 0x7e4   : > { %v5401_v24 = vsub.f32 1.0, %v5400_v46  ;;  %v5342_v51 = vmul.f32 1.442695, %v5283_v43  ;;  %vm5764_vm1 = vweird.f32 %v10875_v31  ;;  %v5771_v18 = vor.u32 1.1754944e-38, %v5770_v32  ;;  %v5247_v16 = vpop.f32.mrf.mxu0 }
 0x7e5   : > { %v5752_v7 = vsel %vm5751_vm8, %v6862_v50, %v5748_v27  ;;  %v5294_v50 = vmul.f32 1.442695, %v5259_v62  ;;  %v5173_v33 = vadd.f32 %v11137_v3, %v5060_v48  ;;  %v5245_v39 = vadd.f32 %v5244_v26, %v5132_v44 }
 0x7e6   : > { %v5757_v56 = vsel %vm5754_vm7, %v5756_v15, %v5752_v7  ;;  %v5402_v6 = vmul.f32 %v6866_v57, %v5401_v24  ;;  %v6868_v58 = vpop.eup %6867  ;;  %vm5769_vm2 = vcmp.eq.f32.partialorder %v5768_v45, 8.507059e+37  ;;  %v5022_v11 = vadd.f32 %v10821_v30, %v5021_v17 }
 0x7e7   : > { %5889 = vst.msk [vmem:[%s10633_s16 + $0xc0] sm:$0xff] %vm5864_vm0, %v5757_v56  ;;  %v5760_v42 = vmul.f32 %v6868_v58, %v10875_v31  ;;  %v6870_v36 = vpop.eup %6869  ;;  %vm5765_vm11 = vweird.f32 %v6868_v58  ;;  %v5260_v41 = vsub.f32 0.0, %v5173_v33  ;;  %v5284_v2 = vsub.f32 0.0, %v5245_v39  ;;  %v4949_v4 = vpop.f32.mrf.mxu2 }
 0x7e8   : > { %v5403_v35 = vadd.f32 %v6866_v57, %v5402_v6  ;;  %v10893_v20 = vadd.f32 1.0, %v6870_v36  ;;  %v6872_v34 = vpop.eup %6871  ;;  %vm5766_vm12 = vmor %vm5764_vm1, %vm5765_vm11  ;;  %v4950_v31 = vadd.f32 %v10821_v30, %v4949_v4 }
 0x7e9   : > { %v5761_v10 = vsub.f32 1.0, %v5760_v42  ;;  %v10903_v40 = vadd.f32 1.0, %v6872_v34  ;;  %v5296_v59 = vmul.f32 1.442695, %v5260_v41  ;;  %v5344_v61 = vmul.f32 1.442695, %v5284_v2  ;;  %v5024_v55 = vpop.f32.mrf.mxu3 }
 0x7ea   : > { %v5407_v52 = vsel %vm5406_vm15, %v6866_v57, %v5403_v35  ;;  %6873 = vrcp.f32 %v10893_v20  ;;  %v5134_v27 = vpop.f32.mrf.mxu1  ;;  %v5423_v46 = vand.u32 2147483647, %v10893_v20  ;;  %v5425_v54 = vand.u32 2147483648, %v10893_v20 }
 0x7eb   : > { %v5412_v0 = vsel %vm5409_vm14, %v5411_v21, %v5407_v52  ;;  %v5762_v9 = vmul.f32 %v6868_v58, %v5761_v10  ;;  %6875 = vpow2.f32 %v5294_v50  ;;  %v5783_v12 = vand.u32 2147483647, %v10903_v40 }
 0x7ec   : > { %5866 = vst.msk [vmem:[%s10633_s16 + $0x8] sm:$0xff] %vm5864_vm0, %v5412_v0  ;;  %6877 = vpow2.f32 %v5342_v51  ;;  %vm5419_vm13 = vweird.f32 %v10893_v20  ;;  %v5063_v19 = vadd.f32 %v10498_v29, %v4950_v31  ;;  %v5135_v14 = vadd.f32 %v5134_v27, %v5022_v11  ;;  %v5250_v49 = vpop.f32.mrf.mxu0 }
 0x7ed   : > { %v5763_v60 = vadd.f32 %v6868_v58, %v5762_v9  ;;  %6879 = vrcp.f32 %v10903_v40  ;;  %vm10924_vm4 = vcmp.eq.f32.partialorder %v5423_v46, 8.507059e+37  ;;  %v5426_v8 = vor.u32 1.1754944e-38, %v5425_v54 }
 0x7ee   : > { %6881 = vpow2.f32 %v5296_v59  ;;  %vm5779_vm5 = vweird.f32 %v10903_v40  ;;  %v5785_v1 = vand.u32 2147483648, %v10903_v40  ;;  %vm10930_vm6 = vcmp.eq.f32.partialorder %v5783_v12, 8.507059e+37 }
 0x7ef   : > { %v5767_v23 = vsel %vm5766_vm12, %v6868_v58, %v5763_v60  ;;  %v5176_v21 = vadd.f32 %v10331_v25, %v5063_v19  ;;  %v5248_v32 = vadd.f32 %v5247_v16, %v5135_v14  ;;  %v5025_v26 = vadd.f32 %v10821_v30, %v5024_v55 }
 0x7f0   : > { %v5772_v37 = vsel %vm5769_vm2, %v5771_v18, %v5767_v23  ;;  %v6874_v28 = vpop.eup %6873  ;;  %v5786_v22 = vor.u32 1.1754944e-38, %v5785_v1 }
 0x7f1   : > { %5890 = vst.msk [vmem:[%s10633_s16 + $0xc8] sm:$0xff] %vm5864_vm0, %v5772_v37  ;;  %v6876_v57 = vpop.eup %6875  ;;  %v5415_v13 = vmul.f32 %v6874_v28, %v10893_v20  ;;  %vm5420_vm3 = vweird.f32 %v6874_v28  ;;  %v5261_v50 = vsub.f32 0.0, %v5176_v21  ;;  %v5285_v17 = vsub.f32 0.0, %v5248_v32  ;;  %v5027_v3 = vpop.f32.mrf.mxu3 }
 0x7f2   : > { %v6878_v15 = vpop.eup %6877  ;;  %v10915_v47 = vadd.f32 1.0, %v6876_v57  ;;  %vm5421_vm7 = vmor %vm5419_vm13, %vm5420_vm3  ;;  %v5137_v52 = vpop.f32.mrf.mxu1  ;;  %v5028_v31 = vadd.f32 %v10821_v30, %v5027_v3 }
 0x7f3   : > { %v5416_v7 = vsub.f32 1.0, %v5415_v13  ;;  %v10917_v24 = vadd.f32 1.0, %v6878_v15  ;;  %v6880_v56 = vpop.eup %6879  ;;  %v5138_v33 = vadd.f32 %v5137_v52, %v5025_v26  ;;  %v5298_v37 = vmul.f32 1.442695, %v5261_v50 }
 0x7f4   : > { %6883 = vrcp.f32 %v10915_v47  ;;  %v5775_v6 = vmul.f32 %v6880_v56, %v10903_v40  ;;  %v5438_v42 = vand.u32 2147483647, %v10915_v47  ;;  %v5440_v36 = vand.u32 2147483648, %v10915_v47  ;;  %v6882_v62 = vpop.eup %6881  ;;  %v5253_v16 = vpop.f32.mrf.mxu0 }
 0x7f5   : > { %v5417_v5 = vmul.f32 %v6874_v28, %v5416_v7  ;;  %6885 = vrcp.f32 %v10917_v24  ;;  %vm5780_vm8 = vweird.f32 %v6880_v56  ;;  %v10942_v0 = vadd.f32 1.0, %v6882_v62 }
 0x7f6   : > { %v5776_v35 = vsub.f32 1.0, %v5775_v6  ;;  %6887 = vpow2.f32 %v5344_v61  ;;  %vm5434_vm9 = vweird.f32 %v10915_v47  ;;  %vm5781_vm10 = vmor %vm5779_vm5, %vm5780_vm8  ;;  %vm10951_vm14 = vcmp.eq.f32.partialorder %v5438_v42, 8.507059e+37 }
 0x7f7   : > { %v5418_v53 = vadd.f32 %v6874_v28, %v5417_v5  ;;  %v5441_v45 = vor.u32 1.1754944e-38, %v5440_v36  ;;  %6889 = vrcp.f32 %v10942_v0  ;;  %v5798_v18 = vand.u32 2147483647, %v10917_v24 }
 0x7f8   : > { %v5777_v38 = vmul.f32 %v6880_v56, %v5776_v35  ;;  %v5800_v2 = vand.u32 2147483648, %v10917_v24  ;;  %v5346_v4 = vmul.f32 1.442695, %v5285_v17  ;;  %vm5794_vm1 = vweird.f32 %v10917_v24 }
 0x7f9   : > { %v5422_v43 = vsel %vm5421_vm7, %v6874_v28, %v5418_v53  ;;  %v5251_v13 = vadd.f32 %v5250_v49, %v5138_v33  ;;  %vm5799_vm2 = vcmp.eq.f32.partialorder %v5798_v18, 8.507059e+37  ;;  %v5453_v12 = vand.u32 2147483647, %v10942_v0 }
 0x7fa   : > { %v6884_v10 = vpop.eup %6883  ;;  %v5427_v20 = vsel %vm10924_vm4, %v5426_v8, %v5422_v43  ;;  %v5778_v25 = vadd.f32 %v6880_v56, %v5777_v38  ;;  %v5140_v59 = vpop.f32.mrf.mxu1  ;;  %v5801_v30 = vor.u32 1.1754944e-38, %v5800_v2  ;;  %v5455_v14 = vand.u32 2147483648, %v10942_v0 }
 0x7fb   : > { %v6886_v63 = vpop.eup %6885  ;;  %5867 = vst.msk [vmem:[%s10633_s16 + $0x10] sm:$0xff] %vm5864_vm0, %v5427_v20  ;;  %v5430_v51 = vmul.f32 %v6884_v10, %v10915_v47  ;;  %vm5435_vm15 = vweird.f32 %v6884_v10  ;;  %v5141_v15 = vadd.f32 %v5140_v59, %v5028_v31  ;;  %vm5449_vm4 = vweird.f32 %v10942_v0 }
 0x7fc   : > { %v5790_v34 = vmul.f32 %v6886_v63, %v10917_v24  ;;  %v6888_v48 = vpop.eup %6887  ;;  %v5782_v44 = vsel %vm5781_vm10, %v6880_v56, %v5778_v25  ;;  %vm5795_vm11 = vweird.f32 %v6886_v63  ;;  %vm5436_vm12 = vmor %vm5434_vm9, %vm5435_vm15  ;;  %v5286_v24 = vsub.f32 0.0, %v5251_v13 }
 0x7fd   : > { %v5431_v60 = vsub.f32 1.0, %v5430_v51  ;;  %v5787_v40 = vsel %vm10930_vm6, %v5786_v22, %v5782_v44  ;;  %v10960_v23 = vadd.f32 1.0, %v6888_v48  ;;  %v6890_v11 = vpop.eup %6889  ;;  %vm5796_vm13 = vmor %vm5794_vm1, %vm5795_vm11  ;;  %v5254_v61 = vadd.f32 %v5253_v16, %v5141_v15 }
 0x7fe   : > { %v5791_v39 = vsub.f32 1.0, %v5790_v34  ;;  %5891 = vst.msk [vmem:[%s10633_s16 + $0xd0] sm:$0xff] %vm5864_vm0, %v5787_v40  ;;  %v5445_v54 = vmul.f32 %v6890_v11, %v10942_v0  ;;  %v5348_v5 = vmul.f32 1.442695, %v5286_v24  ;;  %vm5450_vm3 = vweird.f32 %v6890_v11 }
 0x7ff   : > { %v5432_v41 = vmul.f32 %v6884_v10, %v5431_v60  ;;  %6891 = vrcp.f32 %v10960_v23  ;;  %v5287_v6 = vsub.f32 0.0, %v5254_v61  ;;  %vm10982_vm5 = vcmp.eq.f32.partialorder %v5453_v12, 8.507059e+37  ;;  %vm5451_vm6 = vmor %vm5449_vm4, %vm5450_vm3 }
 0x800   : > { %v5792_v28 = vmul.f32 %v6886_v63, %v5791_v39  ;;  %6893 = vpow2.f32 %v5298_v37  ;;  %v5446_v56 = vsub.f32 1.0, %v5445_v54  ;;  %v5456_v62 = vor.u32 1.1754944e-38, %v5455_v14 }
 0x801   : > { %v5433_v57 = vadd.f32 %v6884_v10, %v5432_v41  ;;  %6895 = vpow2.f32 %v5346_v4  ;;  %v5350_v32 = vmul.f32 1.442695, %v5287_v6  ;;  %v5813_v43 = vand.u32 2147483647, %v10960_v23 }
 0x802   : > { %v5793_v27 = vadd.f32 %v6886_v63, %v5792_v28  ;;  %v5447_v8 = vmul.f32 %v6890_v11, %v5446_v56  ;;  %6897 = vpow2.f32 %v5348_v5  ;;  %v5815_v38 = vand.u32 2147483648, %v10960_v23 }
 0x803   : > { %v5437_v46 = vsel %vm5436_vm12, %v6884_v10, %v5433_v57  ;;  %vm5809_vm8 = vweird.f32 %v10960_v23  ;;  %vm5814_vm10 = vcmp.eq.f32.partialorder %v5813_v43, 8.507059e+37 }
 0x804   : > { %v5442_v7 = vsel %vm10951_vm14, %v5441_v45, %v5437_v46  ;;  %v5797_v47 = vsel %vm5796_vm13, %v6886_v63, %v5793_v27  ;;  %v5448_v42 = vadd.f32 %v6890_v11, %v5447_v8  ;;  %v5816_v0 = vor.u32 1.1754944e-38, %v5815_v38 }
 0x805   : > { %5868 = vst.msk [vmem:[%s10633_s16 + $0x18] sm:$0xff] %vm5864_vm0, %v5442_v7  ;;  %v5802_v55 = vsel %vm5799_vm2, %v5801_v30, %v5797_v47  ;;  %v6892_v19 = vpop.eup %6891 }
 0x806   : > { %5892 = vst.msk [vmem:[%s10633_s16 + $0xd8] sm:$0xff] %vm5864_vm0, %v5802_v55  ;;  %v6894_v58 = vpop.eup %6893  ;;  %v5805_v1 = vmul.f32 %v6892_v19, %v10960_v23  ;;  %v5452_v26 = vsel %vm5451_vm6, %v6890_v11, %v5448_v42  ;;  %vm5810_vm7 = vweird.f32 %v6892_v19 }
 0x807   : > { %v6896_v53 = vpop.eup %6895  ;;  %v5357_v29 = vadd.f32 1.0, %v6894_v58  ;;  %v5457_v10 = vsel %vm10982_vm5, %v5456_v62, %v5452_v26  ;;  %vm5811_vm9 = vmor %vm5809_vm8, %vm5810_vm7 }
 0x808   : > { %v5806_v36 = vsub.f32 1.0, %v5805_v1  ;;  %v5381_v21 = vadd.f32 1.0, %v6896_v53  ;;  %5869 = vst.msk [vmem:[%s10633_s16 + $0x20] sm:$0xff] %vm5864_vm0, %v5457_v10  ;;  %v6898_v22 = vpop.eup %6897 }
 0x809   : > { %6899 = vrcp.f32 %v5357_v29  ;;  %v5382_v63 = vadd.f32 1.0, %v6898_v22  ;;  %v5470_v48 = vand.u32 2147483648, %v5357_v29  ;;  %v5468_v3 = vand.u32 2147483647, %v5357_v29 }
 0x80a   : > { %v5807_v52 = vmul.f32 %v6892_v19, %v5806_v36  ;;  %6901 = vrcp.f32 %v5381_v21  ;;  %v5830_v33 = vand.u32 2147483648, %v5381_v21  ;;  %v5828_v39 = vand.u32 2147483647, %v5381_v21 }
 0x80b   : > { %6903 = vpow2.f32 %v5350_v32  ;;  %vm5464_vm11 = vweird.f32 %v5357_v29  ;;  %v5471_v41 = vor.u32 1.1754944e-38, %v5470_v48  ;;  %vm5824_vm12 = vweird.f32 %v5381_v21 }
 0x80c   : > { %v5808_v20 = vadd.f32 %v6892_v19, %v5807_v52  ;;  %6905 = vrcp.f32 %v5382_v63  ;;  %vm5469_vm2 = vcmp.eq.f32.partialorder %v5468_v3, 8.507059e+37  ;;  %v5831_v31 = vor.u32 1.1754944e-38, %v5830_v33 }
 0x80d   : > { %vm5829_vm3 = vcmp.eq.f32.partialorder %v5828_v39, 8.507059e+37  ;;  %v5845_v27 = vand.u32 2147483648, %v5382_v63  ;;  %v5843_v30 = vand.u32 2147483647, %v5382_v63  ;;  %vm5839_vm5 = vweird.f32 %v5382_v63 }
 0x80e   : > { %v5812_v50 = vsel %vm5811_vm9, %v6892_v19, %v5808_v20 }
 0x80f   : > { %v6900_v25 = vpop.eup %6899  ;;  %v5817_v51 = vsel %vm5814_vm10, %v5816_v0, %v5812_v50  ;;  %v5846_v16 = vor.u32 1.1754944e-38, %v5845_v27  ;;  %vm5844_vm7 = vcmp.eq.f32.partialorder %v5843_v30, 8.507059e+37 }
 0x810   : > { %v6902_v17 = vpop.eup %6901  ;;  %5893 = vst.msk [vmem:[%s10633_s16 + $0xe0] sm:$0xff] %vm5864_vm0, %v5817_v51  ;;  %v5460_v49 = vmul.f32 %v6900_v25, %v5357_v29  ;;  %vm5465_vm14 = vweird.f32 %v6900_v25 }
 0x811   : > { %v5820_v9 = vmul.f32 %v6902_v17, %v5381_v21  ;;  %v6904_v45 = vpop.eup %6903  ;;  %vm5825_vm15 = vweird.f32 %v6902_v17  ;;  %vm5466_vm1 = vmor %vm5464_vm11, %vm5465_vm14 }
 0x812   : > { %v5461_v34 = vsub.f32 1.0, %v5460_v49  ;;  %v5383_v60 = vadd.f32 1.0, %v6904_v45  ;;  %v6906_v23 = vpop.eup %6905  ;;  %vm5826_vm13 = vmor %vm5824_vm12, %vm5825_vm15 }
 0x813   : > { %v5821_v44 = vsub.f32 1.0, %v5820_v9  ;;  %v5835_v4 = vmul.f32 %v6906_v23, %v5382_v63  ;;  %vm5840_vm4 = vweird.f32 %v6906_v23 }
 0x814   : > { %v5462_v18 = vmul.f32 %v6900_v25, %v5461_v34  ;;  %6907 = vrcp.f32 %v5383_v60  ;;  %vm5841_vm6 = vmor %vm5839_vm5, %vm5840_vm4  ;;  %v5860_v24 = vand.u32 2147483648, %v5383_v60  ;;  %v5858_v56 = vand.u32 2147483647, %v5383_v60 }
 0x815   : > { %v5822_v40 = vmul.f32 %v6902_v17, %v5821_v44  ;;  %v5836_v59 = vsub.f32 1.0, %v5835_v4  ;;  %vm5854_vm9 = vweird.f32 %v5383_v60 }
 0x816   : > { %v5463_v37 = vadd.f32 %v6900_v25, %v5462_v18  ;;  %v5861_v14 = vor.u32 1.1754944e-38, %v5860_v24  ;;  %vm5859_vm14 = vcmp.eq.f32.partialorder %v5858_v56, 8.507059e+37 }
 0x817   : > { %v5823_v2 = vadd.f32 %v6902_v17, %v5822_v40  ;;  %v5837_v46 = vmul.f32 %v6906_v23, %v5836_v59 }
 0x818   : > { %v5467_v28 = vsel %vm5466_vm1, %v6900_v25, %v5463_v37 }
 0x819   : > { %v5472_v57 = vsel %vm5469_vm2, %v5471_v41, %v5467_v28  ;;  %v5827_v13 = vsel %vm5826_vm13, %v6902_v17, %v5823_v2  ;;  %v5838_v12 = vadd.f32 %v6906_v23, %v5837_v46 }
 0x81a   : > { %5870 = vst.msk [vmem:[%s10633_s16 + $0x28] sm:$0xff] %vm5864_vm0, %v5472_v57  ;;  %v5832_v11 = vsel %vm5829_vm3, %v5831_v31, %v5827_v13  ;;  %v6908_v15 = vpop.eup %6907 }
 0x81b   : > { %5894 = vst.msk [vmem:[%s10633_s16 + $0xe8] sm:$0xff] %vm5864_vm0, %v5832_v11  ;;  %v5850_v54 = vmul.f32 %v6908_v15, %v5383_v60  ;;  %v5842_v47 = vsel %vm5841_vm6, %v6906_v23, %v5838_v12  ;;  %vm5855_vm8 = vweird.f32 %v6908_v15 }
 0x81c   : > { %v5847_v61 = vsel %vm5844_vm7, %v5846_v16, %v5842_v47  ;;  %vm5856_vm10 = vmor %vm5854_vm9, %vm5855_vm8 }
 0x81d   : > { %v5851_v7 = vsub.f32 1.0, %v5850_v54  ;;  %5895 = vst.msk [vmem:[%s10633_s16 + $0xf0] sm:$0xff] %vm5864_vm0, %v5847_v61 }
 0x81f   : > { %v5852_v55 = vmul.f32 %v6908_v15, %v5851_v7 }
 0x821   : > { %v5853_v19 = vadd.f32 %v6908_v15, %v5852_v55 }
 0x823   : > { %v5857_v5 = vsel %vm5856_vm10, %v6908_v15, %v5853_v19 }
 0x824   : > { %v5862_v6 = vsel %vm5859_vm14, %v5861_v14, %v5857_v5 }
 0x825   : > { %5896 = vst.msk [vmem:[%s10633_s16 + $0xf8] sm:$0xff] %vm5864_vm0, %v5862_v6 }
 0x826 PF: > { %s25_s27 = sadd.s32 1, %s6916_s27  }
 0x827   : > { %p22_p4 = scmp.ge.s32.totalorder %s25_s27, 4  }
 0x829   :  { %24 = sbr.rel (!%p22_p4) target bundleno = 3 (0x3), region = 130 }

</bundles_post_ra>
